<compile_context>
chip_gen: v7x
topology: tpu7x:2x2x1
jax: 0.10.0
libtpu: 0.0.40
codegen_flags: <defaults>
</compile_context>

<pallas_src>
import numpy as np

import jax
import jax.numpy as jnp
from jax.experimental import pallas as pl
from jax.experimental.pallas import tpu as pltpu


# ----------------------------------------------------------------------------
# Canvas geometry
# ----------------------------------------------------------------------------
IMG = 28                     # input spatial size (architecture requires 28x28)
P_REAL = IMG * IMG           # 784 real canvas positions
P = 896                      # lane-padded canvas width used for compute (7 * 128)
OFF = 128                    # left margin (covers negative taps of the padded conv7)
CANW = OFF + P + 128         # 1152-lane scratch canvas
CMAX = 16                    # max channel count in the net

# tap offset lists (di-major, matching the (kh,kw)-major weight layout below)
S1 = tuple(IMG * di + dj for di in range(3) for dj in range(3))                      # stride-1 3x3
S2 = tuple(2 * IMG * di + 2 * dj for di in range(3) for dj in range(3))              # post-pool (dilated by 2)
S3 = tuple(2 * IMG * (di - 1) + 2 * (dj - 1) for di in range(3) for dj in range(3))  # post-pool, padding=1


# ----------------------------------------------------------------------------
# Fused whole-network kernel (one grid step == one image)
# ----------------------------------------------------------------------------
def _net_a_kernel(x_ref, mask_ref,
                  w1_ref, w2_ref, w3_ref, w4_ref, w5_ref, w6_ref, w7_ref, w8_ref,
                  sb1_ref, sb2_ref, sb4_ref, sb5_ref, sb6_ref, sb7_ref,
                  o_ref, buf_a, buf_b):
    # Zero both canvases: the left/right margins must read as zero for the
    # padded conv7 taps, and this also keeps all "invalid region" garbage finite.
    zeros = jnp.zeros((CMAX, CANW), jnp.float32)
    buf_a[...] = zeros
    buf_b[...] = zeros

    # Place the (1-channel) input image on canvas A.
    buf_a[0:1, OFF:OFF + P_REAL] = x_ref[0]

    mask = mask_ref[...]          # (1, P) 0/1 mask of the 36 valid 6x6 GAP positions

    def conv3x3(src, w_ref, cin, shifts):
        # 3x3 conv as 9 shifted canvas slices, each a (Cout,Cin)@(Cin,P) matmul.
        acc = None
        for t, s in enumerate(shifts):
            a = src[0:cin, OFF + s:OFF + s + P]          # (cin, P)
            w = w_ref[t]                                 # (cout, cin)
            if cin == 1:
                c = w * a                                # outer-product broadcast (VPU)
            else:
                c = jnp.dot(w, a, preferred_element_type=jnp.float32)
            acc = c if acc is None else acc + c
        return acc

    def relu_bn(z, sb_ref):
        # PyTorch block order: Conv -> ReLU -> BatchNorm (inference affine).
        z = jnp.maximum(z, 0.0)
        return z * sb_ref[0] + sb_ref[1]                 # (cout,1) broadcast along lanes

    # convblock1: 1 -> 16, 3x3, relu, bn            (valid 26x26)
    y = relu_bn(conv3x3(buf_a, w1_ref, 1, S1), sb1_ref)
    buf_b[0:16, OFF:OFF + P] = y
    # convblock2: 16 -> 16, 3x3, relu, bn           (valid 24x24)
    y = relu_bn(conv3x3(buf_b, w2_ref, 16, S1), sb2_ref)
    buf_a[0:16, OFF:OFF + P] = y
    # convblock3: 16 -> 10, 1x1                     (valid 24x24)
    y = jnp.dot(w3_ref[...], buf_a[0:16, OFF:OFF + P],
                preferred_element_type=jnp.float32)
    buf_b[0:10, OFF:OFF + P] = y
    # maxpool 2x2 stride 2: result kept at the even (dilated) canvas positions
    y = jnp.maximum(
        jnp.maximum(buf_b[0:10, OFF:OFF + P],
                    buf_b[0:10, OFF + 1:OFF + 1 + P]),
        jnp.maximum(buf_b[0:10, OFF + IMG:OFF + IMG + P],
                    buf_b[0:10, OFF + IMG + 1:OFF + IMG + 1 + P]))
    buf_a[0:10, OFF:OFF + P] = y
    # convblock4: 10 -> 16, 3x3 (dilated taps), relu, bn   (valid 10x10)
    y = relu_bn(conv3x3(buf_a, w4_ref, 10, S2), sb4_ref)
    buf_b[0:16, OFF:OFF + P] = y
    # convblock5: 16 -> 10, relu, bn                        (valid 8x8)
    y = relu_bn(conv3x3(buf_b, w5_ref, 16, S2), sb5_ref)
    buf_a[0:10, OFF:OFF + P] = y
    # convblock6: 10 -> 10, relu, bn                        (valid 6x6)
    # Zero everything outside the 6x6 valid region so that convblock7's
    # padding=1 taps read exact zeros.
    y = relu_bn(conv3x3(buf_a, w6_ref, 10, S2), sb6_ref)
    y = jnp.where(mask > 0.0, y, 0.0)
    buf_b[0:10, OFF:OFF + P] = y
    # convblock7: 10 -> 10, padding=1, relu, bn             (valid 6x6)
    y7 = relu_bn(conv3x3(buf_b, w7_ref, 10, S3), sb7_ref)
    # GAP(6x6) + convblock8 (1x1): apply the 1x1 conv across the canvas, then
    # sum the 36 masked positions (linear ops commute with the average).
    y7 = jnp.where(mask > 0.0, y7, 0.0)
    y8 = jnp.dot(w8_ref[...], y7, preferred_element_type=jnp.float32)   # (10, P)
    g = jnp.sum(y8, axis=1, keepdims=True) * (1.0 / 36.0)               # (10, 1)
    # log_softmax over the 10 classes
    m = jnp.max(g, axis=0, keepdims=True)
    e = jnp.exp(g - m)
    lse = jnp.log(jnp.sum(e, axis=0, keepdims=True))
    o_ref[0] = g - m - lse


# ----------------------------------------------------------------------------
# Host-side parameter layout helpers (tiny, plain-JAX)
# ----------------------------------------------------------------------------
def _prep_w3x3(w):
    # torch (Cout, Cin, 3, 3) -> (9, Cout, Cin), tap index t = 3*di + dj
    co, ci, kh, kw = w.shape
    return jnp.transpose(w, (2, 3, 0, 1)).reshape(kh * kw, co, ci)


def _prep_w1x1(w):
    return w.reshape(w.shape[0], w.shape[1])


def _bn_scale_shift(bn, eps=1e-5):
    scale = bn["gamma"] / jnp.sqrt(bn["var"] + eps)
    shift = bn["beta"] - bn["mean"] * scale
    c = scale.shape[0]
    return jnp.stack([scale, shift], axis=0).reshape(2, c, 1).astype(jnp.float32)


def _valid6_mask():
    # 1.0 at canvas positions (r, c) with r = 2h, c = 2w, h,w in [0,6): the 36
    # valid positions of the 6x6 feature map feeding GAP (and conv7's input).
    idx = np.arange(P)
    r, c = idx // IMG, idx % IMG
    m = (r < 12) & (c < 12) & (r % 2 == 0) & (c % 2 == 0)
    return jnp.asarray(m.astype(np.float32).reshape(1, P))


# ----------------------------------------------------------------------------
# Forward pass wrapper
# ----------------------------------------------------------------------------
def net_a_forward(x_nchw, params):
    x = x_nchw.astype(jnp.float32)
    n = x.shape[0]
    x_flat = x.reshape(n, 1, P_REAL)

    w1 = _prep_w3x3(params["w1"]); w2 = _prep_w3x3(params["w2"])
    w3 = _prep_w1x1(params["w3"]); w4 = _prep_w3x3(params["w4"])
    w5 = _prep_w3x3(params["w5"]); w6 = _prep_w3x3(params["w6"])
    w7 = _prep_w3x3(params["w7"]); w8 = _prep_w1x1(params["w8"])
    sb1 = _bn_scale_shift(params["bn1"]); sb2 = _bn_scale_shift(params["bn2"])
    sb4 = _bn_scale_shift(params["bn4"]); sb5 = _bn_scale_shift(params["bn5"])
    sb6 = _bn_scale_shift(params["bn6"]); sb7 = _bn_scale_shift(params["bn7"])
    mask = _valid6_mask()

    def full(shape):
        r = len(shape)
        return pl.BlockSpec(shape, lambda i, _r=r: (0,) * _r)

    out = pl.pallas_call(
        _net_a_kernel,
        out_shape=jax.ShapeDtypeStruct((n, 10, 1), jnp.float32),
        grid=(n,),
        in_specs=[
            pl.BlockSpec((1, 1, P_REAL), lambda i: (i, 0, 0)),   # image
            full(mask.shape),
            full(w1.shape), full(w2.shape), full(w3.shape), full(w4.shape),
            full(w5.shape), full(w6.shape), full(w7.shape), full(w8.shape),
            full(sb1.shape), full(sb2.shape), full(sb4.shape),
            full(sb5.shape), full(sb6.shape), full(sb7.shape),
        ],
        out_specs=pl.BlockSpec((1, 10, 1), lambda i: (i, 0, 0)),
        scratch_shapes=[pltpu.VMEM((CMAX, CANW), jnp.float32),
                        pltpu.VMEM((CMAX, CANW), jnp.float32)],
        compiler_params=pltpu.CompilerParams(
            dimension_semantics=("parallel",)),
    )(x_flat, mask, w1, w2, w3, w4, w5, w6, w7, w8,
      sb1, sb2, sb4, sb5, sb6, sb7)
    return out.reshape(n, 10)


# ----------------------------------------------------------------------------
# Plain-JAX reference (same inference semantics) for a correctness check
# ----------------------------------------------------------------------------
def net_a_reference(x_nchw, params, eps=1e-5):
    def conv(x, w, pad=0):
        return jax.lax.conv_general_dilated(
            x, w, window_strides=(1, 1), padding=((pad, pad), (pad, pad)),
            dimension_numbers=("NCHW", "OIHW", "NCHW"),
            precision=jax.lax.Precision.HIGHEST)

    def bn(x, p):
        scale = p["gamma"] / jnp.sqrt(p["var"] + eps)
        shift = p["beta"] - p["mean"] * scale
        return x * scale[None, :, None, None] + shift[None, :, None, None]

    x = x_nchw.astype(jnp.float32)
    x = bn(jax.nn.relu(conv(x, params["w1"])), params["bn1"])
    x = bn(jax.nn.relu(conv(x, params["w2"])), params["bn2"])
    x = conv(x, params["w3"])
    x = jax.lax.reduce_window(x, -jnp.inf, jax.lax.max,
                              (1, 1, 2, 2), (1, 1, 2, 2), "VALID")
    x = bn(jax.nn.relu(conv(x, params["w4"])), params["bn4"])
    x = bn(jax.nn.relu(conv(x, params["w5"])), params["bn5"])
    x = bn(jax.nn.relu(conv(x, params["w6"])), params["bn6"])
    x = bn(jax.nn.relu(conv(x, params["w7"], pad=1)), params["bn7"])
    x = jnp.mean(x, axis=(2, 3), keepdims=True)
    x = conv(x, params["w8"]).reshape(-1, 10)
    return jax.nn.log_softmax(x, axis=-1)


# ----------------------------------------------------------------------------
# Deterministic parameter init (BatchNorm uses its default/inference stats)
# ----------------------------------------------------------------------------
def init_params():
    key = jax.random.PRNGKey(0)
    shapes = {
        "w1": (16, 1, 3, 3),
        "w2": (16, 16, 3, 3),
        "w3": (10, 16, 1, 1),
        "w4": (16, 10, 3, 3),
        "w5": (10, 16, 3, 3),
        "w6": (10, 10, 3, 3),
        "w7": (10, 10, 3, 3),
        "w8": (10, 10, 1, 1),
    }
    params = {}
    for name, shp in shapes.items():
        key, sub = jax.random.split(key)
        fan_in = shp[1] * shp[2] * shp[3]
        params[name] = (jax.random.normal(sub, shp, jnp.float32)
                        * (2.0 / fan_in) ** 0.5)
    for c, name in [(16, "bn1"), (16, "bn2"), (16, "bn4"), (10, "bn5"),
                    (10, "bn6"), (10, "bn7")]:
        params[name] = dict(
            gamma=jnp.ones((c,), jnp.float32),
            beta=jnp.zeros((c,), jnp.float32),
            mean=jnp.zeros((c,), jnp.float32),
            var=jnp.ones((c,), jnp.float32),
        )
    return params


if __name__ == "__main__":
    params = init_params()
    key = jax.random.PRNGKey(0)
    x = jax.random.normal(key, (2, 1, 28, 28), jnp.float32)   # NCHW like PyTorch

    out = jax.jit(net_a_forward)(x, params)
    out = jax.block_until_ready(out)

    assert out.shape == (2, 10)
    # log_softmax rows must (approximately) exponentiate-sum to 1
    assert bool(jnp.all(jnp.abs(jnp.sum(jnp.exp(out), axis=-1) - 1.0) < 1e-4))
    # correctness vs a plain-JAX reference of the same (inference) semantics
    ref = jax.jit(net_a_reference)(x, params)
    assert bool(jnp.max(jnp.abs(out - ref)) < 5e-2)

    print("KERNEL_OK")
</pallas_src>

<mosaic_0001>
module attributes {stable_mosaic.version = 11 : i64} {
  func.func @_net_a_kernel(%arg0: i32, %arg1: memref<1x1x784xf32, #tpu.memory_space<vmem>>, %arg2: memref<1x896xf32, #tpu.memory_space<vmem>>, %arg3: memref<9x16x1xf32, #tpu.memory_space<vmem>>, %arg4: memref<9x16x16xf32, #tpu.memory_space<vmem>>, %arg5: memref<10x16xf32, #tpu.memory_space<vmem>>, %arg6: memref<9x16x10xf32, #tpu.memory_space<vmem>>, %arg7: memref<9x10x16xf32, #tpu.memory_space<vmem>>, %arg8: memref<9x10x10xf32, #tpu.memory_space<vmem>>, %arg9: memref<9x10x10xf32, #tpu.memory_space<vmem>>, %arg10: memref<10x10xf32, #tpu.memory_space<vmem>>, %arg11: memref<2x16x1xf32, #tpu.memory_space<vmem>>, %arg12: memref<2x16x1xf32, #tpu.memory_space<vmem>>, %arg13: memref<2x16x1xf32, #tpu.memory_space<vmem>>, %arg14: memref<2x10x1xf32, #tpu.memory_space<vmem>>, %arg15: memref<2x10x1xf32, #tpu.memory_space<vmem>>, %arg16: memref<2x10x1xf32, #tpu.memory_space<vmem>>, %arg17: memref<1x10x1xf32, #tpu.memory_space<vmem>>, %arg18: memref<16x1152xf32, #tpu.memory_space<vmem>>, %arg19: memref<16x1152xf32, #tpu.memory_space<vmem>>) attributes {dimension_semantics = [#tpu.dimension_semantics<parallel>], iteration_bounds = array<i64: 2>, scalar_prefetch = 0 : i64, scratch_operands = 2 : i64, tpu.core_type = #tpu.core_type<tc>, window_params = [{transform_indices = @transform_0, window_bounds = array<i64: 1, 1, 784>}, {pipeline_mode = #tpu.pipeline_mode<synchronous>, transform_indices = @transform_1, window_bounds = array<i64: 1, 896>}, {pipeline_mode = #tpu.pipeline_mode<synchronous>, transform_indices = @transform_2, window_bounds = array<i64: 9, 16, 1>}, {pipeline_mode = #tpu.pipeline_mode<synchronous>, transform_indices = @transform_3, window_bounds = array<i64: 9, 16, 16>}, {pipeline_mode = #tpu.pipeline_mode<synchronous>, transform_indices = @transform_4, window_bounds = array<i64: 10, 16>}, {pipeline_mode = #tpu.pipeline_mode<synchronous>, transform_indices = @transform_5, window_bounds = array<i64: 9, 16, 10>}, {pipeline_mode = #tpu.pipeline_mode<synchronous>, transform_indices = @transform_6, window_bounds = array<i64: 9, 10, 16>}, {pipeline_mode = #tpu.pipeline_mode<synchronous>, transform_indices = @transform_7, window_bounds = array<i64: 9, 10, 10>}, {pipeline_mode = #tpu.pipeline_mode<synchronous>, transform_indices = @transform_8, window_bounds = array<i64: 9, 10, 10>}, {pipeline_mode = #tpu.pipeline_mode<synchronous>, transform_indices = @transform_9, window_bounds = array<i64: 10, 10>}, {pipeline_mode = #tpu.pipeline_mode<synchronous>, transform_indices = @transform_10, window_bounds = array<i64: 2, 16, 1>}, {pipeline_mode = #tpu.pipeline_mode<synchronous>, transform_indices = @transform_11, window_bounds = array<i64: 2, 16, 1>}, {pipeline_mode = #tpu.pipeline_mode<synchronous>, transform_indices = @transform_12, window_bounds = array<i64: 2, 16, 1>}, {pipeline_mode = #tpu.pipeline_mode<synchronous>, transform_indices = @transform_13, window_bounds = array<i64: 2, 10, 1>}, {pipeline_mode = #tpu.pipeline_mode<synchronous>, transform_indices = @transform_14, window_bounds = array<i64: 2, 10, 1>}, {pipeline_mode = #tpu.pipeline_mode<synchronous>, transform_indices = @transform_15, window_bounds = array<i64: 2, 10, 1>}, {transform_indices = @transform_16, window_bounds = array<i64: 1, 10, 1>}]} {
    %cst = arith.constant 0.000000e+00 : f32
    %0 = vector.broadcast %cst : f32 to vector<16x1152xf32>
    %c0 = arith.constant 0 : index
    %c0_0 = arith.constant 0 : index
    %1 = vector.load %arg18[%c0, %c0_0] : memref<16x1152xf32, #tpu.memory_space<vmem>>, vector<16x1152xf32>
    tpu.vector_store %arg18[%c0, %c0_0], %0 {strides = array<i32>} : memref<16x1152xf32, #tpu.memory_space<vmem>>, vector<16x1152xf32>,
    %c0_1 = arith.constant 0 : index
    %c0_2 = arith.constant 0 : index
    %2 = vector.load %arg19[%c0_1, %c0_2] : memref<16x1152xf32, #tpu.memory_space<vmem>>, vector<16x1152xf32>
    tpu.vector_store %arg19[%c0_1, %c0_2], %0 {strides = array<i32>} : memref<16x1152xf32, #tpu.memory_space<vmem>>, vector<16x1152xf32>,
    %c0_3 = arith.constant 0 : index
    %c0_4 = arith.constant 0 : index
    %c0_5 = arith.constant 0 : index
    %3 = vector.load %arg1[%c0_3, %c0_4, %c0_5] : memref<1x1x784xf32, #tpu.memory_space<vmem>>, vector<1x1x784xf32>
    %4 = vector.shape_cast %3 : vector<1x1x784xf32> to vector<1x784xf32>
    %c0_6 = arith.constant 0 : index
    %c128 = arith.constant 128 : index
    %5 = vector.load %arg18[%c0_6, %c128] : memref<16x1152xf32, #tpu.memory_space<vmem>>, vector<1x784xf32>
    tpu.vector_store %arg18[%c0_6, %c128], %4 {strides = array<i32>} : memref<16x1152xf32, #tpu.memory_space<vmem>>, vector<1x784xf32>,
    %c0_7 = arith.constant 0 : index
    %c0_8 = arith.constant 0 : index
    %6 = vector.load %arg2[%c0_7, %c0_8] : memref<1x896xf32, #tpu.memory_space<vmem>>, vector<1x896xf32>
    %c0_9 = arith.constant 0 : index
    %c128_10 = arith.constant 128 : index
    %7 = vector.load %arg18[%c0_9, %c128_10] : memref<16x1152xf32, #tpu.memory_space<vmem>>, vector<1x896xf32>
    %c0_11 = arith.constant 0 : index
    %c0_12 = arith.constant 0 : index
    %c0_13 = arith.constant 0 : index
    %8 = vector.load %arg3[%c0_11, %c0_12, %c0_13] : memref<9x16x1xf32, #tpu.memory_space<vmem>>, vector<1x16x1xf32>
    %9 = vector.shape_cast %8 : vector<1x16x1xf32> to vector<16x1xf32>
    %10 = vector.broadcast %9 : vector<16x1xf32> to vector<16x896xf32>
    %11 = vector.broadcast %7 : vector<1x896xf32> to vector<16x896xf32>
    %12 = arith.mulf %10, %11 : vector<16x896xf32>
    %c0_14 = arith.constant 0 : index
    %c129 = arith.constant 129 : index
    %13 = vector.load %arg18[%c0_14, %c129] : memref<16x1152xf32, #tpu.memory_space<vmem>>, vector<1x896xf32>
    %c1 = arith.constant 1 : index
    %c0_15 = arith.constant 0 : index
    %c0_16 = arith.constant 0 : index
    %14 = vector.load %arg3[%c1, %c0_15, %c0_16] : memref<9x16x1xf32, #tpu.memory_space<vmem>>, vector<1x16x1xf32>
    %15 = vector.shape_cast %14 : vector<1x16x1xf32> to vector<16x1xf32>
    %16 = vector.broadcast %15 : vector<16x1xf32> to vector<16x896xf32>
    %17 = vector.broadcast %13 : vector<1x896xf32> to vector<16x896xf32>
    %18 = arith.mulf %16, %17 : vector<16x896xf32>
    %19 = arith.addf %12, %18 : vector<16x896xf32>
    %c0_17 = arith.constant 0 : index
    %c130 = arith.constant 130 : index
    %20 = vector.load %arg18[%c0_17, %c130] : memref<16x1152xf32, #tpu.memory_space<vmem>>, vector<1x896xf32>
    %c2 = arith.constant 2 : index
    %c0_18 = arith.constant 0 : index
    %c0_19 = arith.constant 0 : index
    %21 = vector.load %arg3[%c2, %c0_18, %c0_19] : memref<9x16x1xf32, #tpu.memory_space<vmem>>, vector<1x16x1xf32>
    %22 = vector.shape_cast %21 : vector<1x16x1xf32> to vector<16x1xf32>
    %23 = vector.broadcast %22 : vector<16x1xf32> to vector<16x896xf32>
    %24 = vector.broadcast %20 : vector<1x896xf32> to vector<16x896xf32>
    %25 = arith.mulf %23, %24 : vector<16x896xf32>
    %26 = arith.addf %19, %25 : vector<16x896xf32>
    %c0_20 = arith.constant 0 : index
    %c156 = arith.constant 156 : index
    %27 = vector.load %arg18[%c0_20, %c156] : memref<16x1152xf32, #tpu.memory_space<vmem>>, vector<1x896xf32>
    %c3 = arith.constant 3 : index
    %c0_21 = arith.constant 0 : index
    %c0_22 = arith.constant 0 : index
    %28 = vector.load %arg3[%c3, %c0_21, %c0_22] : memref<9x16x1xf32, #tpu.memory_space<vmem>>, vector<1x16x1xf32>
    %29 = vector.shape_cast %28 : vector<1x16x1xf32> to vector<16x1xf32>
    %30 = vector.broadcast %29 : vector<16x1xf32> to vector<16x896xf32>
    %31 = vector.broadcast %27 : vector<1x896xf32> to vector<16x896xf32>
    %32 = arith.mulf %30, %31 : vector<16x896xf32>
    %33 = arith.addf %26, %32 : vector<16x896xf32>
    %c0_23 = arith.constant 0 : index
    %c157 = arith.constant 157 : index
    %34 = vector.load %arg18[%c0_23, %c157] : memref<16x1152xf32, #tpu.memory_space<vmem>>, vector<1x896xf32>
    %c4 = arith.constant 4 : index
    %c0_24 = arith.constant 0 : index
    %c0_25 = arith.constant 0 : index
    %35 = vector.load %arg3[%c4, %c0_24, %c0_25] : memref<9x16x1xf32, #tpu.memory_space<vmem>>, vector<1x16x1xf32>
    %36 = vector.shape_cast %35 : vector<1x16x1xf32> to vector<16x1xf32>
    %37 = vector.broadcast %36 : vector<16x1xf32> to vector<16x896xf32>
    %38 = vector.broadcast %34 : vector<1x896xf32> to vector<16x896xf32>
    %39 = arith.mulf %37, %38 : vector<16x896xf32>
    %40 = arith.addf %33, %39 : vector<16x896xf32>
    %c0_26 = arith.constant 0 : index
    %c158 = arith.constant 158 : index
    %41 = vector.load %arg18[%c0_26, %c158] : memref<16x1152xf32, #tpu.memory_space<vmem>>, vector<1x896xf32>
    %c5 = arith.constant 5 : index
    %c0_27 = arith.constant 0 : index
    %c0_28 = arith.constant 0 : index
    %42 = vector.load %arg3[%c5, %c0_27, %c0_28] : memref<9x16x1xf32, #tpu.memory_space<vmem>>, vector<1x16x1xf32>
    %43 = vector.shape_cast %42 : vector<1x16x1xf32> to vector<16x1xf32>
    %44 = vector.broadcast %43 : vector<16x1xf32> to vector<16x896xf32>
    %45 = vector.broadcast %41 : vector<1x896xf32> to vector<16x896xf32>
    %46 = arith.mulf %44, %45 : vector<16x896xf32>
    %47 = arith.addf %40, %46 : vector<16x896xf32>
    %c0_29 = arith.constant 0 : index
    %c184 = arith.constant 184 : index
    %48 = vector.load %arg18[%c0_29, %c184] : memref<16x1152xf32, #tpu.memory_space<vmem>>, vector<1x896xf32>
    %c6 = arith.constant 6 : index
    %c0_30 = arith.constant 0 : index
    %c0_31 = arith.constant 0 : index
    %49 = vector.load %arg3[%c6, %c0_30, %c0_31] : memref<9x16x1xf32, #tpu.memory_space<vmem>>, vector<1x16x1xf32>
    %50 = vector.shape_cast %49 : vector<1x16x1xf32> to vector<16x1xf32>
    %51 = vector.broadcast %50 : vector<16x1xf32> to vector<16x896xf32>
    %52 = vector.broadcast %48 : vector<1x896xf32> to vector<16x896xf32>
    %53 = arith.mulf %51, %52 : vector<16x896xf32>
    %54 = arith.addf %47, %53 : vector<16x896xf32>
    %c0_32 = arith.constant 0 : index
    %c185 = arith.constant 185 : index
    %55 = vector.load %arg18[%c0_32, %c185] : memref<16x1152xf32, #tpu.memory_space<vmem>>, vector<1x896xf32>
    %c7 = arith.constant 7 : index
    %c0_33 = arith.constant 0 : index
    %c0_34 = arith.constant 0 : index
    %56 = vector.load %arg3[%c7, %c0_33, %c0_34] : memref<9x16x1xf32, #tpu.memory_space<vmem>>, vector<1x16x1xf32>
    %57 = vector.shape_cast %56 : vector<1x16x1xf32> to vector<16x1xf32>
    %58 = vector.broadcast %57 : vector<16x1xf32> to vector<16x896xf32>
    %59 = vector.broadcast %55 : vector<1x896xf32> to vector<16x896xf32>
    %60 = arith.mulf %58, %59 : vector<16x896xf32>
    %61 = arith.addf %54, %60 : vector<16x896xf32>
    %c0_35 = arith.constant 0 : index
    %c186 = arith.constant 186 : index
    %62 = vector.load %arg18[%c0_35, %c186] : memref<16x1152xf32, #tpu.memory_space<vmem>>, vector<1x896xf32>
    %c8 = arith.constant 8 : index
    %c0_36 = arith.constant 0 : index
    %c0_37 = arith.constant 0 : index
    %63 = vector.load %arg3[%c8, %c0_36, %c0_37] : memref<9x16x1xf32, #tpu.memory_space<vmem>>, vector<1x16x1xf32>
    %64 = vector.shape_cast %63 : vector<1x16x1xf32> to vector<16x1xf32>
    %65 = vector.broadcast %64 : vector<16x1xf32> to vector<16x896xf32>
    %66 = vector.broadcast %62 : vector<1x896xf32> to vector<16x896xf32>
    %67 = arith.mulf %65, %66 : vector<16x896xf32>
    %68 = arith.addf %61, %67 : vector<16x896xf32>
    %cst_38 = arith.constant 0.000000e+00 : f32
    %69 = vector.broadcast %cst_38 : f32 to vector<16x896xf32>
    %70 = arith.maximumf %68, %69 : vector<16x896xf32>
    %c0_39 = arith.constant 0 : index
    %c0_40 = arith.constant 0 : index
    %c0_41 = arith.constant 0 : index
    %71 = vector.load %arg11[%c0_39, %c0_40, %c0_41] : memref<2x16x1xf32, #tpu.memory_space<vmem>>, vector<1x16x1xf32>
    %72 = vector.shape_cast %71 : vector<1x16x1xf32> to vector<16x1xf32>
    %73 = vector.broadcast %72 : vector<16x1xf32> to vector<16x896xf32>
    %74 = arith.mulf %70, %73 : vector<16x896xf32>
    %c1_42 = arith.constant 1 : index
    %c0_43 = arith.constant 0 : index
    %c0_44 = arith.constant 0 : index
    %75 = vector.load %arg11[%c1_42, %c0_43, %c0_44] : memref<2x16x1xf32, #tpu.memory_space<vmem>>, vector<1x16x1xf32>
    %76 = vector.shape_cast %75 : vector<1x16x1xf32> to vector<16x1xf32>
    %77 = vector.broadcast %76 : vector<16x1xf32> to vector<16x896xf32>
    %78 = arith.addf %74, %77 : vector<16x896xf32>
    %c0_45 = arith.constant 0 : index
    %c128_46 = arith.constant 128 : index
    %79 = vector.load %arg19[%c0_45, %c128_46] : memref<16x1152xf32, #tpu.memory_space<vmem>>, vector<16x896xf32>
    tpu.vector_store %arg19[%c0_45, %c128_46], %78 {strides = array<i32>} : memref<16x1152xf32, #tpu.memory_space<vmem>>, vector<16x896xf32>,
    %c0_47 = arith.constant 0 : index
    %c128_48 = arith.constant 128 : index
    %80 = vector.load %arg19[%c0_47, %c128_48] : memref<16x1152xf32, #tpu.memory_space<vmem>>, vector<16x896xf32>
    %c0_49 = arith.constant 0 : index
    %c0_50 = arith.constant 0 : index
    %c0_51 = arith.constant 0 : index
    %81 = vector.load %arg4[%c0_49, %c0_50, %c0_51] : memref<9x16x16xf32, #tpu.memory_space<vmem>>, vector<1x16x16xf32>
    %82 = vector.shape_cast %81 : vector<1x16x16xf32> to vector<16x16xf32>
    %cst_52 = arith.constant dense<0.000000e+00> : vector<16x896xf32>
    %83 = tpu.matmul %82, %80, %cst_52 {dimension_numbers = #tpu.dot_dimension_numbers<[1], [0], [0], [1], [0, 0, 1, 1], [], []>} : vector<16x16xf32>, vector<16x896xf32>, vector<16x896xf32> -> vector<16x896xf32>
    %c0_53 = arith.constant 0 : index
    %c129_54 = arith.constant 129 : index
    %84 = vector.load %arg19[%c0_53, %c129_54] : memref<16x1152xf32, #tpu.memory_space<vmem>>, vector<16x896xf32>
    %c1_55 = arith.constant 1 : index
    %c0_56 = arith.constant 0 : index
    %c0_57 = arith.constant 0 : index
    %85 = vector.load %arg4[%c1_55, %c0_56, %c0_57] : memref<9x16x16xf32, #tpu.memory_space<vmem>>, vector<1x16x16xf32>
    %86 = vector.shape_cast %85 : vector<1x16x16xf32> to vector<16x16xf32>
    %cst_58 = arith.constant dense<0.000000e+00> : vector<16x896xf32>
    %87 = tpu.matmul %86, %84, %cst_58 {dimension_numbers = #tpu.dot_dimension_numbers<[1], [0], [0], [1], [0, 0, 1, 1], [], []>} : vector<16x16xf32>, vector<16x896xf32>, vector<16x896xf32> -> vector<16x896xf32>
    %88 = arith.addf %83, %87 : vector<16x896xf32>
    %c0_59 = arith.constant 0 : index
    %c130_60 = arith.constant 130 : index
    %89 = vector.load %arg19[%c0_59, %c130_60] : memref<16x1152xf32, #tpu.memory_space<vmem>>, vector<16x896xf32>
    %c2_61 = arith.constant 2 : index
    %c0_62 = arith.constant 0 : index
    %c0_63 = arith.constant 0 : index
    %90 = vector.load %arg4[%c2_61, %c0_62, %c0_63] : memref<9x16x16xf32, #tpu.memory_space<vmem>>, vector<1x16x16xf32>
    %91 = vector.shape_cast %90 : vector<1x16x16xf32> to vector<16x16xf32>
    %cst_64 = arith.constant dense<0.000000e+00> : vector<16x896xf32>
    %92 = tpu.matmul %91, %89, %cst_64 {dimension_numbers = #tpu.dot_dimension_numbers<[1], [0], [0], [1], [0, 0, 1, 1], [], []>} : vector<16x16xf32>, vector<16x896xf32>, vector<16x896xf32> -> vector<16x896xf32>
    %93 = arith.addf %88, %92 : vector<16x896xf32>
    %c0_65 = arith.constant 0 : index
    %c156_66 = arith.constant 156 : index
    %94 = vector.load %arg19[%c0_65, %c156_66] : memref<16x1152xf32, #tpu.memory_space<vmem>>, vector<16x896xf32>
    %c3_67 = arith.constant 3 : index
    %c0_68 = arith.constant 0 : index
    %c0_69 = arith.constant 0 : index
    %95 = vector.load %arg4[%c3_67, %c0_68, %c0_69] : memref<9x16x16xf32, #tpu.memory_space<vmem>>, vector<1x16x16xf32>
    %96 = vector.shape_cast %95 : vector<1x16x16xf32> to vector<16x16xf32>
    %cst_70 = arith.constant dense<0.000000e+00> : vector<16x896xf32>
    %97 = tpu.matmul %96, %94, %cst_70 {dimension_numbers = #tpu.dot_dimension_numbers<[1], [0], [0], [1], [0, 0, 1, 1], [], []>} : vector<16x16xf32>, vector<16x896xf32>, vector<16x896xf32> -> vector<16x896xf32>
    %98 = arith.addf %93, %97 : vector<16x896xf32>
    %c0_71 = arith.constant 0 : index
    %c157_72 = arith.constant 157 : index
    %99 = vector.load %arg19[%c0_71, %c157_72] : memref<16x1152xf32, #tpu.memory_space<vmem>>, vector<16x896xf32>
    %c4_73 = arith.constant 4 : index
    %c0_74 = arith.constant 0 : index
    %c0_75 = arith.constant 0 : index
    %100 = vector.load %arg4[%c4_73, %c0_74, %c0_75] : memref<9x16x16xf32, #tpu.memory_space<vmem>>, vector<1x16x16xf32>
    %101 = vector.shape_cast %100 : vector<1x16x16xf32> to vector<16x16xf32>
    %cst_76 = arith.constant dense<0.000000e+00> : vector<16x896xf32>
    %102 = tpu.matmul %101, %99, %cst_76 {dimension_numbers = #tpu.dot_dimension_numbers<[1], [0], [0], [1], [0, 0, 1, 1], [], []>} : vector<16x16xf32>, vector<16x896xf32>, vector<16x896xf32> -> vector<16x896xf32>
    %103 = arith.addf %98, %102 : vector<16x896xf32>
    %c0_77 = arith.constant 0 : index
    %c158_78 = arith.constant 158 : index
    %104 = vector.load %arg19[%c0_77, %c158_78] : memref<16x1152xf32, #tpu.memory_space<vmem>>, vector<16x896xf32>
    %c5_79 = arith.constant 5 : index
    %c0_80 = arith.constant 0 : index
    %c0_81 = arith.constant 0 : index
    %105 = vector.load %arg4[%c5_79, %c0_80, %c0_81] : memref<9x16x16xf32, #tpu.memory_space<vmem>>, vector<1x16x16xf32>
    %106 = vector.shape_cast %105 : vector<1x16x16xf32> to vector<16x16xf32>
    %cst_82 = arith.constant dense<0.000000e+00> : vector<16x896xf32>
    %107 = tpu.matmul %106, %104, %cst_82 {dimension_numbers = #tpu.dot_dimension_numbers<[1], [0], [0], [1], [0, 0, 1, 1], [], []>} : vector<16x16xf32>, vector<16x896xf32>, vector<16x896xf32> -> vector<16x896xf32>
    %108 = arith.addf %103, %107 : vector<16x896xf32>
    %c0_83 = arith.constant 0 : index
    %c184_84 = arith.constant 184 : index
    %109 = vector.load %arg19[%c0_83, %c184_84] : memref<16x1152xf32, #tpu.memory_space<vmem>>, vector<16x896xf32>
    %c6_85 = arith.constant 6 : index
    %c0_86 = arith.constant 0 : index
    %c0_87 = arith.constant 0 : index
    %110 = vector.load %arg4[%c6_85, %c0_86, %c0_87] : memref<9x16x16xf32, #tpu.memory_space<vmem>>, vector<1x16x16xf32>
    %111 = vector.shape_cast %110 : vector<1x16x16xf32> to vector<16x16xf32>
    %cst_88 = arith.constant dense<0.000000e+00> : vector<16x896xf32>
    %112 = tpu.matmul %111, %109, %cst_88 {dimension_numbers = #tpu.dot_dimension_numbers<[1], [0], [0], [1], [0, 0, 1, 1], [], []>} : vector<16x16xf32>, vector<16x896xf32>, vector<16x896xf32> -> vector<16x896xf32>
    %113 = arith.addf %108, %112 : vector<16x896xf32>
    %c0_89 = arith.constant 0 : index
    %c185_90 = arith.constant 185 : index
    %114 = vector.load %arg19[%c0_89, %c185_90] : memref<16x1152xf32, #tpu.memory_space<vmem>>, vector<16x896xf32>
    %c7_91 = arith.constant 7 : index
    %c0_92 = arith.constant 0 : index
    %c0_93 = arith.constant 0 : index
    %115 = vector.load %arg4[%c7_91, %c0_92, %c0_93] : memref<9x16x16xf32, #tpu.memory_space<vmem>>, vector<1x16x16xf32>
    %116 = vector.shape_cast %115 : vector<1x16x16xf32> to vector<16x16xf32>
    %cst_94 = arith.constant dense<0.000000e+00> : vector<16x896xf32>
    %117 = tpu.matmul %116, %114, %cst_94 {dimension_numbers = #tpu.dot_dimension_numbers<[1], [0], [0], [1], [0, 0, 1, 1], [], []>} : vector<16x16xf32>, vector<16x896xf32>, vector<16x896xf32> -> vector<16x896xf32>
    %118 = arith.addf %113, %117 : vector<16x896xf32>
    %c0_95 = arith.constant 0 : index
    %c186_96 = arith.constant 186 : index
    %119 = vector.load %arg19[%c0_95, %c186_96] : memref<16x1152xf32, #tpu.memory_space<vmem>>, vector<16x896xf32>
    %c8_97 = arith.constant 8 : index
    %c0_98 = arith.constant 0 : index
    %c0_99 = arith.constant 0 : index
    %120 = vector.load %arg4[%c8_97, %c0_98, %c0_99] : memref<9x16x16xf32, #tpu.memory_space<vmem>>, vector<1x16x16xf32>
    %121 = vector.shape_cast %120 : vector<1x16x16xf32> to vector<16x16xf32>
    %cst_100 = arith.constant dense<0.000000e+00> : vector<16x896xf32>
    %122 = tpu.matmul %121, %119, %cst_100 {dimension_numbers = #tpu.dot_dimension_numbers<[1], [0], [0], [1], [0, 0, 1, 1], [], []>} : vector<16x16xf32>, vector<16x896xf32>, vector<16x896xf32> -> vector<16x896xf32>
    %123 = arith.addf %118, %122 : vector<16x896xf32>
    %cst_101 = arith.constant 0.000000e+00 : f32
    %124 = vector.broadcast %cst_101 : f32 to vector<16x896xf32>
    %125 = arith.maximumf %123, %124 : vector<16x896xf32>
    %c0_102 = arith.constant 0 : index
    %c0_103 = arith.constant 0 : index
    %c0_104 = arith.constant 0 : index
    %126 = vector.load %arg12[%c0_102, %c0_103, %c0_104] : memref<2x16x1xf32, #tpu.memory_space<vmem>>, vector<1x16x1xf32>
    %127 = vector.shape_cast %126 : vector<1x16x1xf32> to vector<16x1xf32>
    %128 = vector.broadcast %127 : vector<16x1xf32> to vector<16x896xf32>
    %129 = arith.mulf %125, %128 : vector<16x896xf32>
    %c1_105 = arith.constant 1 : index
    %c0_106 = arith.constant 0 : index
    %c0_107 = arith.constant 0 : index
    %130 = vector.load %arg12[%c1_105, %c0_106, %c0_107] : memref<2x16x1xf32, #tpu.memory_space<vmem>>, vector<1x16x1xf32>
    %131 = vector.shape_cast %130 : vector<1x16x1xf32> to vector<16x1xf32>
    %132 = vector.broadcast %131 : vector<16x1xf32> to vector<16x896xf32>
    %133 = arith.addf %129, %132 : vector<16x896xf32>
    %c0_108 = arith.constant 0 : index
    %c128_109 = arith.constant 128 : index
    %134 = vector.load %arg18[%c0_108, %c128_109] : memref<16x1152xf32, #tpu.memory_space<vmem>>, vector<16x896xf32>
    tpu.vector_store %arg18[%c0_108, %c128_109], %133 {strides = array<i32>} : memref<16x1152xf32, #tpu.memory_space<vmem>>, vector<16x896xf32>,
    %c0_110 = arith.constant 0 : index
    %c0_111 = arith.constant 0 : index
    %135 = vector.load %arg5[%c0_110, %c0_111] : memref<10x16xf32, #tpu.memory_space<vmem>>, vector<10x16xf32>
    %c0_112 = arith.constant 0 : index
    %c128_113 = arith.constant 128 : index
    %136 = vector.load %arg18[%c0_112, %c128_113] : memref<16x1152xf32, #tpu.memory_space<vmem>>, vector<16x896xf32>
    %cst_114 = arith.constant dense<0.000000e+00> : vector<10x896xf32>
    %137 = tpu.matmul %135, %136, %cst_114 {dimension_numbers = #tpu.dot_dimension_numbers<[1], [0], [0], [1], [0, 0, 1, 1], [], []>} : vector<10x16xf32>, vector<16x896xf32>, vector<10x896xf32> -> vector<10x896xf32>
    %c0_115 = arith.constant 0 : index
    %c128_116 = arith.constant 128 : index
    %138 = vector.load %arg19[%c0_115, %c128_116] : memref<16x1152xf32, #tpu.memory_space<vmem>>, vector<10x896xf32>
    tpu.vector_store %arg19[%c0_115, %c128_116], %137 {strides = array<i32>} : memref<16x1152xf32, #tpu.memory_space<vmem>>, vector<10x896xf32>,
    %c0_117 = arith.constant 0 : index
    %c128_118 = arith.constant 128 : index
    %139 = vector.load %arg19[%c0_117, %c128_118] : memref<16x1152xf32, #tpu.memory_space<vmem>>, vector<10x896xf32>
    %c0_119 = arith.constant 0 : index
    %c129_120 = arith.constant 129 : index
    %140 = vector.load %arg19[%c0_119, %c129_120] : memref<16x1152xf32, #tpu.memory_space<vmem>>, vector<10x896xf32>
    %141 = arith.maximumf %139, %140 : vector<10x896xf32>
    %c0_121 = arith.constant 0 : index
    %c156_122 = arith.constant 156 : index
    %142 = vector.load %arg19[%c0_121, %c156_122] : memref<16x1152xf32, #tpu.memory_space<vmem>>, vector<10x896xf32>
    %c0_123 = arith.constant 0 : index
    %c157_124 = arith.constant 157 : index
    %143 = vector.load %arg19[%c0_123, %c157_124] : memref<16x1152xf32, #tpu.memory_space<vmem>>, vector<10x896xf32>
    %144 = arith.maximumf %142, %143 : vector<10x896xf32>
    %145 = arith.maximumf %141, %144 : vector<10x896xf32>
    %c0_125 = arith.constant 0 : index
    %c128_126 = arith.constant 128 : index
    %146 = vector.load %arg18[%c0_125, %c128_126] : memref<16x1152xf32, #tpu.memory_space<vmem>>, vector<10x896xf32>
    tpu.vector_store %arg18[%c0_125, %c128_126], %145 {strides = array<i32>} : memref<16x1152xf32, #tpu.memory_space<vmem>>, vector<10x896xf32>,
    %c0_127 = arith.constant 0 : index
    %c128_128 = arith.constant 128 : index
    %147 = vector.load %arg18[%c0_127, %c128_128] : memref<16x1152xf32, #tpu.memory_space<vmem>>, vector<10x896xf32>
    %c0_129 = arith.constant 0 : index
    %c0_130 = arith.constant 0 : index
    %c0_131 = arith.constant 0 : index
    %148 = vector.load %arg6[%c0_129, %c0_130, %c0_131] : memref<9x16x10xf32, #tpu.memory_space<vmem>>, vector<1x16x10xf32>
    %149 = vector.shape_cast %148 : vector<1x16x10xf32> to vector<16x10xf32>
    %cst_132 = arith.constant dense<0.000000e+00> : vector<16x896xf32>
    %150 = tpu.matmul %149, %147, %cst_132 {dimension_numbers = #tpu.dot_dimension_numbers<[1], [0], [0], [1], [0, 0, 1, 1], [], []>} : vector<16x10xf32>, vector<10x896xf32>, vector<16x896xf32> -> vector<16x896xf32>
    %c0_133 = arith.constant 0 : index
    %c130_134 = arith.constant 130 : index
    %151 = vector.load %arg18[%c0_133, %c130_134] : memref<16x1152xf32, #tpu.memory_space<vmem>>, vector<10x896xf32>
    %c1_135 = arith.constant 1 : index
    %c0_136 = arith.constant 0 : index
    %c0_137 = arith.constant 0 : index
    %152 = vector.load %arg6[%c1_135, %c0_136, %c0_137] : memref<9x16x10xf32, #tpu.memory_space<vmem>>, vector<1x16x10xf32>
    %153 = vector.shape_cast %152 : vector<1x16x10xf32> to vector<16x10xf32>
    %cst_138 = arith.constant dense<0.000000e+00> : vector<16x896xf32>
    %154 = tpu.matmul %153, %151, %cst_138 {dimension_numbers = #tpu.dot_dimension_numbers<[1], [0], [0], [1], [0, 0, 1, 1], [], []>} : vector<16x10xf32>, vector<10x896xf32>, vector<16x896xf32> -> vector<16x896xf32>
    %155 = arith.addf %150, %154 : vector<16x896xf32>
    %c0_139 = arith.constant 0 : index
    %c132 = arith.constant 132 : index
    %156 = vector.load %arg18[%c0_139, %c132] : memref<16x1152xf32, #tpu.memory_space<vmem>>, vector<10x896xf32>
    %c2_140 = arith.constant 2 : index
    %c0_141 = arith.constant 0 : index
    %c0_142 = arith.constant 0 : index
    %157 = vector.load %arg6[%c2_140, %c0_141, %c0_142] : memref<9x16x10xf32, #tpu.memory_space<vmem>>, vector<1x16x10xf32>
    %158 = vector.shape_cast %157 : vector<1x16x10xf32> to vector<16x10xf32>
    %cst_143 = arith.constant dense<0.000000e+00> : vector<16x896xf32>
    %159 = tpu.matmul %158, %156, %cst_143 {dimension_numbers = #tpu.dot_dimension_numbers<[1], [0], [0], [1], [0, 0, 1, 1], [], []>} : vector<16x10xf32>, vector<10x896xf32>, vector<16x896xf32> -> vector<16x896xf32>
    %160 = arith.addf %155, %159 : vector<16x896xf32>
    %c0_144 = arith.constant 0 : index
    %c184_145 = arith.constant 184 : index
    %161 = vector.load %arg18[%c0_144, %c184_145] : memref<16x1152xf32, #tpu.memory_space<vmem>>, vector<10x896xf32>
    %c3_146 = arith.constant 3 : index
    %c0_147 = arith.constant 0 : index
    %c0_148 = arith.constant 0 : index
    %162 = vector.load %arg6[%c3_146, %c0_147, %c0_148] : memref<9x16x10xf32, #tpu.memory_space<vmem>>, vector<1x16x10xf32>
    %163 = vector.shape_cast %162 : vector<1x16x10xf32> to vector<16x10xf32>
    %cst_149 = arith.constant dense<0.000000e+00> : vector<16x896xf32>
    %164 = tpu.matmul %163, %161, %cst_149 {dimension_numbers = #tpu.dot_dimension_numbers<[1], [0], [0], [1], [0, 0, 1, 1], [], []>} : vector<16x10xf32>, vector<10x896xf32>, vector<16x896xf32> -> vector<16x896xf32>
    %165 = arith.addf %160, %164 : vector<16x896xf32>
    %c0_150 = arith.constant 0 : index
    %c186_151 = arith.constant 186 : index
    %166 = vector.load %arg18[%c0_150, %c186_151] : memref<16x1152xf32, #tpu.memory_space<vmem>>, vector<10x896xf32>
    %c4_152 = arith.constant 4 : index
    %c0_153 = arith.constant 0 : index
    %c0_154 = arith.constant 0 : index
    %167 = vector.load %arg6[%c4_152, %c0_153, %c0_154] : memref<9x16x10xf32, #tpu.memory_space<vmem>>, vector<1x16x10xf32>
    %168 = vector.shape_cast %167 : vector<1x16x10xf32> to vector<16x10xf32>
    %cst_155 = arith.constant dense<0.000000e+00> : vector<16x896xf32>
    %169 = tpu.matmul %168, %166, %cst_155 {dimension_numbers = #tpu.dot_dimension_numbers<[1], [0], [0], [1], [0, 0, 1, 1], [], []>} : vector<16x10xf32>, vector<10x896xf32>, vector<16x896xf32> -> vector<16x896xf32>
    %170 = arith.addf %165, %169 : vector<16x896xf32>
    %c0_156 = arith.constant 0 : index
    %c188 = arith.constant 188 : index
    %171 = vector.load %arg18[%c0_156, %c188] : memref<16x1152xf32, #tpu.memory_space<vmem>>, vector<10x896xf32>
    %c5_157 = arith.constant 5 : index
    %c0_158 = arith.constant 0 : index
    %c0_159 = arith.constant 0 : index
    %172 = vector.load %arg6[%c5_157, %c0_158, %c0_159] : memref<9x16x10xf32, #tpu.memory_space<vmem>>, vector<1x16x10xf32>
    %173 = vector.shape_cast %172 : vector<1x16x10xf32> to vector<16x10xf32>
    %cst_160 = arith.constant dense<0.000000e+00> : vector<16x896xf32>
    %174 = tpu.matmul %173, %171, %cst_160 {dimension_numbers = #tpu.dot_dimension_numbers<[1], [0], [0], [1], [0, 0, 1, 1], [], []>} : vector<16x10xf32>, vector<10x896xf32>, vector<16x896xf32> -> vector<16x896xf32>
    %175 = arith.addf %170, %174 : vector<16x896xf32>
    %c0_161 = arith.constant 0 : index
    %c240 = arith.constant 240 : index
    %176 = vector.load %arg18[%c0_161, %c240] : memref<16x1152xf32, #tpu.memory_space<vmem>>, vector<10x896xf32>
    %c6_162 = arith.constant 6 : index
    %c0_163 = arith.constant 0 : index
    %c0_164 = arith.constant 0 : index
    %177 = vector.load %arg6[%c6_162, %c0_163, %c0_164] : memref<9x16x10xf32, #tpu.memory_space<vmem>>, vector<1x16x10xf32>
    %178 = vector.shape_cast %177 : vector<1x16x10xf32> to vector<16x10xf32>
    %cst_165 = arith.constant dense<0.000000e+00> : vector<16x896xf32>
    %179 = tpu.matmul %178, %176, %cst_165 {dimension_numbers = #tpu.dot_dimension_numbers<[1], [0], [0], [1], [0, 0, 1, 1], [], []>} : vector<16x10xf32>, vector<10x896xf32>, vector<16x896xf32> -> vector<16x896xf32>
    %180 = arith.addf %175, %179 : vector<16x896xf32>
    %c0_166 = arith.constant 0 : index
    %c242 = arith.constant 242 : index
    %181 = vector.load %arg18[%c0_166, %c242] : memref<16x1152xf32, #tpu.memory_space<vmem>>, vector<10x896xf32>
    %c7_167 = arith.constant 7 : index
    %c0_168 = arith.constant 0 : index
    %c0_169 = arith.constant 0 : index
    %182 = vector.load %arg6[%c7_167, %c0_168, %c0_169] : memref<9x16x10xf32, #tpu.memory_space<vmem>>, vector<1x16x10xf32>
    %183 = vector.shape_cast %182 : vector<1x16x10xf32> to vector<16x10xf32>
    %cst_170 = arith.constant dense<0.000000e+00> : vector<16x896xf32>
    %184 = tpu.matmul %183, %181, %cst_170 {dimension_numbers = #tpu.dot_dimension_numbers<[1], [0], [0], [1], [0, 0, 1, 1], [], []>} : vector<16x10xf32>, vector<10x896xf32>, vector<16x896xf32> -> vector<16x896xf32>
    %185 = arith.addf %180, %184 : vector<16x896xf32>
    %c0_171 = arith.constant 0 : index
    %c244 = arith.constant 244 : index
    %186 = vector.load %arg18[%c0_171, %c244] : memref<16x1152xf32, #tpu.memory_space<vmem>>, vector<10x896xf32>
    %c8_172 = arith.constant 8 : index
    %c0_173 = arith.constant 0 : index
    %c0_174 = arith.constant 0 : index
    %187 = vector.load %arg6[%c8_172, %c0_173, %c0_174] : memref<9x16x10xf32, #tpu.memory_space<vmem>>, vector<1x16x10xf32>
    %188 = vector.shape_cast %187 : vector<1x16x10xf32> to vector<16x10xf32>
    %cst_175 = arith.constant dense<0.000000e+00> : vector<16x896xf32>
    %189 = tpu.matmul %188, %186, %cst_175 {dimension_numbers = #tpu.dot_dimension_numbers<[1], [0], [0], [1], [0, 0, 1, 1], [], []>} : vector<16x10xf32>, vector<10x896xf32>, vector<16x896xf32> -> vector<16x896xf32>
    %190 = arith.addf %185, %189 : vector<16x896xf32>
    %cst_176 = arith.constant 0.000000e+00 : f32
    %191 = vector.broadcast %cst_176 : f32 to vector<16x896xf32>
    %192 = arith.maximumf %190, %191 : vector<16x896xf32>
    %c0_177 = arith.constant 0 : index
    %c0_178 = arith.constant 0 : index
    %c0_179 = arith.constant 0 : index
    %193 = vector.load %arg13[%c0_177, %c0_178, %c0_179] : memref<2x16x1xf32, #tpu.memory_space<vmem>>, vector<1x16x1xf32>
    %194 = vector.shape_cast %193 : vector<1x16x1xf32> to vector<16x1xf32>
    %195 = vector.broadcast %194 : vector<16x1xf32> to vector<16x896xf32>
    %196 = arith.mulf %192, %195 : vector<16x896xf32>
    %c1_180 = arith.constant 1 : index
    %c0_181 = arith.constant 0 : index
    %c0_182 = arith.constant 0 : index
    %197 = vector.load %arg13[%c1_180, %c0_181, %c0_182] : memref<2x16x1xf32, #tpu.memory_space<vmem>>, vector<1x16x1xf32>
    %198 = vector.shape_cast %197 : vector<1x16x1xf32> to vector<16x1xf32>
    %199 = vector.broadcast %198 : vector<16x1xf32> to vector<16x896xf32>
    %200 = arith.addf %196, %199 : vector<16x896xf32>
    %c0_183 = arith.constant 0 : index
    %c128_184 = arith.constant 128 : index
    %201 = vector.load %arg19[%c0_183, %c128_184] : memref<16x1152xf32, #tpu.memory_space<vmem>>, vector<16x896xf32>
    tpu.vector_store %arg19[%c0_183, %c128_184], %200 {strides = array<i32>} : memref<16x1152xf32, #tpu.memory_space<vmem>>, vector<16x896xf32>,
    %c0_185 = arith.constant 0 : index
    %c128_186 = arith.constant 128 : index
    %202 = vector.load %arg19[%c0_185, %c128_186] : memref<16x1152xf32, #tpu.memory_space<vmem>>, vector<16x896xf32>
    %c0_187 = arith.constant 0 : index
    %c0_188 = arith.constant 0 : index
    %c0_189 = arith.constant 0 : index
    %203 = vector.load %arg7[%c0_187, %c0_188, %c0_189] : memref<9x10x16xf32, #tpu.memory_space<vmem>>, vector<1x10x16xf32>
    %204 = vector.shape_cast %203 : vector<1x10x16xf32> to vector<10x16xf32>
    %cst_190 = arith.constant dense<0.000000e+00> : vector<10x896xf32>
    %205 = tpu.matmul %204, %202, %cst_190 {dimension_numbers = #tpu.dot_dimension_numbers<[1], [0], [0], [1], [0, 0, 1, 1], [], []>} : vector<10x16xf32>, vector<16x896xf32>, vector<10x896xf32> -> vector<10x896xf32>
    %c0_191 = arith.constant 0 : index
    %c130_192 = arith.constant 130 : index
    %206 = vector.load %arg19[%c0_191, %c130_192] : memref<16x1152xf32, #tpu.memory_space<vmem>>, vector<16x896xf32>
    %c1_193 = arith.constant 1 : index
    %c0_194 = arith.constant 0 : index
    %c0_195 = arith.constant 0 : index
    %207 = vector.load %arg7[%c1_193, %c0_194, %c0_195] : memref<9x10x16xf32, #tpu.memory_space<vmem>>, vector<1x10x16xf32>
    %208 = vector.shape_cast %207 : vector<1x10x16xf32> to vector<10x16xf32>
    %cst_196 = arith.constant dense<0.000000e+00> : vector<10x896xf32>
    %209 = tpu.matmul %208, %206, %cst_196 {dimension_numbers = #tpu.dot_dimension_numbers<[1], [0], [0], [1], [0, 0, 1, 1], [], []>} : vector<10x16xf32>, vector<16x896xf32>, vector<10x896xf32> -> vector<10x896xf32>
    %210 = arith.addf %205, %209 : vector<10x896xf32>
    %c0_197 = arith.constant 0 : index
    %c132_198 = arith.constant 132 : index
    %211 = vector.load %arg19[%c0_197, %c132_198] : memref<16x1152xf32, #tpu.memory_space<vmem>>, vector<16x896xf32>
    %c2_199 = arith.constant 2 : index
    %c0_200 = arith.constant 0 : index
    %c0_201 = arith.constant 0 : index
    %212 = vector.load %arg7[%c2_199, %c0_200, %c0_201] : memref<9x10x16xf32, #tpu.memory_space<vmem>>, vector<1x10x16xf32>
    %213 = vector.shape_cast %212 : vector<1x10x16xf32> to vector<10x16xf32>
    %cst_202 = arith.constant dense<0.000000e+00> : vector<10x896xf32>
    %214 = tpu.matmul %213, %211, %cst_202 {dimension_numbers = #tpu.dot_dimension_numbers<[1], [0], [0], [1], [0, 0, 1, 1], [], []>} : vector<10x16xf32>, vector<16x896xf32>, vector<10x896xf32> -> vector<10x896xf32>
    %215 = arith.addf %210, %214 : vector<10x896xf32>
    %c0_203 = arith.constant 0 : index
    %c184_204 = arith.constant 184 : index
    %216 = vector.load %arg19[%c0_203, %c184_204] : memref<16x1152xf32, #tpu.memory_space<vmem>>, vector<16x896xf32>
    %c3_205 = arith.constant 3 : index
    %c0_206 = arith.constant 0 : index
    %c0_207 = arith.constant 0 : index
    %217 = vector.load %arg7[%c3_205, %c0_206, %c0_207] : memref<9x10x16xf32, #tpu.memory_space<vmem>>, vector<1x10x16xf32>
    %218 = vector.shape_cast %217 : vector<1x10x16xf32> to vector<10x16xf32>
    %cst_208 = arith.constant dense<0.000000e+00> : vector<10x896xf32>
    %219 = tpu.matmul %218, %216, %cst_208 {dimension_numbers = #tpu.dot_dimension_numbers<[1], [0], [0], [1], [0, 0, 1, 1], [], []>} : vector<10x16xf32>, vector<16x896xf32>, vector<10x896xf32> -> vector<10x896xf32>
    %220 = arith.addf %215, %219 : vector<10x896xf32>
    %c0_209 = arith.constant 0 : index
    %c186_210 = arith.constant 186 : index
    %221 = vector.load %arg19[%c0_209, %c186_210] : memref<16x1152xf32, #tpu.memory_space<vmem>>, vector<16x896xf32>
    %c4_211 = arith.constant 4 : index
    %c0_212 = arith.constant 0 : index
    %c0_213 = arith.constant 0 : index
    %222 = vector.load %arg7[%c4_211, %c0_212, %c0_213] : memref<9x10x16xf32, #tpu.memory_space<vmem>>, vector<1x10x16xf32>
    %223 = vector.shape_cast %222 : vector<1x10x16xf32> to vector<10x16xf32>
    %cst_214 = arith.constant dense<0.000000e+00> : vector<10x896xf32>
    %224 = tpu.matmul %223, %221, %cst_214 {dimension_numbers = #tpu.dot_dimension_numbers<[1], [0], [0], [1], [0, 0, 1, 1], [], []>} : vector<10x16xf32>, vector<16x896xf32>, vector<10x896xf32> -> vector<10x896xf32>
    %225 = arith.addf %220, %224 : vector<10x896xf32>
    %c0_215 = arith.constant 0 : index
    %c188_216 = arith.constant 188 : index
    %226 = vector.load %arg19[%c0_215, %c188_216] : memref<16x1152xf32, #tpu.memory_space<vmem>>, vector<16x896xf32>
    %c5_217 = arith.constant 5 : index
    %c0_218 = arith.constant 0 : index
    %c0_219 = arith.constant 0 : index
    %227 = vector.load %arg7[%c5_217, %c0_218, %c0_219] : memref<9x10x16xf32, #tpu.memory_space<vmem>>, vector<1x10x16xf32>
    %228 = vector.shape_cast %227 : vector<1x10x16xf32> to vector<10x16xf32>
    %cst_220 = arith.constant dense<0.000000e+00> : vector<10x896xf32>
    %229 = tpu.matmul %228, %226, %cst_220 {dimension_numbers = #tpu.dot_dimension_numbers<[1], [0], [0], [1], [0, 0, 1, 1], [], []>} : vector<10x16xf32>, vector<16x896xf32>, vector<10x896xf32> -> vector<10x896xf32>
    %230 = arith.addf %225, %229 : vector<10x896xf32>
    %c0_221 = arith.constant 0 : index
    %c240_222 = arith.constant 240 : index
    %231 = vector.load %arg19[%c0_221, %c240_222] : memref<16x1152xf32, #tpu.memory_space<vmem>>, vector<16x896xf32>
    %c6_223 = arith.constant 6 : index
    %c0_224 = arith.constant 0 : index
    %c0_225 = arith.constant 0 : index
    %232 = vector.load %arg7[%c6_223, %c0_224, %c0_225] : memref<9x10x16xf32, #tpu.memory_space<vmem>>, vector<1x10x16xf32>
    %233 = vector.shape_cast %232 : vector<1x10x16xf32> to vector<10x16xf32>
    %cst_226 = arith.constant dense<0.000000e+00> : vector<10x896xf32>
    %234 = tpu.matmul %233, %231, %cst_226 {dimension_numbers = #tpu.dot_dimension_numbers<[1], [0], [0], [1], [0, 0, 1, 1], [], []>} : vector<10x16xf32>, vector<16x896xf32>, vector<10x896xf32> -> vector<10x896xf32>
    %235 = arith.addf %230, %234 : vector<10x896xf32>
    %c0_227 = arith.constant 0 : index
    %c242_228 = arith.constant 242 : index
    %236 = vector.load %arg19[%c0_227, %c242_228] : memref<16x1152xf32, #tpu.memory_space<vmem>>, vector<16x896xf32>
    %c7_229 = arith.constant 7 : index
    %c0_230 = arith.constant 0 : index
    %c0_231 = arith.constant 0 : index
    %237 = vector.load %arg7[%c7_229, %c0_230, %c0_231] : memref<9x10x16xf32, #tpu.memory_space<vmem>>, vector<1x10x16xf32>
    %238 = vector.shape_cast %237 : vector<1x10x16xf32> to vector<10x16xf32>
    %cst_232 = arith.constant dense<0.000000e+00> : vector<10x896xf32>
    %239 = tpu.matmul %238, %236, %cst_232 {dimension_numbers = #tpu.dot_dimension_numbers<[1], [0], [0], [1], [0, 0, 1, 1], [], []>} : vector<10x16xf32>, vector<16x896xf32>, vector<10x896xf32> -> vector<10x896xf32>
    %240 = arith.addf %235, %239 : vector<10x896xf32>
    %c0_233 = arith.constant 0 : index
    %c244_234 = arith.constant 244 : index
    %241 = vector.load %arg19[%c0_233, %c244_234] : memref<16x1152xf32, #tpu.memory_space<vmem>>, vector<16x896xf32>
    %c8_235 = arith.constant 8 : index
    %c0_236 = arith.constant 0 : index
    %c0_237 = arith.constant 0 : index
    %242 = vector.load %arg7[%c8_235, %c0_236, %c0_237] : memref<9x10x16xf32, #tpu.memory_space<vmem>>, vector<1x10x16xf32>
    %243 = vector.shape_cast %242 : vector<1x10x16xf32> to vector<10x16xf32>
    %cst_238 = arith.constant dense<0.000000e+00> : vector<10x896xf32>
    %244 = tpu.matmul %243, %241, %cst_238 {dimension_numbers = #tpu.dot_dimension_numbers<[1], [0], [0], [1], [0, 0, 1, 1], [], []>} : vector<10x16xf32>, vector<16x896xf32>, vector<10x896xf32> -> vector<10x896xf32>
    %245 = arith.addf %240, %244 : vector<10x896xf32>
    %cst_239 = arith.constant 0.000000e+00 : f32
    %246 = vector.broadcast %cst_239 : f32 to vector<10x896xf32>
    %247 = arith.maximumf %245, %246 : vector<10x896xf32>
    %c0_240 = arith.constant 0 : index
    %c0_241 = arith.constant 0 : index
    %c0_242 = arith.constant 0 : index
    %248 = vector.load %arg14[%c0_240, %c0_241, %c0_242] : memref<2x10x1xf32, #tpu.memory_space<vmem>>, vector<1x10x1xf32>
    %249 = vector.shape_cast %248 : vector<1x10x1xf32> to vector<10x1xf32>
    %250 = vector.broadcast %249 : vector<10x1xf32> to vector<10x896xf32>
    %251 = arith.mulf %247, %250 : vector<10x896xf32>
    %c1_243 = arith.constant 1 : index
    %c0_244 = arith.constant 0 : index
    %c0_245 = arith.constant 0 : index
    %252 = vector.load %arg14[%c1_243, %c0_244, %c0_245] : memref<2x10x1xf32, #tpu.memory_space<vmem>>, vector<1x10x1xf32>
    %253 = vector.shape_cast %252 : vector<1x10x1xf32> to vector<10x1xf32>
    %254 = vector.broadcast %253 : vector<10x1xf32> to vector<10x896xf32>
    %255 = arith.addf %251, %254 : vector<10x896xf32>
    %c0_246 = arith.constant 0 : index
    %c128_247 = arith.constant 128 : index
    %256 = vector.load %arg18[%c0_246, %c128_247] : memref<16x1152xf32, #tpu.memory_space<vmem>>, vector<10x896xf32>
    tpu.vector_store %arg18[%c0_246, %c128_247], %255 {strides = array<i32>} : memref<16x1152xf32, #tpu.memory_space<vmem>>, vector<10x896xf32>,
    %c0_248 = arith.constant 0 : index
    %c128_249 = arith.constant 128 : index
    %257 = vector.load %arg18[%c0_248, %c128_249] : memref<16x1152xf32, #tpu.memory_space<vmem>>, vector<10x896xf32>
    %c0_250 = arith.constant 0 : index
    %c0_251 = arith.constant 0 : index
    %c0_252 = arith.constant 0 : index
    %258 = vector.load %arg8[%c0_250, %c0_251, %c0_252] : memref<9x10x10xf32, #tpu.memory_space<vmem>>, vector<1x10x10xf32>
    %259 = vector.shape_cast %258 : vector<1x10x10xf32> to vector<10x10xf32>
    %cst_253 = arith.constant dense<0.000000e+00> : vector<10x896xf32>
    %260 = tpu.matmul %259, %257, %cst_253 {dimension_numbers = #tpu.dot_dimension_numbers<[1], [0], [0], [1], [0, 0, 1, 1], [], []>} : vector<10x10xf32>, vector<10x896xf32>, vector<10x896xf32> -> vector<10x896xf32>
    %c0_254 = arith.constant 0 : index
    %c130_255 = arith.constant 130 : index
    %261 = vector.load %arg18[%c0_254, %c130_255] : memref<16x1152xf32, #tpu.memory_space<vmem>>, vector<10x896xf32>
    %c1_256 = arith.constant 1 : index
    %c0_257 = arith.constant 0 : index
    %c0_258 = arith.constant 0 : index
    %262 = vector.load %arg8[%c1_256, %c0_257, %c0_258] : memref<9x10x10xf32, #tpu.memory_space<vmem>>, vector<1x10x10xf32>
    %263 = vector.shape_cast %262 : vector<1x10x10xf32> to vector<10x10xf32>
    %cst_259 = arith.constant dense<0.000000e+00> : vector<10x896xf32>
    %264 = tpu.matmul %263, %261, %cst_259 {dimension_numbers = #tpu.dot_dimension_numbers<[1], [0], [0], [1], [0, 0, 1, 1], [], []>} : vector<10x10xf32>, vector<10x896xf32>, vector<10x896xf32> -> vector<10x896xf32>
    %265 = arith.addf %260, %264 : vector<10x896xf32>
    %c0_260 = arith.constant 0 : index
    %c132_261 = arith.constant 132 : index
    %266 = vector.load %arg18[%c0_260, %c132_261] : memref<16x1152xf32, #tpu.memory_space<vmem>>, vector<10x896xf32>
    %c2_262 = arith.constant 2 : index
    %c0_263 = arith.constant 0 : index
    %c0_264 = arith.constant 0 : index
    %267 = vector.load %arg8[%c2_262, %c0_263, %c0_264] : memref<9x10x10xf32, #tpu.memory_space<vmem>>, vector<1x10x10xf32>
    %268 = vector.shape_cast %267 : vector<1x10x10xf32> to vector<10x10xf32>
    %cst_265 = arith.constant dense<0.000000e+00> : vector<10x896xf32>
    %269 = tpu.matmul %268, %266, %cst_265 {dimension_numbers = #tpu.dot_dimension_numbers<[1], [0], [0], [1], [0, 0, 1, 1], [], []>} : vector<10x10xf32>, vector<10x896xf32>, vector<10x896xf32> -> vector<10x896xf32>
    %270 = arith.addf %265, %269 : vector<10x896xf32>
    %c0_266 = arith.constant 0 : index
    %c184_267 = arith.constant 184 : index
    %271 = vector.load %arg18[%c0_266, %c184_267] : memref<16x1152xf32, #tpu.memory_space<vmem>>, vector<10x896xf32>
    %c3_268 = arith.constant 3 : index
    %c0_269 = arith.constant 0 : index
    %c0_270 = arith.constant 0 : index
    %272 = vector.load %arg8[%c3_268, %c0_269, %c0_270] : memref<9x10x10xf32, #tpu.memory_space<vmem>>, vector<1x10x10xf32>
    %273 = vector.shape_cast %272 : vector<1x10x10xf32> to vector<10x10xf32>
    %cst_271 = arith.constant dense<0.000000e+00> : vector<10x896xf32>
    %274 = tpu.matmul %273, %271, %cst_271 {dimension_numbers = #tpu.dot_dimension_numbers<[1], [0], [0], [1], [0, 0, 1, 1], [], []>} : vector<10x10xf32>, vector<10x896xf32>, vector<10x896xf32> -> vector<10x896xf32>
    %275 = arith.addf %270, %274 : vector<10x896xf32>
    %c0_272 = arith.constant 0 : index
    %c186_273 = arith.constant 186 : index
    %276 = vector.load %arg18[%c0_272, %c186_273] : memref<16x1152xf32, #tpu.memory_space<vmem>>, vector<10x896xf32>
    %c4_274 = arith.constant 4 : index
    %c0_275 = arith.constant 0 : index
    %c0_276 = arith.constant 0 : index
    %277 = vector.load %arg8[%c4_274, %c0_275, %c0_276] : memref<9x10x10xf32, #tpu.memory_space<vmem>>, vector<1x10x10xf32>
    %278 = vector.shape_cast %277 : vector<1x10x10xf32> to vector<10x10xf32>
    %cst_277 = arith.constant dense<0.000000e+00> : vector<10x896xf32>
    %279 = tpu.matmul %278, %276, %cst_277 {dimension_numbers = #tpu.dot_dimension_numbers<[1], [0], [0], [1], [0, 0, 1, 1], [], []>} : vector<10x10xf32>, vector<10x896xf32>, vector<10x896xf32> -> vector<10x896xf32>
    %280 = arith.addf %275, %279 : vector<10x896xf32>
    %c0_278 = arith.constant 0 : index
    %c188_279 = arith.constant 188 : index
    %281 = vector.load %arg18[%c0_278, %c188_279] : memref<16x1152xf32, #tpu.memory_space<vmem>>, vector<10x896xf32>
    %c5_280 = arith.constant 5 : index
    %c0_281 = arith.constant 0 : index
    %c0_282 = arith.constant 0 : index
    %282 = vector.load %arg8[%c5_280, %c0_281, %c0_282] : memref<9x10x10xf32, #tpu.memory_space<vmem>>, vector<1x10x10xf32>
    %283 = vector.shape_cast %282 : vector<1x10x10xf32> to vector<10x10xf32>
    %cst_283 = arith.constant dense<0.000000e+00> : vector<10x896xf32>
    %284 = tpu.matmul %283, %281, %cst_283 {dimension_numbers = #tpu.dot_dimension_numbers<[1], [0], [0], [1], [0, 0, 1, 1], [], []>} : vector<10x10xf32>, vector<10x896xf32>, vector<10x896xf32> -> vector<10x896xf32>
    %285 = arith.addf %280, %284 : vector<10x896xf32>
    %c0_284 = arith.constant 0 : index
    %c240_285 = arith.constant 240 : index
    %286 = vector.load %arg18[%c0_284, %c240_285] : memref<16x1152xf32, #tpu.memory_space<vmem>>, vector<10x896xf32>
    %c6_286 = arith.constant 6 : index
    %c0_287 = arith.constant 0 : index
    %c0_288 = arith.constant 0 : index
    %287 = vector.load %arg8[%c6_286, %c0_287, %c0_288] : memref<9x10x10xf32, #tpu.memory_space<vmem>>, vector<1x10x10xf32>
    %288 = vector.shape_cast %287 : vector<1x10x10xf32> to vector<10x10xf32>
    %cst_289 = arith.constant dense<0.000000e+00> : vector<10x896xf32>
    %289 = tpu.matmul %288, %286, %cst_289 {dimension_numbers = #tpu.dot_dimension_numbers<[1], [0], [0], [1], [0, 0, 1, 1], [], []>} : vector<10x10xf32>, vector<10x896xf32>, vector<10x896xf32> -> vector<10x896xf32>
    %290 = arith.addf %285, %289 : vector<10x896xf32>
    %c0_290 = arith.constant 0 : index
    %c242_291 = arith.constant 242 : index
    %291 = vector.load %arg18[%c0_290, %c242_291] : memref<16x1152xf32, #tpu.memory_space<vmem>>, vector<10x896xf32>
    %c7_292 = arith.constant 7 : index
    %c0_293 = arith.constant 0 : index
    %c0_294 = arith.constant 0 : index
    %292 = vector.load %arg8[%c7_292, %c0_293, %c0_294] : memref<9x10x10xf32, #tpu.memory_space<vmem>>, vector<1x10x10xf32>
    %293 = vector.shape_cast %292 : vector<1x10x10xf32> to vector<10x10xf32>
    %cst_295 = arith.constant dense<0.000000e+00> : vector<10x896xf32>
    %294 = tpu.matmul %293, %291, %cst_295 {dimension_numbers = #tpu.dot_dimension_numbers<[1], [0], [0], [1], [0, 0, 1, 1], [], []>} : vector<10x10xf32>, vector<10x896xf32>, vector<10x896xf32> -> vector<10x896xf32>
    %295 = arith.addf %290, %294 : vector<10x896xf32>
    %c0_296 = arith.constant 0 : index
    %c244_297 = arith.constant 244 : index
    %296 = vector.load %arg18[%c0_296, %c244_297] : memref<16x1152xf32, #tpu.memory_space<vmem>>, vector<10x896xf32>
    %c8_298 = arith.constant 8 : index
    %c0_299 = arith.constant 0 : index
    %c0_300 = arith.constant 0 : index
    %297 = vector.load %arg8[%c8_298, %c0_299, %c0_300] : memref<9x10x10xf32, #tpu.memory_space<vmem>>, vector<1x10x10xf32>
    %298 = vector.shape_cast %297 : vector<1x10x10xf32> to vector<10x10xf32>
    %cst_301 = arith.constant dense<0.000000e+00> : vector<10x896xf32>
    %299 = tpu.matmul %298, %296, %cst_301 {dimension_numbers = #tpu.dot_dimension_numbers<[1], [0], [0], [1], [0, 0, 1, 1], [], []>} : vector<10x10xf32>, vector<10x896xf32>, vector<10x896xf32> -> vector<10x896xf32>
    %300 = arith.addf %295, %299 : vector<10x896xf32>
    %cst_302 = arith.constant 0.000000e+00 : f32
    %301 = vector.broadcast %cst_302 : f32 to vector<10x896xf32>
    %302 = arith.maximumf %300, %301 : vector<10x896xf32>
    %c0_303 = arith.constant 0 : index
    %c0_304 = arith.constant 0 : index
    %c0_305 = arith.constant 0 : index
    %303 = vector.load %arg15[%c0_303, %c0_304, %c0_305] : memref<2x10x1xf32, #tpu.memory_space<vmem>>, vector<1x10x1xf32>
    %304 = vector.shape_cast %303 : vector<1x10x1xf32> to vector<10x1xf32>
    %305 = vector.broadcast %304 : vector<10x1xf32> to vector<10x896xf32>
    %306 = arith.mulf %302, %305 : vector<10x896xf32>
    %c1_306 = arith.constant 1 : index
    %c0_307 = arith.constant 0 : index
    %c0_308 = arith.constant 0 : index
    %307 = vector.load %arg15[%c1_306, %c0_307, %c0_308] : memref<2x10x1xf32, #tpu.memory_space<vmem>>, vector<1x10x1xf32>
    %308 = vector.shape_cast %307 : vector<1x10x1xf32> to vector<10x1xf32>
    %309 = vector.broadcast %308 : vector<10x1xf32> to vector<10x896xf32>
    %310 = arith.addf %306, %309 : vector<10x896xf32>
    %cst_309 = arith.constant 0.000000e+00 : f32
    %311 = vector.broadcast %cst_309 : f32 to vector<1x896xf32>
    %312 = arith.cmpf ogt, %6, %311 : vector<1x896xf32>
    %cst_310 = arith.constant 0.000000e+00 : f32
    %313 = vector.shape_cast %312 : vector<1x896xi1> to vector<1x896xi1>
    %314 = vector.broadcast %313 : vector<1x896xi1> to vector<10x896xi1>
    %315 = vector.broadcast %cst_310 : f32 to vector<10x896xf32>
    %316 = arith.select %314, %310, %315 : vector<10x896xi1>, vector<10x896xf32>
    %c0_311 = arith.constant 0 : index
    %c128_312 = arith.constant 128 : index
    %317 = vector.load %arg19[%c0_311, %c128_312] : memref<16x1152xf32, #tpu.memory_space<vmem>>, vector<10x896xf32>
    tpu.vector_store %arg19[%c0_311, %c128_312], %316 {strides = array<i32>} : memref<16x1152xf32, #tpu.memory_space<vmem>>, vector<10x896xf32>,
    %c0_313 = arith.constant 0 : index
    %c70 = arith.constant 70 : index
    %318 = vector.load %arg19[%c0_313, %c70] : memref<16x1152xf32, #tpu.memory_space<vmem>>, vector<10x896xf32>
    %c0_314 = arith.constant 0 : index
    %c0_315 = arith.constant 0 : index
    %c0_316 = arith.constant 0 : index
    %319 = vector.load %arg9[%c0_314, %c0_315, %c0_316] : memref<9x10x10xf32, #tpu.memory_space<vmem>>, vector<1x10x10xf32>
    %320 = vector.shape_cast %319 : vector<1x10x10xf32> to vector<10x10xf32>
    %cst_317 = arith.constant dense<0.000000e+00> : vector<10x896xf32>
    %321 = tpu.matmul %320, %318, %cst_317 {dimension_numbers = #tpu.dot_dimension_numbers<[1], [0], [0], [1], [0, 0, 1, 1], [], []>} : vector<10x10xf32>, vector<10x896xf32>, vector<10x896xf32> -> vector<10x896xf32>
    %c0_318 = arith.constant 0 : index
    %c72 = arith.constant 72 : index
    %322 = vector.load %arg19[%c0_318, %c72] : memref<16x1152xf32, #tpu.memory_space<vmem>>, vector<10x896xf32>
    %c1_319 = arith.constant 1 : index
    %c0_320 = arith.constant 0 : index
    %c0_321 = arith.constant 0 : index
    %323 = vector.load %arg9[%c1_319, %c0_320, %c0_321] : memref<9x10x10xf32, #tpu.memory_space<vmem>>, vector<1x10x10xf32>
    %324 = vector.shape_cast %323 : vector<1x10x10xf32> to vector<10x10xf32>
    %cst_322 = arith.constant dense<0.000000e+00> : vector<10x896xf32>
    %325 = tpu.matmul %324, %322, %cst_322 {dimension_numbers = #tpu.dot_dimension_numbers<[1], [0], [0], [1], [0, 0, 1, 1], [], []>} : vector<10x10xf32>, vector<10x896xf32>, vector<10x896xf32> -> vector<10x896xf32>
    %326 = arith.addf %321, %325 : vector<10x896xf32>
    %c0_323 = arith.constant 0 : index
    %c74 = arith.constant 74 : index
    %327 = vector.load %arg19[%c0_323, %c74] : memref<16x1152xf32, #tpu.memory_space<vmem>>, vector<10x896xf32>
    %c2_324 = arith.constant 2 : index
    %c0_325 = arith.constant 0 : index
    %c0_326 = arith.constant 0 : index
    %328 = vector.load %arg9[%c2_324, %c0_325, %c0_326] : memref<9x10x10xf32, #tpu.memory_space<vmem>>, vector<1x10x10xf32>
    %329 = vector.shape_cast %328 : vector<1x10x10xf32> to vector<10x10xf32>
    %cst_327 = arith.constant dense<0.000000e+00> : vector<10x896xf32>
    %330 = tpu.matmul %329, %327, %cst_327 {dimension_numbers = #tpu.dot_dimension_numbers<[1], [0], [0], [1], [0, 0, 1, 1], [], []>} : vector<10x10xf32>, vector<10x896xf32>, vector<10x896xf32> -> vector<10x896xf32>
    %331 = arith.addf %326, %330 : vector<10x896xf32>
    %c0_328 = arith.constant 0 : index
    %c126 = arith.constant 126 : index
    %332 = vector.load %arg19[%c0_328, %c126] : memref<16x1152xf32, #tpu.memory_space<vmem>>, vector<10x896xf32>
    %c3_329 = arith.constant 3 : index
    %c0_330 = arith.constant 0 : index
    %c0_331 = arith.constant 0 : index
    %333 = vector.load %arg9[%c3_329, %c0_330, %c0_331] : memref<9x10x10xf32, #tpu.memory_space<vmem>>, vector<1x10x10xf32>
    %334 = vector.shape_cast %333 : vector<1x10x10xf32> to vector<10x10xf32>
    %cst_332 = arith.constant dense<0.000000e+00> : vector<10x896xf32>
    %335 = tpu.matmul %334, %332, %cst_332 {dimension_numbers = #tpu.dot_dimension_numbers<[1], [0], [0], [1], [0, 0, 1, 1], [], []>} : vector<10x10xf32>, vector<10x896xf32>, vector<10x896xf32> -> vector<10x896xf32>
    %336 = arith.addf %331, %335 : vector<10x896xf32>
    %c0_333 = arith.constant 0 : index
    %c128_334 = arith.constant 128 : index
    %337 = vector.load %arg19[%c0_333, %c128_334] : memref<16x1152xf32, #tpu.memory_space<vmem>>, vector<10x896xf32>
    %c4_335 = arith.constant 4 : index
    %c0_336 = arith.constant 0 : index
    %c0_337 = arith.constant 0 : index
    %338 = vector.load %arg9[%c4_335, %c0_336, %c0_337] : memref<9x10x10xf32, #tpu.memory_space<vmem>>, vector<1x10x10xf32>
    %339 = vector.shape_cast %338 : vector<1x10x10xf32> to vector<10x10xf32>
    %cst_338 = arith.constant dense<0.000000e+00> : vector<10x896xf32>
    %340 = tpu.matmul %339, %337, %cst_338 {dimension_numbers = #tpu.dot_dimension_numbers<[1], [0], [0], [1], [0, 0, 1, 1], [], []>} : vector<10x10xf32>, vector<10x896xf32>, vector<10x896xf32> -> vector<10x896xf32>
    %341 = arith.addf %336, %340 : vector<10x896xf32>
    %c0_339 = arith.constant 0 : index
    %c130_340 = arith.constant 130 : index
    %342 = vector.load %arg19[%c0_339, %c130_340] : memref<16x1152xf32, #tpu.memory_space<vmem>>, vector<10x896xf32>
    %c5_341 = arith.constant 5 : index
    %c0_342 = arith.constant 0 : index
    %c0_343 = arith.constant 0 : index
    %343 = vector.load %arg9[%c5_341, %c0_342, %c0_343] : memref<9x10x10xf32, #tpu.memory_space<vmem>>, vector<1x10x10xf32>
    %344 = vector.shape_cast %343 : vector<1x10x10xf32> to vector<10x10xf32>
    %cst_344 = arith.constant dense<0.000000e+00> : vector<10x896xf32>
    %345 = tpu.matmul %344, %342, %cst_344 {dimension_numbers = #tpu.dot_dimension_numbers<[1], [0], [0], [1], [0, 0, 1, 1], [], []>} : vector<10x10xf32>, vector<10x896xf32>, vector<10x896xf32> -> vector<10x896xf32>
    %346 = arith.addf %341, %345 : vector<10x896xf32>
    %c0_345 = arith.constant 0 : index
    %c182 = arith.constant 182 : index
    %347 = vector.load %arg19[%c0_345, %c182] : memref<16x1152xf32, #tpu.memory_space<vmem>>, vector<10x896xf32>
    %c6_346 = arith.constant 6 : index
    %c0_347 = arith.constant 0 : index
    %c0_348 = arith.constant 0 : index
    %348 = vector.load %arg9[%c6_346, %c0_347, %c0_348] : memref<9x10x10xf32, #tpu.memory_space<vmem>>, vector<1x10x10xf32>
    %349 = vector.shape_cast %348 : vector<1x10x10xf32> to vector<10x10xf32>
    %cst_349 = arith.constant dense<0.000000e+00> : vector<10x896xf32>
    %350 = tpu.matmul %349, %347, %cst_349 {dimension_numbers = #tpu.dot_dimension_numbers<[1], [0], [0], [1], [0, 0, 1, 1], [], []>} : vector<10x10xf32>, vector<10x896xf32>, vector<10x896xf32> -> vector<10x896xf32>
    %351 = arith.addf %346, %350 : vector<10x896xf32>
    %c0_350 = arith.constant 0 : index
    %c184_351 = arith.constant 184 : index
    %352 = vector.load %arg19[%c0_350, %c184_351] : memref<16x1152xf32, #tpu.memory_space<vmem>>, vector<10x896xf32>
    %c7_352 = arith.constant 7 : index
    %c0_353 = arith.constant 0 : index
    %c0_354 = arith.constant 0 : index
    %353 = vector.load %arg9[%c7_352, %c0_353, %c0_354] : memref<9x10x10xf32, #tpu.memory_space<vmem>>, vector<1x10x10xf32>
    %354 = vector.shape_cast %353 : vector<1x10x10xf32> to vector<10x10xf32>
    %cst_355 = arith.constant dense<0.000000e+00> : vector<10x896xf32>
    %355 = tpu.matmul %354, %352, %cst_355 {dimension_numbers = #tpu.dot_dimension_numbers<[1], [0], [0], [1], [0, 0, 1, 1], [], []>} : vector<10x10xf32>, vector<10x896xf32>, vector<10x896xf32> -> vector<10x896xf32>
    %356 = arith.addf %351, %355 : vector<10x896xf32>
    %c0_356 = arith.constant 0 : index
    %c186_357 = arith.constant 186 : index
    %357 = vector.load %arg19[%c0_356, %c186_357] : memref<16x1152xf32, #tpu.memory_space<vmem>>, vector<10x896xf32>
    %c8_358 = arith.constant 8 : index
    %c0_359 = arith.constant 0 : index
    %c0_360 = arith.constant 0 : index
    %358 = vector.load %arg9[%c8_358, %c0_359, %c0_360] : memref<9x10x10xf32, #tpu.memory_space<vmem>>, vector<1x10x10xf32>
    %359 = vector.shape_cast %358 : vector<1x10x10xf32> to vector<10x10xf32>
    %cst_361 = arith.constant dense<0.000000e+00> : vector<10x896xf32>
    %360 = tpu.matmul %359, %357, %cst_361 {dimension_numbers = #tpu.dot_dimension_numbers<[1], [0], [0], [1], [0, 0, 1, 1], [], []>} : vector<10x10xf32>, vector<10x896xf32>, vector<10x896xf32> -> vector<10x896xf32>
    %361 = arith.addf %356, %360 : vector<10x896xf32>
    %cst_362 = arith.constant 0.000000e+00 : f32
    %362 = vector.broadcast %cst_362 : f32 to vector<10x896xf32>
    %363 = arith.maximumf %361, %362 : vector<10x896xf32>
    %c0_363 = arith.constant 0 : index
    %c0_364 = arith.constant 0 : index
    %c0_365 = arith.constant 0 : index
    %364 = vector.load %arg16[%c0_363, %c0_364, %c0_365] : memref<2x10x1xf32, #tpu.memory_space<vmem>>, vector<1x10x1xf32>
    %365 = vector.shape_cast %364 : vector<1x10x1xf32> to vector<10x1xf32>
    %366 = vector.broadcast %365 : vector<10x1xf32> to vector<10x896xf32>
    %367 = arith.mulf %363, %366 : vector<10x896xf32>
    %c1_366 = arith.constant 1 : index
    %c0_367 = arith.constant 0 : index
    %c0_368 = arith.constant 0 : index
    %368 = vector.load %arg16[%c1_366, %c0_367, %c0_368] : memref<2x10x1xf32, #tpu.memory_space<vmem>>, vector<1x10x1xf32>
    %369 = vector.shape_cast %368 : vector<1x10x1xf32> to vector<10x1xf32>
    %370 = vector.broadcast %369 : vector<10x1xf32> to vector<10x896xf32>
    %371 = arith.addf %367, %370 : vector<10x896xf32>
    %cst_369 = arith.constant 0.000000e+00 : f32
    %372 = vector.broadcast %cst_369 : f32 to vector<1x896xf32>
    %373 = arith.cmpf ogt, %6, %372 : vector<1x896xf32>
    %cst_370 = arith.constant 0.000000e+00 : f32
    %374 = vector.shape_cast %373 : vector<1x896xi1> to vector<1x896xi1>
    %375 = vector.broadcast %374 : vector<1x896xi1> to vector<10x896xi1>
    %376 = vector.broadcast %cst_370 : f32 to vector<10x896xf32>
    %377 = arith.select %375, %371, %376 : vector<10x896xi1>, vector<10x896xf32>
    %c0_371 = arith.constant 0 : index
    %c0_372 = arith.constant 0 : index
    %378 = vector.load %arg10[%c0_371, %c0_372] : memref<10x10xf32, #tpu.memory_space<vmem>>, vector<10x10xf32>
    %cst_373 = arith.constant dense<0.000000e+00> : vector<10x896xf32>
    %379 = tpu.matmul %378, %377, %cst_373 {dimension_numbers = #tpu.dot_dimension_numbers<[1], [0], [0], [1], [0, 0, 1, 1], [], []>} : vector<10x10xf32>, vector<10x896xf32>, vector<10x896xf32> -> vector<10x896xf32>
    %cst_374 = arith.constant dense<0.000000e+00> : vector<10xf32>
    %380 = vector.multi_reduction <add>, %379, %cst_374 [1] : vector<10x896xf32> to vector<10xf32>
    %381 = vector.shape_cast %380 : vector<10xf32> to vector<10x1xf32>
    %cst_375 = arith.constant 0.027777778 : f32
    %382 = vector.broadcast %cst_375 : f32 to vector<10x1xf32>
    %383 = arith.mulf %381, %382 : vector<10x1xf32>
    %cst_376 = arith.constant dense<0xFF800000> : vector<1xf32>
    %384 = vector.multi_reduction <maximumf>, %383, %cst_376 [0] : vector<10x1xf32> to vector<1xf32>
    %385 = vector.shape_cast %384 : vector<1xf32> to vector<1x1xf32>
    %386 = vector.broadcast %385 : vector<1x1xf32> to vector<10x1xf32>
    %387 = arith.subf %383, %386 : vector<10x1xf32>
    %388 = math.exp %387 : vector<10x1xf32>
    %cst_377 = arith.constant dense<0.000000e+00> : vector<1xf32>
    %389 = vector.multi_reduction <add>, %388, %cst_377 [0] : vector<10x1xf32> to vector<1xf32>
    %390 = vector.shape_cast %389 : vector<1xf32> to vector<1x1xf32>
    %391 = math.log %390 : vector<1x1xf32>
    %392 = vector.broadcast %385 : vector<1x1xf32> to vector<10x1xf32>
    %393 = arith.subf %383, %392 : vector<10x1xf32>
    %394 = vector.broadcast %391 : vector<1x1xf32> to vector<10x1xf32>
    %395 = arith.subf %393, %394 : vector<10x1xf32>
    %c0_378 = arith.constant 0 : index
    %c0_379 = arith.constant 0 : index
    %c0_380 = arith.constant 0 : index
    %396 = vector.load %arg17[%c0_378, %c0_379, %c0_380] : memref<1x10x1xf32, #tpu.memory_space<vmem>>, vector<1x10x1xf32>
    %397 = vector.shape_cast %396 : vector<1x10x1xf32> to vector<10x1xf32>
    %398 = vector.shape_cast %395 : vector<10x1xf32> to vector<1x10x1xf32>
    tpu.vector_store %arg17[%c0_378, %c0_379, %c0_380], %398 {strides = array<i32>} : memref<1x10x1xf32, #tpu.memory_space<vmem>>, vector<1x10x1xf32>,
    return
  }
  func.func @transform_0(%arg0: i32) -> (i32, i32, i32) {
    %c0_i32 = arith.constant 0 : i32
    %c0_i32_0 = arith.constant 0 : i32
    %c0_i32_1 = arith.constant 0 : i32
    return %arg0, %c0_i32, %c0_i32_0 : i32, i32, i32
  }
  func.func @transform_1(%arg0: i32) -> (i32, i32) {
    %c0_i32 = arith.constant 0 : i32
    %c0_i32_0 = arith.constant 0 : i32
    %c0_i32_1 = arith.constant 0 : i32
    return %c0_i32, %c0_i32_0 : i32, i32
  }
  func.func @transform_2(%arg0: i32) -> (i32, i32, i32) {
    %c0_i32 = arith.constant 0 : i32
    %c0_i32_0 = arith.constant 0 : i32
    %c0_i32_1 = arith.constant 0 : i32
    %c0_i32_2 = arith.constant 0 : i32
    return %c0_i32, %c0_i32_0, %c0_i32_1 : i32, i32, i32
  }
  func.func @transform_3(%arg0: i32) -> (i32, i32, i32) {
    %c0_i32 = arith.constant 0 : i32
    %c0_i32_0 = arith.constant 0 : i32
    %c0_i32_1 = arith.constant 0 : i32
    %c0_i32_2 = arith.constant 0 : i32
    return %c0_i32, %c0_i32_0, %c0_i32_1 : i32, i32, i32
  }
  func.func @transform_4(%arg0: i32) -> (i32, i32) {
    %c0_i32 = arith.constant 0 : i32
    %c0_i32_0 = arith.constant 0 : i32
    %c0_i32_1 = arith.constant 0 : i32
    return %c0_i32, %c0_i32_0 : i32, i32
  }
  func.func @transform_5(%arg0: i32) -> (i32, i32, i32) {
    %c0_i32 = arith.constant 0 : i32
    %c0_i32_0 = arith.constant 0 : i32
    %c0_i32_1 = arith.constant 0 : i32
    %c0_i32_2 = arith.constant 0 : i32
    return %c0_i32, %c0_i32_0, %c0_i32_1 : i32, i32, i32
  }
  func.func @transform_6(%arg0: i32) -> (i32, i32, i32) {
    %c0_i32 = arith.constant 0 : i32
    %c0_i32_0 = arith.constant 0 : i32
    %c0_i32_1 = arith.constant 0 : i32
    %c0_i32_2 = arith.constant 0 : i32
    return %c0_i32, %c0_i32_0, %c0_i32_1 : i32, i32, i32
  }
  func.func @transform_7(%arg0: i32) -> (i32, i32, i32) {
    %c0_i32 = arith.constant 0 : i32
    %c0_i32_0 = arith.constant 0 : i32
    %c0_i32_1 = arith.constant 0 : i32
    %c0_i32_2 = arith.constant 0 : i32
    return %c0_i32, %c0_i32_0, %c0_i32_1 : i32, i32, i32
  }
  func.func @transform_8(%arg0: i32) -> (i32, i32, i32) {
    %c0_i32 = arith.constant 0 : i32
    %c0_i32_0 = arith.constant 0 : i32
    %c0_i32_1 = arith.constant 0 : i32
    %c0_i32_2 = arith.constant 0 : i32
    return %c0_i32, %c0_i32_0, %c0_i32_1 : i32, i32, i32
  }
  func.func @transform_9(%arg0: i32) -> (i32, i32) {
    %c0_i32 = arith.constant 0 : i32
    %c0_i32_0 = arith.constant 0 : i32
    %c0_i32_1 = arith.constant 0 : i32
    return %c0_i32, %c0_i32_0 : i32, i32
  }
  func.func @transform_10(%arg0: i32) -> (i32, i32, i32) {
    %c0_i32 = arith.constant 0 : i32
    %c0_i32_0 = arith.constant 0 : i32
    %c0_i32_1 = arith.constant 0 : i32
    %c0_i32_2 = arith.constant 0 : i32
    return %c0_i32, %c0_i32_0, %c0_i32_1 : i32, i32, i32
  }
  func.func @transform_11(%arg0: i32) -> (i32, i32, i32) {
    %c0_i32 = arith.constant 0 : i32
    %c0_i32_0 = arith.constant 0 : i32
    %c0_i32_1 = arith.constant 0 : i32
    %c0_i32_2 = arith.constant 0 : i32
    return %c0_i32, %c0_i32_0, %c0_i32_1 : i32, i32, i32
  }
  func.func @transform_12(%arg0: i32) -> (i32, i32, i32) {
    %c0_i32 = arith.constant 0 : i32
    %c0_i32_0 = arith.constant 0 : i32
    %c0_i32_1 = arith.constant 0 : i32
    %c0_i32_2 = arith.constant 0 : i32
    return %c0_i32, %c0_i32_0, %c0_i32_1 : i32, i32, i32
  }
  func.func @transform_13(%arg0: i32) -> (i32, i32, i32) {
    %c0_i32 = arith.constant 0 : i32
    %c0_i32_0 = arith.constant 0 : i32
    %c0_i32_1 = arith.constant 0 : i32
    %c0_i32_2 = arith.constant 0 : i32
    return %c0_i32, %c0_i32_0, %c0_i32_1 : i32, i32, i32
  }
  func.func @transform_14(%arg0: i32) -> (i32, i32, i32) {
    %c0_i32 = arith.constant 0 : i32
    %c0_i32_0 = arith.constant 0 : i32
    %c0_i32_1 = arith.constant 0 : i32
    %c0_i32_2 = arith.constant 0 : i32
    return %c0_i32, %c0_i32_0, %c0_i32_1 : i32, i32, i32
  }
  func.func @transform_15(%arg0: i32) -> (i32, i32, i32) {
    %c0_i32 = arith.constant 0 : i32
    %c0_i32_0 = arith.constant 0 : i32
    %c0_i32_1 = arith.constant 0 : i32
    %c0_i32_2 = arith.constant 0 : i32
    return %c0_i32, %c0_i32_0, %c0_i32_1 : i32, i32, i32
  }
  func.func @transform_16(%arg0: i32) -> (i32, i32, i32) {
    %c0_i32 = arith.constant 0 : i32
    %c0_i32_0 = arith.constant 0 : i32
    %c0_i32_1 = arith.constant 0 : i32
    return %arg0, %c0_i32, %c0_i32_0 : i32, i32, i32
  }
}

</mosaic_0001>

<bundles_post_ra>
// kernel: net_a_forward.1
= control target key start
LH: loop header
LB: loop body
LE: loop exit
PB: predicated region body
PF: predicated region fallthrough
CT: control target
= control target key end

     0   :  { %s25263_s21 = smov 0   ;;  %s30550_s0 = inlined_call_operand.vmem [shape: f32[2,1,784], index: 0, kind: input, shape index: {}]   ;;  %s30551_s1 = inlined_call_operand.vmem [shape: f32[1,896], index: 1, kind: input, shape index: {}]   ;;  %s30552_s2 = inlined_call_operand.vmem [shape: f32[9,16,1], index: 2, kind: input, shape index: {}]   ;;  %s30553_s3 = inlined_call_operand.vmem [shape: f32[9,16,16], index: 3, kind: input, shape index: {}]   ;;  %s30554_s4 = inlined_call_operand.vmem [shape: f32[10,16], index: 4, kind: input, shape index: {}]   ;;  %s30555_s5 = inlined_call_operand.vmem [shape: f32[9,16,10], index: 5, kind: input, shape index: {}]   ;;  %s30556_s6 = inlined_call_operand.vmem [shape: f32[9,10,16], index: 6, kind: input, shape index: {}]   ;;  %s30557_s7 = inlined_call_operand.vmem [shape: f32[9,10,10], index: 7, kind: input, shape index: {}]   ;;  %s30558_s8 = inlined_call_operand.vmem [shape: f32[9,10,10], index: 8, kind: input, shape index: {}]   ;;  %s30559_s9 = inlined_call_operand.vmem [shape: f32[10,10], index: 9, kind: input, shape index: {}]   ;;  %s30560_s10 = inlined_call_operand.vmem [shape: f32[2,16,1], index: 10, kind: input, shape index: {}]   ;;  %s30561_s11 = inlined_call_operand.vmem [shape: f32[2,16,1], index: 11, kind: input, shape index: {}]   ;;  %s30562_s12 = inlined_call_operand.vmem [shape: f32[2,16,1], index: 12, kind: input, shape index: {}]   ;;  %s30563_s13 = inlined_call_operand.vmem [shape: f32[2,10,1], index: 13, kind: input, shape index: {}]   ;;  %s30564_s14 = inlined_call_operand.vmem [shape: f32[2,10,1], index: 14, kind: input, shape index: {}]   ;;  %s30565_s15 = inlined_call_operand.vmem [shape: f32[2,10,1], index: 15, kind: input, shape index: {}]   ;;  %s30566_s16 = inlined_call_operand.vmem [shape: f32[2,10,1], index: 16, kind: output, shape index: {}]  }
   0x1   :  { %30620 = sst [smem:[#allocation44_spill]] %s30550_s0 }
   0x2 LB: > { %s20743_s22 = sadd.s32 4294967295, %s25155_s21   ;;  %p20747_p0 = scmp.ge.s32.totalorder %s25155_s21, 1  ;;  %s25155_s21 = sphi %s25263_s21, %s26_s21  }
   0x3   : > { %p461_p1 = scmp.lt.s32.totalorder %s25155_s21, 3 }
   0x5   : > { %p462_p2 = pnand %p20747_p0, %p461_p1 }
   0x7   : > { %465 = sbr.rel (%p462_p2) target bundleno = 4229 (0x1085), region = 84 }
   0xe   : > { %v20752_v0 = vld [vmem:[%s30552_s2 + $0x20] sm:$0xff]  ;;  %v20750_v1 = vld [vmem:[%s30552_s2 + $0x10] sm:$0xff]  ;;  %p25277_p3 = scmp.lt.s32.totalorder %s20743_s22, 1  ;;  %v30567_v2 = vmov 0   ;;  %v25158_v3 = vmov 0.0   ;;  %v556_v4 = vlaneseq  ;;  %v20753_v5 = vld [vmem:[%s30552_s2 + $0x28] sm:$0xff] }
   0xf   : > { %23524 = vset.pattern.permute.xlu1 %v30567_v2  ;;  %23523 = vset.pattern.permute.xlu0 %v30567_v2  ;;  %520 = vst [vmem:[#allocation2 + $0x8] sm:$0xff] %v25158_v3  ;;  %521 = vst [vmem:[#allocation2 + $0x10] sm:$0xff] %v25158_v3  ;;  %v20751_v6 = vld [vmem:[%s30552_s2 + $0x18] sm:$0xff]  ;;  %s30622_s20 = sld [smem:[#allocation44_spill]]  ;;  %v20754_v8 = vld [vmem:[%s30552_s2 + $0x30] sm:$0xff]  ;;  %s25159_s26 = smov 127  }
  0x10   : > { %522 = vst [vmem:[#allocation2 + $0x18] sm:$0xff] %v25158_v3  ;;  %523 = vst [vmem:[#allocation2 + $0x20] sm:$0xff] %v25158_v3  ;;  %798 = vperm.xlu1 %23524, %v20752_v0   ;;  %637 = vperm.xlu0 %23523, %v20750_v1   ;;  %s30750_s22 = smov (!%p25277_p3, %s20743_s22), 1  ;;  %vm558_vm0 = vcmp.lt.s32.totalorder %v556_v4, 784  ;;  %v20755_v7 = vld [vmem:[%s30552_s2 + $0x38] sm:$0xff]  ;;  %v25303_v10 = vshrl.u32 %v556_v4, 7 }
  0x11   : > { %524 = vst [vmem:[#allocation2 + $0x28] sm:$0xff] %v25158_v3  ;;  %525 = vst [vmem:[#allocation2 + $0x30] sm:$0xff] %v25158_v3  ;;  %1896 = vmatprep.mubr.f32.mxu1 %v25158_v3  ;;  %4139 = vmatprep.mubr.f32.mxu0 %v25158_v3  ;;  %s23493_s17 = smul.u32 7, %s30750_s22  ;;  %v20757_v11 = vld [vmem:[%s30552_s2 + $0x48] sm:$0xff]  ;;  %v20756_v12 = vld [vmem:[%s30552_s2 + $0x40] sm:$0xff]  ;;  %s25160_s27 = smov 126  }
  0x12   : > { %526 = vst [vmem:[#allocation2 + $0x38] sm:$0xff] %v25158_v3  ;;  %527 = vst [vmem:[#allocation2 + $0x40] sm:$0xff] %v25158_v3  ;;  %v20759_v13 = vld [vmem:[%s30552_s2 + $0x58] sm:$0xff]  ;;  %v20758_v14 = vld [vmem:[%s30552_s2 + $0x50] sm:$0xff]  ;;  %v676_v15 = vsub.s32 7, %v25303_v10  ;;  %v25348_v28 = vsub.s32 2, %v25303_v10 }
  0x13   : > { %536 = vst [vmem:[#allocation2 + $0x88] sm:$0xff] %v25158_v3  ;;  %546 = vst [vmem:[#allocation3 + $0x48] sm:$0xff] %v25158_v3  ;;  %v20761_v19 = vld [vmem:[%s30552_s2 + $0x68] sm:$0xff]  ;;  %v20760_v20 = vld [vmem:[%s30552_s2 + $0x60] sm:$0xff]  ;;  %v25351_v29 = vsub.s32 1, %v25303_v10  ;;  %v25362_v32 = vsub.s32 3, %v25303_v10 }
  0x14   : > { %554 = vst [vmem:[#allocation3 + $0x88] sm:$0xff] %v25158_v3  ;;  %803 = vperm.xlu1 %23524, %v20753_v5   ;;  %642 = vperm.xlu0 %23523, %v20751_v6   ;;  %v20763_v22 = vld [vmem:[%s30552_s2 + $0x78] sm:$0xff]  ;;  %v20762_v23 = vld [vmem:[%s30552_s2 + $0x70] sm:$0xff]  ;;  %v20765_v24 = vld [vmem:[%s30552_s2 + $0x88] sm:$0xff]  ;;  %v25383_v40 = vsub.s32 0, %v25303_v10  ;;  %s25161_s28 = smov 100  }
  0x15   : > { %s513_s23 = scalar_lea.vmem %s30622_s20, %s23493_s17  ;;  %v20764_v25 = vld [vmem:[%s30552_s2 + $0x80] sm:$0xff]  ;;  %v568_v26 = vld [vmem:[%s30552_s2 + $0x8] sm:$0xff]  ;;  %30623 = vst [vmem:[#allocation4_spill] sm:$0xff] %v25348_v28  ;;  %30624 = vst [vmem:[#allocation5_spill] sm:$0xff] %v25351_v29  ;;  %s25162_s29 = smov 99   ;;  %vm750_vm1 = vcmask 1039360  }
  0x16   : > { %v555_v9 = vld [vmem:[%s513_s23] sm:$0x7f]  ;;  %30625 = vst [vmem:[#allocation6_spill] sm:$0xff] %v25362_v32  ;;  %30626 = vst [vmem:[#allocation7_spill] sm:$0xff] %v25383_v40  ;;  %s25163_s30 = smov 98   ;;  %s25164_s0 = smov 72  }
  0x17   : > { %561 = vst.msk [vmem:[#allocation2 + $0x8] ss:$8 sm:$0xf] %vm558_vm0, %v555_v9  ;;  %562 = vst.msk [vmem:[#allocation2 + $0x8] ss:$8 sm:$0x70] %vm558_vm0, %v555_v9 }
  0x18   : > { %923 = vperm.xlu1 %23524, %v20755_v7   ;;  %918 = vperm.xlu0 %23523, %v20754_v8   ;;  %v567_v27 = vld [vmem:[%s30552_s2] sm:$0xff]  ;;  %s25165_s17 = smov 71   ;;  %s25166_s24 = smov 70   ;;  %vm870_vm2 = vcmask 1031168   ;;  %vm990_vm3 = vcmask 818176   ;;  %vm1110_vm4 = vcmask 809984  }
  0x19   : > { %vm1230_vm5 = vcmask 801792   ;;  %vm1350_vm6 = vcmask 588800   ;;  %vm1470_vm7 = vcmask 580608   ;;  %vm1590_vm8 = vcmask 572416   ;;  %s25169_s23 = smov 16   ;;  %s30618_s25 = smov 14  }
  0x1a   : > { %vm1825_vm9 = vcmask 130048   ;;  %s25171_s18 = smov 12   ;;  %vm5949_vm10 = vcmask 1041408   ;;  %vm25172_vm11 = vmmov 1   ;;  %vm5942_vm13 = vcmask 80896   ;;  %s25173_s20 = smov 56  }
  0x1b   : > { %vm27729_vm12 = vmpackc.low %vm5949_vm10, %vm25172_vm11  ;;  %vm6638_vm14 = vcmask 1014784   ;;  %vm7827_vm15 = vcmask 556032   ;;  %vm8620_vm0 = vcmask 113664   ;;  %s25174_s19 = smov 58  }
  0x1c   : > { %1043 = vperm.xlu1 %23524, %v20757_v11   ;;  %1038 = vperm.xlu0 %23523, %v20756_v12   ;;  %v25480_v12 = vsub.s32 5, %v25303_v10 }
  0x1e   : > { %v629_v16 = vld [vmem:[#allocation2 + $0x8] ss:$8 sm:$0xf]  ;;  %30627 = vst [vmem:[#allocation8_spill] sm:$0xff] %v25480_v12 }
  0x1f   : > { %v630_v17 = vld [vmem:[#allocation2 + $0x8] ss:$8 sm:$0xf0] }
  0x20   : > { %v25318_v18 = vor.u32 %v630_v17, %v629_v16  ;;  %1163 = vperm.xlu1 %23524, %v20759_v13   ;;  %1158 = vperm.xlu0 %23523, %v20758_v14   ;;  %v25483_v13 = vsub.s32 4, %v25303_v10 }
  0x22   : > { %v25327_v21 = vrot.slane %v25318_v18, %v676_v15  ;;  %v25355_v30 = vrot.slane %v25318_v18, %v25348_v28  ;;  %v25359_v31 = vrot.slane %v25318_v18, %v25351_v29  ;;  %v25372_v36 = vrot.slane %v25318_v18, %v25362_v32  ;;  %30628 = vst [vmem:[#allocation9_spill] sm:$0xff] %v25483_v13 }
  0x23   : > { %v25393_v43 = vrot.slane %v25318_v18, %v25383_v40  ;;  %v25493_v16 = vrot.slane %v25318_v18, %v25480_v12  ;;  %v25497_v17 = vrot.slane %v25318_v18, %v25483_v13 }
  0x24   : > { %1283 = vperm.xlu1 %23524, %v20761_v19   ;;  %1278 = vperm.xlu0 %23523, %v20760_v20  }
  0x28   : > { %1403 = vperm.xlu1 %23524, %v20763_v22   ;;  %1398 = vperm.xlu0 %23523, %v20762_v23  }
  0x2c   : > { %1523 = vperm.xlu1 %23524, %v20765_v24   ;;  %1518 = vperm.xlu0 %23523, %v20764_v25  }
  0x30   : > { %576 = vperm.xlu1 %23524, %v568_v26   ;;  %571 = vperm.xlu0 %23523, %v567_v27  }
  0x8f   : > { %v25364_v33 = vpop.permute.xlu0 %637  ;;  %v25401_v46 = vpop.permute.xlu1 %798 }
  0x90   : > { %v688_v34 = vmul.f32 %v25355_v30, %v25364_v33  ;;  %v687_v35 = vmul.f32 %v25359_v31, %v25364_v33  ;;  %v689_v39 = vmul.f32 %v25372_v36, %v25364_v33  ;;  %v686_v45 = vmul.f32 %v25393_v43, %v25364_v33 }
  0x91   : > { %v808_v47 = vmul.f32 %v25401_v46, %v25355_v30  ;;  %v807_v48 = vmul.f32 %v25401_v46, %v25359_v31  ;;  %v809_v51 = vmul.f32 %v25401_v46, %v25372_v36  ;;  %v806_v55 = vmul.f32 %v25401_v46, %v25393_v43 }
  0x92   : > { %722 = vrot.lane.b32.xlu1 %v688_v34, %s25159_s26  ;;  %720 = vrot.lane.b32.xlu0 %v687_v35, %s25159_s26  ;;  %v691_v19 = vmul.f32 %v25493_v16, %v25364_v33  ;;  %v690_v20 = vmul.f32 %v25497_v17, %v25364_v33 }
  0x93   : > { %v25376_v37 = vpop.permute.xlu0 %642  ;;  %v25411_v49 = vpop.permute.xlu1 %803 }
  0x94   : > { %v695_v38 = vmul.f32 %v25359_v31, %v25376_v37  ;;  %v697_v41 = vmul.f32 %v25372_v36, %v25376_v37  ;;  %v696_v42 = vmul.f32 %v25355_v30, %v25376_v37  ;;  %v694_v44 = vmul.f32 %v25393_v43, %v25376_v37 }
  0x95   : > { %v815_v50 = vmul.f32 %v25411_v49, %v25359_v31  ;;  %v817_v52 = vmul.f32 %v25411_v49, %v25372_v36  ;;  %v816_v53 = vmul.f32 %v25411_v49, %v25355_v30  ;;  %v814_v54 = vmul.f32 %v25411_v49, %v25393_v43 }
  0x96   : > { %736 = vrot.lane.b32.xlu1 %v695_v38, %s25159_s26  ;;  %724 = vrot.lane.b32.xlu0 %v689_v39, %s25159_s26  ;;  %v699_v22 = vmul.f32 %v25493_v16, %v25376_v37  ;;  %v698_v23 = vmul.f32 %v25497_v17, %v25376_v37 }
  0x97   : > { %v25429_v56 = vpop.permute.xlu0 %918  ;;  %v25439_v59 = vpop.permute.xlu1 %923 }
  0x98   : > { %v928_v57 = vmul.f32 %v25429_v56, %v25355_v30  ;;  %v927_v58 = vmul.f32 %v25429_v56, %v25359_v31  ;;  %v935_v60 = vmul.f32 %v25439_v59, %v25359_v31  ;;  %v929_v61 = vmul.f32 %v25429_v56, %v25372_v36 }
  0x99   : > { %v937_v62 = vmul.f32 %v25439_v59, %v25372_v36  ;;  %v936_v63 = vmul.f32 %v25439_v59, %v25355_v30  ;;  %v934_v0 = vmul.f32 %v25439_v59, %v25393_v43  ;;  %v926_v1 = vmul.f32 %v25429_v56, %v25393_v43 }
  0x9a   : > { %740 = vrot.lane.b32.xlu1 %v697_v41, %s25159_s26  ;;  %738 = vrot.lane.b32.xlu0 %v696_v42, %s25159_s26 }
  0x9b   : > { %v25457_v3 = vpop.permute.xlu0 %1038  ;;  %v25467_v6 = vpop.permute.xlu1 %1043 }
  0x9c   : > { %v1048_v4 = vmul.f32 %v25457_v3, %v25355_v30  ;;  %v1047_v5 = vmul.f32 %v25457_v3, %v25359_v31  ;;  %v1055_v7 = vmul.f32 %v25467_v6, %v25359_v31  ;;  %v1049_v8 = vmul.f32 %v25457_v3, %v25372_v36 }
  0x9d   : > { %v1057_v9 = vmul.f32 %v25467_v6, %v25372_v36  ;;  %v1056_v11 = vmul.f32 %v25467_v6, %v25355_v30  ;;  %v1054_v14 = vmul.f32 %v25467_v6, %v25393_v43  ;;  %v1046_v15 = vmul.f32 %v25457_v3, %v25393_v43 }
  0x9e   : > { %734 = vrot.lane.b32.xlu1 %v694_v44, %s25159_s26  ;;  %718 = vrot.lane.b32.xlu0 %v686_v45, %s25159_s26  ;;  %v811_v44 = vmul.f32 %v25401_v46, %v25493_v16  ;;  %v810_v45 = vmul.f32 %v25401_v46, %v25497_v17 }
  0x9f   : > { %v25511_v24 = vpop.permute.xlu0 %1158  ;;  %v25519_v27 = vpop.permute.xlu1 %1163 }
  0xa0   : > { %v1168_v25 = vmul.f32 %v25511_v24, %v25355_v30  ;;  %v1167_v26 = vmul.f32 %v25511_v24, %v25359_v31  ;;  %v1175_v34 = vmul.f32 %v25519_v27, %v25359_v31  ;;  %v1169_v35 = vmul.f32 %v25511_v24, %v25372_v36 }
  0xa1   : > { %v1177_v38 = vmul.f32 %v25519_v27, %v25372_v36  ;;  %v1176_v39 = vmul.f32 %v25519_v27, %v25355_v30  ;;  %v1174_v41 = vmul.f32 %v25519_v27, %v25393_v43  ;;  %v1166_v42 = vmul.f32 %v25511_v24, %v25393_v43 }
  0xa2   : > { %842 = vrot.lane.b32.xlu1 %v808_v47, %s25160_s27  ;;  %840 = vrot.lane.b32.xlu0 %v807_v48, %s25160_s27  ;;  %v819_v47 = vmul.f32 %v25411_v49, %v25493_v16  ;;  %v818_v48 = vmul.f32 %v25411_v49, %v25497_v17 }
  0xa6   : > { %856 = vrot.lane.b32.xlu1 %v815_v50, %s25160_s27  ;;  %844 = vrot.lane.b32.xlu0 %v809_v51, %s25160_s27  ;;  %v25551_v50 = vpop.permute.xlu0 %1278  ;;  %v25553_v51 = vpop.permute.xlu1 %1283 }
  0xaa   : > { %860 = vrot.lane.b32.xlu1 %v817_v52, %s25160_s27  ;;  %858 = vrot.lane.b32.xlu0 %v816_v53, %s25160_s27  ;;  %v1288_v52 = vmul.f32 %v25551_v50, %v25355_v30  ;;  %v1287_v53 = vmul.f32 %v25551_v50, %v25359_v31 }
  0xae   : > { %854 = vrot.lane.b32.xlu1 %v814_v54, %s25160_s27  ;;  %838 = vrot.lane.b32.xlu0 %v806_v55, %s25160_s27  ;;  %v25563_v54 = vpop.permute.xlu1 %1403  ;;  %v25565_v55 = vpop.permute.xlu0 %1398 }
  0xb2   : > { %962 = vrot.lane.b32.xlu1 %v928_v57, %s25161_s28  ;;  %960 = vrot.lane.b32.xlu0 %v927_v58, %s25161_s28  ;;  %v1295_v57 = vmul.f32 %v25553_v51, %v25359_v31  ;;  %v1289_v58 = vmul.f32 %v25551_v50, %v25372_v36 }
  0xb6   : > { %976 = vrot.lane.b32.xlu1 %v935_v60, %s25161_s28  ;;  %964 = vrot.lane.b32.xlu0 %v929_v61, %s25161_s28  ;;  %v1297_v60 = vmul.f32 %v25553_v51, %v25372_v36  ;;  %v1296_v61 = vmul.f32 %v25553_v51, %v25355_v30 }
  0xba   : > { %980 = vrot.lane.b32.xlu1 %v937_v62, %s25161_s28  ;;  %978 = vrot.lane.b32.xlu0 %v936_v63, %s25161_s28  ;;  %v25577_v62 = vpop.permute.xlu1 %1523  ;;  %v25579_v63 = vpop.permute.xlu0 %1518 }
  0xbe   : > { %974 = vrot.lane.b32.xlu1 %v934_v0, %s25161_s28  ;;  %958 = vrot.lane.b32.xlu0 %v926_v1, %s25161_s28  ;;  %v1294_v0 = vmul.f32 %v25553_v51, %v25393_v43  ;;  %v1286_v1 = vmul.f32 %v25551_v50, %v25393_v43 }
  0xc2   : > { %1082 = vrot.lane.b32.xlu1 %v1048_v4, %s25162_s29  ;;  %1080 = vrot.lane.b32.xlu0 %v1047_v5, %s25162_s29  ;;  %v25589_v4 = vpop.permute.xlu1 %576  ;;  %v25591_v5 = vpop.permute.xlu0 %571 }
  0xc3   : > { %30629 = vst [vmem:[#allocation10_spill] sm:$0xff] %v25589_v4  ;;  %30630 = vst [vmem:[#allocation11_spill] sm:$0xff] %v25591_v5 }
  0xc6   : > { %1096 = vrot.lane.b32.xlu1 %v1055_v7, %s25162_s29  ;;  %1084 = vrot.lane.b32.xlu0 %v1049_v8, %s25162_s29  ;;  %v931_v7 = vmul.f32 %v25429_v56, %v25493_v16  ;;  %v930_v8 = vmul.f32 %v25429_v56, %v25497_v17 }
  0xca   : > { %1100 = vrot.lane.b32.xlu1 %v1057_v9, %s25162_s29  ;;  %1098 = vrot.lane.b32.xlu0 %v1056_v11, %s25162_s29 }
  0xce   : > { %1094 = vrot.lane.b32.xlu1 %v1054_v14, %s25162_s29  ;;  %1078 = vrot.lane.b32.xlu0 %v1046_v15, %s25162_s29  ;;  %v939_v14 = vmul.f32 %v25439_v59, %v25493_v16  ;;  %v938_v15 = vmul.f32 %v25439_v59, %v25497_v17 }
  0xd2   : > { %728 = vrot.lane.b32.xlu1 %v691_v19, %s25159_s26  ;;  %726 = vrot.lane.b32.xlu0 %v690_v20, %s25159_s26 }
  0xd6   : > { %744 = vrot.lane.b32.xlu1 %v699_v22, %s25159_s26  ;;  %742 = vrot.lane.b32.xlu0 %v698_v23, %s25159_s26  ;;  %v1408_v22 = vmul.f32 %v25565_v55, %v25355_v30  ;;  %v1407_v23 = vmul.f32 %v25565_v55, %v25359_v31 }
  0xda   : > { %1202 = vrot.lane.b32.xlu1 %v1168_v25, %s25163_s30  ;;  %1200 = vrot.lane.b32.xlu0 %v1167_v26, %s25163_s30 }
  0xde   : > { %1216 = vrot.lane.b32.xlu1 %v1175_v34, %s25163_s30  ;;  %1204 = vrot.lane.b32.xlu0 %v1169_v35, %s25163_s30  ;;  %v1415_v34 = vmul.f32 %v25563_v54, %v25359_v31  ;;  %v1409_v35 = vmul.f32 %v25565_v55, %v25372_v36 }
  0xe2   : > { %1220 = vrot.lane.b32.xlu1 %v1177_v38, %s25163_s30  ;;  %1218 = vrot.lane.b32.xlu0 %v1176_v39, %s25163_s30 }
  0xe6   : > { %1214 = vrot.lane.b32.xlu1 %v1174_v41, %s25163_s30  ;;  %1198 = vrot.lane.b32.xlu0 %v1166_v42, %s25163_s30  ;;  %v1417_v41 = vmul.f32 %v25563_v54, %v25372_v36  ;;  %v1416_v42 = vmul.f32 %v25563_v54, %v25355_v30 }
  0xea   : > { %848 = vrot.lane.b32.xlu1 %v811_v44, %s25160_s27  ;;  %846 = vrot.lane.b32.xlu0 %v810_v45, %s25160_s27  ;;  %v1648_v44 = vld [vmem:[%s30560_s10 + $0x8] sm:$0xff]  ;;  %v1647_v45 = vld [vmem:[%s30560_s10] sm:$0xff] }
  0xee   : > { %864 = vrot.lane.b32.xlu1 %v819_v47, %s25160_s27  ;;  %862 = vrot.lane.b32.xlu0 %v818_v48, %s25160_s27 }
  0xf2   : > { %1322 = vrot.lane.b32.xlu1 %v1288_v52, %s25164_s0  ;;  %1320 = vrot.lane.b32.xlu0 %v1287_v53, %s25164_s0 }
  0xf6   : > { %1336 = vrot.lane.b32.xlu1 %v1295_v57, %s25164_s0  ;;  %1324 = vrot.lane.b32.xlu0 %v1289_v58, %s25164_s0  ;;  %v1414_v57 = vmul.f32 %v25563_v54, %v25393_v43  ;;  %v1406_v58 = vmul.f32 %v25565_v55, %v25393_v43 }
  0xfa   : > { %1340 = vrot.lane.b32.xlu1 %v1297_v60, %s25164_s0  ;;  %1338 = vrot.lane.b32.xlu0 %v1296_v61, %s25164_s0 }
  0xfe   : > { %1334 = vrot.lane.b32.xlu1 %v1294_v0, %s25164_s0  ;;  %1318 = vrot.lane.b32.xlu0 %v1286_v1, %s25164_s0  ;;  %v1051_v0 = vmul.f32 %v25457_v3, %v25493_v16  ;;  %v1050_v1 = vmul.f32 %v25457_v3, %v25497_v17 }
 0x102   : > { %968 = vrot.lane.b32.xlu1 %v931_v7, %s25161_s28  ;;  %966 = vrot.lane.b32.xlu0 %v930_v8, %s25161_s28 }
 0x104   : > { %v25599_v9 = vpop.permute.xlu1 %722  ;;  %v25601_v11 = vpop.permute.xlu0 %720 }
 0x106   : > { %984 = vrot.lane.b32.xlu1 %v939_v14, %s25161_s28  ;;  %982 = vrot.lane.b32.xlu0 %v938_v15, %s25161_s28  ;;  %v1059_v14 = vmul.f32 %v25467_v6, %v25493_v16  ;;  %v1058_v15 = vmul.f32 %v25467_v6, %v25497_v17 }
 0x108   : > { %v25609_v19 = vpop.permute.xlu1 %736  ;;  %v25611_v20 = vpop.permute.xlu0 %724 }
 0x109   : > { %30631 = vst [vmem:[#allocation12_spill] sm:$0xff] %v25611_v20 }
 0x10a   : > { %1442 = vrot.lane.b32.xlu1 %v1408_v22, %s25165_s17  ;;  %1440 = vrot.lane.b32.xlu0 %v1407_v23, %s25165_s17 }
 0x10c   : > { %v25619_v25 = vpop.permute.xlu1 %740  ;;  %v25621_v26 = vpop.permute.xlu0 %738 }
 0x10d   : > { %30632 = vst [vmem:[#allocation13_spill] sm:$0xff] %v25619_v25 }
 0x10e   : > { %1456 = vrot.lane.b32.xlu1 %v1415_v34, %s25165_s17  ;;  %1444 = vrot.lane.b32.xlu0 %v1409_v35, %s25165_s17  ;;  %v1528_v34 = vmul.f32 %v25579_v63, %v25355_v30  ;;  %v1527_v35 = vmul.f32 %v25579_v63, %v25359_v31 }
 0x110   : > { %v25629_v38 = vpop.permute.xlu1 %734  ;;  %v25631_v39 = vpop.permute.xlu0 %718 }
 0x112   : > { %1460 = vrot.lane.b32.xlu1 %v1417_v41, %s25165_s17  ;;  %1458 = vrot.lane.b32.xlu0 %v1416_v42, %s25165_s17 }
 0x114   : > { %v25645_v47 = vpop.permute.xlu1 %842  ;;  %v25647_v48 = vpop.permute.xlu0 %840 }
 0x116   : > { %1656 = vperm.xlu1 %23524, %v1648_v44   ;;  %1651 = vperm.xlu0 %23523, %v1647_v45   ;;  %v1535_v44 = vmul.f32 %v25577_v62, %v25359_v31  ;;  %v1529_v45 = vmul.f32 %v25579_v63, %v25372_v36  ;;  %v20767_v31 = vld [vmem:[%s30560_s10 + $0x18] sm:$0xff] }
 0x118   : > { %v25649_v52 = vpop.permute.xlu1 %856  ;;  %v25651_v53 = vpop.permute.xlu0 %844 }
 0x11a   : > { %1454 = vrot.lane.b32.xlu1 %v1414_v57, %s25165_s17  ;;  %1438 = vrot.lane.b32.xlu0 %v1406_v58, %s25165_s17 }
 0x11c   : > { %v25659_v60 = vpop.permute.xlu1 %860  ;;  %v25661_v61 = vpop.permute.xlu0 %858 }
 0x11e   : > { %1088 = vrot.lane.b32.xlu1 %v1051_v0, %s25162_s29  ;;  %1086 = vrot.lane.b32.xlu0 %v1050_v1, %s25162_s29  ;;  %v1537_v0 = vmul.f32 %v25577_v62, %v25372_v36  ;;  %v1536_v1 = vmul.f32 %v25577_v62, %v25355_v30  ;;  %v25720_v36 = vsub.s32 6, %v25303_v10 }
 0x120   : > { %v25669_v7 = vpop.permute.xlu1 %854  ;;  %v25671_v8 = vpop.permute.xlu0 %838  ;;  %30634 = vst [vmem:[#allocation15_spill] sm:$0xff] %v25720_v36 }
 0x122   : > { %1104 = vrot.lane.b32.xlu1 %v1059_v14, %s25162_s29  ;;  %1102 = vrot.lane.b32.xlu0 %v1058_v15, %s25162_s29  ;;  %v20766_v14 = vld [vmem:[%s30560_s10 + $0x10] sm:$0xff] }
 0x124   : > { %v25679_v22 = vpop.permute.xlu1 %962  ;;  %v25681_v23 = vpop.permute.xlu0 %960 }
 0x126   : > { %1562 = vrot.lane.b32.xlu1 %v1528_v34, %s25166_s24  ;;  %1560 = vrot.lane.b32.xlu0 %v1527_v35, %s25166_s24 }
 0x128   : > { %v25689_v41 = vpop.permute.xlu1 %976  ;;  %v25691_v42 = vpop.permute.xlu0 %964 }
 0x12a   : > { %1576 = vrot.lane.b32.xlu1 %v1535_v44, %s25166_s24  ;;  %1564 = vrot.lane.b32.xlu0 %v1529_v45, %s25166_s24  ;;  %v1534_v44 = vmul.f32 %v25577_v62, %v25393_v43  ;;  %v1526_v45 = vmul.f32 %v25579_v63, %v25393_v43 }
 0x12c   : > { %v25699_v57 = vpop.permute.xlu1 %980  ;;  %v25701_v58 = vpop.permute.xlu0 %978 }
 0x12e   : > { %1580 = vrot.lane.b32.xlu1 %v1537_v0, %s25166_s24  ;;  %1578 = vrot.lane.b32.xlu0 %v1536_v1, %s25166_s24  ;;  %v25732_v0 = vrot.slane %v25318_v18, %v25720_v36 }
 0x130   : > { %v25715_v15 = vpop.permute.xlu1 %974  ;;  %v25717_v34 = vpop.permute.xlu0 %958 }
 0x131   : > { %30633 = vst [vmem:[#allocation14_spill] sm:$0xff] %v25717_v34 }
 0x132   : > { %1683 = vperm.xlu1 %23524, %v20767_v31   ;;  %1678 = vperm.xlu0 %23523, %v20766_v14   ;;  %v693_v31 = vmul.f32 %v25327_v21, %v25364_v33  ;;  %v692_v14 = vmul.f32 %v25732_v0, %v25364_v33 }
 0x134   : > { %v25722_v30 = vpop.permute.xlu1 %1082  ;;  %v25724_v35 = vpop.permute.xlu0 %1080 }
 0x136   : > { %1574 = vrot.lane.b32.xlu1 %v1534_v44, %s25166_s24  ;;  %1558 = vrot.lane.b32.xlu0 %v1526_v45, %s25166_s24  ;;  %v701_v44 = vmul.f32 %v25327_v21, %v25376_v37  ;;  %v700_v45 = vmul.f32 %v25732_v0, %v25376_v37 }
 0x138   : > { %v25736_v10 = vpop.permute.xlu1 %1096  ;;  %v25738_v1 = vpop.permute.xlu0 %1084 }
 0x13a   : > { %732 = vrot.lane.b32.xlu1 %v693_v31, %s25159_s26  ;;  %730 = vrot.lane.b32.xlu0 %v692_v14, %s25159_s26  ;;  %v1171_v31 = vmul.f32 %v25511_v24, %v25493_v16  ;;  %v1170_v14 = vmul.f32 %v25511_v24, %v25497_v17 }
 0x13c   : > { %v25746_v18 = vpop.permute.xlu1 %1100  ;;  %v25748_v43 = vpop.permute.xlu0 %1098 }
 0x13e   : > { %748 = vrot.lane.b32.xlu1 %v701_v44, %s25159_s26  ;;  %746 = vrot.lane.b32.xlu0 %v700_v45, %s25159_s26  ;;  %v1179_v44 = vmul.f32 %v25519_v27, %v25493_v16  ;;  %v1178_v45 = vmul.f32 %v25519_v27, %v25497_v17 }
 0x140   : > { %v25756_v2 = vpop.permute.xlu1 %1094  ;;  %v25758_v33 = vpop.permute.xlu0 %1078 }
 0x141   : > { %30635 = vst [vmem:[#allocation16_spill] sm:$0xff] %v25756_v2  ;;  %30636 = vst [vmem:[#allocation17_spill] sm:$0xff] %v25758_v33 }
 0x142   : > { %1208 = vrot.lane.b32.xlu1 %v1171_v31, %s25163_s30  ;;  %1206 = vrot.lane.b32.xlu0 %v1170_v14, %s25163_s30  ;;  %v813_v31 = vmul.f32 %v25401_v46, %v25327_v21  ;;  %v812_v14 = vmul.f32 %v25401_v46, %v25732_v0 }
 0x144   : > { %v25766_v36 = vpop.permute.xlu1 %728  ;;  %v25768_v37 = vpop.permute.xlu0 %726 }
 0x145   : > { %30637 = vst [vmem:[#allocation18_spill] sm:$0xff] %v25766_v36  ;;  %30638 = vst [vmem:[#allocation19_spill] sm:$0xff] %v25768_v37 }
 0x146   : > { %1224 = vrot.lane.b32.xlu1 %v1179_v44, %s25163_s30  ;;  %1222 = vrot.lane.b32.xlu0 %v1178_v45, %s25163_s30  ;;  %v821_v44 = vmul.f32 %v25411_v49, %v25327_v21  ;;  %v820_v45 = vmul.f32 %v25411_v49, %v25732_v0 }
 0x148   : > { %v25776_v12 = vpop.permute.xlu1 %744  ;;  %v25778_v13 = vpop.permute.xlu0 %742 }
 0x149   : > { %30639 = vst [vmem:[#allocation20_spill] sm:$0xff] %v25776_v12  ;;  %30640 = vst [vmem:[#allocation21_spill] sm:$0xff] %v25778_v13 }
 0x14a   : > { %852 = vrot.lane.b32.xlu1 %v813_v31, %s25160_s27  ;;  %850 = vrot.lane.b32.xlu0 %v812_v14, %s25160_s27  ;;  %v1291_v31 = vmul.f32 %v25551_v50, %v25493_v16  ;;  %v1290_v14 = vmul.f32 %v25551_v50, %v25497_v17 }
 0x14c   : > { %v25786_v36 = vpop.permute.xlu1 %1202  ;;  %v25788_v37 = vpop.permute.xlu0 %1200 }
 0x14e   : > { %868 = vrot.lane.b32.xlu1 %v821_v44, %s25160_s27  ;;  %866 = vrot.lane.b32.xlu0 %v820_v45, %s25160_s27  ;;  %v1299_v44 = vmul.f32 %v25553_v51, %v25493_v16  ;;  %v1298_v45 = vmul.f32 %v25553_v51, %v25497_v17 }
 0x150   : > { %v25796_v12 = vpop.permute.xlu1 %1216  ;;  %v25798_v46 = vpop.permute.xlu0 %1204 }
 0x152   : > { %1328 = vrot.lane.b32.xlu1 %v1291_v31, %s25164_s0  ;;  %1326 = vrot.lane.b32.xlu0 %v1290_v14, %s25164_s0  ;;  %v933_v31 = vmul.f32 %v25429_v56, %v25327_v21  ;;  %v932_v14 = vmul.f32 %v25429_v56, %v25732_v0 }
 0x154   : > { %v25806_v13 = vpop.permute.xlu1 %1220  ;;  %v25808_v49 = vpop.permute.xlu0 %1218 }
 0x156   : > { %1344 = vrot.lane.b32.xlu1 %v1299_v44, %s25164_s0  ;;  %1342 = vrot.lane.b32.xlu0 %v1298_v45, %s25164_s0  ;;  %v941_v44 = vmul.f32 %v25439_v59, %v25327_v21  ;;  %v940_v45 = vmul.f32 %v25439_v59, %v25732_v0 }
 0x158   : > { %v25816_v32 = vpop.permute.xlu1 %1214  ;;  %v25818_v33 = vpop.permute.xlu0 %1198 }
 0x159   : > { %30641 = vst [vmem:[#allocation22_spill] sm:$0xff] %v25816_v32  ;;  %30642 = vst [vmem:[#allocation23_spill] sm:$0xff] %v25818_v33 }
 0x15a   : > { %972 = vrot.lane.b32.xlu1 %v933_v31, %s25161_s28  ;;  %970 = vrot.lane.b32.xlu0 %v932_v14, %s25161_s28  ;;  %v1411_v31 = vmul.f32 %v25565_v55, %v25493_v16  ;;  %v1410_v14 = vmul.f32 %v25565_v55, %v25497_v17 }
 0x15c   : > { %v25826_v2 = vpop.permute.xlu1 %848  ;;  %v25828_v34 = vpop.permute.xlu0 %846 }
 0x15d   : > { %30643 = vst [vmem:[#allocation24_spill] sm:$0xff] %v25826_v2  ;;  %30644 = vst [vmem:[#allocation25_spill] sm:$0xff] %v25828_v34  ;;  %v1061_v34 = vmul.f32 %v25467_v6, %v25327_v21 }
 0x15e   : > { %988 = vrot.lane.b32.xlu1 %v941_v44, %s25161_s28  ;;  %986 = vrot.lane.b32.xlu0 %v940_v45, %s25161_s28  ;;  %v1419_v44 = vmul.f32 %v25563_v54, %v25493_v16  ;;  %v1418_v45 = vmul.f32 %v25563_v54, %v25497_v17 }
 0x160   : > { %v25836_v33 = vpop.permute.xlu1 %864  ;;  %v25838_v56 = vpop.permute.xlu0 %862 }
 0x161   : > { %30645 = vst [vmem:[#allocation26_spill] sm:$0xff] %v25836_v33  ;;  %30646 = vst [vmem:[#allocation27_spill] sm:$0xff] %v25838_v56 }
 0x162   : > { %1448 = vrot.lane.b32.xlu1 %v1411_v31, %s25165_s17  ;;  %1446 = vrot.lane.b32.xlu0 %v1410_v14, %s25165_s17  ;;  %v1053_v31 = vmul.f32 %v25457_v3, %v25327_v21  ;;  %v1052_v14 = vmul.f32 %v25457_v3, %v25732_v0  ;;  %v1531_v3 = vmul.f32 %v25579_v63, %v25493_v16 }
 0x164   : > { %v25846_v2 = vpop.permute.xlu1 %1322  ;;  %v25848_v59 = vpop.permute.xlu0 %1320 }
 0x166   : > { %1464 = vrot.lane.b32.xlu1 %v1419_v44, %s25165_s17  ;;  %1462 = vrot.lane.b32.xlu0 %v1418_v45, %s25165_s17  ;;  %v1060_v44 = vmul.f32 %v25467_v6, %v25732_v0 }
 0x168   : > { %v25856_v33 = vpop.permute.xlu1 %1336  ;;  %v25858_v56 = vpop.permute.xlu0 %1324 }
 0x16a   : > { %1092 = vrot.lane.b32.xlu1 %v1053_v31, %s25162_s29  ;;  %1090 = vrot.lane.b32.xlu0 %v1052_v14, %s25162_s29  ;;  %v1530_v31 = vmul.f32 %v25579_v63, %v25497_v17 }
 0x16c   : > { %v25870_v45 = vpop.permute.xlu1 %1340  ;;  %v25872_v32 = vpop.permute.xlu0 %1338 }
 0x16d   : > { %30647 = vst [vmem:[#allocation28_spill] sm:$0xff] %v25870_v45  ;;  %v1539_v45 = vmul.f32 %v25577_v62, %v25493_v16  ;;  %v1181_v16 = vmul.f32 %v25519_v27, %v25327_v21 }
 0x16e   : > { %1108 = vrot.lane.b32.xlu1 %v1061_v34, %s25162_s29  ;;  %1106 = vrot.lane.b32.xlu0 %v1060_v44, %s25162_s29  ;;  %v1538_v34 = vmul.f32 %v25577_v62, %v25497_v17  ;;  %v1173_v44 = vmul.f32 %v25511_v24, %v25327_v21  ;;  %v1180_v17 = vmul.f32 %v25519_v27, %v25732_v0 }
 0x16f   : > { %v1301_v27 = vmul.f32 %v25553_v51, %v25327_v21 }
 0x170   : > { %v25882_v14 = vpop.permute.xlu1 %1334  ;;  %v25884_v6 = vpop.permute.xlu0 %1318 }
 0x171   : > { %30648 = vst [vmem:[#allocation29_spill] sm:$0xff] %v25882_v14 }
 0x172   : > { %1568 = vrot.lane.b32.xlu1 %v1531_v3, %s25166_s24  ;;  %1566 = vrot.lane.b32.xlu0 %v1530_v31, %s25166_s24  ;;  %v1172_v3 = vmul.f32 %v25511_v24, %v25732_v0 }
 0x174   : > { %v25896_v31 = vpop.permute.xlu1 %968  ;;  %v25898_v14 = vpop.permute.xlu0 %966 }
 0x175   : > { %30649 = vst [vmem:[#allocation30_spill] sm:$0xff] %v25896_v31  ;;  %30650 = vst [vmem:[#allocation31_spill] sm:$0xff] %v25898_v14 }
 0x176   : > { %1584 = vrot.lane.b32.xlu1 %v1539_v45, %s25166_s24  ;;  %1582 = vrot.lane.b32.xlu0 %v1538_v34, %s25166_s24  ;;  %v1293_v34 = vmul.f32 %v25551_v50, %v25327_v21 }
 0x178   : > { %v25908_v45 = vpop.permute.xlu1 %984  ;;  %v25910_v24 = vpop.permute.xlu0 %982 }
 0x179   : > { %30651 = vst [vmem:[#allocation32_spill] sm:$0xff] %v25908_v45  ;;  %30652 = vst [vmem:[#allocation33_spill] sm:$0xff] %v25910_v24  ;;  %v565_v45 = vld [vmem:[#allocation2 + $0x8] ss:$8 sm:$0xf0] }
 0x17a   : > { %1212 = vrot.lane.b32.xlu1 %v1173_v44, %s25163_s30  ;;  %1210 = vrot.lane.b32.xlu0 %v1172_v3, %s25163_s30  ;;  %v1292_v44 = vmul.f32 %v25551_v50, %v25732_v0  ;;  %v1300_v3 = vmul.f32 %v25553_v51, %v25732_v0  ;;  %v1413_v50 = vmul.f32 %v25565_v55, %v25327_v21  ;;  %v564_v24 = vld [vmem:[#allocation2 + $0x8] ss:$8 sm:$0xf] }
 0x17e   : > { %1228 = vrot.lane.b32.xlu1 %v1181_v16, %s25163_s30  ;;  %1226 = vrot.lane.b32.xlu0 %v1180_v17, %s25163_s30  ;;  %v25922_v16 = vpop.permute.xlu1 %1442  ;;  %v25924_v17 = vpop.permute.xlu0 %1440 }
 0x182   : > { %1332 = vrot.lane.b32.xlu1 %v1293_v34, %s25164_s0  ;;  %1330 = vrot.lane.b32.xlu0 %v1292_v44, %s25164_s0  ;;  %v1412_v34 = vmul.f32 %v25565_v55, %v25732_v0  ;;  %v25934_v44 = vpop.permute.xlu1 %1456  ;;  %v25936_v51 = vpop.permute.xlu0 %1444  ;;  %v25944_v55 = vor.u32 %v565_v45, %v564_v24  ;;  %v1541_v24 = vmul.f32 %v25577_v62, %v25327_v21 }
 0x184   : > { %30653 = vst [vmem:[#allocation34_spill] sm:$0xff] %v25944_v55  ;;  %v591_v45 = vrot.slane %v25944_v55, %v25348_v28 }
 0x186   : > { %1348 = vrot.lane.b32.xlu1 %v1301_v27, %s25164_s0  ;;  %1346 = vrot.lane.b32.xlu0 %v1300_v3, %s25164_s0  ;;  %v1421_v27 = vmul.f32 %v25563_v54, %v25327_v21  ;;  %v1420_v3 = vmul.f32 %v25563_v54, %v25732_v0  ;;  %v25950_v31 = vpop.permute.xlu1 %1460  ;;  %v25952_v14 = vpop.permute.xlu0 %1458  ;;  %v587_v54 = vrot.slane %v25944_v55, %v25351_v29 }
 0x187   : > { %v624_v28 = vmul.f32 %v591_v45, %v25589_v4 }
 0x18a   : > { %1452 = vrot.lane.b32.xlu1 %v1413_v50, %s25165_s17  ;;  %1450 = vrot.lane.b32.xlu0 %v1412_v34, %s25165_s17  ;;  %v1533_v50 = vmul.f32 %v25579_v63, %v25327_v21  ;;  %v1532_v34 = vmul.f32 %v25579_v63, %v25732_v0  ;;  %v1540_v63 = vmul.f32 %v25577_v62, %v25732_v0 }
 0x18b   : > { %v616_v21 = vmul.f32 %v587_v54, %v25591_v5  ;;  %v617_v62 = vmul.f32 %v591_v45, %v25591_v5  ;;  %v623_v0 = vmul.f32 %v587_v54, %v25589_v4  ;;  %v753_v54 = vsel %vm750_vm1, %v25599_v9, %v25611_v20 }
 0x18c   : > { %v759_v45 = vsel %vm750_vm1, %v25609_v19, %v25621_v26  ;;  %v879_v20 = vsel %vm870_vm2, %v25649_v52, %v25661_v61 }
 0x18e   : > { %1468 = vrot.lane.b32.xlu1 %v1421_v27, %s25165_s17  ;;  %1466 = vrot.lane.b32.xlu0 %v1420_v3, %s25165_s17  ;;  %v583_v27 = vrot.slane %v25944_v55, %v25383_v40 }
 0x190   : > { %v622_v29 = vmul.f32 %v583_v27, %v25589_v4  ;;  %v615_v40 = vmul.f32 %v583_v27, %v25591_v5  ;;  %v760_v27 = vsel %vm750_vm1, %v25621_v26, %v25619_v25  ;;  %v992_v4 = vsel %vm990_vm3, %v25681_v23, %v25679_v22 }
 0x191   : > { %v873_v5 = vsel %vm870_vm2, %v25645_v47, %v25651_v53  ;;  %v781_v26 = vadd.f32 %v753_v54, %v617_v62  ;;  %v787_v25 = vadd.f32 %v759_v45, %v623_v0  ;;  %v1232_v54 = vsel %vm1230_vm5, %v25788_v37, %v25786_v36 }
 0x192   : > { %1572 = vrot.lane.b32.xlu1 %v1533_v50, %s25166_s24  ;;  %1570 = vrot.lane.b32.xlu0 %v1532_v34, %s25166_s24  ;;  %v752_v34 = vsel %vm750_vm1, %v25601_v11, %v25599_v9  ;;  %v751_v9 = vsel %vm750_vm1, %v25631_v39, %v25601_v11  ;;  %v788_v11 = vadd.f32 %v760_v27, %v624_v28 }
 0x193   : > { %v880_v39 = vsel %vm870_vm2, %v25661_v61, %v25659_v60  ;;  %v779_v0 = vadd.f32 %v751_v9, %v615_v40  ;;  %v907_v45 = vadd.f32 %v879_v20, %v787_v25  ;;  %v878_v28 = vsel %vm870_vm2, %v25669_v7, %v25649_v52 }
 0x194   : > { %v908_v61 = vadd.f32 %v880_v39, %v788_v11  ;;  %v999_v52 = vsel %vm990_vm3, %v25689_v41, %v25701_v58  ;;  %v1000_v7 = vsel %vm990_vm3, %v25701_v58, %v25699_v57  ;;  %v1120_v58 = vsel %vm1110_vm4, %v25748_v43, %v25746_v18 }
 0x195   : > { %v25966_v3 = vpop.permute.xlu1 %1656  ;;  %v25968_v50 = vpop.permute.xlu0 %1651  ;;  %v1239_v39 = vsel %vm1230_vm5, %v25796_v12, %v25808_v49 }
 0x196   : > { %30654 = vst [vmem:[#allocation35_spill] sm:$0xff] %v25966_v3  ;;  %1588 = vrot.lane.b32.xlu1 %v1541_v24, %s25166_s24  ;;  %1586 = vrot.lane.b32.xlu0 %v1540_v63, %s25166_s24  ;;  %v872_v24 = vsel %vm870_vm2, %v25647_v48, %v25645_v47  ;;  %v780_v3 = vadd.f32 %v752_v34, %v616_v21 }
 0x197   : > { %v758_v34 = vsel %vm750_vm1, %v25629_v38, %v25609_v19 }
 0x198   : > { %v900_v21 = vadd.f32 %v872_v24, %v780_v3  ;;  %v993_v3 = vsel %vm990_vm3, %v25679_v22, %v25691_v42  ;;  %v786_v62 = vadd.f32 %v758_v34, %v622_v29  ;;  %v901_v24 = vadd.f32 %v873_v5, %v781_v26 }
 0x199   : > { %v25984_v63 = vpop.permute.xlu1 %1454  ;;  %v25986_v55 = vpop.permute.xlu0 %1438  ;;  %v871_v29 = vsel %vm870_vm2, %v25671_v8, %v25647_v48  ;;  %v1352_v5 = vsel %vm1350_vm6, %v25848_v59, %v25846_v2  ;;  %v1233_v48 = vsel %vm1230_vm5, %v25786_v36, %v25798_v46  ;;  %v1119_v34 = vsel %vm1110_vm4, %v25736_v10, %v25748_v43 }
 0x19a   : > { %30655 = vst [vmem:[#allocation36_spill] sm:$0xff] %v25986_v55  ;;  %v1112_v55 = vsel %vm1110_vm4, %v25724_v35, %v25722_v30  ;;  %v1020_v47 = vadd.f32 %v992_v4, %v900_v21  ;;  %v1113_v4 = vsel %vm1110_vm4, %v25722_v30, %v25738_v1  ;;  %v1021_v40 = vadd.f32 %v993_v3, %v901_v24 }
 0x19b   : > { %v906_v8 = vadd.f32 %v878_v28, %v786_v62  ;;  %v1353_v36 = vsel %vm1350_vm6, %v25846_v2, %v25858_v56  ;;  %v1027_v21 = vadd.f32 %v999_v52, %v907_v45  ;;  %v1028_v26 = vadd.f32 %v1000_v7, %v908_v61  ;;  %v30656_v61 = vld [vmem:[#allocation28_spill] sm:$0xff] }
 0x19c   : > { %v1140_v27 = vadd.f32 %v1112_v55, %v1020_v47  ;;  %v1141_v30 = vadd.f32 %v1113_v4, %v1021_v40  ;;  %v1472_v55 = vsel %vm1470_vm7, %v25924_v17, %v25922_v16  ;;  %v1240_v62 = vsel %vm1230_vm5, %v25808_v49, %v25806_v13 }
 0x19d   : > { %v26015_v19 = vpop.permute.xlu1 %1088  ;;  %v26017_v38 = vpop.permute.xlu0 %1086  ;;  %v1473_v24 = vsel %vm1470_vm7, %v25922_v16, %v25936_v51  ;;  %v1147_v45 = vadd.f32 %v1119_v34, %v1027_v21  ;;  %v1148_v28 = vadd.f32 %v1120_v58, %v1028_v26  ;;  %v998_v4 = vsel %vm990_vm3, %v25715_v15, %v25689_v41  ;;  %v30658_v41 = vld [vmem:[#allocation16_spill] sm:$0xff]  ;;  %v30659_v21 = vld [vmem:[#allocation17_spill] sm:$0xff] }
 0x19e   : > { %v1260_v22 = vadd.f32 %v1232_v54, %v1140_v27  ;;  %v1261_v11 = vadd.f32 %v1233_v48, %v1141_v30  ;;  %v899_v54 = vadd.f32 %v871_v29, %v779_v0  ;;  %v1359_v49 = vsel %vm1350_vm6, %v25856_v33, %v25872_v32 }
 0x19f   : > { %v1360_v40 = vsel %vm1350_vm6, %v25872_v32, %v30656_v61  ;;  %v1267_v29 = vadd.f32 %v1239_v39, %v1147_v45  ;;  %v1268_v52 = vadd.f32 %v1240_v62, %v1148_v28  ;;  %v1118_v15 = vsel %vm1110_vm4, %v30658_v41, %v25736_v10 }
 0x1a0   : > { %v1380_v9 = vadd.f32 %v1352_v5, %v1260_v22  ;;  %v1381_v27 = vadd.f32 %v1353_v36, %v1261_v11  ;;  %v30657_v5 = vld [vmem:[#allocation14_spill] sm:$0xff]  ;;  %v1479_v30 = vsel %vm1470_vm7, %v25934_v44, %v25952_v14  ;;  %v1480_v32 = vsel %vm1470_vm7, %v25952_v14, %v25950_v31 }
 0x1a1   : > { %v26040_v20 = vpop.permute.xlu1 %1104  ;;  %v26042_v25 = vpop.permute.xlu0 %1102  ;;  %v991_v0 = vsel %vm990_vm3, %v30657_v5, %v25681_v23  ;;  %v1387_v34 = vadd.f32 %v1359_v49, %v1267_v29  ;;  %v1388_v58 = vadd.f32 %v1360_v40, %v1268_v52  ;;  %v1111_v10 = vsel %vm1110_vm4, %v30659_v21, %v25724_v35  ;;  %v30662_v40 = vld [vmem:[#allocation29_spill] sm:$0xff] }
 0x1a2   : > { %v1500_v43 = vadd.f32 %v1472_v55, %v1380_v9  ;;  %v1501_v7 = vadd.f32 %v1473_v24, %v1381_v27  ;;  %v1026_v55 = vadd.f32 %v998_v4, %v906_v8  ;;  %v1019_v36 = vadd.f32 %v991_v0, %v899_v54 }
 0x1a3   : > { %v1507_v39 = vadd.f32 %v1479_v30, %v1387_v34  ;;  %v1508_v62 = vadd.f32 %v1480_v32, %v1388_v58 }
 0x1a4   : > { %v1146_v11 = vadd.f32 %v1118_v15, %v1026_v55  ;;  %v1139_v28 = vadd.f32 %v1111_v10, %v1019_v36  ;;  %v1478_v15 = vsel %vm1470_vm7, %v25984_v63, %v25934_v44  ;;  %v30666_v55 = vld [vmem:[#allocation35_spill] sm:$0xff] }
 0x1a5   : > { %v1563_v47 = vpop.permute.xlu1 %1562  ;;  %v26068_v3 = vpop.permute.xlu0 %1560 }
 0x1a6   : > { %v1592_v2 = vsel %vm1590_vm8, %v26068_v3, %v1563_v47 }
 0x1a7   : > { %v1620_v16 = vadd.f32 %v1592_v2, %v1500_v43  ;;  %v30660_v2 = vld [vmem:[#allocation22_spill] sm:$0xff] }
 0x1a8   : > { %v1238_v8 = vsel %vm1230_vm5, %v30660_v2, %v25796_v12  ;;  %v1351_v12 = vsel %vm1350_vm6, %v25884_v6, %v25848_v59 }
 0x1a9   : > { %v1577_v22 = vpop.permute.xlu1 %1576  ;;  %v26090_v48 = vpop.permute.xlu0 %1564  ;;  %v1634_v26 = vmax.f32 %v1620_v16, 0.0  ;;  %v1358_v16 = vsel %vm1350_vm6, %v30662_v40, %v25856_v33  ;;  %v1266_v5 = vadd.f32 %v1238_v8, %v1146_v11  ;;  %v30663_v33 = vld [vmem:[#allocation36_spill] sm:$0xff] }
 0x1aa   : > { %v1593_v23 = vsel %vm1590_vm8, %v1563_v47, %v26090_v48  ;;  %v30661_v47 = vld [vmem:[#allocation23_spill] sm:$0xff]  ;;  %v1471_v30 = vsel %vm1470_vm7, %v30663_v33, %v25924_v17 }
 0x1ab   : > { %v1621_v9 = vadd.f32 %v1593_v23, %v1501_v7  ;;  %v1231_v54 = vsel %vm1230_vm5, %v30661_v47, %v25788_v37  ;;  %v1660_v37 = vmul.f32 %v25968_v50, %v1634_v26  ;;  %v1386_v32 = vadd.f32 %v1358_v16, %v1266_v5 }
 0x1ac   : > { %v1259_v0 = vadd.f32 %v1231_v54, %v1139_v28 }
 0x1ad   : > { %v1635_v43 = vmax.f32 %v1621_v9, 0.0  ;;  %v26106_v24 = vpop.permute.xlu1 %1580  ;;  %v1579_v14 = vpop.permute.xlu0 %1578  ;;  %v1506_v44 = vadd.f32 %v1478_v15, %v1386_v32 }
 0x1ae   : > { %v1599_v45 = vsel %vm1590_vm8, %v1577_v22, %v1579_v14  ;;  %v1600_v35 = vsel %vm1590_vm8, %v1579_v14, %v26106_v24  ;;  %v1379_v23 = vadd.f32 %v1351_v12, %v1259_v0  ;;  %v30687_v14 = vld [vmem:[#allocation11_spill] sm:$0xff] }
 0x1af   : > { %v1661_v27 = vmul.f32 %v25968_v50, %v1635_v43  ;;  %v1627_v4 = vadd.f32 %v1599_v45, %v1507_v39  ;;  %v1628_v49 = vadd.f32 %v1600_v35, %v1508_v62 }
 0x1b0   : > { %v1499_v63 = vadd.f32 %v1471_v30, %v1379_v23 }
 0x1b1   : > { %v1641_v29 = vmax.f32 %v1627_v4, 0.0  ;;  %v1642_v52 = vmax.f32 %v1628_v49, 0.0  ;;  %v26125_v7 = vpop.permute.xlu1 %1683  ;;  %v26127_v41 = vpop.permute.xlu0 %1678 }
 0x1b2   : > { %v26136_v59 = vadd.f32 %v26127_v41, %v1660_v37  ;;  %v26139_v6 = vadd.f32 %v26127_v41, %v1661_v27 }
 0x1b3   : > { %v1667_v34 = vmul.f32 %v30666_v55, %v1641_v29  ;;  %v1668_v58 = vmul.f32 %v30666_v55, %v1642_v52 }
 0x1b4   : > { %30664 = vst [vmem:[#allocation28_spill] sm:$0xff] %v26136_v59  ;;  %30665 = vst [vmem:[#allocation14_spill] sm:$0xff] %v26139_v6  ;;  %v26145_v9 = vpack.i.bf16 %v26139_v6, %v26136_v59 }
 0x1b5   : > { %v26148_v17 = vadd.f32 %v26125_v7, %v1667_v34  ;;  %v26151_v36 = vadd.f32 %v26125_v7, %v1668_v58  ;;  %v1575_v21 = vpop.permute.xlu1 %1574  ;;  %v1559_v10 = vpop.permute.xlu0 %1558 }
 0x1b6   : > { %30667 = vst [vmem:[#allocation16_spill] sm:$0xff] %v26145_v9  ;;  %v1598_v26 = vsel %vm1590_vm8, %v1575_v21, %v1577_v22  ;;  %v1591_v11 = vsel %vm1590_vm8, %v1559_v10, %v26068_v3  ;;  %23526 = vrot.lane.b32.xlu0 %v26145_v9, %s25159_s26  ;;  %v30681_v21 = vld [vmem:[#allocation6_spill] sm:$0xff]  ;;  %v30690_v9 = vld [vmem:[#allocation21_spill] sm:$0xff] }
 0x1b7   : > { %30668 = vst [vmem:[#allocation17_spill] sm:$0xff] %v26148_v17  ;;  %30669 = vst [vmem:[#allocation22_spill] sm:$0xff] %v26151_v36  ;;  %v1626_v39 = vadd.f32 %v1598_v26, %v1506_v44  ;;  %v1619_v62 = vadd.f32 %v1591_v11, %v1499_v63  ;;  %v26162_v43 = vpack.i.bf16 %v26151_v36, %v26148_v17  ;;  %v30682_v10 = vld [vmem:[#allocation34_spill] sm:$0xff]  ;;  %v30683_v11 = vld [vmem:[#allocation9_spill] sm:$0xff] }
 0x1b8   : > { %1708 = vst [vmem:[#allocation3 + $0x58] sm:$0xff] %v26148_v17  ;;  %1709 = vst [vmem:[#allocation3 + $0x60] sm:$0xff] %v26151_v36  ;;  %v595_v26 = vrot.slane %v30682_v10, %v30681_v21  ;;  %v30686_v22 = vld [vmem:[#allocation18_spill] sm:$0xff] }
 0x1b9   : > { %30670 = vst [vmem:[#allocation23_spill] sm:$0xff] %v26162_v43  ;;  %v1640_v3 = vmax.f32 %v1626_v39, 0.0  ;;  %v1633_v2 = vmax.f32 %v1619_v62, 0.0  ;;  %v26168_v8 = vpop.permute.xlu1 %732  ;;  %v26170_v47 = vpop.permute.xlu0 %730  ;;  %23531 = vrot.lane.b32.xlu1 %v26162_v43, %s25159_s26  ;;  %v599_v39 = vrot.slane %v30682_v10, %v30683_v11  ;;  %v30689_v11 = vld [vmem:[#allocation24_spill] sm:$0xff]  ;;  %v30691_v43 = vld [vmem:[#allocation13_spill] sm:$0xff] }
 0x1ba   : > { %v618_v6 = vmul.f32 %v595_v26, %v30687_v14 }
 0x1bb   : > { %v1666_v54 = vmul.f32 %v30666_v55, %v1640_v3  ;;  %v1659_v45 = vmul.f32 %v25968_v50, %v1633_v2  ;;  %v30684_v2 = vld [vmem:[#allocation19_spill] sm:$0xff]  ;;  %v619_v36 = vmul.f32 %v599_v39, %v30687_v14 }
 0x1bc   : > { %v755_v40 = vsel %vm750_vm1, %v30684_v2, %v30686_v22 }
 0x1bd   : > { %v26177_v35 = vadd.f32 %v26125_v7, %v1666_v54  ;;  %v26180_v28 = vadd.f32 %v26127_v41, %v1659_v45  ;;  %v26182_v27 = vpop.permute.xlu1 %748  ;;  %v26184_v4 = vpop.permute.xlu0 %746  ;;  %v30685_v54 = vld [vmem:[#allocation12_spill] sm:$0xff]  ;;  %v783_v17 = vadd.f32 %v755_v40, %v619_v36  ;;  %v30695_v36 = vld [vmem:[#allocation10_spill] sm:$0xff] }
 0x1be   : > { %30673 = vst [vmem:[#allocation35_spill] sm:$0xff] %v26182_v27  ;;  %v754_v45 = vsel %vm750_vm1, %v30685_v54, %v30684_v2  ;;  %v761_v2 = vsel %vm750_vm1, %v30691_v43, %v30690_v9  ;;  %v626_v40 = vmul.f32 %v599_v39, %v30695_v36  ;;  %v30697_v27 = vld [vmem:[#allocation26_spill] sm:$0xff] }
 0x1bf   : > { %30671 = vst [vmem:[#allocation29_spill] sm:$0xff] %v26177_v35  ;;  %30672 = vst [vmem:[#allocation36_spill] sm:$0xff] %v26180_v28  ;;  %v26189_v49 = vpack.i.bf16 %v26177_v35, %v26180_v28  ;;  %v30688_v28 = vld [vmem:[#allocation25_spill] sm:$0xff]  ;;  %v782_v59 = vadd.f32 %v754_v45, %v618_v6 }
 0x1c0   : > { %1707 = vst [vmem:[#allocation3 + $0x50] sm:$0xff] %v26177_v35  ;;  %v874_v21 = vsel %vm870_vm2, %v25651_v53, %v30688_v28  ;;  %v875_v35 = vsel %vm870_vm2, %v30688_v28, %v30689_v11  ;;  %v625_v28 = vmul.f32 %v595_v26, %v30695_v36 }
 0x1c1   : > { %30674 = vst [vmem:[#allocation37_spill] sm:$0xff] %v26189_v49  ;;  %v26193_v16 = vpop.permute.xlu1 %1208  ;;  %v1207_v12 = vpop.permute.xlu0 %1206  ;;  %23536 = vrot.lane.b32.xlu0 %v26189_v49, %s25159_s26  ;;  %v902_v45 = vadd.f32 %v874_v21, %v782_v59 }
 0x1c2   : > { %v789_v26 = vadd.f32 %v761_v2, %v625_v28  ;;  %v1234_v36 = vsel %vm1230_vm5, %v25798_v46, %v1207_v12 }
 0x1c5   : > { %v26197_v37 = vpop.permute.xlu1 %1224  ;;  %v26199_v5 = vpop.permute.xlu0 %1222 }
 0x1c9   : > { %v26201_v0 = vpop.permute.xlu1 %852  ;;  %v26203_v29 = vpop.permute.xlu0 %850 }
 0x1cd   : > { %v26205_v52 = vpop.permute.xlu1 %868  ;;  %v26207_v15 = vpop.permute.xlu0 %866 }
 0x1ce   : > { %30675 = vst [vmem:[#allocation38_spill] sm:$0xff] %v26205_v52  ;;  %30676 = vst [vmem:[#allocation39_spill] sm:$0xff] %v26207_v15  ;;  %v30693_v52 = vld [vmem:[#allocation31_spill] sm:$0xff]  ;;  %v30694_v15 = vld [vmem:[#allocation30_spill] sm:$0xff] }
 0x1cf   : > { %v994_v53 = vsel %vm990_vm3, %v25691_v42, %v30693_v52  ;;  %v995_v6 = vsel %vm990_vm3, %v30693_v52, %v30694_v15  ;;  %v1114_v42 = vsel %vm1110_vm4, %v25738_v1, %v26017_v38  ;;  %v1115_v52 = vsel %vm1110_vm4, %v26017_v38, %v26015_v19 }
 0x1d0   : > { %v1022_v59 = vadd.f32 %v994_v53, %v902_v45  ;;  %v1235_v38 = vsel %vm1230_vm5, %v1207_v12, %v26193_v16 }
 0x1d1   : > { %v26209_v33 = vpop.permute.xlu1 %1328  ;;  %v1327_v30 = vpop.permute.xlu0 %1326 }
 0x1d2   : > { %v1142_v2 = vadd.f32 %v1114_v42, %v1022_v59  ;;  %v1354_v28 = vsel %vm1350_vm6, %v25858_v56, %v1327_v30  ;;  %v1355_v46 = vsel %vm1350_vm6, %v1327_v30, %v26209_v33 }
 0x1d4   : > { %v1262_v45 = vadd.f32 %v1234_v36, %v1142_v2 }
 0x1d5   : > { %v26211_v32 = vpop.permute.xlu1 %1344  ;;  %v26213_v23 = vpop.permute.xlu0 %1342 }
 0x1d6   : > { %v1361_v59 = vsel %vm1350_vm6, %v30656_v61, %v26213_v23 }
 0x1d9   : > { %v26215_v34 = vpop.permute.xlu1 %972  ;;  %v26217_v58 = vpop.permute.xlu0 %970 }
 0x1da   : > { %30677 = vst [vmem:[#allocation40_spill] sm:$0xff] %v26215_v34  ;;  %30678 = vst [vmem:[#allocation41_spill] sm:$0xff] %v26217_v58  ;;  %v903_v34 = vadd.f32 %v875_v35, %v783_v17  ;;  %v30696_v58 = vld [vmem:[#allocation27_spill] sm:$0xff] }
 0x1db   : > { %v881_v43 = vsel %vm870_vm2, %v25659_v60, %v30696_v58  ;;  %v30698_v60 = vld [vmem:[#allocation33_spill] sm:$0xff] }
 0x1dc   : > { %v1023_v17 = vadd.f32 %v995_v6, %v903_v34  ;;  %v1121_v6 = vsel %vm1110_vm4, %v25746_v18, %v26042_v25  ;;  %v1241_v18 = vsel %vm1230_vm5, %v25806_v13, %v26199_v5  ;;  %v1362_v13 = vsel %vm1350_vm6, %v26213_v23, %v26211_v32 }
 0x1dd   : > { %v26219_v44 = vpop.permute.xlu1 %988  ;;  %v26221_v63 = vpop.permute.xlu0 %986 }
 0x1de   : > { %30679 = vst [vmem:[#allocation42_spill] sm:$0xff] %v26219_v44  ;;  %30680 = vst [vmem:[#allocation43_spill] sm:$0xff] %v26221_v63  ;;  %v30692_v44 = vld [vmem:[#allocation20_spill] sm:$0xff]  ;;  %v1143_v53 = vadd.f32 %v1115_v52, %v1023_v17 }
 0x1df   : > { %v762_v63 = vsel %vm750_vm1, %v30690_v9, %v30692_v44  ;;  %v882_v9 = vsel %vm870_vm2, %v30696_v58, %v30697_v27  ;;  %v1001_v58 = vsel %vm990_vm3, %v25699_v57, %v30698_v60  ;;  %v30699_v27 = vld [vmem:[#allocation32_spill] sm:$0xff]  ;;  %v1122_v57 = vsel %vm1110_vm4, %v26042_v25, %v26040_v20 }
 0x1e0   : > { %v790_v39 = vadd.f32 %v762_v63, %v626_v40  ;;  %v1002_v1 = vsel %vm990_vm3, %v30698_v60, %v30699_v27  ;;  %v909_v63 = vadd.f32 %v881_v43, %v789_v26  ;;  %v1263_v43 = vadd.f32 %v1235_v38, %v1143_v53 }
 0x1e1   : > { %v26227_v62 = vpop.permute.xlu1 %1448  ;;  %v1447_v3 = vpop.permute.xlu0 %1446  ;;  %v1242_v25 = vsel %vm1230_vm5, %v26199_v5, %v26197_v37  ;;  %v1382_v26 = vadd.f32 %v1354_v28, %v1262_v45 }
 0x1e2   : > { %v910_v34 = vadd.f32 %v882_v9, %v790_v39  ;;  %v1029_v40 = vadd.f32 %v1001_v58, %v909_v63  ;;  %v1474_v56 = vsel %vm1470_vm7, %v25936_v51, %v1447_v3  ;;  %v1475_v30 = vsel %vm1470_vm7, %v1447_v3, %v26227_v62 }
 0x1e3   : > { %v1383_v39 = vadd.f32 %v1355_v46, %v1263_v43  ;;  %v1502_v60 = vadd.f32 %v1474_v56, %v1382_v26 }
 0x1e4   : > { %v1030_v12 = vadd.f32 %v1002_v1, %v910_v34  ;;  %v1149_v36 = vadd.f32 %v1121_v6, %v1029_v40 }
 0x1e5   : > { %v26243_v49 = vpop.permute.xlu1 %1464  ;;  %v1463_v54 = vpop.permute.xlu0 %1462  ;;  %v1503_v58 = vadd.f32 %v1475_v30, %v1383_v39 }
 0x1e6   : > { %v1150_v52 = vadd.f32 %v1122_v57, %v1030_v12  ;;  %v1269_v17 = vadd.f32 %v1241_v18, %v1149_v36  ;;  %v1481_v3 = vsel %vm1470_vm7, %v25950_v31, %v1463_v54  ;;  %v1482_v38 = vsel %vm1470_vm7, %v1463_v54, %v26243_v49 }
 0x1e8   : > { %v1270_v5 = vadd.f32 %v1242_v25, %v1150_v52  ;;  %v1389_v23 = vadd.f32 %v1361_v59, %v1269_v17 }
 0x1e9   : > { %v26271_v35 = vpop.permute.xlu1 %1092  ;;  %v26273_v21 = vpop.permute.xlu0 %1090 }
 0x1ea   : > { %v1390_v34 = vadd.f32 %v1362_v13, %v1270_v5  ;;  %v1509_v6 = vadd.f32 %v1481_v3, %v1389_v23  ;;  %v30701_v3 = vld [vmem:[#allocation15_spill] sm:$0xff] }
 0x1ec   : > { %v1510_v57 = vadd.f32 %v1482_v38, %v1390_v34  ;;  %v607_v38 = vrot.slane %v30682_v10, %v30701_v3 }
 0x1ed   : > { %v26295_v9 = vpop.permute.xlu1 %1108  ;;  %v26297_v42 = vpop.permute.xlu0 %1106 }
 0x1f1   : > { %v26315_v51 = vpop.permute.xlu1 %1568  ;;  %v1567_v1 = vpop.permute.xlu0 %1566 }
 0x1f2   : > { %v1594_v61 = vsel %vm1590_vm8, %v26090_v48, %v1567_v1  ;;  %v1595_v63 = vsel %vm1590_vm8, %v1567_v1, %v26315_v51 }
 0x1f3   : > { %v1622_v2 = vadd.f32 %v1594_v61, %v1502_v60  ;;  %v1623_v53 = vadd.f32 %v1595_v63, %v1503_v58  ;;  %v30700_v58 = vld [vmem:[#allocation8_spill] sm:$0xff] }
 0x1f4   : > { %v603_v1 = vrot.slane %v30682_v10, %v30700_v58 }
 0x1f5   : > { %v1636_v28 = vmax.f32 %v1622_v2, 0.0  ;;  %v1637_v46 = vmax.f32 %v1623_v53, 0.0  ;;  %v26325_v40 = vpop.permute.xlu1 %1584  ;;  %v1583_v31 = vpop.permute.xlu0 %1582 }
 0x1f6   : > { %v1601_v54 = vsel %vm1590_vm8, %v26106_v24, %v1583_v31  ;;  %v1602_v48 = vsel %vm1590_vm8, %v1583_v31, %v26325_v40  ;;  %v876_v31 = vsel %vm870_vm2, %v30689_v11, %v26203_v29 }
 0x1f7   : > { %v1662_v12 = vmul.f32 %v25968_v50, %v1636_v28  ;;  %v1663_v45 = vmul.f32 %v25968_v50, %v1637_v46  ;;  %v1629_v43 = vadd.f32 %v1601_v54, %v1509_v6  ;;  %v1630_v18 = vadd.f32 %v1602_v48, %v1510_v57 }
 0x1f8   : > { %v756_v6 = vsel %vm750_vm1, %v30686_v22, %v26170_v47  ;;  %v757_v57 = vsel %vm750_vm1, %v26170_v47, %v26168_v8  ;;  %v620_v28 = vmul.f32 %v603_v1, %v30687_v14  ;;  %v621_v46 = vmul.f32 %v607_v38, %v30687_v14  ;;  %v30702_v47 = vld [vmem:[#allocation35_spill] sm:$0xff] }
 0x1f9   : > { %v26334_v25 = vadd.f32 %v26127_v41, %v1662_v12  ;;  %v26337_v56 = vadd.f32 %v26127_v41, %v1663_v45  ;;  %v1643_v30 = vmax.f32 %v1629_v43, 0.0  ;;  %v1644_v36 = vmax.f32 %v1630_v18, 0.0  ;;  %v1213_v52 = vpop.permute.xlu1 %1212  ;;  %v1211_v26 = vpop.permute.xlu0 %1210  ;;  %v30703_v43 = vld [vmem:[#allocation41_spill] sm:$0xff]  ;;  %v30704_v18 = vld [vmem:[#allocation40_spill] sm:$0xff] }
 0x1fa   : > { %v877_v54 = vsel %vm870_vm2, %v26203_v29, %v26201_v0  ;;  %v784_v48 = vadd.f32 %v756_v6, %v620_v28  ;;  %v785_v12 = vadd.f32 %v757_v57, %v621_v46  ;;  %v763_v8 = vsel %vm750_vm1, %v30692_v44, %v26184_v4  ;;  %v30705_v29 = vld [vmem:[#allocation10_spill] sm:$0xff]  ;;  %v30706_v6 = vld [vmem:[#allocation39_spill] sm:$0xff] }
 0x1fb   : > { %v1669_v24 = vmul.f32 %v30666_v55, %v1643_v30  ;;  %v1670_v39 = vmul.f32 %v30666_v55, %v1644_v36  ;;  %v26343_v59 = vpack.i.bf16 %v26337_v56, %v26334_v25  ;;  %v764_v14 = vsel %vm750_vm1, %v26184_v4, %v30702_v47  ;;  %v30707_v44 = vld [vmem:[#allocation26_spill] sm:$0xff]  ;;  %v30709_v47 = vld [vmem:[#allocation43_spill] sm:$0xff] }
 0x1fc   : > { %v996_v11 = vsel %vm990_vm3, %v30694_v15, %v30703_v43  ;;  %v997_v0 = vsel %vm990_vm3, %v30703_v43, %v30704_v18  ;;  %v627_v30 = vmul.f32 %v603_v1, %v30705_v29  ;;  %v628_v36 = vmul.f32 %v607_v38, %v30705_v29  ;;  %v30708_v28 = vld [vmem:[#allocation38_spill] sm:$0xff] }
 0x1fd   : > { %v26346_v13 = vadd.f32 %v26125_v7, %v1669_v24  ;;  %v26349_v17 = vadd.f32 %v26125_v7, %v1670_v39  ;;  %v26351_v5 = vpop.permute.xlu1 %1228  ;;  %v1227_v60 = vpop.permute.xlu0 %1226  ;;  %23541 = vrot.lane.b32.xlu1 %v26343_v59, %s25159_s26  ;;  %v904_v24 = vadd.f32 %v876_v31, %v784_v48  ;;  %v905_v39 = vadd.f32 %v877_v54, %v785_v12  ;;  %v30710_v18 = vld [vmem:[#allocation42_spill] sm:$0xff] }
 0x1fe   : > { %v883_v57 = vsel %vm870_vm2, %v30707_v44, %v30706_v6  ;;  %v884_v4 = vsel %vm870_vm2, %v30706_v6, %v30708_v28  ;;  %v1116_v15 = vsel %vm1110_vm4, %v26015_v19, %v26273_v21  ;;  %v1117_v1 = vsel %vm1110_vm4, %v26273_v21, %v26271_v35 }
 0x1ff   : > { %1710 = vst [vmem:[#allocation3 + $0x68] sm:$0xff] %v26346_v13  ;;  %1711 = vst [vmem:[#allocation3 + $0x70] sm:$0xff] %v26349_v17  ;;  %v26363_v61 = vpack.i.bf16 %v26349_v17, %v26346_v13  ;;  %v26367_v63 = vpack.i.bf16 %v26349_v17, %v26337_v56  ;;  %v26371_v23 = vpack.i.bf16 %v26346_v13, %v26334_v25 }
 0x200   : > { %v21977_v34 = vpack.c.bf16 %v26346_v13, %v26334_v25  ;;  %v21983_v10 = vpack.c.bf16 %v26349_v17, %v26337_v56  ;;  %v791_v46 = vadd.f32 %v763_v8, %v627_v30  ;;  %v792_v38 = vadd.f32 %v764_v14, %v628_v36 }
 0x201   : > { %v1333_v2 = vpop.permute.xlu1 %1332  ;;  %v1331_v53 = vpop.permute.xlu0 %1330  ;;  %23546 = vrot.lane.b32.xlu0 %v26363_v61, %s25159_s26  ;;  %v1024_v31 = vadd.f32 %v996_v11, %v904_v24  ;;  %v1025_v54 = vadd.f32 %v997_v0, %v905_v39  ;;  %v1003_v43 = vsel %vm990_vm3, %v30699_v27, %v30709_v47  ;;  %v1004_v29 = vsel %vm990_vm3, %v30709_v47, %v30710_v18 }
 0x202   : > { %v1236_v19 = vsel %vm1230_vm5, %v26193_v16, %v1211_v26  ;;  %v1237_v6 = vsel %vm1230_vm5, %v1211_v26, %v1213_v52  ;;  %v911_v35 = vadd.f32 %v883_v57, %v791_v46  ;;  %v912_v21 = vadd.f32 %v884_v4, %v792_v38 }
 0x203   : > { %v1144_v8 = vadd.f32 %v1116_v15, %v1024_v31  ;;  %v1145_v14 = vadd.f32 %v1117_v1, %v1025_v54  ;;  %v1123_v11 = vsel %vm1110_vm4, %v26040_v20, %v26297_v42  ;;  %v1124_v27 = vsel %vm1110_vm4, %v26297_v42, %v26295_v9 }
 0x204   : > { %v1356_v0 = vsel %vm1350_vm6, %v26209_v33, %v1331_v53  ;;  %v1357_v30 = vsel %vm1350_vm6, %v1331_v53, %v1333_v2  ;;  %v1031_v16 = vadd.f32 %v1003_v43, %v911_v35  ;;  %v1032_v36 = vadd.f32 %v1004_v29, %v912_v21 }
 0x205   : > { %v1349_v45 = vpop.permute.xlu1 %1348  ;;  %v1347_v22 = vpop.permute.xlu0 %1346  ;;  %v1264_v52 = vadd.f32 %v1236_v19, %v1144_v8  ;;  %v1265_v26 = vadd.f32 %v1237_v6, %v1145_v14  ;;  %v1243_v44 = vsel %vm1230_vm5, %v26197_v37, %v1227_v60  ;;  %v1244_v20 = vsel %vm1230_vm5, %v1227_v60, %v26351_v5 }
 0x206   : > { %v1151_v33 = vadd.f32 %v1123_v11, %v1031_v16  ;;  %v1152_v57 = vadd.f32 %v1124_v27, %v1032_v36  ;;  %v1363_v28 = vsel %vm1350_vm6, %v26211_v32, %v1347_v22  ;;  %v1364_v4 = vsel %vm1350_vm6, %v1347_v22, %v1349_v45 }
 0x207   : > { %v1384_v2 = vadd.f32 %v1356_v0, %v1264_v52  ;;  %v1385_v53 = vadd.f32 %v1357_v30, %v1265_v26  ;;  %v26473_v52 = vld [vmem:[#allocation2 + $0x40] sm:$0xff] }
 0x208   : > { %v1271_v15 = vadd.f32 %v1243_v44, %v1151_v33  ;;  %v1272_v1 = vadd.f32 %v1244_v20, %v1152_v57  ;;  %v30713_v20 = vld [vmem:[#allocation37_spill] sm:$0xff] }
 0x209   : > { %v1453_v48 = vpop.permute.xlu1 %1452  ;;  %v1451_v12 = vpop.permute.xlu0 %1450 }
 0x20a   : > { %v1476_v9 = vsel %vm1470_vm7, %v26227_v62, %v1451_v12  ;;  %v1477_v42 = vsel %vm1470_vm7, %v1451_v12, %v1453_v48  ;;  %v1391_v48 = vadd.f32 %v1363_v28, %v1271_v15  ;;  %v1392_v32 = vadd.f32 %v1364_v4, %v1272_v1 }
 0x20b   : > { %v1504_v37 = vadd.f32 %v1476_v9, %v1384_v2  ;;  %v1505_v46 = vadd.f32 %v1477_v42, %v1385_v53 }
 0x20d   : > { %v1469_v24 = vpop.permute.xlu1 %1468  ;;  %v1467_v39 = vpop.permute.xlu0 %1466 }
 0x20e   : > { %v1483_v62 = vsel %vm1470_vm7, %v26243_v49, %v1467_v39  ;;  %v1484_v60 = vsel %vm1470_vm7, %v1467_v39, %v1469_v24  ;;  %v30712_v39 = vld [vmem:[#allocation16_spill] sm:$0xff] }
 0x20f   : > { %v1511_v22 = vadd.f32 %v1483_v62, %v1391_v48  ;;  %v1512_v47 = vadd.f32 %v1484_v60, %v1392_v32  ;;  %v26532_v62 = vld [vmem:[%s30553_s3 + $0x10] sm:$0xff]  ;;  %v26544_v60 = vld [vmem:[%s30553_s3 + $0x18] sm:$0xff] }
 0x211   : > { %v1573_v38 = vpop.permute.xlu1 %1572  ;;  %v1571_v5 = vpop.permute.xlu0 %1570 }
 0x212   : > { %v1596_v31 = vsel %vm1590_vm8, %v26315_v51, %v1571_v5  ;;  %v1597_v54 = vsel %vm1590_vm8, %v1571_v5, %v1573_v38 }
 0x213   : > { %v1624_v12 = vadd.f32 %v1596_v31, %v1504_v37  ;;  %v1625_v45 = vadd.f32 %v1597_v54, %v1505_v46 }
 0x215   : > { %v1638_v43 = vmax.f32 %v1624_v12, 0.0  ;;  %v1639_v18 = vmax.f32 %v1625_v45, 0.0  ;;  %v1589_v29 = vpop.permute.xlu1 %1588  ;;  %v1587_v19 = vpop.permute.xlu0 %1586 }
 0x216   : > { %v1603_v49 = vsel %vm1590_vm8, %v26325_v40, %v1587_v19  ;;  %v1604_v6 = vsel %vm1590_vm8, %v1587_v19, %v1589_v29 }
 0x217   : > { %v1664_v35 = vmul.f32 %v25968_v50, %v1638_v43  ;;  %v1665_v51 = vmul.f32 %v25968_v50, %v1639_v18  ;;  %v1631_v21 = vadd.f32 %v1603_v49, %v1511_v22  ;;  %v1632_v8 = vadd.f32 %v1604_v6, %v1512_v47 }
 0x219   : > { %v26459_v14 = vadd.f32 %v26127_v41, %v1664_v35  ;;  %v1692_v11 = vadd.f32 %v26127_v41, %v1665_v51  ;;  %v1645_v27 = vmax.f32 %v1631_v21, 0.0  ;;  %v1646_v0 = vmax.f32 %v1632_v8, 0.0  ;;  %v5187_v51 = vld [vmem:[%s30561_s11] sm:$0xff] }
 0x21a   : > { %v26477_v41 = vpack.i.bf16 %v26473_v52, %v26473_v52 }
 0x21b   : > { %v1671_v30 = vmul.f32 %v30666_v55, %v1645_v27  ;;  %v1672_v16 = vmul.f32 %v30666_v55, %v1646_v0  ;;  %v26465_v40 = vpack.i.bf16 %v1692_v11, %v26459_v14 }
 0x21d   : > { %v26468_v36 = vadd.f32 %v26125_v7, %v1671_v30  ;;  %v1699_v50 = vadd.f32 %v26125_v7, %v1672_v16  ;;  %23551 = vrot.lane.b32.xlu1 %v26465_v40, %s25159_s26  ;;  %v30711_v7 = vld [vmem:[#allocation23_spill] sm:$0xff] }
 0x21e   : > { %v20857_v16 = vld [vmem:[%s30561_s11 + $0x18] sm:$0xff] }
 0x21f   : > { %1712 = vst [vmem:[#allocation3 + $0x78] sm:$0xff] %v26468_v36  ;;  %1713 = vst [vmem:[#allocation3 + $0x80] sm:$0xff] %v1699_v50  ;;  %v26481_v55 = vpack.i.bf16 %v1699_v50, %v26468_v36  ;;  %v21981_v26 = vpack.c.bf16 %v26468_v36, %v26459_v14  ;;  %v26485_v24 = vpack.c.bf16 %v1699_v50, %v1692_v11 }
 0x221   : > { %23561 = vrot.lane.b32.xlu1 %v26477_v41, %s25159_s26  ;;  %23556 = vrot.lane.b32.xlu0 %v26481_v55, %s25159_s26 }
 0x225   : > { %23571 = vrot.lane.b32.xlu1 %v30711_v7, %s25160_s27  ;;  %23566 = vrot.lane.b32.xlu0 %v30712_v39, %s25160_s27 }
 0x228   : > { %v26495_v44 = vpop.permute.xlu0 %23526 }
 0x229   : > { %23581 = vrot.lane.b32.xlu1 %v26343_v59, %s25160_s27  ;;  %23576 = vrot.lane.b32.xlu0 %v30713_v20, %s25160_s27  ;;  %v23529_v9 = vunpack.i.h.bf16 %v26495_v44  ;;  %v23528_v42 = vunpack.i.l.bf16 %v26495_v44 }
 0x22b   : > { %v26503_v33 = vpop.permute.xlu1 %23531  ;;  %v1798_v53 = vsel %vm750_vm1, %v23528_v42, %v23529_v9 }
 0x22c   : > { %v23534_v57 = vunpack.i.h.bf16 %v26503_v33  ;;  %v23533_v2 = vunpack.i.l.bf16 %v26503_v33 }
 0x22d   : > { %23591 = vrot.lane.b32.xlu1 %v26465_v40, %s25160_s27  ;;  %23586 = vrot.lane.b32.xlu0 %v26363_v61, %s25160_s27 }
 0x22e   : > { %v1805_v28 = vsel %vm750_vm1, %v23533_v2, %v23534_v57 }
 0x22f   : > { %v21957_v4 = vpack.c.bf16 %v1805_v28, %v1798_v53  ;;  %v30714_v53 = vld [vmem:[#allocation17_spill] sm:$0xff]  ;;  %v30715_v28 = vld [vmem:[#allocation28_spill] sm:$0xff] }
 0x231   : > { %23601 = vrot.lane.b32.xlu1 %v26477_v41, %s25160_s27  ;;  %21958 = vmatprep.subr.bf16.mxu1 %v21957_v4  ;;  %v30716_v4 = vpack.c.bf16 %v30714_v53, %v30715_v28  ;;  %v26798_v53 = vld [vmem:[%s30553_s3 + $0x28] sm:$0xff] }
 0x232   : > { %23596 = vrot.lane.b32.xlu0 %v26481_v55, %s25160_s27 }
 0x233   : > { %v23537_v15 = vpop.permute.xlu0 %23536 }
 0x234   : > { %v23539_v1 = vunpack.i.h.bf16 %v23537_v15  ;;  %v23538_v37 = vunpack.i.l.bf16 %v23537_v15 }
 0x235   : > { %23611 = vrot.lane.b32.xlu1 %v30711_v7, %s25161_s28 }
 0x236   : > { %23606 = vrot.lane.b32.xlu0 %v30712_v39, %s25161_s28  ;;  %v1797_v46 = vsel %vm750_vm1, %v23538_v37, %v23528_v42  ;;  %v1804_v38 = vsel %vm750_vm1, %v23539_v1, %v23533_v2  ;;  %v30717_v37 = vld [vmem:[#allocation29_spill] sm:$0xff] }
 0x237   : > { %v21959_v5 = vpack.c.bf16 %v1804_v38, %v1797_v46  ;;  %v30718_v46 = vld [vmem:[#allocation36_spill] sm:$0xff] }
 0x238   : > { %v30719_v38 = vpack.c.bf16 %v30717_v37, %v30718_v46 }
 0x239   : > { %23621 = vrot.lane.b32.xlu1 %v26343_v59, %s25161_s28  ;;  %21960 = vmatpush1.bf16.msra.mxu1 %v21959_v5  ;;  %v1728_v5 = vld [vmem:[%s30553_s3] sm:$0xff] }
 0x23a   : > { %23616 = vrot.lane.b32.xlu0 %v30713_v20, %s25161_s28 }
 0x23c   : > { %20770 = vmatmul.mubr.msk.f32.vlgmr.msra.gmra.mrb[0].mxu1 %vm1825_vm9, %v26532_v62 }
 0x23d   : > { %23631 = vrot.lane.b32.xlu1 %v26465_v40, %s25161_s28  ;;  %1902 = vmatprep.mubr.f32.mxu1 %v26473_v52 }
 0x23e   : > { %23626 = vrot.lane.b32.xlu0 %v26363_v61, %s25161_s28 }
 0x240   : > { %20771 = vmatmul.mubr.msk.f32.gmra.mrb[2].mxu1 %vm1825_vm9, %v26544_v60 }
 0x241   : > { %23641 = vrot.lane.b32.xlu1 %v26477_v41, %s25161_s28  ;;  %1973 = vmatprep.mubr.f32.mxu1 %v26473_v52 }
 0x242   : > { %23636 = vrot.lane.b32.xlu0 %v26481_v55, %s25161_s28 }
 0x245   : > { %23651 = vrot.lane.b32.xlu1 %v30711_v7, %s25162_s29 }
 0x246   : > { %23646 = vrot.lane.b32.xlu0 %v30712_v39, %s25162_s29 }
 0x249   : > { %23661 = vrot.lane.b32.xlu1 %v26343_v59, %s25162_s29 }
 0x24a   : > { %23656 = vrot.lane.b32.xlu0 %v30713_v20, %s25162_s29 }
 0x24d   : > { %23671 = vrot.lane.b32.xlu1 %v26465_v40, %s25162_s29 }
 0x24e   : > { %23666 = vrot.lane.b32.xlu0 %v26363_v61, %s25162_s29 }
 0x251   : > { %23681 = vrot.lane.b32.xlu1 %v26477_v41, %s25162_s29 }
 0x252   : > { %23676 = vrot.lane.b32.xlu0 %v26481_v55, %s25162_s29 }
 0x255   : > { %23691 = vrot.lane.b32.xlu1 %v30711_v7, %s25163_s30 }
 0x256   : > { %23686 = vrot.lane.b32.xlu0 %v30712_v39, %s25163_s30 }
 0x259   : > { %23701 = vrot.lane.b32.xlu1 %v26343_v59, %s25163_s30 }
 0x25a   : > { %23696 = vrot.lane.b32.xlu0 %v30713_v20, %s25163_s30 }
 0x25d   : > { %23711 = vrot.lane.b32.xlu1 %v30712_v39, %s25164_s0 }
 0x25e   : > { %23706 = vrot.lane.b32.xlu0 %v26363_v61, %s25163_s30 }
 0x261   : > { %23721 = vrot.lane.b32.xlu1 %v30713_v20, %s25164_s0 }
 0x262   : > { %23716 = vrot.lane.b32.xlu0 %v30711_v7, %s25164_s0 }
 0x265   : > { %23731 = vrot.lane.b32.xlu1 %v26481_v55, %s25163_s30 }
 0x266   : > { %23726 = vrot.lane.b32.xlu0 %v26465_v40, %s25163_s30 }
 0x269   : > { %23741 = vrot.lane.b32.xlu1 %v26481_v55, %s25164_s0 }
 0x26a   : > { %23736 = vrot.lane.b32.xlu0 %v26465_v40, %s25164_s0 }
 0x26d   : > { %23751 = vrot.lane.b32.xlu1 %v26477_v41, %s25163_s30 }
 0x26e   : > { %23746 = vrot.lane.b32.xlu0 %v26367_v63, %s25164_s0 }
 0x26f   : > { %v23542_v31 = vpop.permute.xlu1 %23541 }
 0x270   : > { %v23544_v54 = vunpack.i.h.bf16 %v23542_v31  ;;  %v23543_v48 = vunpack.i.l.bf16 %v23542_v31 }
 0x271   : > { %23761 = vrot.lane.b32.xlu1 %v30711_v7, %s25165_s17 }
 0x272   : > { %23756 = vrot.lane.b32.xlu0 %v30712_v39, %s25165_s17  ;;  %v1799_v22 = vsel %vm750_vm1, %v23529_v9, %v23543_v48  ;;  %v1800_v43 = vsel %vm750_vm1, %v23543_v48, %v23544_v54 }
 0x273   : > { %v23547_v32 = vpop.permute.xlu0 %23546 }
 0x274   : > { %v23549_v12 = vunpack.i.h.bf16 %v23547_v32  ;;  %v23548_v45 = vunpack.i.l.bf16 %v23547_v32  ;;  %v1729_v32 = vld [vmem:[%s30553_s3 + $0x8] sm:$0xff] }
 0x275   : > { %23771 = vrot.lane.b32.xlu1 %v26371_v23, %s25164_s0 }
 0x276   : > { %v1806_v47 = vsel %vm750_vm1, %v23534_v57, %v23548_v45  ;;  %23766 = vrot.lane.b32.xlu0 %v30713_v20, %s25165_s17  ;;  %v1807_v18 = vsel %vm750_vm1, %v23548_v45, %v23549_v12 }
 0x277   : > { %v21961_v29 = vpack.c.bf16 %v1807_v18, %v1800_v43  ;;  %v21963_v19 = vpack.c.bf16 %v1806_v47, %v1799_v22 }
 0x279   : > { %23781 = vrot.lane.b32.xlu1 %v26481_v55, %s25165_s17  ;;  %21962 = vmatprep.subr.bf16.mxu1 %v21961_v29 }
 0x27a   : > { %23776 = vrot.lane.b32.xlu0 %v26465_v40, %s25165_s17  ;;  %21964 = vmatpush1.bf16.msra.mxu1 %v21963_v19 }
 0x27d   : > { %23791 = vrot.lane.b32.xlu1 %v26477_v41, %s25164_s0  ;;  %20772 = vmatmul.mubr.msk.f32.vlgmr.msra.gmra.mrb[4].mxu1 %vm1825_vm9, %v26532_v62 }
 0x27e   : > { %23786 = vrot.lane.b32.xlu0 %v26367_v63, %s25165_s17  ;;  %1979 = vmatprep.mubr.f32.mxu1 %v26473_v52 }
 0x281   : > { %23801 = vrot.lane.b32.xlu1 %v30712_v39, %s25166_s24  ;;  %20773 = vmatmul.mubr.msk.f32.gmra.mrb[6].mxu1 %vm1825_vm9, %v26544_v60  ;;  %v20856_v39 = vld [vmem:[%s30561_s11 + $0x10] sm:$0xff] }
 0x282   : > { %23796 = vrot.lane.b32.xlu0 %v26371_v23, %s25165_s17  ;;  %2050 = vmatprep.mubr.f32.mxu1 %v26473_v52 }
 0x285   : > { %23811 = vrot.lane.b32.xlu1 %v30713_v20, %s25166_s24 }
 0x286   : > { %23806 = vrot.lane.b32.xlu0 %v30711_v7, %s25166_s24 }
 0x289   : > { %23821 = vrot.lane.b32.xlu1 %v26343_v59, %s25166_s24  ;;  %v5188_v59 = vld [vmem:[%s30561_s11 + $0x8] sm:$0xff] }
 0x28a   : > { %23816 = vrot.lane.b32.xlu0 %v26477_v41, %s25165_s17 }
 0x28d   : > { %23831 = vrot.lane.b32.xlu1 %v26465_v40, %s25166_s24 }
 0x28e   : > { %23826 = vrot.lane.b32.xlu0 %v26363_v61, %s25166_s24 }
 0x28f   : > { %v23552_v63 = vpop.permute.xlu1 %23551 }
 0x290   : > { %v23554_v23 = vunpack.i.h.bf16 %v23552_v63  ;;  %v23553_v49 = vunpack.i.l.bf16 %v23552_v63 }
 0x291   : > { %23841 = vrot.lane.b32.xlu1 %v26477_v41, %s25166_s24 }
 0x292   : > { %23836 = vrot.lane.b32.xlu0 %v26481_v55, %s25166_s24  ;;  %v1801_v27 = vsel %vm750_vm1, %v23544_v54, %v23553_v49  ;;  %v1802_v0 = vsel %vm750_vm1, %v23553_v49, %v23554_v23  ;;  %v30721_v54 = vld [vmem:[#allocation14_spill] sm:$0xff] }
 0x293   : > { %v23562_v6 = vpop.permute.xlu1 %23561  ;;  %v23557_v35 = vpop.permute.xlu0 %23556 }
 0x294   : > { %v23564_v61 = vunpack.i.h.bf16 %v23562_v6  ;;  %v23563_v21 = vunpack.i.l.bf16 %v23562_v6  ;;  %v23559_v8 = vunpack.i.h.bf16 %v23557_v35  ;;  %v23558_v11 = vunpack.i.l.bf16 %v23557_v35 }
 0x295   : > { %5196 = vperm.xlu1 %23524, %v5188_v59  }
 0x296   : > { %v1808_v30 = vsel %vm750_vm1, %v23549_v12, %v23558_v11  ;;  %5191 = vperm.xlu0 %23523, %v5187_v51   ;;  %v1809_v40 = vsel %vm750_vm1, %v23558_v11, %v23559_v8  ;;  %v1803_v50 = vsel %vm750_vm1, %v23554_v23, %v23563_v21  ;;  %v1810_v41 = vsel %vm750_vm1, %v23559_v8, %v23564_v61 }
 0x297   : > { %v26664_v55 = vpop.permute.xlu1 %23571  ;;  %v26666_v7 = vpop.permute.xlu0 %23566  ;;  %v21965_v44 = vpack.c.bf16 %v1809_v40, %v1802_v0  ;;  %v21967_v20 = vpack.c.bf16 %v1808_v30, %v1801_v27  ;;  %v21969_v9 = vpack.c.bf16 %v1810_v41, %v1803_v50 }
 0x298   : > { %v23574_v45 = vunpack.i.h.bf16 %v26664_v55  ;;  %v23573_v22 = vunpack.i.l.bf16 %v26664_v55  ;;  %v23569_v14 = vunpack.i.h.bf16 %v26666_v7  ;;  %v23568_v36 = vunpack.i.l.bf16 %v26666_v7  ;;  %v26781_v55 = vld [vmem:[%s30553_s3 + $0x20] sm:$0xff] }
 0x299   : > { %5223 = vperm.xlu1 %23524, %v20857_v16   ;;  %21966 = vmatprep.subr.bf16.mxu1 %v21965_v44 }
 0x29a   : > { %5218 = vperm.xlu0 %23523, %v20856_v39   ;;  %21968 = vmatpush1.bf16.msra.mxu1 %v21967_v20  ;;  %v2486_v43 = vsel %vm870_vm2, %v23568_v36, %v23569_v14  ;;  %v2493_v18 = vsel %vm870_vm2, %v23573_v22, %v23574_v45 }
 0x29b   : > { %v26671_v42 = vpop.permute.xlu1 %23581  ;;  %v23577_v33 = vpop.permute.xlu0 %23576  ;;  %21970 = vmatprep.subr.bf16.mxu1 %v21969_v9  ;;  %v21989_v19 = vpack.c.bf16 %v2493_v18, %v2486_v43 }
 0x29c   : > { %v23579_v17 = vunpack.i.h.bf16 %v23577_v33  ;;  %v23584_v59 = vunpack.i.h.bf16 %v26671_v42  ;;  %v23583_v6 = vunpack.i.l.bf16 %v26671_v42 }
 0x29d   : > { %20774 = vmatmul.mubr.msk.f32.vlgmr.msra.gmra.mrb[8].mxu1 %vm1825_vm9, %v26532_v62 }
 0x29e   : > { %21972 = vmatpush3.bf16.msra.mxu1 %v21969_v9  ;;  %2056 = vmatprep.mubr.f32.mxu1 %v26473_v52  ;;  %v2492_v51 = vsel %vm870_vm2, %v23579_v17, %v23573_v22  ;;  %v2488_v40 = vsel %vm870_vm2, %v23583_v6, %v23584_v59  ;;  %v2487_v39 = vsel %vm870_vm2, %v23569_v14, %v23583_v6 }
 0x29f   : > { %v26676_v57 = vpop.permute.xlu1 %23591  ;;  %v26678_v2 = vpop.permute.xlu0 %23586  ;;  %21974 = vmatprep.subr.bf16.mxu1 %v30716_v4 }
 0x2a0   : > { %v23589_v63 = vunpack.i.h.bf16 %v26678_v2  ;;  %v23588_v23 = vunpack.i.l.bf16 %v26678_v2  ;;  %v23594_v27 = vunpack.i.h.bf16 %v26676_v57  ;;  %v23593_v0 = vunpack.i.l.bf16 %v26676_v57 }
 0x2a1   : > { %20775 = vmatmul.mubr.msk.f32.gmra.mrb[10].mxu1 %vm1825_vm9, %v26544_v60 }
 0x2a2   : > { %21632 = vmatprep.mubr.msk.f32.mxu1 %vm1825_vm9, %v26532_v62  ;;  %v2495_v8 = vsel %vm870_vm2, %v23588_v23, %v23589_v63  ;;  %v2494_v50 = vsel %vm870_vm2, %v23574_v45, %v23588_v23  ;;  %v2490_v42 = vsel %vm870_vm2, %v23593_v0, %v23594_v27  ;;  %v2489_v46 = vsel %vm870_vm2, %v23584_v59, %v23593_v0 }
 0x2a3   : > { %v26687_v15 = vpop.permute.xlu1 %23601  ;;  %v21993_v41 = vpack.c.bf16 %v2495_v8, %v2488_v40  ;;  %v21995_v9 = vpack.c.bf16 %v2494_v50, %v2487_v39 }
 0x2a4   : > { %v26689_v1 = vpop.permute.xlu0 %23596  ;;  %v23604_v57 = vunpack.i.h.bf16 %v26687_v15  ;;  %v23603_v2 = vunpack.i.l.bf16 %v26687_v15 }
 0x2a5   : > { %21633 = vmatmul.mubr.msk.f32.vlgmr.msra.gmra.mrb[12].mxu1 %vm1825_vm9, %v26544_v60  ;;  %v30720_v60 = vld [vmem:[#allocation22_spill] sm:$0xff]  ;;  %v23599_v21 = vunpack.i.h.bf16 %v26689_v1 }
 0x2a6   : > { %21976 = vmatpush1.bf16.msra.mxu1 %v30719_v38  ;;  %2208 = vmatprep.mubr.f32.mxu1 %v26473_v52  ;;  %v30722_v48 = vpack.c.bf16 %v30720_v60, %v30721_v54  ;;  %v2491_v15 = vsel %vm870_vm2, %v23594_v27, %v23603_v2 }
 0x2a7   : > { %21978 = vmatprep.subr.bf16.mxu1 %v21977_v34  ;;  %v26703_v62 = vpop.permute.xlu1 %23611  ;;  %v2498_v37 = vsel %vm870_vm2, %v23599_v21, %v23604_v57 }
 0x2a8   : > { %v26705_v31 = vpop.permute.xlu0 %23606  ;;  %v22001_v22 = vpack.c.bf16 %v2498_v37, %v2491_v15 }
 0x2a9   : > { %20778 = vmatmul.mubr.msk.f32.vlgmr.msra.gmra.mrb[0].mxu1 %vm1825_vm9, %v1728_v5  ;;  %v23608_v45 = vunpack.i.l.bf16 %v26705_v31 }
 0x2aa   : > { %21980 = vmatpush1.bf16.msra.mxu1 %v30722_v48  ;;  %2214 = vmatprep.mubr.f32.mxu1 %v26473_v52  ;;  %v23613_v48 = vunpack.i.l.bf16 %v26703_v62 }
 0x2ab   : > { %21982 = vmatprep.subr.bf16.mxu1 %v21981_v26  ;;  %v26718_v25 = vpop.permute.xlu1 %23621 }
 0x2ac   : > { %v26720_v13 = vpop.permute.xlu0 %23616  ;;  %v23624_v8 = vunpack.i.h.bf16 %v26718_v25 }
 0x2ad   : > { %20779 = vmatmul.mubr.msk.f32.gmra.mrb[2].mxu1 %vm1825_vm9, %v1729_v32 }
 0x2ae   : > { %2285 = vmatprep.mubr.f32.mxu1 %v26473_v52 }
 0x2af   : > { %v26724_v34 = vpop.permute.xlu1 %23631 }
 0x2b0   : > { %v26726_v12 = vpop.permute.xlu0 %23626  ;;  %v23634_v15 = vunpack.i.h.bf16 %v26724_v34 }
 0x2b1   : > { %20780 = vmatmul.mubr.msk.f32.vlgmr.msra.gmra.mrb[4].mxu1 %vm1825_vm9, %v1728_v5  ;;  %v23629_v27 = vunpack.i.h.bf16 %v26726_v12  ;;  %v23628_v0 = vunpack.i.l.bf16 %v26726_v12 }
 0x2b2   : > { %21984 = vmatpush1.bf16.msra.mxu1 %v21983_v10  ;;  %2291 = vmatprep.mubr.f32.mxu1 %v26473_v52  ;;  %v23578_v10 = vunpack.i.l.bf16 %v23577_v33 }
 0x2b3   : > { %21986 = vmatprep.subr.bf16.mxu1 %v26485_v24  ;;  %v26738_v26 = vpop.permute.xlu1 %23641 }
 0x2b4   : > { %v26740_v47 = vpop.permute.xlu0 %23636  ;;  %v2485_v61 = vsel %vm870_vm2, %v23578_v10, %v23568_v36 }
 0x2b5   : > { %20781 = vmatmul.mubr.msk.f32.gmra.mrb[6].mxu1 %vm1825_vm9, %v1729_v32  ;;  %v21991_v16 = vpack.c.bf16 %v2492_v51, %v2485_v61  ;;  %v23619_v51 = vunpack.i.h.bf16 %v26720_v13  ;;  %v23618_v61 = vunpack.i.l.bf16 %v26720_v13  ;;  %v23623_v13 = vunpack.i.l.bf16 %v26718_v25 }
 0x2b6   : > { %2362 = vmatprep.mubr.f32.mxu1 %v26473_v52  ;;  %v23639_v57 = vunpack.i.h.bf16 %v26740_v47  ;;  %v23638_v2 = vunpack.i.l.bf16 %v26740_v47 }
 0x2b7   : > { %v26746_v29 = vpop.permute.xlu1 %23651 }
 0x2b8   : > { %v26748_v56 = vpop.permute.xlu0 %23646 }
 0x2b9   : > { %20782 = vmatmul.mubr.msk.f32.vlgmr.msra.gmra.mrb[8].mxu1 %vm1825_vm9, %v1728_v5 }
 0x2ba   : > { %21988 = vmatpush3.bf16.msra.mxu1 %v26485_v24  ;;  %2368 = vmatprep.mubr.f32.mxu1 %v26473_v52  ;;  %v23598_v24 = vunpack.i.l.bf16 %v26689_v1 }
 0x2bb   : > { %21990 = vmatprep.subr.bf16.mxu1 %v21989_v19  ;;  %v26755_v49 = vpop.permute.xlu1 %23661 }
 0x2bc   : > { %v26759_v35 = vpop.permute.xlu0 %23656  ;;  %v2497_v7 = vsel %vm870_vm2, %v23598_v24, %v23599_v21  ;;  %v2496_v1 = vsel %vm870_vm2, %v23589_v63, %v23598_v24 }
 0x2bd   : > { %20783 = vmatmul.mubr.msk.f32.gmra.mrb[10].mxu1 %vm1825_vm9, %v1729_v32  ;;  %v21997_v33 = vpack.c.bf16 %v2497_v7, %v2490_v42  ;;  %v21999_v54 = vpack.c.bf16 %v2496_v1, %v2489_v46  ;;  %v2881_v42 = vsel %vm990_vm3, %v23619_v51, %v23613_v48  ;;  %v2884_v1 = vsel %vm990_vm3, %v23628_v0, %v23629_v27 }
 0x2be   : > { %21639 = vmatprep.mubr.msk.f32.mxu1 %vm1825_vm9, %v1728_v5  ;;  %v23614_v5 = vunpack.i.h.bf16 %v26703_v62  ;;  %v2877_v46 = vsel %vm990_vm3, %v23623_v13, %v23624_v8 }
 0x2bf   : > { %v26768_v11 = vpop.permute.xlu1 %23671 }
 0x2c0   : > { %v26772_v30 = vpop.permute.xlu0 %23666  ;;  %v2882_v18 = vsel %vm990_vm3, %v23613_v48, %v23614_v5 }
 0x2c1   : > { %21640 = vmatmul.mubr.msk.f32.vlgmr.msra.gmra.mrb[12].mxu1 %vm1825_vm9, %v1729_v32  ;;  %v23609_v32 = vunpack.i.h.bf16 %v26705_v31 }
 0x2c2   : > { %21992 = vmatpush1.bf16.msra.mxu1 %v21991_v16  ;;  %2583 = vmatprep.mubr.f32.mxu1 %v26473_v52 }
 0x2c3   : > { %21994 = vmatprep.subr.bf16.mxu1 %v21993_v41  ;;  %v26785_v44 = vpop.permute.xlu1 %23681  ;;  %v2875_v43 = vsel %vm990_vm3, %v23608_v45, %v23609_v32 }
 0x2c4   : > { %v26787_v20 = vpop.permute.xlu0 %23676  ;;  %v22005_v6 = vpack.c.bf16 %v2882_v18, %v2875_v43  ;;  %v2883_v43 = vsel %vm990_vm3, %v23614_v5, %v23628_v0  ;;  %v2886_v5 = vsel %vm990_vm3, %v23638_v2, %v23639_v57 }
 0x2c5   : > { %20788 = vmatmul.mubr.msk.f32.vlgmr.msra.gmra.mrb[0].mxu1 %vm1825_vm9, %v26781_v55 }
 0x2c6   : > { %21996 = vmatpush1.bf16.msra.mxu1 %v21995_v9  ;;  %2589 = vmatprep.mubr.f32.mxu1 %v26473_v52 }
 0x2c7   : > { %21998 = vmatprep.subr.bf16.mxu1 %v21997_v33  ;;  %v26800_v28 = vpop.permute.xlu1 %23691  ;;  %v2874_v33 = vsel %vm990_vm3, %v23618_v61, %v23608_v45 }
 0x2c8   : > { %v26802_v4 = vpop.permute.xlu0 %23686 }
 0x2c9   : > { %20789 = vmatmul.mubr.msk.f32.gmra.mrb[2].mxu1 %vm1825_vm9, %v26798_v53 }
 0x2ca   : > { %2660 = vmatprep.mubr.f32.mxu1 %v26473_v52 }
 0x2cb   : > { %v26811_v38 = vpop.permute.xlu1 %23701 }
 0x2cc   : > { %v26814_v60 = vpop.permute.xlu0 %23696 }
 0x2cd   : > { %20790 = vmatmul.mubr.msk.f32.vlgmr.msra.gmra.mrb[4].mxu1 %vm1825_vm9, %v26781_v55 }
 0x2ce   : > { %22000 = vmatpush1.bf16.msra.mxu1 %v21999_v54  ;;  %2666 = vmatprep.mubr.f32.mxu1 %v26473_v52  ;;  %v23633_v54 = vunpack.i.l.bf16 %v26724_v34 }
 0x2cf   : > { %22002 = vmatprep.subr.bf16.mxu1 %v22001_v22  ;;  %v26822_v14 = vpop.permute.xlu1 %23711 }
 0x2d0   : > { %v26824_v36 = vpop.permute.xlu0 %23706  ;;  %v23714_v17 = vunpack.i.h.bf16 %v26822_v14  ;;  %v23713_v10 = vunpack.i.l.bf16 %v26822_v14  ;;  %v2879_v31 = vsel %vm990_vm3, %v23633_v54, %v23634_v15 }
 0x2d1   : > { %20791 = vmatmul.mubr.msk.f32.gmra.mrb[6].mxu1 %vm1825_vm9, %v26798_v53 }
 0x2d2   : > { %2737 = vmatprep.mubr.f32.mxu1 %v26473_v52  ;;  %v4042_v50 = vsel %vm1350_vm6, %v23713_v10, %v23714_v17 }
 0x2d3   : > { %v23722_v19 = vpop.permute.xlu1 %23721 }
 0x2d4   : > { %v23724_v63 = vunpack.i.h.bf16 %v23722_v19  ;;  %v23723_v23 = vunpack.i.l.bf16 %v23722_v19  ;;  %v26837_v59 = vpop.permute.xlu0 %23716  ;;  %v23643_v19 = vunpack.i.l.bf16 %v26738_v26 }
 0x2d5   : > { %v23719_v21 = vunpack.i.h.bf16 %v26837_v59  ;;  %v23718_v24 = vunpack.i.l.bf16 %v26837_v59  ;;  %20792 = vmatmul.mubr.msk.f32.vlgmr.msra.gmra.mrb[8].mxu1 %vm1825_vm9, %v26781_v55 }
 0x2d6   : > { %22004 = vmatpush3.bf16.msra.mxu1 %v22001_v22  ;;  %2743 = vmatprep.mubr.f32.mxu1 %v26473_v52  ;;  %v4041_v16 = vsel %vm1350_vm6, %v23723_v23, %v23713_v10  ;;  %v26885_v22 = vld [vmem:[%s30553_s3 + $0x60] sm:$0xff]  ;;  %v22009_v10 = vpack.c.bf16 %v2884_v1, %v2877_v46  ;;  %v23644_v23 = vunpack.i.h.bf16 %v26738_v26 }
 0x2d7   : > { %22006 = vmatprep.subr.bf16.mxu1 %v22005_v6  ;;  %v26851_v40 = vpop.permute.xlu1 %23731  ;;  %v4049_v41 = vsel %vm1350_vm6, %v23718_v24, %v23719_v21  ;;  %v4048_v12 = vsel %vm1350_vm6, %v23724_v63, %v23718_v24  ;;  %v26899_v63 = vld [vmem:[%s30553_s3 + $0x30] sm:$0xff] }
 0x2d8   : > { %v26860_v7 = vpop.permute.xlu0 %23726  ;;  %v22053_v39 = vpack.c.bf16 %v4049_v41, %v4042_v50  ;;  %v22055_v9 = vpack.c.bf16 %v4048_v12, %v4041_v16  ;;  %v22013_v16 = vpack.c.bf16 %v2886_v5, %v2879_v31  ;;  %v2885_v50 = vsel %vm990_vm3, %v23629_v27, %v23638_v2  ;;  %v26933_v41 = vld [vmem:[%s30553_s3 + $0x38] sm:$0xff] }
 0x2d9   : > { %20793 = vmatmul.mubr.msk.f32.gmra.mrb[10].mxu1 %vm1825_vm9, %v26798_v53  ;;  %v2880_v12 = vsel %vm990_vm3, %v23634_v15, %v23643_v19  ;;  %v2887_v27 = vsel %vm990_vm3, %v23639_v57, %v23644_v23  ;;  %v23653_v2 = vunpack.i.l.bf16 %v26746_v29 }
 0x2da   : > { %22054 = vmatprep.subr.bf16.mxu0 %v22053_v39  ;;  %21646 = vmatprep.mubr.msk.f32.mxu1 %vm1825_vm9, %v26781_v55  ;;  %v22007_v55 = vpack.c.bf16 %v2881_v42, %v2874_v33  ;;  %v23654_v39 = vunpack.i.h.bf16 %v26746_v29  ;;  %v22017_v25 = vpack.c.bf16 %v2887_v27, %v2880_v12  ;;  %v27125_v29 = vld [vmem:[%s30553_s3 + $0x40] sm:$0xff] }
 0x2db   : > { %22056 = vmatpush1.bf16.msra.mxu0 %v22055_v9  ;;  %v26872_v37 = vpop.permute.xlu1 %23741 }
 0x2dc   : > { %v23744_v48 = vunpack.i.h.bf16 %v26872_v37  ;;  %v23743_v47 = vunpack.i.l.bf16 %v26872_v37  ;;  %v26880_v45 = vpop.permute.xlu0 %23736  ;;  %v3271_v31 = vsel %vm1110_vm4, %v23653_v2, %v23654_v39 }
 0x2dd   : > { %v23739_v18 = vunpack.i.h.bf16 %v26880_v45  ;;  %v23738_v34 = vunpack.i.l.bf16 %v26880_v45  ;;  %21647 = vmatmul.mubr.msk.f32.vlgmr.msra.gmra.mrb[12].mxu1 %vm1825_vm9, %v26798_v53  ;;  %v2876_v53 = vsel %vm990_vm3, %v23609_v32, %v23623_v13  ;;  %v26927_v13 = vld [vmem:[%s30553_s3 + $0x68] sm:$0xff]  ;;  %v23673_v45 = vunpack.i.l.bf16 %v26768_v11 }
 0x2de   : > { %22008 = vmatpush1.bf16.msra.mxu1 %v22007_v55  ;;  %2972 = vmatprep.mubr.f32.mxu1 %v26473_v52  ;;  %v4053_v62 = vsel %vm1350_vm6, %v23743_v47, %v23744_v48  ;;  %v22011_v24 = vpack.c.bf16 %v2883_v43, %v2876_v53  ;;  %v23648_v43 = vunpack.i.l.bf16 %v26748_v56 }
 0x2df   : > { %22010 = vmatprep.subr.bf16.mxu1 %v22009_v10  ;;  %v26909_v6 = vpop.permute.xlu1 %23751  ;;  %v4046_v51 = vsel %vm1350_vm6, %v23738_v34, %v23739_v18  ;;  %20828 = vmatmul.mubr.msk.f32.vlgmr.msra.gmra.mrb[0].mxu0 %vm1825_vm9, %v26885_v22  ;;  %v2878_v10 = vsel %vm990_vm3, %v23624_v8, %v23633_v54 }
 0x2e0   : > { %v26916_v61 = vpop.permute.xlu0 %23746  ;;  %v22061_v0 = vpack.c.bf16 %v4053_v62, %v4046_v51  ;;  %4145 = vmatprep.mubr.f32.mxu0 %v26473_v52  ;;  %v22015_v5 = vpack.c.bf16 %v2885_v50, %v2878_v10 }
 0x2e1   : > { %v23749_v26 = vunpack.i.h.bf16 %v26916_v61  ;;  %v23748_v32 = vunpack.i.l.bf16 %v26916_v61  ;;  %20798 = vmatmul.mubr.msk.f32.vlgmr.msra.gmra.mrb[0].mxu1 %vm1825_vm9, %v26899_v63 }
 0x2e2   : > { %22012 = vmatpush1.bf16.msra.mxu1 %v22011_v24  ;;  %22062 = vmatprep.subr.bf16.mxu0 %v22061_v0 }
 0x2e3   : > { %v4052_v9 = vsel %vm1350_vm6, %v23749_v26, %v23743_v47  ;;  %v4045_v42 = vsel %vm1350_vm6, %v23748_v32, %v23738_v34  ;;  %22014 = vmatprep.subr.bf16.mxu1 %v22013_v16  ;;  %v26939_v33 = vpop.permute.xlu1 %23761  ;;  %2978 = vmatprep.mubr.f32.mxu1 %v26473_v52  ;;  %v23649_v47 = vunpack.i.h.bf16 %v26748_v56  ;;  %v23663_v16 = vunpack.i.l.bf16 %v26755_v49 }
 0x2e4   : > { %v23764_v1 = vunpack.i.h.bf16 %v26939_v33  ;;  %v23763_v46 = vunpack.i.l.bf16 %v26939_v33  ;;  %v26946_v15 = vpop.permute.xlu0 %23756  ;;  %v22063_v55 = vpack.c.bf16 %v4052_v9, %v4045_v42  ;;  %20829 = vmatmul.mubr.msk.f32.gmra.mrb[2].mxu0 %vm1825_vm9, %v26927_v13  ;;  %v23659_v42 = vunpack.i.h.bf16 %v26759_v35 }
 0x2e5   : > { %v23759_v34 = vunpack.i.h.bf16 %v26946_v15  ;;  %v23758_v57 = vunpack.i.l.bf16 %v26946_v15  ;;  %20799 = vmatmul.mubr.msk.f32.gmra.mrb[2].mxu1 %vm1825_vm9, %v26933_v41  ;;  %4293 = vmatprep.mubr.f32.mxu0 %v26473_v52  ;;  %v3264_v54 = vsel %vm1110_vm4, %v23648_v43, %v23649_v47 }
 0x2e6   : > { %22064 = vmatpush1.bf16.msra.mxu0 %v22063_v55  ;;  %3049 = vmatprep.mubr.f32.mxu1 %v26473_v52  ;;  %v4438_v19 = vsel %vm1470_vm7, %v23763_v46, %v23764_v1 }
 0x2e7   : > { %v23772_v62 = vpop.permute.xlu1 %23771  ;;  %v4431_v53 = vsel %vm1470_vm7, %v23758_v57, %v23759_v34 }
 0x2e8   : > { %v23774_v23 = vunpack.i.h.bf16 %v23772_v62  ;;  %v23773_v51 = vunpack.i.l.bf16 %v23772_v62  ;;  %v23767_v61 = vpop.permute.xlu0 %23766  ;;  %v22069_v24 = vpack.c.bf16 %v4438_v19, %v4431_v53  ;;  %v23658_v62 = vunpack.i.l.bf16 %v26759_v35  ;;  %v27025_v53 = vld [vmem:[%s30553_s3 + $0x70] sm:$0xff] }
 0x2e9   : > { %v23769_v0 = vunpack.i.h.bf16 %v23767_v61  ;;  %v23768_v8 = vunpack.i.l.bf16 %v23767_v61  ;;  %20800 = vmatmul.mubr.msk.f32.vlgmr.msra.gmra.mrb[4].mxu1 %vm1825_vm9, %v26899_v63  ;;  %20832 = vmatmul.mubr.msk.f32.vlgmr.msra.gmra.mrb[4].mxu0 %vm1825_vm9, %v26885_v22 }
 0x2ea   : > { %v26983_v50 = vsel %vm1350_vm6, %v23714_v17, %v23773_v51  ;;  %v26988_v12 = vsel %vm1350_vm6, %v23719_v21, %v23774_v23  ;;  %22016 = vmatpush1.bf16.msra.mxu1 %v22015_v5  ;;  %22070 = vmatprep.subr.bf16.mxu0 %v22069_v24  ;;  %v26991_v9 = vsel %vm1350_vm6, %v23773_v51, %v23748_v32 }
 0x2eb   : > { %v4437_v27 = vsel %vm1470_vm7, %v23769_v0, %v23763_v46  ;;  %v4430_v55 = vsel %vm1470_vm7, %v23768_v8, %v23758_v57  ;;  %22018 = vmatprep.subr.bf16.mxu1 %v22017_v25  ;;  %v26996_v14 = vpop.permute.xlu1 %23781  ;;  %3055 = vmatprep.mubr.f32.mxu1 %v26473_v52  ;;  %v27000_v17 = vsel %vm1350_vm6, %v23774_v23, %v23749_v26  ;;  %v23664_v23 = vunpack.i.h.bf16 %v26755_v49 }
 0x2ec   : > { %v30617_v59 = vunpack.i.h.bf16 %v26996_v14  ;;  %v23783_v21 = vunpack.i.l.bf16 %v26996_v14  ;;  %v27004_v32 = vpop.permute.xlu0 %23776  ;;  %v22071_v10 = vpack.c.bf16 %v4437_v27, %v4430_v55  ;;  %4299 = vmatprep.mubr.f32.mxu0 %v26473_v52  ;;  %v27031_v51 = vsel %vm1110_vm4, %v23649_v47, %v23663_v16 }
 0x2ed   : > { %v23779_v57 = vunpack.i.h.bf16 %v27004_v32  ;;  %v23778_v19 = vunpack.i.l.bf16 %v27004_v32  ;;  %20801 = vmatmul.mubr.msk.f32.gmra.mrb[6].mxu1 %vm1825_vm9, %v26933_v41  ;;  %20833 = vmatmul.mubr.msk.f32.gmra.mrb[6].mxu0 %vm1825_vm9, %v26927_v13  ;;  %v22021_v24 = vpack.c.bf16 %v3271_v31, %v3264_v54  ;;  %v3270_v0 = vsel %vm1110_vm4, %v23659_v42, %v23653_v2  ;;  %v27052_v54 = vld [vmem:[%s30553_s3 + $0x78] sm:$0xff] }
 0x2ee   : > { %22072 = vmatpush1.bf16.msra.mxu0 %v22071_v10  ;;  %3126 = vmatprep.mubr.f32.mxu1 %v26473_v52  ;;  %v4442_v5 = vsel %vm1470_vm7, %v23783_v21, %v30617_v59  ;;  %v23669_v26 = vunpack.i.h.bf16 %v26772_v30  ;;  %v23668_v47 = vunpack.i.l.bf16 %v26772_v30  ;;  %v3263_v2 = vsel %vm1110_vm4, %v23658_v62, %v23648_v43 }
 0x2ef   : > { %v23792_v35 = vpop.permute.xlu1 %23791  ;;  %v4435_v61 = vsel %vm1470_vm7, %v23778_v19, %v23779_v57  ;;  %4528 = vmatprep.mubr.f32.mxu0 %v26473_v52  ;;  %v23674_v62 = vunpack.i.h.bf16 %v26768_v11  ;;  %v3266_v37 = vsel %vm1110_vm4, %v23663_v16, %v23664_v23  ;;  %v23694_v32 = vunpack.i.h.bf16 %v26800_v28 }
 0x2f0   : > { %v23794_v8 = vunpack.i.h.bf16 %v23792_v35  ;;  %v23793_v27 = vunpack.i.l.bf16 %v23792_v35  ;;  %v23787_v55 = vpop.permute.xlu0 %23786  ;;  %v22077_v10 = vpack.c.bf16 %v4442_v5, %v4435_v61  ;;  %v3273_v61 = vsel %vm1110_vm4, %v23668_v47, %v23669_v26 }
 0x2f1   : > { %v23789_v46 = vunpack.i.h.bf16 %v23787_v55  ;;  %v23788_v59 = vunpack.i.l.bf16 %v23787_v55  ;;  %20802 = vmatmul.mubr.msk.f32.vlgmr.msra.gmra.mrb[8].mxu1 %vm1825_vm9, %v26899_v63  ;;  %20838 = vmatmul.mubr.msk.f32.vlgmr.msra.gmra.mrb[0].mxu0 %vm1825_vm9, %v27025_v53  ;;  %v23688_v11 = vunpack.i.l.bf16 %v26802_v4 }
 0x2f2   : > { %22020 = vmatpush3.bf16.msra.mxu1 %v22017_v25  ;;  %22078 = vmatprep.subr.bf16.mxu0 %v22077_v10  ;;  %v4047_v31 = vsel %vm1350_vm6, %v23739_v18, %v23793_v27  ;;  %v4054_v42 = vsel %vm1350_vm6, %v23744_v48, %v23794_v8  ;;  %v23678_v8 = vunpack.i.l.bf16 %v26787_v20 }
 0x2f3   : > { %v4441_v5 = vsel %vm1470_vm7, %v23789_v46, %v23783_v21  ;;  %v4434_v56 = vsel %vm1470_vm7, %v23788_v59, %v23778_v19  ;;  %22022 = vmatprep.subr.bf16.mxu1 %v22021_v24  ;;  %v27062_v43 = vpop.permute.xlu1 %23801  ;;  %3132 = vmatprep.mubr.f32.mxu1 %v26473_v52  ;;  %v27065_v25 = vpack.c.bf16 %v4054_v42, %v4047_v31  ;;  %v23679_v24 = vunpack.i.h.bf16 %v26787_v20 }
 0x2f4   : > { %v23797_v18 = vpop.permute.xlu0 %23796  ;;  %v22079_v35 = vpack.c.bf16 %v4441_v5, %v4434_v56  ;;  %4534 = vmatprep.mubr.f32.mxu0 %v26473_v52  ;;  %v22023_v19 = vpack.c.bf16 %v3270_v0, %v3263_v2  ;;  %v23804_v27 = vunpack.i.h.bf16 %v27062_v43  ;;  %v23803_v16 = vunpack.i.l.bf16 %v27062_v43  ;;  %v27216_v43 = vld [vmem:[%s30553_s3 + $0x88] sm:$0xff] }
 0x2f5   : > { %v23799_v48 = vunpack.i.h.bf16 %v23797_v18  ;;  %v23798_v21 = vunpack.i.l.bf16 %v23797_v18  ;;  %20803 = vmatmul.mubr.msk.f32.gmra.mrb[10].mxu1 %vm1825_vm9, %v26933_v41  ;;  %20839 = vmatmul.mubr.msk.f32.gmra.mrb[2].mxu0 %vm1825_vm9, %v27052_v54 }
 0x2f6   : > { %22080 = vmatpush1.bf16.msra.mxu0 %v22079_v35  ;;  %21653 = vmatprep.mubr.msk.f32.mxu1 %vm1825_vm9, %v26899_v63  ;;  %v4820_v35 = vsel %vm1590_vm8, %v23803_v16, %v23804_v27 }
 0x2f7   : > { %v27091_v0 = vsel %vm1470_vm7, %v23764_v1, %v23799_v48  ;;  %v27096_v55 = vsel %vm1470_vm7, %v23759_v34, %v23798_v21  ;;  %v23812_v10 = vpop.permute.xlu1 %23811  ;;  %4682 = vmatprep.mubr.f32.mxu0 %v26473_v52  ;;  %v27100_v2 = vsel %vm1470_vm7, %v23798_v21, %v23788_v59  ;;  %v27103_v31 = vsel %vm1470_vm7, %v23799_v48, %v23789_v46 }
 0x2f8   : > { %v23814_v63 = vunpack.i.h.bf16 %v23812_v10  ;;  %v23813_v42 = vunpack.i.l.bf16 %v23812_v10  ;;  %v27105_v33 = vpop.permute.xlu0 %23806  ;;  %v22073_v1 = vpack.c.bf16 %v27103_v31, %v27100_v2  ;;  %v22075_v15 = vpack.c.bf16 %v27091_v0, %v27096_v55 }
 0x2f9   : > { %v3272_v34 = vsel %vm1110_vm4, %v23654_v39, %v23668_v47  ;;  %v23809_v59 = vunpack.i.h.bf16 %v27105_v33  ;;  %v23808_v5 = vunpack.i.l.bf16 %v27105_v33  ;;  %21654 = vmatmul.mubr.msk.f32.vlgmr.msra.gmra.mrb[12].mxu1 %vm1825_vm9, %v26933_v41  ;;  %v22025_v46 = vpack.c.bf16 %v3273_v61, %v3266_v37  ;;  %20842 = vmatmul.mubr.msk.f32.vlgmr.msra.gmra.mrb[4].mxu0 %vm1825_vm9, %v27025_v53 }
 0x2fa   : > { %v4819_v56 = vsel %vm1590_vm8, %v23813_v42, %v23803_v16  ;;  %22024 = vmatpush1.bf16.msra.mxu1 %v22023_v19  ;;  %3361 = vmatprep.mubr.f32.mxu1 %v26473_v52  ;;  %v3268_v41 = vsel %vm1110_vm4, %v23673_v45, %v23674_v62  ;;  %v3275_v39 = vsel %vm1110_vm4, %v23678_v8, %v23679_v24  ;;  %v23684_v48 = vunpack.i.h.bf16 %v26785_v44  ;;  %v27153_v16 = vld [vmem:[%s30553_s3 + $0x48] sm:$0xff] }
 0x2fb   : > { %v4826_v47 = vsel %vm1590_vm8, %v23814_v63, %v23808_v5  ;;  %22026 = vmatprep.subr.bf16.mxu1 %v22025_v46  ;;  %v27136_v18 = vpop.permute.xlu1 %23821  ;;  %v4827_v37 = vsel %vm1590_vm8, %v23808_v5, %v23809_v59  ;;  %4688 = vmatprep.mubr.f32.mxu0 %v26473_v52  ;;  %v22027_v19 = vpack.c.bf16 %v3272_v34, %v27031_v51  ;;  %v23683_v63 = vunpack.i.l.bf16 %v26785_v44  ;;  %v27162_v5 = vld [vmem:[%s30553_s3 + $0x80] sm:$0xff] }
 0x2fc   : > { %v23817_v21 = vpop.permute.xlu0 %23816  ;;  %v22085_v61 = vpack.c.bf16 %v4827_v37, %v4820_v35  ;;  %v22087_v10 = vpack.c.bf16 %v4826_v47, %v4819_v56  ;;  %v22029_v46 = vpack.c.bf16 %v3275_v39, %v3268_v41  ;;  %v3274_v44 = vsel %vm1110_vm4, %v23669_v26, %v23678_v8 }
 0x2fd   : > { %v23819_v42 = vunpack.i.h.bf16 %v23817_v21  ;;  %v23818_v33 = vunpack.i.l.bf16 %v23817_v21  ;;  %20808 = vmatmul.mubr.msk.f32.vlgmr.msra.gmra.mrb[0].mxu1 %vm1825_vm9, %v27125_v29  ;;  %20843 = vmatmul.mubr.msk.f32.gmra.mrb[6].mxu0 %vm1825_vm9, %v27052_v54  ;;  %v23823_v51 = vunpack.i.l.bf16 %v27136_v18  ;;  %v30723_v41 = vunpack.i.h.bf16 %v26996_v14 }
 0x2fe   : > { %22028 = vmatpush1.bf16.msra.mxu1 %v22027_v19  ;;  %22086 = vmatprep.subr.bf16.mxu0 %v22085_v61  ;;  %v3267_v26 = vsel %vm1110_vm4, %v23664_v23, %v23673_v45  ;;  %v3269_v49 = vsel %vm1110_vm4, %v23674_v62, %v23683_v63  ;;  %v23693_v23 = vunpack.i.l.bf16 %v26800_v28  ;;  %v23689_v37 = vunpack.i.h.bf16 %v26802_v4 }
 0x2ff   : > { %22030 = vmatprep.subr.bf16.mxu1 %v22029_v46  ;;  %22088 = vmatpush1.bf16.msra.mxu0 %v22087_v10  ;;  %v23832_v34 = vpop.permute.xlu1 %23831  ;;  %v4436_v56 = vsel %vm1470_vm7, %v23779_v57, %v23818_v33  ;;  %v4443_v30 = vsel %vm1470_vm7, %v30723_v41, %v23819_v42  ;;  %v3276_v57 = vsel %vm1110_vm4, %v23679_v24, %v23684_v48  ;;  %v27209_v24 = vld [vmem:[#allocation2 + $0x40] sm:$0xff]  ;;  %v23824_v48 = vunpack.i.h.bf16 %v27136_v18 }
 0x300   : > { %v27175_v8 = vpop.permute.xlu0 %23826  ;;  %3367 = vmatprep.mubr.f32.mxu1 %v26473_v52  ;;  %4917 = vmatprep.mubr.f32.mxu0 %v26473_v52  ;;  %v27179_v39 = vpack.c.bf16 %v4443_v30, %v4436_v56  ;;  %v23834_v45 = vunpack.i.h.bf16 %v23832_v34  ;;  %v23833_v47 = vunpack.i.l.bf16 %v23832_v34  ;;  %v22031_v35 = vpack.c.bf16 %v3274_v44, %v3267_v26 }
 0x301   : > { %v23828_v14 = vunpack.i.l.bf16 %v27175_v8  ;;  %20809 = vmatmul.mubr.msk.f32.gmra.mrb[2].mxu1 %vm1825_vm9, %v27153_v16  ;;  %v27202_v20 = vsel %vm1590_vm8, %v23804_v27, %v23823_v51  ;;  %v22033_v42 = vpack.c.bf16 %v3276_v57, %v3269_v49  ;;  %v3653_v57 = vsel %vm1230_vm5, %v23688_v11, %v23689_v37 }
 0x302   : > { %3438 = vmatprep.mubr.f32.mxu1 %v26473_v52  ;;  %20848 = vmatmul.mubr.msk.f32.vlgmr.msra.gmra.mrb[0].mxu0 %vm1825_vm9, %v27162_v5  ;;  %v4823_v33 = vsel %vm1590_vm8, %v23824_v48, %v23833_v47  ;;  %v4824_v46 = vsel %vm1590_vm8, %v23833_v47, %v23834_v45 }
 0x303   : > { %v27207_v62 = vsel %vm1590_vm8, %v23809_v59, %v23828_v14  ;;  %v23842_v52 = vpop.permute.xlu1 %23841  ;;  %4923 = vmatprep.mubr.f32.mxu0 %v27209_v24  ;;  %v23829_v59 = vunpack.i.h.bf16 %v27175_v8 }
 0x304   : > { %v23844_v21 = vunpack.i.h.bf16 %v23842_v52  ;;  %v23843_v19 = vunpack.i.l.bf16 %v23842_v52  ;;  %v23837_v61 = vpop.permute.xlu0 %23836  ;;  %v22091_v27 = vpack.c.bf16 %v27207_v62, %v27202_v20  ;;  %v23698_v52 = vunpack.i.l.bf16 %v26814_v60 }
 0x305   : > { %v23839_v10 = vunpack.i.h.bf16 %v23837_v61  ;;  %v23838_v63 = vunpack.i.l.bf16 %v23837_v61  ;;  %20810 = vmatmul.mubr.msk.f32.vlgmr.msra.gmra.mrb[4].mxu1 %vm1825_vm9, %v27125_v29  ;;  %v23704_v61 = vunpack.i.h.bf16 %v26811_v38 }
 0x306   : > { %22032 = vmatpush1.bf16.msra.mxu1 %v22031_v35  ;;  %3444 = vmatprep.mubr.f32.mxu1 %v27209_v24  ;;  %v4825_v44 = vsel %vm1590_vm8, %v23834_v45, %v23843_v19  ;;  %v3660_v45 = vsel %vm1230_vm5, %v23693_v23, %v23694_v32  ;;  %v23699_v35 = vunpack.i.h.bf16 %v26814_v60  ;;  %v23708_v19 = vunpack.i.l.bf16 %v26824_v36 }
 0x307   : > { %v4830_v34 = vsel %vm1590_vm8, %v23829_v59, %v23838_v63  ;;  %22034 = vmatprep.subr.bf16.mxu1 %v22033_v42  ;;  %v4831_v56 = vsel %vm1590_vm8, %v23838_v63, %v23839_v10  ;;  %20849 = vmatmul.mubr.msk.f32.gmra.mrb[2].mxu0 %vm1825_vm9, %v27216_v43  ;;  %v4832_v41 = vsel %vm1590_vm8, %v23839_v10, %v23844_v21  ;;  %v23709_v21 = vunpack.i.h.bf16 %v26824_v36 }
 0x308   : > { %v22093_v30 = vpack.c.bf16 %v4831_v56, %v4824_v46  ;;  %v22095_v26 = vpack.c.bf16 %v4830_v34, %v4823_v33  ;;  %5071 = vmatprep.mubr.f32.mxu0 %v27209_v24  ;;  %v27237_v49 = vpack.c.bf16 %v4832_v41, %v4825_v44  ;;  %v22037_v47 = vpack.c.bf16 %v3660_v45, %v3653_v57 }
 0x309   : > { %20811 = vmatmul.mubr.msk.f32.gmra.mrb[6].mxu1 %vm1825_vm9, %v27153_v16  ;;  %v23703_v10 = vunpack.i.l.bf16 %v26811_v38  ;;  %v3659_v60 = vsel %vm1230_vm5, %v23699_v35, %v23693_v23  ;;  %v3652_v36 = vsel %vm1230_vm5, %v23698_v52, %v23688_v11  ;;  %v3662_v63 = vsel %vm1230_vm5, %v23708_v19, %v23709_v21 }
 0x30a   : > { %22094 = vmatprep.subr.bf16.mxu0 %v22093_v30  ;;  %3515 = vmatprep.mubr.f32.mxu1 %v27209_v24  ;;  %v23733_v33 = vunpack.i.l.bf16 %v26851_v40  ;;  %v23729_v46 = vunpack.i.h.bf16 %v26860_v7  ;;  %v23728_v44 = vunpack.i.l.bf16 %v26860_v7  ;;  %v22039_v38 = vpack.c.bf16 %v3659_v60, %v3652_v36  ;;  %v20816_v7 = vld [vmem:[%s30553_s3 + $0x50] sm:$0xff]  ;;  %v20817_v30 = vld [vmem:[%s30553_s3 + $0x58] sm:$0xff] }
 0x30b   : > { %22096 = vmatpush1.bf16.msra.mxu0 %v22095_v26  ;;  %v3655_v23 = vsel %vm1230_vm5, %v23703_v10, %v23704_v61  ;;  %v3661_v11 = vsel %vm1230_vm5, %v23694_v32, %v23708_v19  ;;  %v3654_v28 = vsel %vm1230_vm5, %v23689_v37, %v23703_v10  ;;  %v23754_v56 = vunpack.i.h.bf16 %v26909_v6 }
 0x30c   : > { %v22043_v32 = vpack.c.bf16 %v3661_v11, %v3654_v28  ;;  %v23753_v41 = vunpack.i.l.bf16 %v26909_v6  ;;  %v3663_v4 = vsel %vm1230_vm5, %v23709_v21, %v23733_v33  ;;  %v3656_v37 = vsel %vm1230_vm5, %v23704_v61, %v23728_v44  ;;  %v5255_v28 = vld [vmem:[%s30554_s4 + $0x8] sm:$0x3] }
 0x30d   : > { %20812 = vmatmul.mubr.msk.f32.vlgmr.msra.gmra.mrb[8].mxu1 %vm1825_vm9, %v27125_v29  ;;  %v22047_v57 = vpack.c.bf16 %v3663_v4, %v3656_v37  ;;  %v30725_v35 = vpack.c.bf16 %v26988_v12, %v26983_v50  ;;  %v4829_v50 = vsel %vm1590_vm8, %v23828_v14, %v23829_v59 }
 0x30e   : > { %22036 = vmatpush3.bf16.msra.mxu1 %v22033_v42  ;;  %3521 = vmatprep.mubr.f32.mxu1 %v27209_v24  ;;  %v23734_v42 = vunpack.i.h.bf16 %v26851_v40  ;;  %v22041_v40 = vpack.c.bf16 %v3662_v63, %v3655_v23  ;;  %v3658_v26 = vsel %vm1230_vm5, %v23729_v46, %v23753_v41 }
 0x30f   : > { %22038 = vmatprep.subr.bf16.mxu1 %v22037_v47  ;;  %20852 = vmatmul.mubr.msk.f32.vlgmr.msra.gmra.mrb[4].mxu0 %vm1825_vm9, %v27162_v5  ;;  %v30724_v47 = vpack.c.bf16 %v27000_v17, %v26991_v9 }
 0x310   : > { %5077 = vmatprep.mubr.f32.mxu0 %v27209_v24  ;;  %v3664_v34 = vsel %vm1230_vm5, %v23733_v33, %v23734_v42  ;;  %v3665_v6 = vsel %vm1230_vm5, %v23734_v42, %v23754_v56 }
 0x311   : > { %20813 = vmatmul.mubr.msk.f32.gmra.mrb[10].mxu1 %vm1825_vm9, %v27153_v16  ;;  %v22049_v45 = vpack.c.bf16 %v3665_v6, %v3658_v26 }
 0x312   : > { %21660 = vmatprep.mubr.msk.f32.mxu1 %vm1825_vm9, %v27125_v29  ;;  %v3657_v29 = vsel %vm1230_vm5, %v23728_v44, %v23729_v46 }
 0x313   : > { %20853 = vmatmul.mubr.msk.f32.gmra.mrb[6].mxu0 %vm1825_vm9, %v27216_v43 }
 0x314   : > { %6105 = vmatprep.mubr.f32.mxu0 %v27209_v24  ;;  %v27373_v18 = vpop.permute.xlu1 %5196 }
 0x315   : > { %21661 = vmatmul.mubr.msk.f32.vlgmr.msra.gmra.mrb[12].mxu1 %vm1825_vm9, %v27153_v16  ;;  %v22045_v16 = vpack.c.bf16 %v3664_v34, %v3657_v29 }
 0x316   : > { %22040 = vmatpush1.bf16.msra.mxu1 %v22039_v38  ;;  %3750 = vmatprep.mubr.f32.mxu1 %v27209_v24  ;;  %v27392_v38 = vld [vmem:[%s30554_s4] sm:$0xff] }
 0x317   : > { %22042 = vmatprep.subr.bf16.mxu1 %v22041_v40 }
 0x318   : > { %v27380_v52 = vpop.permute.xlu1 %5223 }
 0x319   : > { %20818 = vmatmul.mubr.msk.f32.vlgmr.msra.gmra.mrb[0].mxu1 %vm1825_vm9, %v20816_v7 }
 0x31a   : > { %22044 = vmatpush1.bf16.msra.mxu1 %v22043_v32  ;;  %3756 = vmatprep.mubr.f32.mxu1 %v27209_v24 }
 0x31b   : > { %22046 = vmatprep.subr.bf16.mxu1 %v22045_v16 }
 0x31d   : > { %20819 = vmatmul.mubr.msk.f32.gmra.mrb[2].mxu1 %vm1825_vm9, %v20817_v30 }
 0x31e   : > { %3827 = vmatprep.mubr.f32.mxu1 %v27209_v24 }
 0x321   : > { %20820 = vmatmul.mubr.msk.f32.vlgmr.msra.gmra.mrb[4].mxu1 %vm1825_vm9, %v20816_v7 }
 0x322   : > { %22048 = vmatpush1.bf16.msra.mxu1 %v22047_v57  ;;  %3833 = vmatprep.mubr.f32.mxu1 %v27209_v24 }
 0x323   : > { %22050 = vmatprep.subr.bf16.mxu1 %v22049_v45 }
 0x325   : > { %20821 = vmatmul.mubr.msk.f32.gmra.mrb[6].mxu1 %vm1825_vm9, %v20817_v30 }
 0x326   : > { %3904 = vmatprep.mubr.f32.mxu1 %v27209_v24 }
 0x329   : > { %20822 = vmatmul.mubr.msk.f32.vlgmr.msra.gmra.mrb[8].mxu1 %vm1825_vm9, %v20816_v7 }
 0x32a   : > { %22052 = vmatpush3.bf16.msra.mxu1 %v22049_v45  ;;  %3910 = vmatprep.mubr.f32.mxu1 %v27209_v24 }
 0x32b   : > { %22058 = vmatprep.subr.bf16.mxu1 %v30724_v47 }
 0x32d   : > { %20823 = vmatmul.mubr.msk.f32.gmra.mrb[10].mxu1 %vm1825_vm9, %v20817_v30 }
 0x32e   : > { %21667 = vmatprep.mubr.msk.f32.mxu1 %vm1825_vm9, %v20816_v7 }
 0x331   : > { %21668 = vmatmul.mubr.msk.f32.vlgmr.msra.gmra.mrb[12].mxu1 %vm1825_vm9, %v20817_v30 }
 0x332   : > { %22060 = vmatpush1.bf16.msra.mxu1 %v30725_v35  ;;  %4216 = vmatprep.mubr.f32.mxu1 %v27209_v24 }
 0x333   : > { %22066 = vmatprep.subr.bf16.mxu1 %v27065_v25 }
 0x335   : > { %20830 = vmatmul.mubr.msk.f32.vlgmr.msra.gmra.mrb[4].mxu1 %vm1825_vm9, %v26885_v22 }
 0x336   : > { %22068 = vmatpush3.bf16.msra.mxu1 %v27065_v25  ;;  %4222 = vmatprep.mubr.f32.mxu1 %v27209_v24 }
 0x337   : > { %22074 = vmatprep.subr.bf16.mxu1 %v22073_v1 }
 0x339   : > { %20831 = vmatmul.mubr.msk.f32.gmra.mrb[6].mxu1 %vm1825_vm9, %v26927_v13 }
 0x33a   : > { %21674 = vmatprep.mubr.msk.f32.mxu1 %vm1825_vm9, %v26885_v22  ;;  %v4822_v22 = vsel %vm1590_vm8, %v23823_v51, %v23824_v48 }
 0x33d   : > { %21675 = vmatmul.mubr.msk.f32.vlgmr.msra.gmra.mrb[12].mxu1 %vm1825_vm9, %v26927_v13  ;;  %v22089_v13 = vpack.c.bf16 %v4829_v50, %v4822_v22 }
 0x33e   : > { %22076 = vmatpush1.bf16.msra.mxu1 %v22075_v15  ;;  %4605 = vmatprep.mubr.f32.mxu1 %v27209_v24 }
 0x33f   : > { %22082 = vmatprep.subr.bf16.mxu1 %v27179_v39 }
 0x341   : > { %20840 = vmatmul.mubr.msk.f32.vlgmr.msra.gmra.mrb[4].mxu1 %vm1825_vm9, %v27025_v53 }
 0x342   : > { %22084 = vmatpush3.bf16.msra.mxu1 %v27179_v39  ;;  %4611 = vmatprep.mubr.f32.mxu1 %v27209_v24 }
 0x343   : > { %22090 = vmatprep.subr.bf16.mxu1 %v22089_v13 }
 0x345   : > { %20841 = vmatmul.mubr.msk.f32.gmra.mrb[6].mxu1 %vm1825_vm9, %v27052_v54 }
 0x346   : > { %21681 = vmatprep.mubr.msk.f32.mxu1 %vm1825_vm9, %v27025_v53 }
 0x349   : > { %21682 = vmatmul.mubr.msk.f32.vlgmr.msra.gmra.mrb[12].mxu1 %vm1825_vm9, %v27052_v54 }
 0x34a   : > { %22092 = vmatpush1.bf16.msra.mxu1 %v22091_v27  ;;  %4994 = vmatprep.mubr.f32.mxu1 %v27209_v24 }
 0x34b   : > { %22098 = vmatprep.subr.bf16.mxu1 %v27237_v49 }
 0x34d   : > { %20850 = vmatmul.mubr.msk.f32.vlgmr.msra.gmra.mrb[4].mxu1 %vm1825_vm9, %v27162_v5 }
 0x34e   : > { %22100 = vmatpush3.bf16.msra.mxu1 %v27237_v49  ;;  %5000 = vmatprep.mubr.f32.mxu1 %v27209_v24 }
 0x351   : > { %20851 = vmatmul.mubr.msk.f32.gmra.mrb[6].mxu1 %vm1825_vm9, %v27216_v43 }
 0x352   : > { %21688 = vmatprep.mubr.msk.f32.mxu1 %vm1825_vm9, %v27162_v5  ;;  %v27375_v5 = vpop.permute.xlu0 %5191 }
 0x355   : > { %21689 = vmatmul.mubr.msk.f32.vlgmr.msra.gmra.mrb[12].mxu1 %vm1825_vm9, %v27216_v43 }
 0x356   : > { %5340 = vmatprep.mubr.f32.mxu1 %v27209_v24  ;;  %v27382_v21 = vpop.permute.xlu0 %5218 }
 0x3d5   : > { %v4919_v12 = vpop.f32.mrb[0].mxu0 }
 0x3d6   : > { %v4921_v9 = vpop.f32.mrb[1].mxu0 }
 0x3da   : > { %v4925_v17 = vpop.f32.mrb[2].mxu0 }
 0x3db   : > { %v4927_v53 = vpop.f32.mrb[3].mxu0 }
 0x3e2   : > { %v5073_v54 = vpop.f32.mrb[4].mxu0 }
 0x3e3   : > { %v5075_v25 = vpop.f32.mrb[5].mxu0 }
 0x3e6   : > { %v5079_v0 = vpop.f32.mrb[6].mxu0 }
 0x3e7   : > { %v5081_v55 = vpop.f32.mrb[7].mxu0 }
 0x3ec   : > { %v3752_v2 = vpop.f32.mrb[0].mxu1 }
 0x3ed   : > { %v22933_v31 = vadd.f32 %v4919_v12, %v3752_v2  ;;  %v3754_v1 = vpop.f32.mrb[1].mxu1 }
 0x3ee   : > { %v22934_v15 = vadd.f32 %v4921_v9, %v3754_v1 }
 0x3ef   : > { %v5173_v51 = vmax.f32 %v22933_v31, 0.0 }
 0x3f0   : > { %v5174_v8 = vmax.f32 %v22934_v15, 0.0  ;;  %v3758_v39 = vpop.f32.mrb[2].mxu1 }
 0x3f1   : > { %v22935_v14 = vadd.f32 %v4925_v17, %v3758_v39  ;;  %v3760_v20 = vpop.f32.mrb[3].mxu1  ;;  %v5199_v48 = vmul.f32 %v27375_v5, %v5173_v51 }
 0x3f2   : > { %v22936_v62 = vadd.f32 %v4927_v53, %v3760_v20  ;;  %v5200_v27 = vmul.f32 %v27375_v5, %v5174_v8 }
 0x3f3   : > { %v5180_v43 = vmax.f32 %v22935_v14, 0.0  ;;  %v5226_v61 = vadd.f32 %v27382_v21, %v5199_v48 }
 0x3f4   : > { %v5181_v59 = vmax.f32 %v22936_v62, 0.0  ;;  %v5227_v60 = vadd.f32 %v27382_v21, %v5200_v27 }
 0x3f5   : > { %v5206_v49 = vmul.f32 %v27373_v18, %v5180_v43 }
 0x3f6   : > { %v5207_v19 = vmul.f32 %v27373_v18, %v5181_v59 }
 0x3f7   : > { %v5233_v10 = vadd.f32 %v27380_v52, %v5206_v49 }
 0x3f8   : > { %v5234_v36 = vadd.f32 %v27380_v52, %v5207_v19 }
 0x3f9   : > { %5247 = vst [vmem:[#allocation2 + $0x50] sm:$0xff] %v5233_v10  ;;  %v22103_v63 = vpack.c.bf16 %v5233_v10, %v5226_v61 }
 0x3fa   : > { %5248 = vst [vmem:[#allocation2 + $0x58] sm:$0xff] %v5234_v36  ;;  %v22101_v42 = vpack.c.bf16 %v5234_v36, %v5227_v60 }
 0x3fc   : > { %v3906_v33 = vpop.f32.mrb[8].mxu1  ;;  %22102 = vmatprep.subr.bf16.mxu1 %v22101_v42 }
 0x3fd   : > { %v22937_v46 = vadd.f32 %v5073_v54, %v3906_v33  ;;  %v3908_v44 = vpop.f32.mrb[9].mxu1  ;;  %22104 = vmatpush1.bf16.msra.mxu1 %v22103_v63 }
 0x3fe   : > { %v22938_v23 = vadd.f32 %v5075_v25, %v3908_v44 }
 0x3ff   : > { %v5177_v11 = vmax.f32 %v22937_v46, 0.0 }
 0x400   : > { %v5178_v40 = vmax.f32 %v22938_v23, 0.0  ;;  %v3912_v7 = vpop.f32.mrb[10].mxu1  ;;  %20858 = vmatmul.mubr.msk.f32.vlgmr.msra.gmra.mrb[14].mxu1 %vm1825_vm9, %v27392_v38 }
 0x401   : > { %v22939_v29 = vadd.f32 %v5079_v0, %v3912_v7  ;;  %v3914_v34 = vpop.f32.mrb[11].mxu1  ;;  %5346 = vmatprep.mubr.f32.mxu1 %v27209_v24  ;;  %v5203_v16 = vmul.f32 %v27375_v5, %v5177_v11 }
 0x402   : > { %v22940_v32 = vadd.f32 %v5081_v55, %v3914_v34  ;;  %v5204_v41 = vmul.f32 %v27375_v5, %v5178_v40 }
 0x403   : > { %v5184_v56 = vmax.f32 %v22939_v29, 0.0  ;;  %v5230_v26 = vadd.f32 %v27382_v21, %v5203_v16 }
 0x404   : > { %v5185_v30 = vmax.f32 %v22940_v32, 0.0  ;;  %20859 = vmatmul.mubr.msk.f32.gmra.mrb[16].mxu1 %vm1825_vm9, %v5255_v28  ;;  %v5231_v57 = vadd.f32 %v27382_v21, %v5204_v41 }
 0x405   : > { %v5210_v4 = vmul.f32 %v27373_v18, %v5184_v56  ;;  %5417 = vmatprep.mubr.f32.mxu1 %v27209_v24 }
 0x406   : > { %v5211_v37 = vmul.f32 %v27373_v18, %v5185_v30 }
 0x407   : > { %v5237_v6 = vadd.f32 %v27380_v52, %v5210_v4 }
 0x408   : > { %v5238_v45 = vadd.f32 %v27380_v52, %v5211_v37 }
 0x409   : > { %5251 = vst [vmem:[#allocation2 + $0x70] sm:$0xff] %v5237_v6  ;;  %v22111_v47 = vpack.c.bf16 %v5237_v6, %v5230_v26 }
 0x40a   : > { %5252 = vst [vmem:[#allocation2 + $0x78] sm:$0xff] %v5238_v45  ;;  %v22109_v35 = vpack.c.bf16 %v5238_v45, %v5231_v57 }
 0x420   : > { %v4996_v50 = vpop.f32.mrb[4].mxu1 }
 0x421   : > { %v5175_v22 = vmax.f32 %v4996_v50, 0.0  ;;  %v4998_v13 = vpop.f32.mrb[5].mxu1 }
 0x422   : > { %v5176_v12 = vmax.f32 %v4998_v13, 0.0 }
 0x423   : > { %v5201_v17 = vmul.f32 %v27375_v5, %v5175_v22 }
 0x424   : > { %v5002_v9 = vpop.f32.mrb[6].mxu1  ;;  %v5202_v25 = vmul.f32 %v27375_v5, %v5176_v12 }
 0x425   : > { %v5182_v53 = vmax.f32 %v5002_v9, 0.0  ;;  %v5004_v54 = vpop.f32.mrb[7].mxu1  ;;  %v5228_v1 = vadd.f32 %v27382_v21, %v5201_v17 }
 0x426   : > { %v5183_v0 = vmax.f32 %v5004_v54, 0.0  ;;  %v5229_v39 = vadd.f32 %v27382_v21, %v5202_v25 }
 0x427   : > { %v5208_v55 = vmul.f32 %v27373_v18, %v5182_v53 }
 0x428   : > { %v5209_v2 = vmul.f32 %v27373_v18, %v5183_v0  ;;  %v21690_v31 = vpop.f32.mrb[12].mxu1 }
 0x429   : > { %v5235_v15 = vadd.f32 %v27380_v52, %v5208_v55  ;;  %v5186_v51 = vmax.f32 %v21690_v31, 0.0  ;;  %v5150_v8 = vpop.f32.mrb[13].mxu1 }
 0x42a   : > { %v5236_v14 = vadd.f32 %v27380_v52, %v5209_v2  ;;  %v5179_v20 = vmax.f32 %v5150_v8, 0.0 }
 0x42b   : > { %5249 = vst [vmem:[#allocation2 + $0x60] sm:$0xff] %v5235_v15  ;;  %v5212_v62 = vmul.f32 %v27373_v18, %v5186_v51  ;;  %v22107_v48 = vpack.c.bf16 %v5235_v15, %v5228_v1  ;;  %v5625_v18 = vld [vmem:[#allocation3 + $0x88] sm:$0x3] }
 0x42c   : > { %5250 = vst [vmem:[#allocation2 + $0x68] sm:$0xff] %v5236_v14  ;;  %v5205_v43 = vmul.f32 %v27375_v5, %v5179_v20  ;;  %v22105_v27 = vpack.c.bf16 %v5236_v14, %v5229_v39  ;;  %v23845_v5 = vpack.i.bf16 %v5625_v18, %v27209_v24 }
 0x42d   : > { %v5239_v59 = vadd.f32 %v27380_v52, %v5212_v62 }
 0x42e   : > { %v5232_v49 = vadd.f32 %v27382_v21, %v5205_v43  ;;  %22106 = vmatprep.subr.bf16.mxu1 %v22105_v27  ;;  %23846 = vrot.lane.b32.xlu0 %v23845_v5, %s25159_s26 }
 0x42f   : > { %5253 = vst [vmem:[#allocation2 + $0x80] sm:$0xff] %v5239_v59  ;;  %22108 = vmatpush1.bf16.msra.mxu1 %v22107_v48 }
 0x430   : > { %22110 = vmatprep.subr.bf16.mxu1 %v22109_v35  ;;  %v22113_v19 = vpack.c.bf16 %v5239_v59, %v5232_v49 }
 0x432   : > { %20860 = vmatmul.mubr.msk.f32.vlgmr.msra.gmra.mrb[18].mxu1 %vm1825_vm9, %v27392_v38 }
 0x433   : > { %22112 = vmatpush1.bf16.msra.mxu1 %v22111_v47  ;;  %5423 = vmatprep.mubr.f32.mxu1 %v27209_v24 }
 0x434   : > { %22114 = vmatprep.subr.bf16.mxu1 %v22113_v19 }
 0x436   : > { %20861 = vmatmul.mubr.msk.f32.gmra.mrb[20].mxu1 %vm1825_vm9, %v5255_v28 }
 0x437   : > { %5494 = vmatprep.mubr.f32.mxu1 %v27209_v24 }
 0x43a   : > { %20862 = vmatmul.mubr.msk.f32.vlgmr.msra.gmra.mrb[22].mxu1 %vm1825_vm9, %v27392_v38 }
 0x43b   : > { %22116 = vmatpush3.bf16.msra.mxu1 %v22113_v19  ;;  %5500 = vmatprep.mubr.f32.mxu1 %v27209_v24 }
 0x43e   : > { %20863 = vmatmul.mubr.msk.f32.gmra.mrb[24].mxu1 %vm1825_vm9, %v5255_v28 }
 0x43f   : > { %21695 = vmatprep.mubr.msk.f32.mxu1 %vm1825_vm9, %v27392_v38 }
 0x442   : > { %21696 = vmatmul.mubr.msk.f32.vlgmr.msra.gmra.mrb[26].mxu1 %vm1825_vm9, %v5255_v28 }
 0x443   : > { %6028 = vmatprep.mubr.f32.mxu1 %v27209_v24 }
 0x4a0   : > { %v23847_v28 = vpop.permute.xlu0 %23846 }
 0x4a1   : > { %v23849_v16 = vunpack.i.h.bf16 %v23847_v28  ;;  %v23848_v56 = vunpack.i.l.bf16 %v23847_v28 }
 0x4a3   : > { %v5733_v30 = vmax.f32 %v5625_v18, %v23849_v16  ;;  %v5725_v4 = vmax.f32 %v27209_v24, %v23848_v56 }
 0x4a5   : > { %v23850_v26 = vpack.i.bf16 %v5733_v30, %v5725_v4 }
 0x4d3   : > { %v5342_v52 = vpop.f32.mrb[14].mxu1 }
 0x4d4   : > { %v5344_v21 = vpop.f32.mrb[15].mxu1  ;;  %5642 = vrot.lane.b32.xlu0 %v5342_v52, %s25159_s26 }
 0x4d7   : > { %v5348_v61 = vpop.f32.mrb[16].mxu1 }
 0x4d8   : > { %5589 = vst [vmem:[#allocation3 + $0x50] sm:$0x3] %v5348_v61  ;;  %v5350_v10 = vpop.f32.mrb[17].mxu1  ;;  %5644 = vrot.lane.b32.xlu0 %v5344_v21, %s25159_s26 }
 0x4d9   : > { %5590 = vst [vmem:[#allocation3 + $0x58] sm:$0x3] %v5350_v10 }
 0x4df   : > { %v5618_v60 = vld [vmem:[#allocation3 + $0x50] sm:$0x3] }
 0x4e0   : > { %5658 = vrot.lane.b32.xlu1 %v5618_v60, %s25159_s26  ;;  %v27440_v36 = vld [vmem:[#allocation3 + $0x58] sm:$0x3] }
 0x4e1   : > { %5660 = vrot.lane.b32.xlu0 %v27440_v36, %s25159_s26 }
 0x505   : > { %v5419_v63 = vpop.f32.mrb[18].mxu1 }
 0x506   : > { %v27444_v42 = vpop.f32.mrb[19].mxu1  ;;  %5646 = vrot.lane.b32.xlu1 %v5419_v63, %s25159_s26 }
 0x507   : > { %5648 = vrot.lane.b32.xlu0 %v27444_v42, %s25159_s26 }
 0x509   : > { %v5425_v33 = vpop.f32.mrb[20].mxu1 }
 0x50a   : > { %5591 = vst [vmem:[#allocation3 + $0x60] sm:$0x3] %v5425_v33  ;;  %v5427_v46 = vpop.f32.mrb[21].mxu1 }
 0x50b   : > { %5592 = vst [vmem:[#allocation3 + $0x68] sm:$0x3] %v5427_v46 }
 0x50d   : > { %v27449_v44 = vpop.f32.mrb[22].mxu1 }
 0x50e   : > { %v27451_v38 = vpop.f32.mrb[23].mxu1 }
 0x511   : > { %v5502_v23 = vpop.f32.mrb[24].mxu1  ;;  %v5620_v11 = vld [vmem:[#allocation3 + $0x60] sm:$0x3] }
 0x512   : > { %5593 = vst [vmem:[#allocation3 + $0x70] sm:$0x3] %v5502_v23  ;;  %5662 = vrot.lane.b32.xlu1 %v5620_v11, %s25159_s26  ;;  %v5504_v40 = vpop.f32.mrb[25].mxu1  ;;  %v5621_v7 = vld [vmem:[#allocation3 + $0x68] sm:$0x3] }
 0x513   : > { %5594 = vst [vmem:[#allocation3 + $0x78] sm:$0x3] %v5504_v40  ;;  %5664 = vrot.lane.b32.xlu0 %v5621_v7, %s25159_s26  ;;  %v5603_v40 = vld [vmem:[#allocation3 + $0x50] sm:$0x3] }
 0x515   : > { %v21697_v29 = vpop.f32.mrb[26].mxu1 }
 0x516   : > { %5595 = vst [vmem:[#allocation3 + $0x80] sm:$0x3] %v21697_v29  ;;  %5650 = vrot.lane.b32.xlu1 %v27449_v44, %s25159_s26  ;;  %v27457_v34 = vpop.f32.mrb[27].mxu1  ;;  %v5604_v29 = vld [vmem:[#allocation3 + $0x58] sm:$0x3] }
 0x517   : > { %5652 = vrot.lane.b32.xlu0 %v27451_v38, %s25159_s26 }
 0x519   : > { %v27461_v32 = vld [vmem:[#allocation3 + $0x70] sm:$0x3] }
 0x51a   : > { %5666 = vrot.lane.b32.xlu1 %v27461_v32, %s25159_s26  ;;  %v5623_v37 = vld [vmem:[#allocation3 + $0x78] sm:$0x3] }
 0x51d   : > { %v5624_v41 = vld [vmem:[#allocation3 + $0x80] sm:$0x3] }
 0x51e   : > { %5670 = vrot.lane.b32.xlu0 %v5624_v41, %s25159_s26  ;;  %5654 = vrot.lane.b32.xlu1 %v27457_v34, %s25159_s26 }
 0x522   : > { %5668 = vrot.lane.b32.xlu1 %v5623_v37, %s25159_s26  ;;  %s25167_s26 = smov 124  }
 0x526   : > { %23851 = vrot.lane.b32.xlu1 %v23850_v26, %s25161_s28  ;;  %v5605_v26 = vld [vmem:[#allocation3 + $0x60] sm:$0x3] }
 0x546   : > { %v5643_v6 = vpop.permute.xlu0 %5642 }
 0x54a   : > { %v5645_v57 = vpop.permute.xlu0 %5644 }
 0x54b   : > { %v5674_v45 = vsel %vm750_vm1, %v5643_v6, %v5645_v57 }
 0x54c   : > { %v27472_v47 = vmax.f32 %v5342_v52, %v5674_v45 }
 0x54e   : > { %5750 = vrot.lane.b32.xlu1 %v27472_v47, %s25161_s28 }
 0x552   : > { %v5659_v35 = vpop.permute.xlu1 %5658 }
 0x553   : > { %v5661_v50 = vpop.permute.xlu0 %5660 }
 0x554   : > { %v5681_v22 = vsel %vm750_vm1, %v5659_v35, %v5661_v50 }
 0x555   : > { %v5726_v13 = vmax.f32 %v5618_v60, %v5681_v22 }
 0x557   : > { %5766 = vrot.lane.b32.xlu0 %v5726_v13, %s25161_s28 }
 0x578   : > { %v5647_v12 = vpop.permute.xlu1 %5646 }
 0x579   : > { %v5675_v9 = vsel %vm750_vm1, %v5645_v57, %v5647_v12  ;;  %v5649_v17 = vpop.permute.xlu0 %5648 }
 0x57a   : > { %v27479_v53 = vmax.f32 %v5344_v21, %v5675_v9  ;;  %v5676_v54 = vsel %vm750_vm1, %v5647_v12, %v5649_v17 }
 0x57b   : > { %v27482_v25 = vmax.f32 %v5419_v63, %v5676_v54 }
 0x57c   : > { %5752 = vrot.lane.b32.xlu1 %v27479_v53, %s25161_s28 }
 0x57d   : > { %5754 = vrot.lane.b32.xlu0 %v27482_v25, %s25161_s28 }
 0x584   : > { %v5663_v0 = vpop.permute.xlu1 %5662 }
 0x585   : > { %v5682_v55 = vsel %vm750_vm1, %v5661_v50, %v5663_v0  ;;  %v5665_v2 = vpop.permute.xlu0 %5664 }
 0x586   : > { %v5727_v31 = vmax.f32 %v27440_v36, %v5682_v55  ;;  %v27491_v1 = vsel %vm750_vm1, %v5663_v0, %v5665_v2  ;;  %v5710_v28 = vmax.f32 %v5604_v29, %v5682_v55 }
 0x587   : > { %v5728_v15 = vmax.f32 %v5620_v11, %v27491_v1  ;;  %v5711_v35 = vmax.f32 %v5605_v26, %v27491_v1 }
 0x588   : > { %v5651_v51 = vpop.permute.xlu1 %5650  ;;  %5768 = vrot.lane.b32.xlu0 %v5727_v31, %s25161_s28  ;;  %v5608_v31 = vld [vmem:[#allocation3 + $0x78] sm:$0x3] }
 0x589   : > { %v5677_v8 = vsel %vm750_vm1, %v5649_v17, %v5651_v51  ;;  %5770 = vrot.lane.b32.xlu1 %v5728_v15, %s25161_s28  ;;  %v5653_v14 = vpop.permute.xlu0 %5652  ;;  %v5609_v17 = vld [vmem:[#allocation3 + $0x80] sm:$0x3] }
 0x58a   : > { %v27498_v39 = vmax.f32 %v27444_v42, %v5677_v8  ;;  %v5678_v63 = vsel %vm750_vm1, %v5651_v51, %v5653_v14 }
 0x58b   : > { %v27534_v42 = vmax.f32 %v27449_v44, %v5678_v63 }
 0x58c   : > { %v5667_v20 = vpop.permute.xlu1 %5666 }
 0x58d   : > { %v27501_v62 = vsel %vm750_vm1, %v5665_v2, %v5667_v20  ;;  %5756 = vrot.lane.b32.xlu1 %v27498_v39, %s25161_s28 }
 0x58e   : > { %v5729_v48 = vmax.f32 %v5621_v7, %v27501_v62  ;;  %v5709_v7 = vmax.f32 %v5603_v40, %v5681_v22 }
 0x590   : > { %5772 = vrot.lane.b32.xlu0 %v5729_v48, %s25161_s28  ;;  %v5671_v43 = vpop.permute.xlu0 %5670  ;;  %v5655_v27 = vpop.permute.xlu1 %5654  ;;  %v5607_v48 = vld [vmem:[#allocation3 + $0x70] sm:$0x3] }
 0x591   : > { %v5687_v59 = vsel %vm750_vm1, %v5671_v43, %v23849_v16  ;;  %v5679_v19 = vsel %vm750_vm1, %v5653_v14, %v5655_v27  ;;  %v5680_v61 = vsel %vm750_vm1, %v5655_v27, %v23848_v56  ;;  %v5606_v14 = vld [vmem:[#allocation3 + $0x68] sm:$0x3] }
 0x592   : > { %v5732_v49 = vmax.f32 %v5624_v41, %v5687_v59  ;;  %v27514_v52 = vmax.f32 %v27451_v38, %v5679_v19  ;;  %v27525_v60 = vmax.f32 %v27457_v34, %v5680_v61 }
 0x594   : > { %5778 = vrot.lane.b32.xlu1 %v5732_v49, %s25161_s28  ;;  %v5669_v18 = vpop.permute.xlu1 %5668  ;;  %v5712_v49 = vmax.f32 %v5606_v14, %v27501_v62 }
 0x595   : > { %v27511_v5 = vsel %vm750_vm1, %v5669_v18, %v5671_v43  ;;  %v27519_v10 = vsel %vm750_vm1, %v5667_v20, %v5669_v18  ;;  %vm9017_vm1 = vcmask 97280  }
 0x596   : > { %v5731_v21 = vmax.f32 %v5623_v37, %v27511_v5  ;;  %v5730_v36 = vmax.f32 %v27461_v32, %v27519_v10  ;;  %v5714_v1 = vmax.f32 %v5608_v31, %v27511_v5  ;;  %v5713_v19 = vmax.f32 %v5607_v48, %v27519_v10 }
 0x598   : > { %5760 = vrot.lane.b32.xlu1 %v27514_v52, %s25161_s28  ;;  %5776 = vrot.lane.b32.xlu0 %v5731_v21, %s25161_s28  ;;  %v27538_v33 = vpop.permute.xlu1 %23851 }
 0x599   : > { %v23853_v43 = vunpack.i.l.bf16 %v27538_v33 }
 0x59c   : > { %5774 = vrot.lane.b32.xlu1 %v5730_v36, %s25161_s28  ;;  %5762 = vrot.lane.b32.xlu0 %v27525_v60, %s25161_s28 }
 0x5a0   : > { %5758 = vrot.lane.b32.xlu0 %v27534_v42, %s25161_s28  ;;  %s25168_s28 = smov 68  }
 0x5c0   : > { %v5751_v38 = vpop.permute.xlu1 %5750 }
 0x5c9   : > { %v5767_v46 = vpop.permute.xlu0 %5766 }
 0x5ee   : > { %v5753_v11 = vpop.permute.xlu1 %5752 }
 0x5ef   : > { %v5755_v23 = vpop.permute.xlu0 %5754  ;;  %v5782_v6 = vsel %vm990_vm3, %v5751_v38, %v5753_v11 }
 0x5f0   : > { %v5783_v30 = vsel %vm990_vm3, %v5753_v11, %v5755_v23  ;;  %v27558_v12 = vmax.f32 %v27472_v47, %v5782_v6 }
 0x5f1   : > { %v27546_v57 = vmax.f32 %v27479_v53, %v5783_v30  ;;  %v23854_v53 = vunpack.i.h.bf16 %v27538_v33 }
 0x5fa   : > { %v5769_v34 = vpop.permute.xlu0 %5768 }
 0x5fb   : > { %v5789_v32 = vsel %vm990_vm3, %v5767_v46, %v5769_v34  ;;  %v5771_v16 = vpop.permute.xlu1 %5770 }
 0x5fc   : > { %v5817_v56 = vmax.f32 %v5709_v7, %v5789_v32  ;;  %v5790_v44 = vsel %vm990_vm3, %v5769_v34, %v5771_v16 }
 0x5fd   : > { %v5818_v41 = vmax.f32 %v5710_v28, %v5790_v44  ;;  %v5869_v44 = vld [vmem:[#allocation2 + $0x88] sm:$0x3] }
 0x5fe   : > { %5831 = vst [vmem:[#allocation2 + $0x50] sm:$0x3] %v5817_v56  ;;  %v27620_v30 = vpack.i.bf16 %v5869_v44, %v27209_v24 }
 0x5ff   : > { %5832 = vst [vmem:[#allocation2 + $0x58] sm:$0x3] %v5818_v41  ;;  %v5757_v4 = vpop.permute.xlu1 %5756 }
 0x600   : > { %v5784_v37 = vsel %vm990_vm3, %v5755_v23, %v5757_v4 }
 0x601   : > { %v27549_v45 = vmax.f32 %v27482_v25, %v5784_v37  ;;  %v5715_v25 = vmax.f32 %v5609_v17, %v5687_v59 }
 0x602   : > { %v5773_v50 = vpop.permute.xlu0 %5772 }
 0x603   : > { %v5791_v22 = vsel %vm990_vm3, %v5771_v16, %v5773_v50  ;;  %v27555_v13 = vpack.i.bf16 %v27549_v45, %v27546_v57 }
 0x604   : > { %v5819_v9 = vmax.f32 %v5711_v35, %v5791_v22 }
 0x605   : > { %23856 = vrot.lane.b32.xlu0 %v27555_v13, %s25160_s27  ;;  %v27563_v54 = vld [vmem:[#allocation2 + $0x50] sm:$0x3] }
 0x606   : > { %5833 = vst [vmem:[#allocation2 + $0x60] sm:$0x3] %v5819_v9  ;;  %v5779_v0 = vpop.permute.xlu1 %5778  ;;  %v27567_v55 = vpack.i.bf16 %v27563_v54, %v27558_v12  ;;  %v5863_v27 = vld [vmem:[#allocation2 + $0x58] sm:$0x3] }
 0x607   : > { %v5795_v2 = vsel %vm990_vm3, %v5779_v0, %v23854_v53 }
 0x608   : > { %v5823_v47 = vmax.f32 %v5715_v25, %v5795_v2 }
 0x609   : > { %23866 = vrot.lane.b32.xlu0 %v27567_v55, %s25160_s27 }
 0x60a   : > { %5837 = vst [vmem:[#allocation2 + $0x80] sm:$0x3] %v5823_v47  ;;  %v5761_v15 = vpop.permute.xlu1 %5760  ;;  %v5777_v51 = vpop.permute.xlu0 %5776 }
 0x60b   : > { %v5794_v8 = vsel %vm990_vm3, %v5777_v51, %v5779_v0 }
 0x60c   : > { %v5822_v20 = vmax.f32 %v5714_v1, %v5794_v8  ;;  %v27748_v8 = vld [vmem:[%s30555_s5 + $0x10] sm:$0xff] }
 0x60d   : > { %v5864_v59 = vld [vmem:[#allocation2 + $0x60] sm:$0x3] }
 0x60e   : > { %5836 = vst [vmem:[#allocation2 + $0x78] sm:$0x3] %v5822_v20  ;;  %v5775_v18 = vpop.permute.xlu1 %5774  ;;  %v5763_v21 = vpop.permute.xlu0 %5762  ;;  %v27577_v5 = vpack.i.bf16 %v5864_v59, %v5863_v27  ;;  %v9393_v27 = vld [vmem:[%s30562_s12] sm:$0xff] }
 0x60f   : > { %v5792_v61 = vsel %vm990_vm3, %v5773_v50, %v5775_v18  ;;  %v5793_v36 = vsel %vm990_vm3, %v5775_v18, %v5777_v51  ;;  %v5787_v63 = vsel %vm990_vm3, %v5761_v15, %v5763_v21  ;;  %v5788_v46 = vsel %vm990_vm3, %v5763_v21, %v23853_v43  ;;  %v27761_v59 = vld [vmem:[#allocation2 + $0x40] sm:$0xff]  ;;  %v27769_v21 = vld [vmem:[%s30555_s5 + $0x18] sm:$0xff] }
 0x610   : > { %v5820_v33 = vmax.f32 %v5712_v49, %v5792_v61  ;;  %v5821_v38 = vmax.f32 %v5713_v19, %v5793_v36  ;;  %v27584_v23 = vmax.f32 %v27514_v52, %v5787_v63  ;;  %v27587_v62 = vmax.f32 %v27525_v60, %v5788_v46  ;;  %23861 = vrot.lane.b32.xlu1 %v27577_v5, %s25160_s27  ;;  %v21017_v46 = vld [vmem:[%s30562_s12 + $0x10] sm:$0xff] }
 0x611   : > { %v5868_v34 = vld [vmem:[#allocation2 + $0x80] sm:$0x3] }
 0x612   : > { %5834 = vst [vmem:[#allocation2 + $0x68] sm:$0x3] %v5820_v33  ;;  %5835 = vst [vmem:[#allocation2 + $0x70] sm:$0x3] %v5821_v38  ;;  %v5759_v10 = vpop.permute.xlu0 %5758  ;;  %v27593_v11 = vpack.i.bf16 %v27587_v62, %v27584_v23  ;;  %v5846_v33 = vld [vmem:[#allocation2 + $0x58] sm:$0x3] }
 0x613   : > { %v5785_v40 = vsel %vm990_vm3, %v5757_v4, %v5759_v10  ;;  %v5786_v7 = vsel %vm990_vm3, %v5759_v10, %v5761_v15 }
 0x614   : > { %v27598_v52 = vmax.f32 %v27498_v39, %v5785_v40  ;;  %v27601_v60 = vmax.f32 %v27534_v42, %v5786_v7  ;;  %23876 = vrot.lane.b32.xlu1 %v27593_v11, %s25160_s27  ;;  %v9394_v40 = vld [vmem:[%s30562_s12 + $0x8] sm:$0xff] }
 0x615   : > { %v5867_v29 = vld [vmem:[#allocation2 + $0x78] sm:$0x3] }
 0x616   : > { %v27605_v28 = vpack.i.bf16 %v5868_v34, %v5867_v29  ;;  %v24095_v32 = vpack.i.bf16 %v27601_v60, %v27598_v52  ;;  %v24145_v39 = vpack.i.bf16 %v27598_v52, %v27558_v12  ;;  %v24150_v1 = vpack.i.bf16 %v27563_v54, %v27601_v60  ;;  %v5845_v34 = vld [vmem:[#allocation2 + $0x50] sm:$0x3] }
 0x618   : > { %23871 = vrot.lane.b32.xlu0 %v27605_v28, %s25160_s27 }
 0x619   : > { %v5866_v16 = vld [vmem:[#allocation2 + $0x70] sm:$0x3]  ;;  %v5865_v56 = vld [vmem:[#allocation2 + $0x68] sm:$0x3] }
 0x61a   : > { %v23880_v42 = vpack.i.bf16 %v5866_v16, %v27601_v60  ;;  %v23895_v41 = vpack.i.bf16 %v5865_v56, %v27598_v52  ;;  %v24075_v24 = vpack.i.bf16 %v5866_v16, %v5865_v56  ;;  %v5850_v56 = vld [vmem:[#allocation2 + $0x78] sm:$0x3] }
 0x61c   : > { %23886 = vrot.lane.b32.xlu0 %v27555_v13, %s25167_s26  ;;  %23881 = vrot.lane.b32.xlu1 %v23880_v42, %s25160_s27 }
 0x620   : > { %23896 = vrot.lane.b32.xlu0 %v23895_v41, %s25160_s27  ;;  %23891 = vrot.lane.b32.xlu1 %v27577_v5, %s25167_s26 }
 0x624   : > { %23911 = vrot.lane.b32.xlu0 %v27620_v30, %s25160_s27  ;;  %23901 = vrot.lane.b32.xlu1 %v27567_v55, %s25167_s26 }
 0x628   : > { %23916 = vrot.lane.b32.xlu0 %v27555_v13, %s25164_s0  ;;  %23906 = vrot.lane.b32.xlu1 %v27605_v28, %s25167_s26 }
 0x62c   : > { %23926 = vrot.lane.b32.xlu0 %v27593_v11, %s25167_s26  ;;  %23921 = vrot.lane.b32.xlu1 %v27577_v5, %s25164_s0 }
 0x630   : > { %23931 = vrot.lane.b32.xlu0 %v27567_v55, %s25164_s0  ;;  %23941 = vrot.lane.b32.xlu1 %v23880_v42, %s25167_s26 }
 0x634   : > { %23936 = vrot.lane.b32.xlu0 %v27605_v28, %s25164_s0  ;;  %23946 = vrot.lane.b32.xlu1 %v23895_v41, %s25167_s26 }
 0x638   : > { %23956 = vrot.lane.b32.xlu0 %v27577_v5, %s25166_s24  ;;  %23951 = vrot.lane.b32.xlu1 %v27555_v13, %s25166_s24 }
 0x63c   : > { %23971 = vrot.lane.b32.xlu0 %v27567_v55, %s25166_s24  ;;  %23961 = vrot.lane.b32.xlu1 %v27593_v11, %s25164_s0 }
 0x640   : > { %23991 = vrot.lane.b32.xlu0 %v23880_v42, %s25164_s0  ;;  %23966 = vrot.lane.b32.xlu1 %v27620_v30, %s25167_s26 }
 0x644   : > { %23996 = vrot.lane.b32.xlu0 %v27555_v13, %s25168_s28  ;;  %23976 = vrot.lane.b32.xlu1 %v23895_v41, %s25164_s0 }
 0x648   : > { %24006 = vrot.lane.b32.xlu0 %v23895_v41, %s25166_s24  ;;  %23981 = vrot.lane.b32.xlu1 %v27605_v28, %s25166_s24 }
 0x64c   : > { %24021 = vrot.lane.b32.xlu0 %v27593_v11, %s25166_s24  ;;  %23986 = vrot.lane.b32.xlu1 %v27620_v30, %s25164_s0 }
 0x650   : > { %24026 = vrot.lane.b32.xlu0 %v23880_v42, %s25166_s24  ;;  %24001 = vrot.lane.b32.xlu1 %v27577_v5, %s25168_s28 }
 0x654   : > { %24031 = vrot.lane.b32.xlu0 %v27620_v30, %s25166_s24  ;;  %24011 = vrot.lane.b32.xlu1 %v27567_v55, %s25168_s28 }
 0x658   : > { %24036 = vrot.lane.b32.xlu0 %v23895_v41, %s25168_s28  ;;  %24016 = vrot.lane.b32.xlu1 %v27605_v28, %s25168_s28 }
 0x65c   : > { %24046 = vrot.lane.b32.xlu0 %v27593_v11, %s25168_s28  ;;  %24041 = vrot.lane.b32.xlu1 %v27555_v13, %s25169_s23 }
 0x660   : > { %24051 = vrot.lane.b32.xlu0 %v27577_v5, %s25169_s23  ;;  %24056 = vrot.lane.b32.xlu1 %v23880_v42, %s25168_s28 }
 0x664   : > { %24066 = vrot.lane.b32.xlu0 %v27620_v30, %s25168_s28  ;;  %24061 = vrot.lane.b32.xlu1 %v27567_v55, %s25169_s23 }
 0x668   : > { %24071 = vrot.lane.b32.xlu0 %v27605_v28, %s25169_s23  ;;  %24081 = vrot.lane.b32.xlu1 %v27555_v13, %s30618_s25 }
 0x66c   : > { %24076 = vrot.lane.b32.xlu0 %v24075_v24, %s25169_s23  ;;  %24091 = vrot.lane.b32.xlu1 %v27593_v11, %s25169_s23 }
 0x670   : > { %24086 = vrot.lane.b32.xlu0 %v27577_v5, %s30618_s25  ;;  %24096 = vrot.lane.b32.xlu1 %v24095_v32, %s25169_s23 }
 0x674   : > { %24106 = vrot.lane.b32.xlu0 %v27567_v55, %s30618_s25  ;;  %24101 = vrot.lane.b32.xlu1 %v27620_v30, %s25169_s23 }
 0x677   : > { %v27700_v4 = vpop.permute.xlu0 %23856 }
 0x678   : > { %24111 = vrot.lane.b32.xlu0 %v24075_v24, %s30618_s25  ;;  %24121 = vrot.lane.b32.xlu1 %v24095_v32, %s30618_s25  ;;  %v23859_v26 = vunpack.i.h.bf16 %v27700_v4  ;;  %v23858_v6 = vunpack.i.l.bf16 %v27700_v4 }
 0x67b   : > { %v23867_v37 = vpop.permute.xlu0 %23866 }
 0x67c   : > { %24116 = vrot.lane.b32.xlu0 %v27605_v28, %s30618_s25  ;;  %24126 = vrot.lane.b32.xlu1 %v27593_v11, %s30618_s25  ;;  %v23868_v35 = vunpack.i.l.bf16 %v23867_v37  ;;  %v23869_v17 = vunpack.i.h.bf16 %v23867_v37 }
 0x67e   : > { %v5921_v25 = vsel %vm870_vm2, %v23868_v35, %v23858_v6 }
 0x680   : > { %24136 = vrot.lane.b32.xlu0 %v27555_v13, %s25171_s18  ;;  %24131 = vrot.lane.b32.xlu1 %v27620_v30, %s30618_s25  ;;  %v5922_v13 = vsel %vm870_vm2, %v23858_v6, %v23859_v26  ;;  %v22153_v6 = vpack.c.bf16 %v5850_v56, %v27584_v23 }
 0x682   : > { %v27712_v50 = vpop.permute.xlu1 %23861 }
 0x683   : > { %v23864_v22 = vunpack.i.h.bf16 %v27712_v50  ;;  %v23863_v9 = vunpack.i.l.bf16 %v27712_v50  ;;  %v5848_v50 = vld [vmem:[#allocation2 + $0x68] sm:$0x3] }
 0x684   : > { %24146 = vrot.lane.b32.xlu0 %v24145_v39, %s25171_s18  ;;  %24141 = vrot.lane.b32.xlu1 %v27577_v5, %s25171_s18 }
 0x685   : > { %v5929_v53 = vsel %vm870_vm2, %v23863_v9, %v23864_v22  ;;  %v5928_v0 = vsel %vm870_vm2, %v23869_v17, %v23863_v9 }
 0x686   : > { %v22120_v2 = vpack.c.bf16 %v5928_v0, %v5921_v25  ;;  %v22117_v47 = vpack.c.bf16 %v5929_v53, %v5922_v13  ;;  %v27733_v31 = vpop.permute.xlu1 %23876  ;;  %v22147_v53 = vpack.c.bf16 %v5848_v50, %v27598_v52  ;;  %v5849_v52 = vld [vmem:[#allocation2 + $0x70] sm:$0x3] }
 0x687   : > { %v23879_v15 = vunpack.i.h.bf16 %v27733_v31  ;;  %v23878_v51 = vunpack.i.l.bf16 %v27733_v31 }
 0x688   : > { %22119 = vmatprep.subr.msk.bf16.mxu1 %vm27729_vm12, %v22117_v47  ;;  %24156 = vrot.lane.b32.xlu0 %v24075_v24, %s25171_s18 }
 0x689   : > { %22122 = vmatpush1.bf16.msk.msra.mxu1 %vm27729_vm12, %v22120_v2  ;;  %24151 = vrot.lane.b32.xlu1 %v24150_v1, %s25171_s18  ;;  %v5926_v43 = vsel %vm870_vm2, %v23878_v51, %v23879_v15  ;;  %v5852_v1 = vld [vmem:[%s30555_s5] sm:$0xff] }
 0x68a   : > { %v23872_v54 = vpop.permute.xlu0 %23871 }
 0x68b   : > { %v23874_v14 = vunpack.i.h.bf16 %v23872_v54  ;;  %v23873_v20 = vunpack.i.l.bf16 %v23872_v54  ;;  %v22156_v54 = vpack.c.bf16 %v5849_v52, %v27601_v60 }
 0x68c   : > { %24166 = vrot.lane.b32.xlu0 %v27605_v28, %s25171_s18  ;;  %20870 = vmatmul.mubr.msk.f32.vlgmr.msra.gmra.mrb[28].mxu1 %vm5942_vm13, %v27748_v8  ;;  %v22141_v28 = vpack.c.bf16 %v5846_v33, %v27546_v57  ;;  %v22144_v57 = vpack.c.bf16 %v5845_v34, %v27558_v12 }
 0x68d   : > { %v5933_v48 = vsel %vm870_vm2, %v23873_v20, %v23874_v14  ;;  %24161 = vrot.lane.b32.xlu1 %v27593_v11, %s25171_s18  ;;  %6034 = vmatprep.mubr.f32.mxu1 %v27761_v59 }
 0x68e   : > { %v27764_v49 = vpop.permute.xlu0 %23886  ;;  %v23882_v19 = vpop.permute.xlu1 %23881  ;;  %v22129_v18 = vpack.c.bf16 %v5933_v48, %v5926_v43 }
 0x68f   : > { %v23884_v5 = vunpack.i.h.bf16 %v23882_v19  ;;  %v23883_v61 = vunpack.i.l.bf16 %v23882_v19  ;;  %v23889_v25 = vunpack.i.h.bf16 %v27764_v49  ;;  %v23888_v0 = vunpack.i.l.bf16 %v27764_v49 }
 0x690   : > { %9397 = vperm.xlu0 %23523, %v9393_v27   ;;  %22131 = vmatprep.subr.msk.bf16.mxu1 %vm27729_vm12, %v22129_v18 }
 0x691   : > { %v5932_v36 = vsel %vm870_vm2, %v23884_v5, %v23873_v20  ;;  %v5925_v63 = vsel %vm870_vm2, %v23883_v61, %v23878_v51  ;;  %24171 = vrot.lane.b32.xlu1 %v27620_v30, %s25171_s18  ;;  %20871 = vmatmul.mubr.msk.f32.gmra.mrb[30].mxu1 %vm5942_vm13, %v27769_v21  ;;  %v6640_v51 = vsel %vm6638_vm14, %v23888_v0, %v23889_v25 }
 0x692   : > { %v23897_v38 = vpop.permute.xlu0 %23896  ;;  %v22132_v10 = vpack.c.bf16 %v5932_v36, %v5925_v63  ;;  %v27782_v11 = vpop.permute.xlu1 %23891  ;;  %6182 = vmatprep.mubr.f32.mxu1 %v27761_v59 }
 0x693   : > { %v23899_v7 = vunpack.i.h.bf16 %v23897_v38  ;;  %v23898_v29 = vunpack.i.l.bf16 %v23897_v38  ;;  %v23894_v13 = vunpack.i.h.bf16 %v27782_v11  ;;  %v23893_v23 = vunpack.i.l.bf16 %v27782_v11 }
 0x694   : > { %9424 = vperm.xlu0 %23523, %v21017_v46   ;;  %22134 = vmatpush1.bf16.msk.msra.mxu1 %vm27729_vm12, %v22132_v10 }
 0x695   : > { %v5930_v32 = vsel %vm870_vm2, %v23864_v22, %v23899_v7  ;;  %v5923_v39 = vsel %vm870_vm2, %v23859_v26, %v23898_v29  ;;  %v5931_v16 = vsel %vm870_vm2, %v23899_v7, %v23884_v5  ;;  %v5924_v42 = vsel %vm870_vm2, %v23898_v29, %v23883_v61  ;;  %9402 = vperm.xlu1 %23524, %v9394_v40   ;;  %v21018_v26 = vld [vmem:[%s30562_s12 + $0x18] sm:$0xff] }
 0x696   : > { %v22126_v44 = vpack.c.bf16 %v5930_v32, %v5923_v39  ;;  %v23912_v41 = vpop.permute.xlu0 %23911  ;;  %v22123_v30 = vpack.c.bf16 %v5931_v16, %v5924_v42  ;;  %22143 = vmatprep.subr.msk.bf16.mxu1 %vm27729_vm12, %v22141_v28  ;;  %v27799_v24 = vpop.permute.xlu1 %23901  ;;  %v6647_v31 = vsel %vm6638_vm14, %v23893_v23, %v23894_v13 }
 0x697   : > { %v23914_v37 = vunpack.i.h.bf16 %v23912_v41  ;;  %v23913_v4 = vunpack.i.l.bf16 %v23912_v41  ;;  %20878 = vmatmul.mubr.msk.f32.vlgmr.msra.gmra.mrb[32].mxu1 %vm5942_vm13, %v27748_v8  ;;  %v23904_v20 = vunpack.i.h.bf16 %v27799_v24  ;;  %v23903_v48 = vunpack.i.l.bf16 %v27799_v24 }
 0x698   : > { %22125 = vmatprep.subr.msk.bf16.mxu0 %vm27729_vm12, %v22123_v30  ;;  %22146 = vmatpush1.bf16.msk.msra.mxu1 %vm27729_vm12, %v22144_v57  ;;  %v22165_v27 = vpack.c.bf16 %v6647_v31, %v6640_v51 }
 0x699   : > { %v5927_v35 = vsel %vm870_vm2, %v23879_v15, %v23913_v4  ;;  %v5934_v12 = vsel %vm870_vm2, %v23874_v14, %v23914_v37  ;;  %22128 = vmatpush1.bf16.msk.msra.mxu0 %vm27729_vm12, %v22126_v44  ;;  %9429 = vperm.xlu1 %23524, %v21018_v26   ;;  %v5847_v15 = vld [vmem:[#allocation2 + $0x60] sm:$0x3]  ;;  %v6646_v46 = vsel %vm6638_vm14, %v23904_v20, %v23893_v23 }
 0x69a   : > { %v27816_v22 = vpop.permute.xlu0 %23916  ;;  %v22135_v9 = vpack.c.bf16 %v5934_v12, %v5927_v35  ;;  %22155 = vmatprep.subr.msk.bf16.mxu1 %vm27729_vm12, %v22153_v6  ;;  %v27820_v17 = vpop.permute.xlu1 %23906  ;;  %6188 = vmatprep.mubr.f32.mxu1 %v27761_v59  ;;  %v5851_v14 = vld [vmem:[#allocation2 + $0x80] sm:$0x3]  ;;  %v22150_v60 = vpack.c.bf16 %v5847_v15, %v27549_v45  ;;  %v6639_v45 = vsel %vm6638_vm14, %v23903_v48, %v23888_v0  ;;  %v20899_v15 = vld [vmem:[%s30555_s5 + $0x28] sm:$0xff] }
 0x69b   : > { %20879 = vmatmul.mubr.msk.f32.gmra.mrb[34].mxu1 %vm5942_vm13, %v27769_v21  ;;  %v22159_v61 = vpack.c.bf16 %v5851_v14, %v27587_v62  ;;  %v23909_v36 = vunpack.i.h.bf16 %v27820_v17  ;;  %v23908_v63 = vunpack.i.l.bf16 %v27820_v17  ;;  %v22168_v29 = vpack.c.bf16 %v6646_v46, %v6639_v45  ;;  %v20898_v12 = vld [vmem:[%s30555_s5 + $0x20] sm:$0xff] }
 0x69c   : > { %20874 = vmatmul.mubr.msk.f32.vlgmr.msra.gmra.mrb[8].mxu0 %vm5942_vm13, %v27748_v8  ;;  %22137 = vmatprep.subr.msk.bf16.mxu0 %vm27729_vm12, %v22135_v9  ;;  %v23919_v57 = vunpack.i.h.bf16 %v27816_v22  ;;  %v23918_v37 = vunpack.i.l.bf16 %v27816_v22 }
 0x69d   : > { %22140 = vmatpush3.bf16.msk.msra.mxu0 %vm27729_vm12, %v22135_v9  ;;  %6111 = vmatprep.mubr.f32.mxu0 %v27761_v59  ;;  %v6651_v34 = vsel %vm6638_vm14, %v23908_v63, %v23909_v36 }
 0x69e   : > { %v27835_v2 = vpop.permute.xlu0 %23926  ;;  %22149 = vmatprep.subr.msk.bf16.mxu0 %vm27729_vm12, %v22147_v53  ;;  %v27841_v47 = vpop.permute.xlu1 %23921  ;;  %6361 = vmatprep.mubr.f32.mxu1 %v27761_v59  ;;  %v7036_v9 = vsel %vm1350_vm6, %v23918_v37, %v23919_v57 }
 0x69f   : > { %20885 = vmatmul.mubr.msk.f32.vlgmr.msra.gmra.mrb[28].mxu1 %vm5942_vm13, %v5852_v1  ;;  %v23929_v18 = vunpack.i.h.bf16 %v27835_v2  ;;  %v23928_v5 = vunpack.i.l.bf16 %v27835_v2  ;;  %v23924_v56 = vunpack.i.h.bf16 %v27841_v47  ;;  %v23923_v44 = vunpack.i.l.bf16 %v27841_v47 }
 0x6a0   : > { %20875 = vmatmul.mubr.msk.f32.gmra.mrb[10].mxu0 %vm5942_vm13, %v27769_v21  ;;  %22158 = vmatpush1.bf16.msk.msra.mxu1 %vm27729_vm12, %v22156_v54 }
 0x6a1   : > { %21702 = vmatprep.mubr.msk.f32.mxu0 %vm5942_vm13, %v27748_v8  ;;  %6367 = vmatprep.mubr.f32.mxu1 %v27761_v59  ;;  %v5853_v8 = vld [vmem:[%s30555_s5 + $0x8] sm:$0xff]  ;;  %v6644_v62 = vsel %vm6638_vm14, %v23928_v5, %v23929_v18  ;;  %v7043_v6 = vsel %vm1350_vm6, %v23923_v44, %v23924_v56 }
 0x6a2   : > { %v27860_v43 = vpop.permute.xlu0 %23931  ;;  %v23942_v19 = vpop.permute.xlu1 %23941  ;;  %22167 = vmatprep.subr.msk.bf16.mxu1 %vm27729_vm12, %v22165_v27  ;;  %v22177_v16 = vpack.c.bf16 %v6651_v34, %v6644_v62  ;;  %v22189_v0 = vpack.c.bf16 %v7043_v6, %v7036_v9 }
 0x6a3   : > { %20886 = vmatmul.mubr.msk.f32.gmra.mrb[30].mxu1 %vm5942_vm13, %v5853_v8  ;;  %v23943_v38 = vunpack.i.l.bf16 %v23942_v19  ;;  %v23944_v7 = vunpack.i.h.bf16 %v23942_v19  ;;  %v23934_v50 = vunpack.i.h.bf16 %v27860_v43  ;;  %v23933_v22 = vunpack.i.l.bf16 %v27860_v43 }
 0x6a4   : > { %21703 = vmatmul.mubr.msk.f32.vlgmr.msra.gmra.mrb[12].mxu0 %vm5942_vm13, %v27769_v21  ;;  %6515 = vmatprep.mubr.f32.mxu1 %v27761_v59 }
 0x6a5   : > { %22152 = vmatpush1.bf16.msk.msra.mxu0 %vm27729_vm12, %v22150_v60  ;;  %6438 = vmatprep.mubr.f32.mxu0 %v27761_v59  ;;  %v6643_v49 = vsel %vm6638_vm14, %v23943_v38, %v23928_v5  ;;  %v6650_v4 = vsel %vm6638_vm14, %v23944_v7, %v23908_v63  ;;  %v7035_v51 = vsel %vm1350_vm6, %v23933_v22, %v23918_v37 }
 0x6a6   : > { %22161 = vmatprep.subr.msk.bf16.mxu0 %vm27729_vm12, %v22159_v61  ;;  %v27885_v21 = vpop.permute.xlu0 %23936  ;;  %v23947_v33 = vpop.permute.xlu1 %23946  ;;  %v7042_v54 = vsel %vm1350_vm6, %v23934_v50, %v23923_v44 }
 0x6a7   : > { %v23949_v10 = vunpack.i.h.bf16 %v23947_v33  ;;  %v23948_v40 = vunpack.i.l.bf16 %v23947_v33  ;;  %20893 = vmatmul.mubr.msk.f32.vlgmr.msra.gmra.mrb[32].mxu1 %vm5942_vm13, %v5852_v1  ;;  %v23939_v14 = vunpack.i.h.bf16 %v27885_v21  ;;  %v23938_v20 = vunpack.i.l.bf16 %v27885_v21 }
 0x6a8   : > { %20889 = vmatmul.mubr.msk.f32.vlgmr.msra.gmra.mrb[8].mxu0 %vm5942_vm13, %v5852_v1  ;;  %22170 = vmatpush1.bf16.msk.msra.mxu1 %vm27729_vm12, %v22168_v29  ;;  %v22192_v17 = vpack.c.bf16 %v7042_v54, %v7035_v51 }
 0x6a9   : > { %22164 = vmatpush3.bf16.msk.msra.mxu0 %vm27729_vm12, %v22159_v61  ;;  %v6642_v28 = vsel %vm6638_vm14, %v23948_v40, %v23943_v38  ;;  %v6649_v39 = vsel %vm6638_vm14, %v23949_v10, %v23944_v7  ;;  %6444 = vmatprep.mubr.f32.mxu0 %v27761_v59  ;;  %v6641_v41 = vsel %vm6638_vm14, %v23889_v25, %v23948_v40 }
 0x6aa   : > { %v27900_v32 = vpop.permute.xlu0 %23956  ;;  %v27905_v42 = vpop.permute.xlu1 %23951  ;;  %6521 = vmatprep.mubr.f32.mxu1 %v27761_v59  ;;  %v6648_v30 = vsel %vm6638_vm14, %v23894_v13, %v23949_v10  ;;  %22179 = vmatprep.subr.msk.bf16.mxu1 %vm27729_vm12, %v22177_v16  ;;  %v22171_v24 = vpack.c.bf16 %v6649_v39, %v6642_v28  ;;  %v22180_v13 = vpack.c.bf16 %v6650_v4, %v6643_v49 }
 0x6ab   : > { %20894 = vmatmul.mubr.msk.f32.gmra.mrb[34].mxu1 %vm5942_vm13, %v5853_v8  ;;  %v22174_v35 = vpack.c.bf16 %v6648_v30, %v6641_v41  ;;  %v23959_v21 = vunpack.i.h.bf16 %v27900_v32  ;;  %v23958_v7 = vunpack.i.l.bf16 %v27900_v32  ;;  %v23954_v29 = vunpack.i.h.bf16 %v27905_v42  ;;  %v20915_v30 = vld [vmem:[%s30555_s5 + $0x30] sm:$0xff] }
 0x6ac   : > { %20890 = vmatmul.mubr.msk.f32.gmra.mrb[10].mxu0 %vm5942_vm13, %v5853_v8  ;;  %22173 = vmatprep.subr.msk.bf16.mxu0 %vm27729_vm12, %v22171_v24  ;;  %v23953_v34 = vunpack.i.l.bf16 %v27905_v42 }
 0x6ad   : > { %21709 = vmatprep.mubr.msk.f32.mxu0 %vm5942_vm13, %v5852_v1  ;;  %6744 = vmatprep.mubr.f32.mxu1 %v27761_v59  ;;  %v7439_v42 = vsel %vm1590_vm8, %v23958_v7, %v23959_v21 }
 0x6ae   : > { %v27926_v26 = vpop.permute.xlu0 %23971  ;;  %v27931_v11 = vpop.permute.xlu1 %23961 }
 0x6af   : > { %v23964_v53 = vunpack.i.h.bf16 %v27931_v11  ;;  %v23963_v25 = vunpack.i.l.bf16 %v27931_v11  ;;  %20902 = vmatmul.mubr.msk.f32.vlgmr.msra.gmra.mrb[28].mxu1 %vm5942_vm13, %v20898_v12  ;;  %v23974_v6 = vunpack.i.h.bf16 %v27926_v26 }
 0x6b0   : > { %21710 = vmatmul.mubr.msk.f32.vlgmr.msra.gmra.mrb[12].mxu0 %vm5942_vm13, %v5853_v8  ;;  %22182 = vmatpush1.bf16.msk.msra.mxu1 %vm27729_vm12, %v22180_v13 }
 0x6b1   : > { %22176 = vmatpush1.bf16.msk.msra.mxu0 %vm27729_vm12, %v22174_v35  ;;  %6821 = vmatprep.mubr.f32.mxu0 %v27761_v59  ;;  %v7040_v27 = vsel %vm1350_vm6, %v23963_v25, %v23964_v53  ;;  %v23973_v35 = vunpack.i.l.bf16 %v27926_v26  ;;  %v20916_v26 = vld [vmem:[%s30555_s5 + $0x38] sm:$0xff]  ;;  %v7438_v51 = vsel %vm1590_vm8, %v23974_v6, %v23958_v7 }
 0x6b2   : > { %v23992_v23 = vpop.permute.xlu0 %23991  ;;  %v23967_v52 = vpop.permute.xlu1 %23966  ;;  %6750 = vmatprep.mubr.f32.mxu1 %v27761_v59  ;;  %22191 = vmatprep.subr.msk.bf16.mxu1 %vm27729_vm12, %v22189_v0 }
 0x6b3   : > { %v23969_v31 = vunpack.i.h.bf16 %v23967_v52  ;;  %v23968_v1 = vunpack.i.l.bf16 %v23967_v52  ;;  %20903 = vmatmul.mubr.msk.f32.gmra.mrb[30].mxu1 %vm5942_vm13, %v20899_v15  ;;  %v23994_v8 = vunpack.i.h.bf16 %v23992_v23  ;;  %v23993_v2 = vunpack.i.l.bf16 %v23992_v23 }
 0x6b4   : > { %20906 = vmatmul.mubr.msk.f32.vlgmr.msra.gmra.mrb[8].mxu0 %vm5942_vm13, %v20898_v12  ;;  %6898 = vmatprep.mubr.f32.mxu1 %v27761_v59  ;;  %v7431_v54 = vsel %vm1590_vm8, %v23973_v35, %v23953_v34 }
 0x6b5   : > { %v6645_v48 = vsel %vm6638_vm14, %v23929_v18, %v23968_v1  ;;  %v6652_v43 = vsel %vm6638_vm14, %v23909_v36, %v23969_v31  ;;  %6827 = vmatprep.mubr.f32.mxu0 %v27761_v59  ;;  %v7047_v36 = vsel %vm1350_vm6, %v23938_v20, %v23939_v14  ;;  %v7046_v47 = vsel %vm1350_vm6, %v23994_v8, %v23938_v20 }
 0x6b6   : > { %v27973_v19 = vpop.permute.xlu0 %23996  ;;  %v23977_v5 = vpop.permute.xlu1 %23976  ;;  %v22183_v60 = vpack.c.bf16 %v6652_v43, %v6645_v48  ;;  %v22201_v38 = vpack.c.bf16 %v7047_v36, %v7040_v27  ;;  %v7039_v32 = vsel %vm1350_vm6, %v23993_v2, %v23963_v25 }
 0x6b7   : > { %v23979_v61 = vunpack.i.h.bf16 %v23977_v5  ;;  %v23978_v18 = vunpack.i.l.bf16 %v23977_v5  ;;  %20910 = vmatmul.mubr.msk.f32.vlgmr.msra.gmra.mrb[32].mxu1 %vm5942_vm13, %v20898_v12  ;;  %v22204_v24 = vpack.c.bf16 %v7046_v47, %v7039_v32 }
 0x6b8   : > { %22185 = vmatprep.subr.msk.bf16.mxu0 %vm27729_vm12, %v22183_v60  ;;  %20907 = vmatmul.mubr.msk.f32.gmra.mrb[10].mxu0 %vm5942_vm13, %v20899_v15 }
 0x6b9   : > { %v7045_v63 = vsel %vm1350_vm6, %v23979_v61, %v23994_v8  ;;  %v7037_v45 = vsel %vm1350_vm6, %v23919_v57, %v23978_v18  ;;  %v7038_v46 = vsel %vm1350_vm6, %v23978_v18, %v23993_v2  ;;  %22188 = vmatpush3.bf16.msk.msra.mxu0 %vm27729_vm12, %v22183_v60  ;;  %v7044_v62 = vsel %vm1350_vm6, %v23924_v56, %v23979_v61 }
 0x6ba   : > { %v24007_v33 = vpop.permute.xlu0 %24006  ;;  %v27991_v10 = vpop.permute.xlu1 %23981  ;;  %21716 = vmatprep.mubr.msk.f32.mxu0 %vm5942_vm13, %v20898_v12  ;;  %v22195_v40 = vpack.c.bf16 %v7045_v63, %v7038_v46  ;;  %v22198_v28 = vpack.c.bf16 %v7044_v62, %v7037_v45  ;;  %22194 = vmatpush1.bf16.msk.msra.mxu1 %vm27729_vm12, %v22192_v17  ;;  %v7432_v56 = vsel %vm1590_vm8, %v23953_v34, %v23954_v29  ;;  %v23999_v62 = vunpack.i.h.bf16 %v27973_v19 }
 0x6bb   : > { %6904 = vmatprep.mubr.f32.mxu1 %v27761_v59  ;;  %22203 = vmatprep.subr.msk.bf16.mxu1 %vm27729_vm12, %v22201_v38  ;;  %v24009_v57 = vunpack.i.h.bf16 %v24007_v33  ;;  %v24008_v37 = vunpack.i.l.bf16 %v24007_v33  ;;  %v22213_v50 = vpack.c.bf16 %v7439_v42, %v7432_v56  ;;  %v23984_v25 = vunpack.i.h.bf16 %v27991_v10  ;;  %v28078_v33 = vld [vmem:[%s30555_s5 + $0x40] sm:$0xff] }
 0x6bc   : > { %22197 = vmatprep.subr.msk.bf16.mxu0 %vm27729_vm12, %v22195_v40  ;;  %21717 = vmatmul.mubr.msk.f32.vlgmr.msra.gmra.mrb[12].mxu0 %vm5942_vm13, %v20899_v15  ;;  %v23983_v0 = vunpack.i.l.bf16 %v27991_v10  ;;  %v22216_v8 = vpack.c.bf16 %v7438_v51, %v7431_v54  ;;  %v23998_v38 = vunpack.i.l.bf16 %v27973_v19 }
 0x6bd   : > { %20911 = vmatmul.mubr.msk.f32.gmra.mrb[34].mxu1 %vm5942_vm13, %v20899_v15  ;;  %22200 = vmatpush1.bf16.msk.msra.mxu0 %vm27729_vm12, %v22198_v28  ;;  %v7433_v52 = vsel %vm1590_vm8, %v23954_v29, %v24008_v37  ;;  %v7440_v31 = vsel %vm1590_vm8, %v23959_v21, %v24009_v57 }
 0x6be   : > { %v28007_v39 = vpop.permute.xlu0 %24021  ;;  %v23987_v16 = vpop.permute.xlu1 %23986  ;;  %7140 = vmatprep.mubr.f32.mxu1 %v27761_v59  ;;  %7217 = vmatprep.mubr.f32.mxu0 %v27761_v59  ;;  %v22222_v60 = vpack.c.bf16 %v7440_v31, %v7433_v52  ;;  %v7443_v2 = vsel %vm1590_vm8, %v23983_v0, %v23984_v25  ;;  %v7829_v47 = vsel %vm7827_vm15, %v23998_v38, %v23999_v62 }
 0x6bf   : > { %v23989_v44 = vunpack.i.h.bf16 %v23987_v16  ;;  %v23988_v41 = vunpack.i.l.bf16 %v23987_v16  ;;  %v24024_v13 = vunpack.i.h.bf16 %v28007_v39  ;;  %v24023_v11 = vunpack.i.l.bf16 %v28007_v39  ;;  %v20933_v39 = vld [vmem:[%s30555_s5 + $0x48] sm:$0xff] }
 0x6c0   : > { %20923 = vmatmul.mubr.msk.f32.vlgmr.msra.gmra.mrb[8].mxu0 %vm5942_vm13, %v20915_v30 }
 0x6c1   : > { %v7048_v49 = vsel %vm1350_vm6, %v23939_v14, %v23989_v44  ;;  %v7041_v4 = vsel %vm1350_vm6, %v23964_v53, %v23988_v41  ;;  %20919 = vmatmul.mubr.msk.f32.vlgmr.msra.gmra.mrb[28].mxu1 %vm5942_vm13, %v20915_v30  ;;  %7223 = vmatprep.mubr.f32.mxu0 %v27761_v59  ;;  %v7436_v43 = vsel %vm1590_vm8, %v24023_v11, %v24024_v13 }
 0x6c2   : > { %v24027_v12 = vpop.permute.xlu0 %24026  ;;  %v28027_v22 = vpop.permute.xlu1 %24001  ;;  %v22207_v9 = vpack.c.bf16 %v7048_v49, %v7041_v4  ;;  %22206 = vmatpush1.bf16.msk.msra.mxu1 %vm27729_vm12, %v22204_v24  ;;  %7146 = vmatprep.mubr.f32.mxu1 %v27761_v59  ;;  %v22225_v36 = vpack.c.bf16 %v7443_v2, %v7436_v43 }
 0x6c3   : > { %v24029_v23 = vunpack.i.h.bf16 %v24027_v12  ;;  %v24028_v53 = vunpack.i.l.bf16 %v24027_v12  ;;  %22215 = vmatprep.subr.msk.bf16.mxu1 %vm27729_vm12, %v22213_v50  ;;  %v24004_v46 = vunpack.i.h.bf16 %v28027_v22  ;;  %v24003_v21 = vunpack.i.l.bf16 %v28027_v22 }
 0x6c4   : > { %22209 = vmatprep.subr.msk.bf16.mxu0 %vm27729_vm12, %v22207_v9  ;;  %20924 = vmatmul.mubr.msk.f32.gmra.mrb[10].mxu0 %vm5942_vm13, %v20916_v26 }
 0x6c5   : > { %v7434_v1 = vsel %vm1590_vm8, %v24008_v37, %v24028_v53  ;;  %v7441_v15 = vsel %vm1590_vm8, %v24009_v57, %v24029_v23  ;;  %20920 = vmatmul.mubr.msk.f32.gmra.mrb[30].mxu1 %vm5942_vm13, %v20916_v26  ;;  %22212 = vmatpush3.bf16.msk.msra.mxu0 %vm27729_vm12, %v22207_v9  ;;  %v7435_v10 = vsel %vm1590_vm8, %v24028_v53, %v24023_v11 }
 0x6c6   : > { %v24032_v14 = vpop.permute.xlu0 %24031  ;;  %v28054_v20 = vpop.permute.xlu1 %24011  ;;  %v22219_v48 = vpack.c.bf16 %v7441_v15, %v7434_v1  ;;  %7294 = vmatprep.mubr.f32.mxu1 %v27761_v59  ;;  %21723 = vmatprep.mubr.msk.f32.mxu0 %vm5942_vm13, %v20915_v30  ;;  %v7442_v40 = vsel %vm1590_vm8, %v24029_v23, %v23983_v0  ;;  %v7836_v34 = vsel %vm7827_vm15, %v24003_v21, %v24004_v46 }
 0x6c7   : > { %v24034_v27 = vunpack.i.h.bf16 %v24032_v14  ;;  %v24033_v5 = vunpack.i.l.bf16 %v24032_v14  ;;  %v22228_v32 = vpack.c.bf16 %v7442_v40, %v7435_v10  ;;  %v24014_v16 = vunpack.i.h.bf16 %v28054_v20 }
 0x6c8   : > { %22221 = vmatprep.subr.msk.bf16.mxu0 %vm27729_vm12, %v22219_v48  ;;  %21724 = vmatmul.mubr.msk.f32.vlgmr.msra.gmra.mrb[12].mxu0 %vm5942_vm13, %v20916_v26  ;;  %v24013_v42 = vunpack.i.l.bf16 %v28054_v20  ;;  %v22237_v44 = vpack.c.bf16 %v7836_v34, %v7829_v47  ;;  %v28152_v48 = vld [vmem:[%s30555_s5 + $0x50] sm:$0xff] }
 0x6c9   : > { %v7437_v61 = vsel %vm1590_vm8, %v24024_v13, %v24033_v5  ;;  %v7444_v18 = vsel %vm1590_vm8, %v23984_v25, %v24034_v27  ;;  %20927 = vmatmul.mubr.msk.f32.vlgmr.msra.gmra.mrb[32].mxu1 %vm5942_vm13, %v20915_v30  ;;  %22224 = vmatpush1.bf16.msk.msra.mxu0 %vm27729_vm12, %v22222_v60  ;;  %v7835_v9 = vsel %vm7827_vm15, %v24014_v16, %v24003_v21 }
 0x6ca   : > { %v24037_v17 = vpop.permute.xlu0 %24036  ;;  %v28068_v63 = vpop.permute.xlu1 %24016  ;;  %v22231_v45 = vpack.c.bf16 %v7444_v18, %v7437_v61  ;;  %22218 = vmatpush1.bf16.msk.msra.mxu1 %vm27729_vm12, %v22216_v8  ;;  %7300 = vmatprep.mubr.f32.mxu1 %v27761_v59  ;;  %v7828_v22 = vsel %vm7827_vm15, %v24013_v42, %v23998_v38 }
 0x6cb   : > { %22227 = vmatprep.subr.msk.bf16.mxu1 %vm27729_vm12, %v22225_v36  ;;  %7613 = vmatprep.mubr.f32.mxu0 %v27761_v59  ;;  %v24039_v19 = vunpack.i.h.bf16 %v24037_v17  ;;  %v24038_v28 = vunpack.i.l.bf16 %v24037_v17  ;;  %v24019_v6 = vunpack.i.h.bf16 %v28068_v63  ;;  %v24018_v35 = vunpack.i.l.bf16 %v28068_v63  ;;  %v28179_v17 = vld [vmem:[%s30555_s5 + $0x58] sm:$0xff] }
 0x6cc   : > { %22233 = vmatprep.subr.msk.bf16.mxu0 %vm27729_vm12, %v22231_v45  ;;  %20940 = vmatmul.mubr.msk.f32.vlgmr.msra.gmra.mrb[8].mxu0 %vm5942_vm13, %v28078_v33  ;;  %v22240_v52 = vpack.c.bf16 %v7835_v9, %v7828_v22  ;;  %v28233_v22 = vld [vmem:[%s30555_s5 + $0x60] sm:$0xff] }
 0x6cd   : > { %20928 = vmatmul.mubr.msk.f32.gmra.mrb[34].mxu1 %vm5942_vm13, %v20916_v26  ;;  %22236 = vmatpush3.bf16.msk.msra.mxu0 %vm27729_vm12, %v22231_v45  ;;  %v7830_v49 = vsel %vm7827_vm15, %v23999_v62, %v24038_v28  ;;  %v7837_v4 = vsel %vm7827_vm15, %v24004_v46, %v24039_v19  ;;  %v7840_v31 = vsel %vm7827_vm15, %v24018_v35, %v24019_v6 }
 0x6ce   : > { %v28089_v7 = vpop.permute.xlu0 %24046  ;;  %v28094_v29 = vpop.permute.xlu1 %24041  ;;  %7536 = vmatprep.mubr.f32.mxu1 %v27761_v59  ;;  %7619 = vmatprep.mubr.f32.mxu0 %v27761_v59  ;;  %v22246_v53 = vpack.c.bf16 %v7837_v4, %v7830_v49 }
 0x6cf   : > { %v24049_v30 = vunpack.i.h.bf16 %v28089_v7  ;;  %v24048_v24 = vunpack.i.l.bf16 %v28089_v7  ;;  %v24044_v5 = vunpack.i.h.bf16 %v28094_v29  ;;  %v24043_v60 = vunpack.i.l.bf16 %v28094_v29 }
 0x6d0   : > { %20941 = vmatmul.mubr.msk.f32.gmra.mrb[10].mxu0 %vm5942_vm13, %v20933_v39 }
 0x6d1   : > { %20936 = vmatmul.mubr.msk.f32.vlgmr.msra.gmra.mrb[28].mxu1 %vm5942_vm13, %v28078_v33  ;;  %21730 = vmatprep.mubr.msk.f32.mxu0 %vm5942_vm13, %v28078_v33  ;;  %v7833_v26 = vsel %vm7827_vm15, %v24048_v24, %v24049_v30  ;;  %v8225_v45 = vsel %vm1825_vm9, %v24043_v60, %v24044_v5 }
 0x6d2   : > { %v28107_v56 = vpop.permute.xlu0 %24051  ;;  %v24057_v41 = vpop.permute.xlu1 %24056  ;;  %22230 = vmatpush1.bf16.msk.msra.mxu1 %vm27729_vm12, %v22228_v32  ;;  %7542 = vmatprep.mubr.f32.mxu1 %v27761_v59  ;;  %v22249_v54 = vpack.c.bf16 %v7840_v31, %v7833_v26 }
 0x6d3   : > { %v24059_v57 = vunpack.i.h.bf16 %v24057_v41  ;;  %v24058_v37 = vunpack.i.l.bf16 %v24057_v41  ;;  %22239 = vmatprep.subr.msk.bf16.mxu1 %vm27729_vm12, %v22237_v44  ;;  %v24054_v43 = vunpack.i.h.bf16 %v28107_v56  ;;  %v24053_v27 = vunpack.i.l.bf16 %v28107_v56 }
 0x6d4   : > { %21731 = vmatmul.mubr.msk.f32.vlgmr.msra.gmra.mrb[12].mxu0 %vm5942_vm13, %v20933_v39 }
 0x6d5   : > { %v7838_v12 = vsel %vm7827_vm15, %v24039_v19, %v24059_v57  ;;  %v7831_v50 = vsel %vm7827_vm15, %v24038_v28, %v24058_v37  ;;  %20937 = vmatmul.mubr.msk.f32.gmra.mrb[30].mxu1 %vm5942_vm13, %v20933_v39  ;;  %8010 = vmatprep.mubr.f32.mxu0 %v27761_v59  ;;  %v7832_v8 = vsel %vm7827_vm15, %v24058_v37, %v24048_v24 }
 0x6d6   : > { %v24067_v13 = vpop.permute.xlu0 %24066  ;;  %v28130_v11 = vpop.permute.xlu1 %24061  ;;  %v22243_v23 = vpack.c.bf16 %v7838_v12, %v7831_v50  ;;  %7690 = vmatprep.mubr.f32.mxu1 %v27761_v59  ;;  %v7839_v2 = vsel %vm7827_vm15, %v24059_v57, %v24018_v35  ;;  %v8232_v36 = vsel %vm1825_vm9, %v24053_v27, %v24054_v43 }
 0x6d7   : > { %v24069_v25 = vunpack.i.h.bf16 %v24067_v13  ;;  %v24068_v0 = vunpack.i.l.bf16 %v24067_v13  ;;  %v24064_v63 = vunpack.i.h.bf16 %v28130_v11  ;;  %v22252_v46 = vpack.c.bf16 %v7839_v2, %v7832_v8 }
 0x6d8   : > { %22245 = vmatprep.subr.msk.bf16.mxu0 %vm27729_vm12, %v22243_v23  ;;  %v24063_v62 = vunpack.i.l.bf16 %v28130_v11  ;;  %v22261_v10 = vpack.c.bf16 %v8232_v36, %v8225_v45 }
 0x6d9   : > { %v7834_v1 = vsel %vm7827_vm15, %v24049_v30, %v24068_v0  ;;  %v7841_v15 = vsel %vm7827_vm15, %v24019_v6, %v24069_v25  ;;  %22248 = vmatpush1.bf16.msk.msra.mxu0 %vm27729_vm12, %v22246_v53  ;;  %20944 = vmatmul.mubr.msk.f32.vlgmr.msra.gmra.mrb[32].mxu1 %vm5942_vm13, %v28078_v33  ;;  %v8231_v32 = vsel %vm1825_vm9, %v24064_v63, %v24053_v27 }
 0x6da   : > { %v28143_v51 = vpop.permute.xlu0 %24071  ;;  %v28147_v14 = vpop.permute.xlu1 %24081  ;;  %v22255_v20 = vpack.c.bf16 %v7841_v15, %v7834_v1  ;;  %22242 = vmatpush1.bf16.msk.msra.mxu1 %vm27729_vm12, %v22240_v52  ;;  %7696 = vmatprep.mubr.f32.mxu1 %v27761_v59  ;;  %v8224_v44 = vsel %vm1825_vm9, %v24063_v62, %v24043_v60 }
 0x6db   : > { %22251 = vmatprep.subr.msk.bf16.mxu1 %vm27729_vm12, %v22249_v54  ;;  %v24074_v28 = vunpack.i.h.bf16 %v28143_v51  ;;  %v24073_v47 = vunpack.i.l.bf16 %v28143_v51  ;;  %v22264_v35 = vpack.c.bf16 %v8231_v32, %v8224_v44  ;;  %v24084_v1 = vunpack.i.h.bf16 %v28147_v14 }
 0x6dc   : > { %22257 = vmatprep.subr.msk.bf16.mxu0 %vm27729_vm12, %v22255_v20  ;;  %20957 = vmatmul.mubr.msk.f32.vlgmr.msra.gmra.mrb[8].mxu0 %vm5942_vm13, %v28152_v48  ;;  %v24083_v15 = vunpack.i.l.bf16 %v28147_v14 }
 0x6dd   : > { %20945 = vmatmul.mubr.msk.f32.gmra.mrb[34].mxu1 %vm5942_vm13, %v20933_v39  ;;  %22260 = vmatpush3.bf16.msk.msra.mxu0 %vm27729_vm12, %v22255_v20  ;;  %v8236_v6 = vsel %vm1825_vm9, %v24073_v47, %v24074_v28  ;;  %v28267_v20 = vld [vmem:[%s30555_s5 + $0x68] sm:$0xff] }
 0x6de   : > { %v28169_v61 = vpop.permute.xlu0 %24076  ;;  %v28174_v18 = vpop.permute.xlu1 %24091  ;;  %7933 = vmatprep.mubr.f32.mxu1 %v27761_v59  ;;  %8016 = vmatprep.mubr.f32.mxu0 %v27761_v59 }
 0x6df   : > { %v24079_v21 = vunpack.i.h.bf16 %v28169_v61  ;;  %v24078_v33 = vunpack.i.l.bf16 %v28169_v61  ;;  %v24094_v7 = vunpack.i.h.bf16 %v28174_v18  ;;  %v24093_v29 = vunpack.i.l.bf16 %v28174_v18 }
 0x6e0   : > { %20958 = vmatmul.mubr.msk.f32.gmra.mrb[10].mxu0 %vm5942_vm13, %v28179_v17  ;;  %v8622_v18 = vsel %vm8620_vm0, %v24083_v15, %v24084_v1 }
 0x6e1   : > { %20953 = vmatmul.mubr.msk.f32.vlgmr.msra.gmra.mrb[28].mxu1 %vm5942_vm13, %v28152_v48  ;;  %21737 = vmatprep.mubr.msk.f32.mxu0 %vm5942_vm13, %v28152_v48  ;;  %v8233_v39 = vsel %vm1825_vm9, %v24054_v43, %v24078_v33  ;;  %v8234_v16 = vsel %vm1825_vm9, %v24078_v33, %v24079_v21  ;;  %v8229_v37 = vsel %vm1825_vm9, %v24093_v29, %v24094_v7 }
 0x6e2   : > { %v28191_v38 = vpop.permute.xlu0 %24086  ;;  %v24097_v40 = vpop.permute.xlu1 %24096  ;;  %22254 = vmatpush1.bf16.msk.msra.mxu1 %vm27729_vm12, %v22252_v46  ;;  %7939 = vmatprep.mubr.f32.mxu1 %v27761_v59  ;;  %v22273_v23 = vpack.c.bf16 %v8236_v6, %v8229_v37  ;;  %v8235_v2 = vsel %vm1825_vm9, %v24079_v21, %v24073_v47 }
 0x6e3   : > { %v24099_v34 = vunpack.i.h.bf16 %v24097_v40  ;;  %v24098_v19 = vunpack.i.l.bf16 %v24097_v40  ;;  %22263 = vmatprep.subr.msk.bf16.mxu1 %vm27729_vm12, %v22261_v10  ;;  %v24089_v9 = vunpack.i.h.bf16 %v28191_v38  ;;  %v24088_v13 = vunpack.i.l.bf16 %v28191_v38 }
 0x6e4   : > { %21738 = vmatmul.mubr.msk.f32.vlgmr.msra.gmra.mrb[12].mxu0 %vm5942_vm13, %v28179_v17 }
 0x6e5   : > { %v8226_v42 = vsel %vm1825_vm9, %v24044_v5, %v24098_v19  ;;  %v8227_v56 = vsel %vm1825_vm9, %v24098_v19, %v24099_v34  ;;  %20954 = vmatmul.mubr.msk.f32.gmra.mrb[30].mxu1 %vm5942_vm13, %v28179_v17  ;;  %8406 = vmatprep.mubr.f32.mxu0 %v27761_v59  ;;  %v8629_v5 = vsel %vm8620_vm0, %v24088_v13, %v24089_v9  ;;  %v28318_v19 = vld [vmem:[%s30555_s5 + $0x70] sm:$0xff] }
 0x6e6   : > { %v28216_v41 = vpop.permute.xlu0 %24106  ;;  %v22270_v30 = vpack.c.bf16 %v8233_v39, %v8226_v42  ;;  %v24102_v24 = vpop.permute.xlu1 %24101  ;;  %v22267_v57 = vpack.c.bf16 %v8234_v16, %v8227_v56  ;;  %8087 = vmatprep.mubr.f32.mxu1 %v27761_v59  ;;  %v22285_v33 = vpack.c.bf16 %v8629_v5, %v8622_v18 }
 0x6e7   : > { %v24104_v49 = vunpack.i.h.bf16 %v24102_v24  ;;  %v24103_v4 = vunpack.i.l.bf16 %v24102_v24  ;;  %v24108_v36 = vunpack.i.l.bf16 %v28216_v41 }
 0x6e8   : > { %22269 = vmatprep.subr.msk.bf16.mxu0 %vm27729_vm12, %v22267_v57 }
 0x6e9   : > { %v8237_v12 = vsel %vm1825_vm9, %v24074_v28, %v24104_v49  ;;  %v8230_v50 = vsel %vm1825_vm9, %v24094_v7, %v24103_v4  ;;  %22272 = vmatpush1.bf16.msk.msra.mxu0 %vm27729_vm12, %v22270_v30  ;;  %20961 = vmatmul.mubr.msk.f32.vlgmr.msra.gmra.mrb[32].mxu1 %vm5942_vm13, %v28152_v48  ;;  %v8228_v48 = vsel %vm1825_vm9, %v24099_v34, %v24093_v29  ;;  %v28342_v30 = vld [vmem:[%s30555_s5 + $0x78] sm:$0xff] }
 0x6ea   : > { %v28237_v11 = vpop.permute.xlu0 %24111  ;;  %v28241_v53 = vpop.permute.xlu1 %24121  ;;  %v22279_v26 = vpack.c.bf16 %v8237_v12, %v8230_v50  ;;  %22266 = vmatpush1.bf16.msk.msra.mxu1 %vm27729_vm12, %v22264_v35  ;;  %8093 = vmatprep.mubr.f32.mxu1 %v27761_v59  ;;  %v22276_v63 = vpack.c.bf16 %v8235_v2, %v8228_v48  ;;  %v8621_v28 = vsel %vm8620_vm0, %v24108_v36, %v24083_v15  ;;  %v21000_v48 = vld [vmem:[%s30555_s5 + $0x80] sm:$0xff] }
 0x6eb   : > { %v24114_v25 = vunpack.i.h.bf16 %v28237_v11  ;;  %v24113_v0 = vunpack.i.l.bf16 %v28237_v11  ;;  %v24124_v52 = vunpack.i.h.bf16 %v28241_v53  ;;  %v24123_v31 = vunpack.i.l.bf16 %v28241_v53  ;;  %22275 = vmatprep.subr.msk.bf16.mxu1 %vm27729_vm12, %v22273_v23 }
 0x6ec   : > { %20974 = vmatmul.mubr.msk.f32.vlgmr.msra.gmra.mrb[8].mxu0 %vm5942_vm13, %v28233_v22  ;;  %22281 = vmatprep.subr.msk.bf16.mxu0 %vm27729_vm12, %v22279_v26 }
 0x6ed   : > { %v8631_v51 = vsel %vm8620_vm0, %v24113_v0, %v24114_v25  ;;  %v8624_v54 = vsel %vm8620_vm0, %v24123_v31, %v24124_v52  ;;  %20962 = vmatmul.mubr.msk.f32.gmra.mrb[34].mxu1 %vm5942_vm13, %v28179_v17  ;;  %22284 = vmatpush3.bf16.msk.msra.mxu0 %vm27729_vm12, %v22279_v26  ;;  %v8630_v60 = vsel %vm8620_vm0, %v24089_v9, %v24113_v0  ;;  %v24109_v17 = vunpack.i.h.bf16 %v28216_v41 }
 0x6ee   : > { %v28270_v43 = vpop.permute.xlu0 %24116  ;;  %v28276_v14 = vpop.permute.xlu1 %24126  ;;  %v22291_v27 = vpack.c.bf16 %v8631_v51, %v8624_v54  ;;  %v8623_v8 = vsel %vm8620_vm0, %v24084_v1, %v24123_v31  ;;  %8329 = vmatprep.mubr.f32.mxu1 %v27761_v59  ;;  %8412 = vmatprep.mubr.f32.mxu0 %v27761_v59  ;;  %v28383_v51 = vld [vmem:[#allocation2 + $0x40] sm:$0xff] }
 0x6ef   : > { %v24119_v61 = vunpack.i.h.bf16 %v28270_v43  ;;  %v24118_v45 = vunpack.i.l.bf16 %v28270_v43  ;;  %v22294_v46 = vpack.c.bf16 %v8630_v60, %v8623_v8  ;;  %v24129_v38 = vunpack.i.h.bf16 %v28276_v14 }
 0x6f0   : > { %20975 = vmatmul.mubr.msk.f32.gmra.mrb[10].mxu0 %vm5942_vm13, %v28267_v20  ;;  %22293 = vmatprep.subr.msk.bf16.mxu0 %vm27729_vm12, %v22291_v27  ;;  %v24128_v10 = vunpack.i.l.bf16 %v28276_v14  ;;  %v8628_v47 = vsel %vm8620_vm0, %v24109_v17, %v24088_v13 }
 0x6f1   : > { %21744 = vmatprep.mubr.msk.f32.mxu0 %vm5942_vm13, %v28233_v22  ;;  %20970 = vmatmul.mubr.msk.f32.vlgmr.msra.gmra.mrb[28].mxu1 %vm5942_vm13, %v28233_v22  ;;  %v8633_v42 = vsel %vm8620_vm0, %v24118_v45, %v24119_v61  ;;  %v22288_v44 = vpack.c.bf16 %v8628_v47, %v8621_v28 }
 0x6f2   : > { %v28297_v21 = vpop.permute.xlu0 %24136  ;;  %v24132_v62 = vpop.permute.xlu1 %24131  ;;  %22278 = vmatpush1.bf16.msk.msra.mxu1 %vm27729_vm12, %v22276_v63  ;;  %8335 = vmatprep.mubr.f32.mxu1 %v27761_v59  ;;  %v8626_v56 = vsel %vm8620_vm0, %v24128_v10, %v24129_v38  ;;  %v8625_v26 = vsel %vm8620_vm0, %v24124_v52, %v24128_v10 }
 0x6f3   : > { %v24134_v40 = vunpack.i.h.bf16 %v24132_v62  ;;  %v24133_v7 = vunpack.i.l.bf16 %v24132_v62  ;;  %22287 = vmatprep.subr.msk.bf16.mxu1 %vm27729_vm12, %v22285_v33  ;;  %v24139_v24 = vunpack.i.h.bf16 %v28297_v21  ;;  %v22297_v37 = vpack.c.bf16 %v8633_v42, %v8626_v56 }
 0x6f4   : > { %21745 = vmatmul.mubr.msk.f32.vlgmr.msra.gmra.mrb[12].mxu0 %vm5942_vm13, %v28267_v20 }
 0x6f5   : > { %v8634_v29 = vsel %vm8620_vm0, %v24119_v61, %v24134_v40  ;;  %v8627_v34 = vsel %vm8620_vm0, %v24129_v38, %v24133_v7  ;;  %22296 = vmatpush1.bf16.msk.msra.mxu0 %vm27729_vm12, %v22294_v46  ;;  %8803 = vmatprep.mubr.f32.mxu0 %v27761_v59  ;;  %v21001_v61 = vld [vmem:[%s30555_s5 + $0x88] sm:$0xff] }
 0x6f6   : > { %v28322_v32 = vpop.permute.xlu0 %24146  ;;  %20971 = vmatmul.mubr.msk.f32.gmra.mrb[30].mxu1 %vm5942_vm13, %v28267_v20  ;;  %v28326_v39 = vpop.permute.xlu1 %24141  ;;  %v22303_v16 = vpack.c.bf16 %v8634_v29, %v8627_v34 }
 0x6f7   : > { %8483 = vmatprep.mubr.f32.mxu1 %v27761_v59  ;;  %v24149_v41 = vunpack.i.h.bf16 %v28322_v32  ;;  %v24144_v6 = vunpack.i.h.bf16 %v28326_v39  ;;  %v24143_v35 = vunpack.i.l.bf16 %v28326_v39  ;;  %v24148_v8 = vunpack.i.l.bf16 %v28322_v32 }
 0x6f8   : > { %20991 = vmatmul.mubr.msk.f32.vlgmr.msra.gmra.mrb[8].mxu0 %vm5942_vm13, %v28318_v19  ;;  %22305 = vmatprep.subr.msk.bf16.mxu0 %vm27729_vm12, %v22303_v16 }
 0x6f9   : > { %22308 = vmatpush3.bf16.msk.msra.mxu0 %vm27729_vm12, %v22303_v16  ;;  %8809 = vmatprep.mubr.f32.mxu0 %v27761_v59  ;;  %v9020_v9 = vsel %vm9017_vm1, %v24139_v24, %v24149_v41  ;;  %v9026_v1 = vsel %vm9017_vm1, %v24143_v35, %v24144_v6 }
 0x6fa   : > { %v28345_v57 = vpop.permute.xlu0 %24156  ;;  %20978 = vmatmul.mubr.msk.f32.vlgmr.msra.gmra.mrb[32].mxu1 %vm5942_vm13, %v28233_v22  ;;  %v24138_v22 = vunpack.i.l.bf16 %v28297_v21 }
 0x6fb   : > { %v24159_v49 = vunpack.i.h.bf16 %v28345_v57  ;;  %v24158_v4 = vunpack.i.l.bf16 %v28345_v57  ;;  %22290 = vmatpush1.bf16.msk.msra.mxu1 %vm27729_vm12, %v22288_v44  ;;  %v28355_v12 = vpop.permute.xlu1 %24151  ;;  %8489 = vmatprep.mubr.f32.mxu1 %v27761_v59  ;;  %v8632_v59 = vsel %vm8620_vm0, %v24114_v25, %v24118_v45 }
 0x6fc   : > { %22299 = vmatprep.subr.msk.bf16.mxu1 %vm27729_vm12, %v22297_v37  ;;  %v24153_v50 = vunpack.i.l.bf16 %v28355_v12  ;;  %20992 = vmatmul.mubr.msk.f32.gmra.mrb[10].mxu0 %vm5942_vm13, %v28342_v30  ;;  %v9019_v53 = vsel %vm9017_vm1, %v24138_v22, %v24139_v24  ;;  %v22300_v52 = vpack.c.bf16 %v8632_v59, %v8625_v26  ;;  %v24154_v54 = vunpack.i.h.bf16 %v28355_v12 }
 0x6fd   : > { %v9028_v13 = vsel %vm9017_vm1, %v24158_v4, %v24159_v49  ;;  %v9027_v23 = vsel %vm9017_vm1, %v24144_v6, %v24158_v4  ;;  %21751 = vmatprep.mubr.msk.f32.mxu0 %vm5942_vm13, %v28318_v19  ;;  %v9018_v33 = vsel %vm9017_vm1, %v24148_v8, %v24138_v22 }
 0x6fe   : > { %v22318_v0 = vpack.c.bf16 %v9027_v23, %v9020_v9  ;;  %v9021_v31 = vsel %vm9017_vm1, %v24149_v41, %v24153_v50  ;;  %20979 = vmatmul.mubr.msk.f32.gmra.mrb[34].mxu1 %vm5942_vm13, %v28267_v20  ;;  %v24167_v25 = vpop.permute.xlu0 %24166  ;;  %v22309_v20 = vpack.c.bf16 %v9026_v1, %v9019_v53  ;;  %v9025_v17 = vsel %vm9017_vm1, %v24154_v54, %v24143_v35 }
 0x6ff   : > { %v24162_v15 = vpop.permute.xlu1 %24161  ;;  %8726 = vmatprep.mubr.f32.mxu1 %v28383_v51  ;;  %v22315_v11 = vpack.c.bf16 %v9028_v13, %v9021_v31  ;;  %v24169_v43 = vunpack.i.h.bf16 %v24167_v25  ;;  %v24168_v14 = vunpack.i.l.bf16 %v24167_v25  ;;  %v22312_v62 = vpack.c.bf16 %v9025_v17, %v9018_v33 }
 0x700   : > { %21752 = vmatmul.mubr.msk.f32.vlgmr.msra.gmra.mrb[12].mxu0 %vm5942_vm13, %v28342_v30  ;;  %v24164_v27 = vunpack.i.h.bf16 %v24162_v15  ;;  %v24163_v5 = vunpack.i.l.bf16 %v24162_v15 }
 0x701   : > { %22317 = vmatprep.subr.msk.bf16.mxu0 %vm27729_vm12, %v22315_v11  ;;  %9200 = vmatprep.mubr.f32.mxu0 %v28383_v51  ;;  %v9030_v45 = vsel %vm9017_vm1, %v24168_v14, %v24169_v43  ;;  %v9029_v10 = vsel %vm9017_vm1, %v24159_v49, %v24168_v14 }
 0x702   : > { %20987 = vmatmul.mubr.msk.f32.vlgmr.msra.gmra.mrb[28].mxu1 %vm5942_vm13, %v28318_v19  ;;  %22320 = vmatpush1.bf16.msk.msra.mxu0 %vm27729_vm12, %v22318_v0  ;;  %v9023_v46 = vsel %vm9017_vm1, %v24163_v5, %v24164_v27  ;;  %v9022_v40 = vsel %vm9017_vm1, %v24153_v50, %v24163_v5 }
 0x703   : > { %22302 = vmatpush1.bf16.msk.msra.mxu1 %vm27729_vm12, %v22300_v52  ;;  %v24172_v60 = vpop.permute.xlu1 %24171  ;;  %8732 = vmatprep.mubr.f32.mxu1 %v28383_v51  ;;  %v22321_v38 = vpack.c.bf16 %v9030_v45, %v9023_v46  ;;  %v22324_v7 = vpack.c.bf16 %v9029_v10, %v9022_v40 }
 0x704   : > { %22311 = vmatprep.subr.msk.bf16.mxu1 %vm27729_vm12, %v22309_v20  ;;  %v24174_v2 = vunpack.i.h.bf16 %v24172_v60  ;;  %v24173_v18 = vunpack.i.l.bf16 %v24172_v60 }
 0x705   : > { %21008 = vmatmul.mubr.msk.f32.vlgmr.msra.gmra.mrb[8].mxu0 %vm5942_vm13, %v21000_v48 }
 0x706   : > { %v9031_v36 = vsel %vm9017_vm1, %v24169_v43, %v24174_v2  ;;  %v9024_v63 = vsel %vm9017_vm1, %v24164_v27, %v24173_v18  ;;  %20988 = vmatmul.mubr.msk.f32.gmra.mrb[30].mxu1 %vm5942_vm13, %v28342_v30  ;;  %9206 = vmatprep.mubr.f32.mxu0 %v28383_v51 }
 0x707   : > { %8880 = vmatprep.mubr.f32.mxu1 %v28383_v51  ;;  %v22327_v21 = vpack.c.bf16 %v9031_v36, %v9024_v63 }
 0x709   : > { %21009 = vmatmul.mubr.msk.f32.gmra.mrb[10].mxu0 %vm5942_vm13, %v21001_v61  ;;  %22329 = vmatprep.subr.msk.bf16.mxu0 %vm27729_vm12, %v22327_v21 }
 0x70a   : > { %20995 = vmatmul.mubr.msk.f32.vlgmr.msra.gmra.mrb[32].mxu1 %vm5942_vm13, %v28318_v19  ;;  %22332 = vmatpush3.bf16.msk.msra.mxu0 %vm27729_vm12, %v22327_v21 }
 0x70b   : > { %22314 = vmatpush1.bf16.msk.msra.mxu1 %vm27729_vm12, %v22312_v62  ;;  %8886 = vmatprep.mubr.f32.mxu1 %v28383_v51 }
 0x70c   : > { %22323 = vmatprep.subr.msk.bf16.mxu1 %vm27729_vm12, %v22321_v38  ;;  %21758 = vmatprep.mubr.msk.f32.mxu0 %vm5942_vm13, %v21000_v48 }
 0x70d   : > { %21759 = vmatmul.mubr.msk.f32.vlgmr.msra.gmra.mrb[12].mxu0 %vm5942_vm13, %v21001_v61 }
 0x70e   : > { %20996 = vmatmul.mubr.msk.f32.gmra.mrb[34].mxu1 %vm5942_vm13, %v28342_v30  ;;  %9641 = vmatprep.mubr.f32.mxu0 %v28383_v51 }
 0x70f   : > { %9123 = vmatprep.mubr.f32.mxu1 %v28383_v51  ;;  %v9398_v34 = vpop.permute.xlu0 %9397 }
 0x712   : > { %21004 = vmatmul.mubr.msk.f32.vlgmr.msra.gmra.mrb[28].mxu1 %vm5942_vm13, %v21000_v48 }
 0x713   : > { %22326 = vmatpush1.bf16.msk.msra.mxu1 %vm27729_vm12, %v22324_v7  ;;  %9129 = vmatprep.mubr.f32.mxu1 %v28383_v51  ;;  %v9425_v30 = vpop.permute.xlu0 %9424 }
 0x714   : > { %v28454_v47 = vpop.permute.xlu1 %9402 }
 0x716   : > { %21005 = vmatmul.mubr.msk.f32.gmra.mrb[30].mxu1 %vm5942_vm13, %v21001_v61 }
 0x717   : > { %9277 = vmatprep.mubr.f32.mxu1 %v28383_v51 }
 0x718   : > { %v28457_v57 = vpop.permute.xlu1 %9429 }
 0x71a   : > { %21012 = vmatmul.mubr.msk.f32.vlgmr.msra.gmra.mrb[32].mxu1 %vm5942_vm13, %v21000_v48 }
 0x71b   : > { %9283 = vmatprep.mubr.f32.mxu1 %v28383_v51 }
 0x71e   : > { %21013 = vmatmul.mubr.msk.f32.gmra.mrb[34].mxu1 %vm5942_vm13, %v21001_v61 }
 0x71f   : > { %13187 = vmatprep.mubr.f32.mxu1 %v28383_v51 }
 0x7d8   : > { %v9202_v29 = vpop.f32.mrb[8].mxu0 }
 0x7d9   : > { %v9381_v19 = vmax.f32 %v9202_v29, 0.0  ;;  %v9204_v28 = vpop.f32.mrb[9].mxu0 }
 0x7da   : > { %v9382_v32 = vmax.f32 %v9204_v28, 0.0 }
 0x7db   : > { %v9407_v16 = vmul.f32 %v9398_v34, %v9381_v19 }
 0x7dc   : > { %v9208_v39 = vpop.f32.mrb[10].mxu0  ;;  %v9408_v44 = vmul.f32 %v9398_v34, %v9382_v32 }
 0x7dd   : > { %v9388_v42 = vmax.f32 %v9208_v39, 0.0  ;;  %v9210_v56 = vpop.f32.mrb[11].mxu0  ;;  %v28460_v4 = vadd.f32 %v9425_v30, %v9407_v16 }
 0x7de   : > { %v9389_v41 = vmax.f32 %v9210_v56, 0.0  ;;  %v28465_v50 = vadd.f32 %v9425_v30, %v9408_v44 }
 0x7df   : > { %v9414_v24 = vmul.f32 %v28454_v47, %v9388_v42 }
 0x7e0   : > { %v9415_v37 = vmul.f32 %v28454_v47, %v9389_v41  ;;  %v21760_v49 = vpop.f32.mrb[12].mxu0 }
 0x7e1   : > { %v28463_v6 = vadd.f32 %v28457_v57, %v9414_v24  ;;  %v9392_v35 = vmax.f32 %v21760_v49, 0.0  ;;  %v9356_v12 = vpop.f32.mrb[13].mxu0 }
 0x7e2   : > { %v28468_v22 = vadd.f32 %v28457_v57, %v9415_v37  ;;  %v9385_v9 = vmax.f32 %v9356_v12, 0.0 }
 0x7e3   : > { %9455 = vst [vmem:[#allocation3 + $0x60] sm:$0xff] %v28463_v6  ;;  %v9418_v13 = vmul.f32 %v28454_v47, %v9392_v35  ;;  %v22355_v23 = vpack.c.bf16 %v28463_v6, %v28460_v4 }
 0x7e4   : > { %9456 = vst [vmem:[#allocation3 + $0x68] sm:$0xff] %v28468_v22  ;;  %v9411_v59 = vmul.f32 %v9398_v34, %v9385_v9  ;;  %v22353_v26 = vpack.c.bf16 %v28468_v22, %v28465_v50 }
 0x7e5   : > { %v9445_v0 = vadd.f32 %v28457_v57, %v9418_v13  ;;  %v9125_v31 = vpop.f32.mrb[28].mxu1 }
 0x7e6   : > { %v9438_v1 = vadd.f32 %v9425_v30, %v9411_v59  ;;  %v9379_v15 = vmax.f32 %v9125_v31, 0.0  ;;  %v9127_v11 = vpop.f32.mrb[29].mxu1 }
 0x7e7   : > { %9459 = vst [vmem:[#allocation3 + $0x80] sm:$0xff] %v9445_v0  ;;  %v9380_v25 = vmax.f32 %v9127_v11, 0.0 }
 0x7e8   : > { %v28478_v53 = vpack.c.bf16 %v9445_v0, %v9438_v1  ;;  %v9405_v20 = vmul.f32 %v9398_v34, %v9379_v15 }
 0x7e9   : > { %v9406_v52 = vmul.f32 %v9398_v34, %v9380_v25  ;;  %v9131_v54 = vpop.f32.mrb[30].mxu1 }
 0x7ea   : > { %v9386_v48 = vmax.f32 %v9131_v54, 0.0  ;;  %v9133_v43 = vpop.f32.mrb[31].mxu1  ;;  %v28488_v18 = vadd.f32 %v9425_v30, %v9405_v20 }
 0x7eb   : > { %v28480_v14 = vadd.f32 %v9425_v30, %v9406_v52  ;;  %v9387_v27 = vmax.f32 %v9133_v43, 0.0 }
 0x7ec   : > { %v9412_v5 = vmul.f32 %v28454_v47, %v9386_v48 }
 0x7ed   : > { %v9413_v60 = vmul.f32 %v28454_v47, %v9387_v27  ;;  %v9279_v8 = vpop.f32.mrb[32].mxu1  ;;  %v28486_v2 = vpack.i.bf16 %v28460_v4, %v28480_v14 }
 0x7ee   : > { %v28491_v17 = vadd.f32 %v28457_v57, %v9412_v5  ;;  %v9383_v36 = vmax.f32 %v9279_v8, 0.0  ;;  %v9281_v63 = vpop.f32.mrb[33].mxu1  ;;  %v21019_v5 = vld [vmem:[%s30556_s6 + $0x10] sm:$0xff] }
 0x7ef   : > { %v28494_v61 = vadd.f32 %v28457_v57, %v9413_v60  ;;  %v9384_v45 = vmax.f32 %v9281_v63, 0.0  ;;  %24176 = vrot.lane.b32.xlu0 %v28486_v2, %s25160_s27 }
 0x7f0   : > { %9453 = vst [vmem:[#allocation3 + $0x50] sm:$0xff] %v28491_v17  ;;  %v9409_v46 = vmul.f32 %v9398_v34, %v9383_v36  ;;  %v28501_v21 = vpack.i.bf16 %v28491_v17, %v28488_v18  ;;  %v22351_v33 = vpack.c.bf16 %v28491_v17, %v28488_v18  ;;  %v9475_v18 = vld [vmem:[%s30556_s6 + $0x8] sm:$0x3] }
 0x7f1   : > { %9454 = vst [vmem:[#allocation3 + $0x58] sm:$0xff] %v28494_v61  ;;  %v9410_v62 = vmul.f32 %v9398_v34, %v9384_v45  ;;  %v9285_v38 = vpop.f32.mrb[34].mxu1  ;;  %v28508_v10 = vpack.i.bf16 %v28463_v6, %v28494_v61  ;;  %v22349_v40 = vpack.c.bf16 %v28494_v61, %v28480_v14 }
 0x7f2   : > { %v28512_v7 = vadd.f32 %v9425_v30, %v9409_v46  ;;  %v9390_v29 = vmax.f32 %v9285_v38, 0.0  ;;  %v9287_v19 = vpop.f32.mrb[35].mxu1  ;;  %v12932_v38 = vld [vmem:[%s30563_s13] sm:$0xff] }
 0x7f3   : > { %v28514_v28 = vadd.f32 %v9425_v30, %v9410_v62  ;;  %v9391_v32 = vmax.f32 %v9287_v19, 0.0  ;;  %24186 = vrot.lane.b32.xlu0 %v28501_v21, %s25160_s27  ;;  %24181 = vrot.lane.b32.xlu1 %v28508_v10, %s25160_s27  ;;  %v21020_v19 = vld [vmem:[%s30556_s6 + $0x18] sm:$0x3] }
 0x7f4   : > { %v9416_v34 = vmul.f32 %v28454_v47, %v9390_v29  ;;  %v28523_v39 = vpack.i.bf16 %v28512_v7, %v28465_v50 }
 0x7f5   : > { %v9417_v16 = vmul.f32 %v28454_v47, %v9391_v32  ;;  %v28527_v42 = vpack.i.bf16 %v9438_v1, %v28514_v28 }
 0x7f6   : > { %v28530_v56 = vadd.f32 %v28457_v57, %v9416_v34  ;;  %v12933_v34 = vld [vmem:[%s30563_s13 + $0x8] sm:$0x3] }
 0x7f7   : > { %v28533_v44 = vadd.f32 %v28457_v57, %v9417_v16  ;;  %24191 = vrot.lane.b32.xlu1 %v28523_v39, %s25160_s27  ;;  %v28556_v57 = vpack.i.bf16 %v28383_v51, %v28383_v51 }
 0x7f8   : > { %9457 = vst [vmem:[#allocation3 + $0x70] sm:$0xff] %v28530_v56  ;;  %v28540_v41 = vpack.i.bf16 %v28530_v56, %v28468_v22  ;;  %v22359_v47 = vpack.c.bf16 %v28530_v56, %v28512_v7 }
 0x7f9   : > { %9458 = vst [vmem:[#allocation3 + $0x78] sm:$0xff] %v28533_v44  ;;  %v28546_v30 = vpack.i.bf16 %v9445_v0, %v28533_v44  ;;  %v22357_v24 = vpack.c.bf16 %v28533_v44, %v28514_v28 }
 0x7fa   : > { %24196 = vrot.lane.b32.xlu0 %v28540_v41, %s25160_s27 }
 0x7fb   : > { %24201 = vrot.lane.b32.xlu1 %v28527_v42, %s25160_s27 }
 0x7fe   : > { %24206 = vrot.lane.b32.xlu0 %v28546_v30, %s25160_s27 }
 0x7ff   : > { %24211 = vrot.lane.b32.xlu1 %v28556_v57, %s25160_s27 }
 0x802   : > { %24216 = vrot.lane.b32.xlu0 %v28486_v2, %s25167_s26 }
 0x803   : > { %24221 = vrot.lane.b32.xlu1 %v28508_v10, %s25167_s26 }
 0x806   : > { %24226 = vrot.lane.b32.xlu0 %v28501_v21, %s25167_s26 }
 0x807   : > { %24231 = vrot.lane.b32.xlu1 %v28523_v39, %s25167_s26 }
 0x80a   : > { %24236 = vrot.lane.b32.xlu0 %v28540_v41, %s25167_s26 }
 0x80b   : > { %24241 = vrot.lane.b32.xlu1 %v28527_v42, %s25167_s26 }
 0x80e   : > { %24246 = vrot.lane.b32.xlu0 %v28546_v30, %s25167_s26 }
 0x80f   : > { %24251 = vrot.lane.b32.xlu1 %v28556_v57, %s25167_s26 }
 0x812   : > { %24256 = vrot.lane.b32.xlu0 %v28486_v2, %s25164_s0 }
 0x813   : > { %24261 = vrot.lane.b32.xlu1 %v28508_v10, %s25164_s0 }
 0x816   : > { %24266 = vrot.lane.b32.xlu0 %v28501_v21, %s25164_s0 }
 0x817   : > { %24271 = vrot.lane.b32.xlu1 %v28523_v39, %s25164_s0 }
 0x81a   : > { %24276 = vrot.lane.b32.xlu0 %v28540_v41, %s25164_s0 }
 0x81b   : > { %24281 = vrot.lane.b32.xlu1 %v28527_v42, %s25164_s0 }
 0x81e   : > { %24286 = vrot.lane.b32.xlu0 %v28546_v30, %s25164_s0 }
 0x81f   : > { %24291 = vrot.lane.b32.xlu1 %v28556_v57, %s25164_s0 }
 0x822   : > { %24296 = vrot.lane.b32.xlu0 %v28486_v2, %s25166_s24 }
 0x823   : > { %24301 = vrot.lane.b32.xlu1 %v28508_v10, %s25166_s24 }
 0x826   : > { %24306 = vrot.lane.b32.xlu0 %v28501_v21, %s25166_s24 }
 0x827   : > { %24311 = vrot.lane.b32.xlu1 %v28523_v39, %s25166_s24 }
 0x82a   : > { %24316 = vrot.lane.b32.xlu0 %v28540_v41, %s25166_s24 }
 0x82b   : > { %24321 = vrot.lane.b32.xlu1 %v28527_v42, %s25166_s24 }
 0x82e   : > { %24326 = vrot.lane.b32.xlu0 %v28546_v30, %s25166_s24 }
 0x82f   : > { %24331 = vrot.lane.b32.xlu1 %v28556_v57, %s25166_s24 }
 0x832   : > { %24336 = vrot.lane.b32.xlu0 %v28486_v2, %s25168_s28 }
 0x833   : > { %24341 = vrot.lane.b32.xlu1 %v28508_v10, %s25168_s28 }
 0x836   : > { %24346 = vrot.lane.b32.xlu0 %v28501_v21, %s25168_s28 }
 0x837   : > { %24351 = vrot.lane.b32.xlu1 %v28523_v39, %s25168_s28 }
 0x83a   : > { %24356 = vrot.lane.b32.xlu0 %v28540_v41, %s25168_s28 }
 0x83b   : > { %24361 = vrot.lane.b32.xlu1 %v28527_v42, %s25168_s28 }
 0x83e   : > { %24366 = vrot.lane.b32.xlu0 %v28546_v30, %s25168_s28 }
 0x83f   : > { %24371 = vrot.lane.b32.xlu1 %v28556_v57, %s25168_s28 }
 0x842   : > { %24376 = vrot.lane.b32.xlu0 %v28486_v2, %s25169_s23 }
 0x843   : > { %24381 = vrot.lane.b32.xlu1 %v28508_v10, %s25169_s23 }
 0x846   : > { %24386 = vrot.lane.b32.xlu0 %v28501_v21, %s25169_s23 }
 0x847   : > { %24391 = vrot.lane.b32.xlu1 %v28523_v39, %s25169_s23 }
 0x84a   : > { %24396 = vrot.lane.b32.xlu0 %v28540_v41, %s25169_s23 }
 0x84b   : > { %24401 = vrot.lane.b32.xlu1 %v28527_v42, %s25169_s23 }
 0x84e   : > { %24406 = vrot.lane.b32.xlu0 %v28546_v30, %s25169_s23 }
 0x84f   : > { %24411 = vrot.lane.b32.xlu1 %v28556_v57, %s25169_s23 }
 0x852   : > { %24416 = vrot.lane.b32.xlu0 %v28486_v2, %s30618_s25 }
 0x853   : > { %24421 = vrot.lane.b32.xlu1 %v28508_v10, %s30618_s25 }
 0x856   : > { %24426 = vrot.lane.b32.xlu0 %v28501_v21, %s30618_s25 }
 0x857   : > { %24431 = vrot.lane.b32.xlu1 %v28523_v39, %s30618_s25 }
 0x85a   : > { %24436 = vrot.lane.b32.xlu0 %v28540_v41, %s30618_s25 }
 0x85b   : > { %24441 = vrot.lane.b32.xlu1 %v28527_v42, %s30618_s25 }
 0x85e   : > { %24446 = vrot.lane.b32.xlu0 %v28546_v30, %s30618_s25 }
 0x85f   : > { %24451 = vrot.lane.b32.xlu1 %v28556_v57, %s30618_s25 }
 0x861   : > { %v24177_v37 = vpop.permute.xlu0 %24176 }
 0x862   : > { %24456 = vrot.lane.b32.xlu0 %v28486_v2, %s25171_s18  ;;  %v24179_v49 = vunpack.i.h.bf16 %v24177_v37  ;;  %v24178_v35 = vunpack.i.l.bf16 %v24177_v37 }
 0x863   : > { %24461 = vrot.lane.b32.xlu1 %v28508_v10, %s25171_s18 }
 0x864   : > { %v9544_v11 = vsel %vm870_vm2, %v24178_v35, %v24179_v49 }
 0x865   : > { %v24187_v12 = vpop.permute.xlu0 %24186  ;;  %v24182_v9 = vpop.permute.xlu1 %24181 }
 0x866   : > { %v24189_v13 = vunpack.i.h.bf16 %v24187_v12  ;;  %v24188_v59 = vunpack.i.l.bf16 %v24187_v12  ;;  %v24184_v0 = vunpack.i.h.bf16 %v24182_v9  ;;  %v24183_v31 = vunpack.i.l.bf16 %v24182_v9  ;;  %24466 = vrot.lane.b32.xlu0 %v28501_v21, %s25171_s18 }
 0x867   : > { %24471 = vrot.lane.b32.xlu1 %v28523_v39, %s25171_s18 }
 0x868   : > { %v9543_v1 = vsel %vm870_vm2, %v24188_v59, %v24178_v35  ;;  %v9550_v15 = vsel %vm870_vm2, %v24189_v13, %v24183_v31  ;;  %v9551_v25 = vsel %vm870_vm2, %v24183_v31, %v24184_v0  ;;  %v21108_v13 = vld [vmem:[%s30563_s13 + $0x18] sm:$0x3] }
 0x869   : > { %v24192_v52 = vpop.permute.xlu1 %24191  ;;  %v22333_v54 = vpack.c.bf16 %v9551_v25, %v9544_v11  ;;  %v22335_v20 = vpack.c.bf16 %v9550_v15, %v9543_v1  ;;  %v9474_v15 = vld [vmem:[%s30556_s6] sm:$0xff] }
 0x86a   : > { %v24193_v48 = vunpack.i.l.bf16 %v24192_v52  ;;  %24476 = vrot.lane.b32.xlu0 %v28540_v41, %s25171_s18  ;;  %v24194_v43 = vunpack.i.h.bf16 %v24192_v52 }
 0x86b   : > { %22334 = vmatprep.subr.bf16.mxu0 %v22333_v54  ;;  %24481 = vrot.lane.b32.xlu1 %v28527_v42, %s25171_s18 }
 0x86c   : > { %22336 = vmatpush1.bf16.msra.mxu0 %v22335_v20  ;;  %v24197_v27 = vpop.permute.xlu0 %24196  ;;  %v9545_v36 = vsel %vm870_vm2, %v24179_v49, %v24193_v48  ;;  %v9546_v21 = vsel %vm870_vm2, %v24193_v48, %v24194_v43  ;;  %v21107_v49 = vld [vmem:[%s30563_s13 + $0x10] sm:$0xff] }
 0x86d   : > { %v24199_v60 = vunpack.i.h.bf16 %v24197_v27  ;;  %v24198_v8 = vunpack.i.l.bf16 %v24197_v27  ;;  %v24202_v2 = vpop.permute.xlu1 %24201 }
 0x86e   : > { %v24203_v63 = vunpack.i.l.bf16 %v24202_v2  ;;  %24486 = vrot.lane.b32.xlu0 %v28546_v30, %s25171_s18  ;;  %v24204_v46 = vunpack.i.h.bf16 %v24202_v2 }
 0x86f   : > { %v9552_v45 = vsel %vm870_vm2, %v24184_v0, %v24198_v8  ;;  %21021 = vmatmul.mubr.msk.f32.vlgmr.msra.gmra.mrb[14].mxu0 %vm1825_vm9, %v21019_v5  ;;  %24491 = vrot.lane.b32.xlu1 %v28556_v57, %s25171_s18  ;;  %v9553_v62 = vsel %vm870_vm2, %v24198_v8, %v24199_v60 }
 0x870   : > { %v24207_v10 = vpop.permute.xlu0 %24206  ;;  %9647 = vmatprep.mubr.f32.mxu0 %v28383_v51  ;;  %v22337_v29 = vpack.c.bf16 %v9553_v62, %v9546_v21  ;;  %v22339_v32 = vpack.c.bf16 %v9552_v45, %v9545_v36  ;;  %v9547_v41 = vsel %vm870_vm2, %v24194_v43, %v24203_v63  ;;  %v9548_v35 = vsel %vm870_vm2, %v24203_v63, %v24204_v46  ;;  %v21037_v63 = vld [vmem:[%s30556_s6 + $0x20] sm:$0xff] }
 0x871   : > { %v24209_v39 = vunpack.i.h.bf16 %v24207_v10  ;;  %v24208_v16 = vunpack.i.l.bf16 %v24207_v10  ;;  %v24212_v42 = vpop.permute.xlu1 %24211 }
 0x872   : > { %v24214_v30 = vunpack.i.h.bf16 %v24212_v42  ;;  %v24213_v57 = vunpack.i.l.bf16 %v24212_v42  ;;  %22338 = vmatprep.subr.bf16.mxu0 %v22337_v29  ;;  %12936 = vperm.xlu0 %23523, %v12932_v38  }
 0x873   : > { %v9554_v37 = vsel %vm870_vm2, %v24199_v60, %v24208_v16  ;;  %21022 = vmatmul.mubr.msk.f32.gmra.mrb[16].mxu0 %vm1825_vm9, %v21020_v19  ;;  %12941 = vperm.xlu1 %23524, %v12933_v34   ;;  %v9555_v12 = vsel %vm870_vm2, %v24208_v16, %v24209_v39  ;;  %v21038_v34 = vld [vmem:[%s30556_s6 + $0x28] sm:$0x3] }
 0x874   : > { %22340 = vmatpush1.bf16.msra.mxu0 %v22339_v32  ;;  %9718 = vmatprep.mubr.f32.mxu0 %v28383_v51  ;;  %v22341_v9 = vpack.c.bf16 %v9555_v12, %v9548_v35  ;;  %v22343_v59 = vpack.c.bf16 %v9554_v37, %v9547_v41  ;;  %v9549_v0 = vsel %vm870_vm2, %v24204_v46, %v24213_v57  ;;  %v24217_v14 = vpop.permute.xlu0 %24216 }
 0x875   : > { %v9556_v31 = vsel %vm870_vm2, %v24209_v39, %v24214_v30  ;;  %v24222_v50 = vpop.permute.xlu1 %24221  ;;  %v24219_v4 = vunpack.i.h.bf16 %v24217_v14  ;;  %v24218_v6 = vunpack.i.l.bf16 %v24217_v14 }
 0x876   : > { %12963 = vperm.xlu0 %23523, %v21107_v49   ;;  %22342 = vmatprep.subr.bf16.mxu0 %v22341_v9  ;;  %v22345_v1 = vpack.c.bf16 %v9556_v31, %v9549_v0 }
 0x877   : > { %21023 = vmatmul.mubr.msk.f32.vlgmr.msra.gmra.mrb[18].mxu0 %vm1825_vm9, %v21019_v5  ;;  %12968 = vperm.xlu1 %23524, %v21108_v13   ;;  %v10231_v61 = vsel %vm6638_vm14, %v24218_v6, %v24219_v4 }
 0x878   : > { %22344 = vmatpush1.bf16.msra.mxu0 %v22343_v59  ;;  %9724 = vmatprep.mubr.f32.mxu0 %v28383_v51  ;;  %v24227_v22 = vpop.permute.xlu0 %24226 }
 0x879   : > { %22346 = vmatprep.subr.bf16.mxu0 %v22345_v1  ;;  %v24229_v28 = vunpack.i.h.bf16 %v24227_v22  ;;  %v24228_v44 = vunpack.i.l.bf16 %v24227_v22 }
 0x87b   : > { %21024 = vmatmul.mubr.msk.f32.gmra.mrb[20].mxu0 %vm1825_vm9, %v21020_v19  ;;  %v10230_v52 = vsel %vm6638_vm14, %v24228_v44, %v24218_v6 }
 0x87c   : > { %9795 = vmatprep.mubr.f32.mxu0 %v28383_v51  ;;  %v24237_v17 = vpop.permute.xlu0 %24236 }
 0x87d   : > { %v24239_v56 = vunpack.i.h.bf16 %v24237_v17 }
 0x87f   : > { %21025 = vmatmul.mubr.msk.f32.vlgmr.msra.gmra.mrb[22].mxu0 %vm1825_vm9, %v21019_v5 }
 0x880   : > { %22348 = vmatpush3.bf16.msra.mxu0 %v22345_v1  ;;  %9801 = vmatprep.mubr.f32.mxu0 %v28383_v51 }
 0x881   : > { %22350 = vmatprep.subr.bf16.mxu0 %v22349_v40  ;;  %v24232_v40 = vpop.permute.xlu1 %24231 }
 0x882   : > { %v24234_v11 = vunpack.i.h.bf16 %v24232_v40  ;;  %v24233_v25 = vunpack.i.l.bf16 %v24232_v40 }
 0x883   : > { %21026 = vmatmul.mubr.msk.f32.gmra.mrb[24].mxu0 %vm1825_vm9, %v21020_v19 }
 0x884   : > { %21765 = vmatprep.mubr.msk.f32.mxu0 %vm1825_vm9, %v21019_v5  ;;  %v10233_v8 = vsel %vm6638_vm14, %v24233_v25, %v24234_v11  ;;  %v10232_v46 = vsel %vm6638_vm14, %v24219_v4, %v24233_v25  ;;  %v21047_v25 = vld [vmem:[%s30556_s6 + $0x30] sm:$0xff] }
 0x885   : > { %v24242_v20 = vpop.permute.xlu1 %24241 }
 0x886   : > { %v24243_v5 = vunpack.i.l.bf16 %v24242_v20 }
 0x887   : > { %21766 = vmatmul.mubr.msk.f32.vlgmr.msra.gmra.mrb[26].mxu0 %vm1825_vm9, %v21020_v19 }
 0x888   : > { %22352 = vmatpush1.bf16.msra.mxu0 %v22351_v33  ;;  %9953 = vmatprep.mubr.f32.mxu0 %v28383_v51  ;;  %v10234_v41 = vsel %vm6638_vm14, %v24234_v11, %v24243_v5 }
 0x889   : > { %22354 = vmatprep.subr.bf16.mxu0 %v22353_v26  ;;  %v24223_v26 = vunpack.i.l.bf16 %v24222_v50  ;;  %v24252_v21 = vpop.permute.xlu1 %24251 }
 0x88a   : > { %v24254_v19 = vunpack.i.h.bf16 %v24252_v21  ;;  %v24253_v32 = vunpack.i.l.bf16 %v24252_v21 }
 0x88b   : > { %21029 = vmatmul.mubr.msk.f32.vlgmr.msra.gmra.mrb[14].mxu0 %vm1825_vm9, %v9474_v15  ;;  %v10237_v54 = vsel %vm6638_vm14, %v24229_v28, %v24223_v26 }
 0x88c   : > { %22356 = vmatpush1.bf16.msra.mxu0 %v22355_v23  ;;  %9959 = vmatprep.mubr.f32.mxu0 %v28383_v51  ;;  %v24224_v23 = vunpack.i.h.bf16 %v24222_v50  ;;  %v22367_v60 = vpack.c.bf16 %v10237_v54, %v10230_v52 }
 0x88d   : > { %22358 = vmatprep.subr.bf16.mxu0 %v22357_v24  ;;  %v24247_v24 = vpop.permute.xlu0 %24246  ;;  %v24262_v30 = vpop.permute.xlu1 %24261 }
 0x88e   : > { %v10238_v33 = vsel %vm6638_vm14, %v24223_v26, %v24224_v23  ;;  %v24249_v48 = vunpack.i.h.bf16 %v24247_v24  ;;  %v24248_v43 = vunpack.i.l.bf16 %v24247_v24  ;;  %v24264_v9 = vunpack.i.h.bf16 %v24262_v30 }
 0x88f   : > { %21030 = vmatmul.mubr.msk.f32.gmra.mrb[16].mxu0 %vm1825_vm9, %v9475_v18  ;;  %v22365_v7 = vpack.c.bf16 %v10238_v33, %v10231_v61  ;;  %v24263_v13 = vunpack.i.l.bf16 %v24262_v30 }
 0x890   : > { %10030 = vmatprep.mubr.f32.mxu0 %v28383_v51  ;;  %v10242_v45 = vsel %vm6638_vm14, %v24248_v43, %v24249_v48  ;;  %v10241_v39 = vsel %vm6638_vm14, %v24239_v56, %v24248_v43  ;;  %v10243_v42 = vsel %vm6638_vm14, %v24249_v48, %v24254_v19 }
 0x891   : > { %v28773_v10 = vpop.permute.xlu0 %24256  ;;  %v22375_v37 = vpack.c.bf16 %v10241_v39, %v10234_v41  ;;  %v10627_v31 = vsel %vm1350_vm6, %v24263_v13, %v24264_v9  ;;  %v24272_v1 = vpop.permute.xlu1 %24271 }
 0x892   : > { %v24259_v35 = vunpack.i.h.bf16 %v28773_v10  ;;  %v24258_v12 = vunpack.i.l.bf16 %v28773_v10  ;;  %v24274_v6 = vunpack.i.h.bf16 %v24272_v1 }
 0x893   : > { %21031 = vmatmul.mubr.msk.f32.vlgmr.msra.gmra.mrb[18].mxu0 %vm1825_vm9, %v9474_v15 }
 0x894   : > { %22360 = vmatpush1.bf16.msra.mxu0 %v22359_v47  ;;  %10036 = vmatprep.mubr.f32.mxu0 %v28383_v51  ;;  %v24238_v47 = vunpack.i.l.bf16 %v24237_v17  ;;  %v10620_v0 = vsel %vm1350_vm6, %v24258_v12, %v24259_v35 }
 0x895   : > { %22362 = vmatprep.subr.bf16.mxu0 %v28478_v53  ;;  %v24267_v57 = vpop.permute.xlu0 %24266  ;;  %v24282_v61 = vpop.permute.xlu1 %24281 }
 0x896   : > { %v10240_v27 = vsel %vm6638_vm14, %v24238_v47, %v24239_v56  ;;  %v10239_v2 = vsel %vm6638_vm14, %v24224_v23, %v24238_v47  ;;  %v24268_v14 = vunpack.i.l.bf16 %v24267_v57  ;;  %v24273_v23 = vunpack.i.l.bf16 %v24272_v1 }
 0x897   : > { %21032 = vmatmul.mubr.msk.f32.gmra.mrb[20].mxu0 %vm1825_vm9, %v9475_v18  ;;  %v22369_v36 = vpack.c.bf16 %v10240_v27, %v10233_v8  ;;  %v22371_v62 = vpack.c.bf16 %v10239_v2, %v10232_v46  ;;  %v24284_v44 = vunpack.i.h.bf16 %v24282_v61  ;;  %v21048_v8 = vld [vmem:[%s30556_s6 + $0x38] sm:$0x3] }
 0x898   : > { %10107 = vmatprep.mubr.f32.mxu0 %v28383_v51  ;;  %v10619_v26 = vsel %vm1350_vm6, %v24268_v14, %v24258_v12  ;;  %v10622_v47 = vsel %vm1350_vm6, %v24273_v23, %v24274_v6  ;;  %v10621_v54 = vsel %vm1350_vm6, %v24259_v35, %v24273_v23  ;;  %v21057_v23 = vld [vmem:[%s30556_s6 + $0x40] sm:$0xff] }
 0x899   : > { %v24277_v59 = vpop.permute.xlu0 %24276 }
 0x89a   : > { %v24279_v50 = vunpack.i.h.bf16 %v24277_v59  ;;  %v24278_v22 = vunpack.i.l.bf16 %v24277_v59 }
 0x89b   : > { %21033 = vmatmul.mubr.msk.f32.vlgmr.msra.gmra.mrb[22].mxu0 %vm1825_vm9, %v9474_v15 }
 0x89c   : > { %22364 = vmatpush3.bf16.msra.mxu0 %v28478_v53  ;;  %10113 = vmatprep.mubr.f32.mxu0 %v28383_v51  ;;  %v24244_v53 = vunpack.i.h.bf16 %v24242_v20  ;;  %v10629_v28 = vsel %vm1350_vm6, %v24278_v22, %v24279_v50  ;;  %v10628_v24 = vsel %vm1350_vm6, %v24264_v9, %v24278_v22  ;;  %v24292_v20 = vpop.permute.xlu1 %24291 }
 0x89d   : > { %22366 = vmatprep.subr.bf16.mxu0 %v22365_v7  ;;  %v24287_v4 = vpop.permute.xlu0 %24286  ;;  %v24283_v7 = vunpack.i.l.bf16 %v24282_v61  ;;  %v22385_v11 = vpack.c.bf16 %v10629_v28, %v10622_v47  ;;  %v22387_v48 = vpack.c.bf16 %v10628_v24, %v10621_v54  ;;  %v21058_v47 = vld [vmem:[%s30556_s6 + $0x48] sm:$0x3] }
 0x89e   : > { %v10235_v38 = vsel %vm6638_vm14, %v24243_v5, %v24244_v53  ;;  %v10236_v16 = vsel %vm6638_vm14, %v24244_v53, %v24253_v32  ;;  %v24289_v33 = vunpack.i.h.bf16 %v24287_v4  ;;  %v24288_v40 = vunpack.i.l.bf16 %v24287_v4 }
 0x89f   : > { %21034 = vmatmul.mubr.msk.f32.gmra.mrb[24].mxu0 %vm1825_vm9, %v9475_v18  ;;  %v22373_v29 = vpack.c.bf16 %v10242_v45, %v10235_v38  ;;  %v22377_v49 = vpack.c.bf16 %v10243_v42, %v10236_v16  ;;  %v10624_v43 = vsel %vm1350_vm6, %v24283_v7, %v24284_v44  ;;  %v24294_v5 = vunpack.i.h.bf16 %v24292_v20 }
 0x8a0   : > { %21772 = vmatprep.mubr.msk.f32.mxu0 %vm1825_vm9, %v9474_v15  ;;  %v24269_v15 = vunpack.i.h.bf16 %v24267_v57  ;;  %v10631_v52 = vsel %vm1350_vm6, %v24288_v40, %v24289_v33  ;;  %v10630_v2 = vsel %vm1350_vm6, %v24279_v50, %v24288_v40  ;;  %v10623_v45 = vsel %vm1350_vm6, %v24274_v6, %v24283_v7  ;;  %v24302_v46 = vpop.permute.xlu1 %24301 }
 0x8a1   : > { %v28811_v27 = vpop.permute.xlu0 %24296  ;;  %v22389_v53 = vpack.c.bf16 %v10631_v52, %v10624_v43  ;;  %v24304_v19 = vunpack.i.h.bf16 %v24302_v46  ;;  %v24303_v32 = vunpack.i.l.bf16 %v24302_v46 }
 0x8a2   : > { %v10626_v17 = vsel %vm1350_vm6, %v24269_v15, %v24263_v13  ;;  %v24299_v10 = vunpack.i.h.bf16 %v28811_v27 }
 0x8a3   : > { %21773 = vmatmul.mubr.msk.f32.vlgmr.msra.gmra.mrb[26].mxu0 %vm1825_vm9, %v9475_v18  ;;  %v22381_v18 = vpack.c.bf16 %v10627_v31, %v10620_v0  ;;  %v22383_v56 = vpack.c.bf16 %v10626_v17, %v10619_v26  ;;  %v11016_v16 = vsel %vm1590_vm8, %v24303_v32, %v24304_v19 }
 0x8a4   : > { %22368 = vmatpush1.bf16.msra.mxu0 %v22367_v60  ;;  %10328 = vmatprep.mubr.f32.mxu0 %v28383_v51  ;;  %v24293_v60 = vunpack.i.l.bf16 %v24292_v20  ;;  %v24312_v42 = vpop.permute.xlu1 %24311 }
 0x8a5   : > { %22370 = vmatprep.subr.bf16.mxu0 %v22369_v36  ;;  %v24307_v21 = vpop.permute.xlu0 %24306  ;;  %v24314_v12 = vunpack.i.h.bf16 %v24312_v42  ;;  %v24313_v9 = vunpack.i.l.bf16 %v24312_v42 }
 0x8a6   : > { %v10625_v36 = vsel %vm1350_vm6, %v24284_v44, %v24293_v60  ;;  %v24309_v41 = vunpack.i.h.bf16 %v24307_v21  ;;  %v24308_v30 = vunpack.i.l.bf16 %v24307_v21 }
 0x8a7   : > { %21039 = vmatmul.mubr.msk.f32.vlgmr.msra.gmra.mrb[14].mxu0 %vm1825_vm9, %v21037_v63  ;;  %v11011_v22 = vsel %vm1590_vm8, %v24313_v9, %v24314_v12  ;;  %v11010_v17 = vsel %vm1590_vm8, %v24299_v10, %v24313_v9  ;;  %v21067_v9 = vld [vmem:[%s30556_s6 + $0x50] sm:$0xff] }
 0x8a8   : > { %22372 = vmatpush1.bf16.msra.mxu0 %v22371_v62  ;;  %10334 = vmatprep.mubr.f32.mxu0 %v28383_v51  ;;  %v22391_v62 = vpack.c.bf16 %v10630_v2, %v10623_v45  ;;  %v11015_v59 = vsel %vm1590_vm8, %v24309_v41, %v24303_v32  ;;  %v24322_v0 = vpop.permute.xlu1 %24321 }
 0x8a9   : > { %22374 = vmatprep.subr.bf16.mxu0 %v22373_v29  ;;  %v24298_v29 = vunpack.i.l.bf16 %v28811_v27  ;;  %v24324_v14 = vunpack.i.h.bf16 %v24322_v0 }
 0x8ab   : > { %21040 = vmatmul.mubr.msk.f32.gmra.mrb[16].mxu0 %vm1825_vm9, %v21038_v34  ;;  %v11009_v39 = vsel %vm1590_vm8, %v24298_v29, %v24299_v10  ;;  %v11008_v13 = vsel %vm1590_vm8, %v24308_v30, %v24298_v29 }
 0x8ac   : > { %10405 = vmatprep.mubr.f32.mxu0 %v28383_v51  ;;  %v22397_v57 = vpack.c.bf16 %v11016_v16, %v11009_v39  ;;  %v22399_v50 = vpack.c.bf16 %v11015_v59, %v11008_v13  ;;  %v24332_v61 = vpop.permute.xlu1 %24331 }
 0x8ad   : > { %v24334_v7 = vunpack.i.h.bf16 %v24332_v61 }
 0x8af   : > { %21041 = vmatmul.mubr.msk.f32.vlgmr.msra.gmra.mrb[18].mxu0 %vm1825_vm9, %v21037_v63 }
 0x8b0   : > { %22376 = vmatpush1.bf16.msra.mxu0 %v22375_v37  ;;  %10411 = vmatprep.mubr.f32.mxu0 %v28383_v51  ;;  %v24342_v54 = vpop.permute.xlu1 %24341 }
 0x8b1   : > { %22378 = vmatprep.subr.bf16.mxu0 %v22377_v49  ;;  %v24343_v60 = vunpack.i.l.bf16 %v24342_v54 }
 0x8b3   : > { %21042 = vmatmul.mubr.msk.f32.gmra.mrb[20].mxu0 %vm1825_vm9, %v21038_v34 }
 0x8b4   : > { %10482 = vmatprep.mubr.f32.mxu0 %v28383_v51 }
 0x8b7   : > { %21043 = vmatmul.mubr.msk.f32.vlgmr.msra.gmra.mrb[22].mxu0 %vm1825_vm9, %v21037_v63 }
 0x8b8   : > { %22380 = vmatpush3.bf16.msra.mxu0 %v22377_v49  ;;  %10488 = vmatprep.mubr.f32.mxu0 %v28383_v51 }
 0x8b9   : > { %22382 = vmatprep.subr.bf16.mxu0 %v22381_v18  ;;  %v24323_v18 = vunpack.i.l.bf16 %v24322_v0 }
 0x8bb   : > { %21044 = vmatmul.mubr.msk.f32.gmra.mrb[24].mxu0 %vm1825_vm9, %v21038_v34  ;;  %v11013_v40 = vsel %vm1590_vm8, %v24323_v18, %v24324_v14  ;;  %v11012_v52 = vsel %vm1590_vm8, %v24314_v12, %v24323_v18 }
 0x8bc   : > { %21779 = vmatprep.mubr.msk.f32.mxu0 %vm1825_vm9, %v21037_v63  ;;  %v10632_v63 = vsel %vm1350_vm6, %v24289_v33, %v24294_v5  ;;  %v24344_v5 = vunpack.i.h.bf16 %v24342_v54 }
 0x8bd   : > { %v22393_v38 = vpack.c.bf16 %v10632_v63, %v10625_v36  ;;  %v24352_v63 = vpop.permute.xlu1 %24351 }
 0x8be   : > { %v11405_v36 = vsel %vm7827_vm15, %v24343_v60, %v24344_v5  ;;  %v24354_v29 = vunpack.i.h.bf16 %v24352_v63 }
 0x8bf   : > { %21780 = vmatmul.mubr.msk.f32.vlgmr.msra.gmra.mrb[26].mxu0 %vm1825_vm9, %v21038_v34  ;;  %v24317_v34 = vpop.permute.xlu0 %24316 }
 0x8c0   : > { %22384 = vmatpush1.bf16.msra.mxu0 %v22383_v56  ;;  %10717 = vmatprep.mubr.f32.mxu0 %v28383_v51  ;;  %v24319_v37 = vunpack.i.h.bf16 %v24317_v34  ;;  %v24318_v49 = vunpack.i.l.bf16 %v24317_v34  ;;  %v24333_v56 = vunpack.i.l.bf16 %v24332_v61 }
 0x8c1   : > { %22386 = vmatprep.subr.bf16.mxu0 %v22385_v11  ;;  %v24362_v39 = vpop.permute.xlu1 %24361 }
 0x8c2   : > { %v11018_v15 = vsel %vm1590_vm8, %v24318_v49, %v24319_v37  ;;  %v11017_v4 = vsel %vm1590_vm8, %v24304_v19, %v24318_v49  ;;  %v11014_v11 = vsel %vm1590_vm8, %v24324_v14, %v24333_v56  ;;  %v24353_v19 = vunpack.i.l.bf16 %v24352_v63 }
 0x8c3   : > { %21049 = vmatmul.mubr.msk.f32.vlgmr.msra.gmra.mrb[14].mxu0 %vm1825_vm9, %v21047_v25  ;;  %v24327_v35 = vpop.permute.xlu0 %24326  ;;  %v22401_v6 = vpack.c.bf16 %v11018_v15, %v11011_v22  ;;  %v22403_v33 = vpack.c.bf16 %v11017_v4, %v11010_v17  ;;  %v24364_v30 = vunpack.i.h.bf16 %v24362_v39  ;;  %v21068_v22 = vld [vmem:[%s30556_s6 + $0x58] sm:$0x3] }
 0x8c4   : > { %22388 = vmatpush1.bf16.msra.mxu0 %v22387_v48  ;;  %10723 = vmatprep.mubr.f32.mxu0 %v28383_v51  ;;  %v24329_v31 = vunpack.i.h.bf16 %v24327_v35  ;;  %v24328_v1 = vunpack.i.l.bf16 %v24327_v35  ;;  %v11400_v49 = vsel %vm7827_vm15, %v24353_v19, %v24354_v29 }
 0x8c5   : > { %22390 = vmatprep.subr.bf16.mxu0 %v22389_v53  ;;  %v24372_v0 = vpop.permute.xlu1 %24371 }
 0x8c6   : > { %v11020_v26 = vsel %vm1590_vm8, %v24328_v1, %v24329_v31  ;;  %v11019_v24 = vsel %vm1590_vm8, %v24319_v37, %v24328_v1  ;;  %v24374_v18 = vunpack.i.h.bf16 %v24372_v0 }
 0x8c7   : > { %21050 = vmatmul.mubr.msk.f32.gmra.mrb[16].mxu0 %vm1825_vm9, %v21048_v8  ;;  %v28849_v28 = vpop.permute.xlu0 %24336  ;;  %v22405_v44 = vpack.c.bf16 %v11020_v26, %v11013_v40  ;;  %v22407_v48 = vpack.c.bf16 %v11019_v24, %v11012_v52 }
 0x8c8   : > { %10794 = vmatprep.mubr.f32.mxu0 %v28383_v51  ;;  %v24339_v27 = vunpack.i.h.bf16 %v28849_v28  ;;  %v24338_v53 = vunpack.i.l.bf16 %v28849_v28 }
 0x8c9   : > { %v24382_v17 = vpop.permute.xlu1 %24381 }
 0x8ca   : > { %v11398_v2 = vsel %vm7827_vm15, %v24338_v53, %v24339_v27  ;;  %v11399_v59 = vsel %vm7827_vm15, %v24339_v27, %v24353_v19  ;;  %v24383_v56 = vunpack.i.l.bf16 %v24382_v17  ;;  %v21077_v19 = vld [vmem:[%s30556_s6 + $0x60] sm:$0xff] }
 0x8cb   : > { %21051 = vmatmul.mubr.msk.f32.vlgmr.msra.gmra.mrb[18].mxu0 %vm1825_vm9, %v21047_v25  ;;  %v24347_v20 = vpop.permute.xlu0 %24346  ;;  %v22413_v21 = vpack.c.bf16 %v11405_v36, %v11398_v2 }
 0x8cc   : > { %22392 = vmatpush1.bf16.msra.mxu0 %v22391_v62  ;;  %10800 = vmatprep.mubr.f32.mxu0 %v28383_v51  ;;  %v24349_v45 = vunpack.i.h.bf16 %v24347_v20  ;;  %v24348_v46 = vunpack.i.l.bf16 %v24347_v20 }
 0x8cd   : > { %22394 = vmatprep.subr.bf16.mxu0 %v22393_v38 }
 0x8ce   : > { %v11397_v32 = vsel %vm7827_vm15, %v24348_v46, %v24338_v53  ;;  %v11404_v34 = vsel %vm7827_vm15, %v24349_v45, %v24343_v60 }
 0x8cf   : > { %21052 = vmatmul.mubr.msk.f32.gmra.mrb[20].mxu0 %vm1825_vm9, %v21048_v8  ;;  %v22415_v37 = vpack.c.bf16 %v11404_v34, %v11397_v32 }
 0x8d0   : > { %10871 = vmatprep.mubr.f32.mxu0 %v28383_v51 }
 0x8d3   : > { %21053 = vmatmul.mubr.msk.f32.vlgmr.msra.gmra.mrb[22].mxu0 %vm1825_vm9, %v21047_v25 }
 0x8d4   : > { %22396 = vmatpush3.bf16.msra.mxu0 %v22393_v38  ;;  %10877 = vmatprep.mubr.f32.mxu0 %v28383_v51 }
 0x8d5   : > { %22398 = vmatprep.subr.bf16.mxu0 %v22397_v57  ;;  %v24363_v57 = vunpack.i.l.bf16 %v24362_v39 }
 0x8d7   : > { %21054 = vmatmul.mubr.msk.f32.gmra.mrb[24].mxu0 %vm1825_vm9, %v21048_v8  ;;  %v11402_v1 = vsel %vm7827_vm15, %v24363_v57, %v24364_v30  ;;  %v11401_v26 = vsel %vm7827_vm15, %v24354_v29, %v24363_v57 }
 0x8d8   : > { %21786 = vmatprep.mubr.msk.f32.mxu0 %vm1825_vm9, %v21047_v25  ;;  %v11021_v25 = vsel %vm1590_vm8, %v24329_v31, %v24334_v7  ;;  %v24384_v7 = vunpack.i.h.bf16 %v24382_v17 }
 0x8d9   : > { %v22409_v43 = vpack.c.bf16 %v11021_v25, %v11014_v11  ;;  %v24392_v25 = vpop.permute.xlu1 %24391 }
 0x8da   : > { %v11794_v11 = vsel %vm1825_vm9, %v24383_v56, %v24384_v7  ;;  %v24394_v53 = vunpack.i.h.bf16 %v24392_v25 }
 0x8db   : > { %21787 = vmatmul.mubr.msk.f32.vlgmr.msra.gmra.mrb[26].mxu0 %vm1825_vm9, %v21048_v8  ;;  %v24357_v8 = vpop.permute.xlu0 %24356 }
 0x8dc   : > { %22400 = vmatpush1.bf16.msra.mxu0 %v22399_v50  ;;  %11106 = vmatprep.mubr.f32.mxu0 %v28383_v51  ;;  %v24359_v62 = vunpack.i.h.bf16 %v24357_v8  ;;  %v24358_v38 = vunpack.i.l.bf16 %v24357_v8  ;;  %v24373_v50 = vunpack.i.l.bf16 %v24372_v0 }
 0x8dd   : > { %22402 = vmatprep.subr.bf16.mxu0 %v22401_v6  ;;  %v24402_v2 = vpop.permute.xlu1 %24401 }
 0x8de   : > { %v11407_v41 = vsel %vm7827_vm15, %v24358_v38, %v24359_v62  ;;  %v11406_v35 = vsel %vm7827_vm15, %v24344_v5, %v24358_v38  ;;  %v11403_v6 = vsel %vm7827_vm15, %v24364_v30, %v24373_v50  ;;  %v24393_v5 = vunpack.i.l.bf16 %v24392_v25 }
 0x8df   : > { %21059 = vmatmul.mubr.msk.f32.vlgmr.msra.gmra.mrb[14].mxu0 %vm1825_vm9, %v21057_v23  ;;  %v24367_v10 = vpop.permute.xlu0 %24366  ;;  %v22417_v12 = vpack.c.bf16 %v11407_v41, %v11400_v49  ;;  %v22419_v31 = vpack.c.bf16 %v11406_v35, %v11399_v59  ;;  %v24404_v46 = vunpack.i.h.bf16 %v24402_v2  ;;  %v21078_v49 = vld [vmem:[%s30556_s6 + $0x68] sm:$0x3] }
 0x8e0   : > { %22404 = vmatpush1.bf16.msra.mxu0 %v22403_v33  ;;  %11112 = vmatprep.mubr.f32.mxu0 %v28383_v51  ;;  %v24369_v16 = vunpack.i.h.bf16 %v24367_v10  ;;  %v24368_v42 = vunpack.i.l.bf16 %v24367_v10  ;;  %v11789_v38 = vsel %vm1825_vm9, %v24393_v5, %v24394_v53 }
 0x8e1   : > { %22406 = vmatprep.subr.bf16.mxu0 %v22405_v44  ;;  %v24412_v39 = vpop.permute.xlu1 %24411 }
 0x8e2   : > { %v11409_v13 = vsel %vm7827_vm15, %v24368_v42, %v24369_v16  ;;  %v11408_v4 = vsel %vm7827_vm15, %v24359_v62, %v24368_v42  ;;  %v24414_v57 = vunpack.i.h.bf16 %v24412_v39 }
 0x8e3   : > { %21060 = vmatmul.mubr.msk.f32.gmra.mrb[16].mxu0 %vm1825_vm9, %v21058_v47  ;;  %v28889_v15 = vpop.permute.xlu0 %24376  ;;  %v22421_v14 = vpack.c.bf16 %v11409_v13, %v11402_v1  ;;  %v22423_v33 = vpack.c.bf16 %v11408_v4, %v11401_v26 }
 0x8e4   : > { %11183 = vmatprep.mubr.f32.mxu0 %v28383_v51  ;;  %v28865_v51 = vld [vmem:[#allocation2 + $0x40] sm:$0xff]  ;;  %v24379_v28 = vunpack.i.h.bf16 %v28889_v15  ;;  %v24378_v44 = vunpack.i.l.bf16 %v28889_v15 }
 0x8e5   : > { %v24422_v59 = vpop.permute.xlu1 %24421 }
 0x8e6   : > { %v11787_v24 = vsel %vm1825_vm9, %v24378_v44, %v24379_v28  ;;  %v11788_v34 = vsel %vm1825_vm9, %v24379_v28, %v24393_v5  ;;  %v24423_v50 = vunpack.i.l.bf16 %v24422_v59  ;;  %v21087_v5 = vld [vmem:[%s30556_s6 + $0x70] sm:$0xff] }
 0x8e7   : > { %21061 = vmatmul.mubr.msk.f32.vlgmr.msra.gmra.mrb[18].mxu0 %vm1825_vm9, %v21057_v23  ;;  %v24387_v61 = vpop.permute.xlu0 %24386  ;;  %v22429_v20 = vpack.c.bf16 %v11794_v11, %v11787_v24 }
 0x8e8   : > { %22408 = vmatpush1.bf16.msra.mxu0 %v22407_v48  ;;  %11189 = vmatprep.mubr.f32.mxu0 %v28865_v51  ;;  %v24389_v52 = vunpack.i.h.bf16 %v24387_v61  ;;  %v24388_v54 = vunpack.i.l.bf16 %v24387_v61 }
 0x8e9   : > { %22410 = vmatprep.subr.bf16.mxu0 %v22409_v43 }
 0x8ea   : > { %v11786_v60 = vsel %vm1825_vm9, %v24388_v54, %v24378_v44  ;;  %v11793_v8 = vsel %vm1825_vm9, %v24389_v52, %v24383_v56 }
 0x8eb   : > { %21062 = vmatmul.mubr.msk.f32.gmra.mrb[20].mxu0 %vm1825_vm9, %v21058_v47  ;;  %v22431_v62 = vpack.c.bf16 %v11793_v8, %v11786_v60 }
 0x8ec   : > { %11260 = vmatprep.mubr.f32.mxu0 %v28865_v51 }
 0x8ef   : > { %21063 = vmatmul.mubr.msk.f32.vlgmr.msra.gmra.mrb[22].mxu0 %vm1825_vm9, %v21057_v23 }
 0x8f0   : > { %22412 = vmatpush3.bf16.msra.mxu0 %v22409_v43  ;;  %11266 = vmatprep.mubr.f32.mxu0 %v28865_v51 }
 0x8f1   : > { %22414 = vmatprep.subr.bf16.mxu0 %v22413_v21  ;;  %v24403_v21 = vunpack.i.l.bf16 %v24402_v2 }
 0x8f3   : > { %21064 = vmatmul.mubr.msk.f32.gmra.mrb[24].mxu0 %vm1825_vm9, %v21058_v47  ;;  %v11791_v42 = vsel %vm1825_vm9, %v24403_v21, %v24404_v46  ;;  %v11790_v13 = vsel %vm1825_vm9, %v24394_v53, %v24403_v21 }
 0x8f4   : > { %21793 = vmatprep.mubr.msk.f32.mxu0 %vm1825_vm9, %v21057_v23  ;;  %v11410_v23 = vsel %vm7827_vm15, %v24369_v16, %v24374_v18  ;;  %v24424_v18 = vunpack.i.h.bf16 %v24422_v59 }
 0x8f5   : > { %v22425_v40 = vpack.c.bf16 %v11410_v23, %v11403_v6  ;;  %v24432_v23 = vpop.permute.xlu1 %24431 }
 0x8f6   : > { %v12183_v6 = vsel %vm8620_vm0, %v24423_v50, %v24424_v18  ;;  %v24434_v44 = vunpack.i.h.bf16 %v24432_v23 }
 0x8f7   : > { %21794 = vmatmul.mubr.msk.f32.vlgmr.msra.gmra.mrb[26].mxu0 %vm1825_vm9, %v21058_v47  ;;  %v24397_v47 = vpop.permute.xlu0 %24396 }
 0x8f8   : > { %22416 = vmatpush1.bf16.msra.mxu0 %v22415_v37  ;;  %11495 = vmatprep.mubr.f32.mxu0 %v28865_v51  ;;  %v24399_v48 = vunpack.i.h.bf16 %v24397_v47  ;;  %v24398_v43 = vunpack.i.l.bf16 %v24397_v47  ;;  %v24413_v37 = vunpack.i.l.bf16 %v24412_v39 }
 0x8f9   : > { %22418 = vmatprep.subr.bf16.mxu0 %v22417_v12  ;;  %v24442_v24 = vpop.permute.xlu1 %24441 }
 0x8fa   : > { %v11796_v45 = vsel %vm1825_vm9, %v24398_v43, %v24399_v48  ;;  %v11795_v10 = vsel %vm1825_vm9, %v24384_v7, %v24398_v43  ;;  %v11792_v12 = vsel %vm1825_vm9, %v24404_v46, %v24413_v37  ;;  %v24433_v7 = vunpack.i.l.bf16 %v24432_v23 }
 0x8fb   : > { %21069 = vmatmul.mubr.msk.f32.vlgmr.msra.gmra.mrb[14].mxu0 %vm1825_vm9, %v21067_v9  ;;  %v24407_v27 = vpop.permute.xlu0 %24406  ;;  %v22433_v29 = vpack.c.bf16 %v11796_v45, %v11789_v38  ;;  %v22435_v16 = vpack.c.bf16 %v11795_v10, %v11788_v34  ;;  %v24444_v54 = vunpack.i.h.bf16 %v24442_v24  ;;  %v21088_v38 = vld [vmem:[%s30556_s6 + $0x78] sm:$0x3] }
 0x8fc   : > { %22420 = vmatpush1.bf16.msra.mxu0 %v22419_v31  ;;  %11501 = vmatprep.mubr.f32.mxu0 %v28865_v51  ;;  %v24409_v36 = vunpack.i.h.bf16 %v24407_v27  ;;  %v24408_v63 = vunpack.i.l.bf16 %v24407_v27  ;;  %v12178_v43 = vsel %vm8620_vm0, %v24433_v7, %v24434_v44 }
 0x8fd   : > { %22422 = vmatprep.subr.bf16.mxu0 %v22421_v14  ;;  %v24452_v2 = vpop.permute.xlu1 %24451 }
 0x8fe   : > { %v11798_v32 = vsel %vm1825_vm9, %v24408_v63, %v24409_v36  ;;  %v11797_v35 = vsel %vm1825_vm9, %v24399_v48, %v24408_v63  ;;  %v24454_v21 = vunpack.i.h.bf16 %v24452_v2 }
 0x8ff   : > { %21070 = vmatmul.mubr.msk.f32.gmra.mrb[16].mxu0 %vm1825_vm9, %v21068_v22  ;;  %v28927_v41 = vpop.permute.xlu0 %24416  ;;  %v22437_v30 = vpack.c.bf16 %v11798_v32, %v11791_v42  ;;  %v22439_v31 = vpack.c.bf16 %v11797_v35, %v11790_v13 }
 0x900   : > { %11572 = vmatprep.mubr.f32.mxu0 %v28865_v51  ;;  %v24419_v15 = vunpack.i.h.bf16 %v28927_v41  ;;  %v24418_v14 = vunpack.i.l.bf16 %v28927_v41 }
 0x901   : > { %v24462_v34 = vpop.permute.xlu1 %24461 }
 0x902   : > { %v12176_v4 = vsel %vm8620_vm0, %v24418_v14, %v24419_v15  ;;  %v12177_v8 = vsel %vm8620_vm0, %v24419_v15, %v24433_v7  ;;  %v24463_v37 = vunpack.i.l.bf16 %v24462_v34  ;;  %v21097_v7 = vld [vmem:[%s30556_s6 + $0x80] sm:$0xff] }
 0x903   : > { %21071 = vmatmul.mubr.msk.f32.vlgmr.msra.gmra.mrb[18].mxu0 %vm1825_vm9, %v21067_v9  ;;  %v24427_v0 = vpop.permute.xlu0 %24426  ;;  %v22445_v61 = vpack.c.bf16 %v12183_v6, %v12176_v4 }
 0x904   : > { %22424 = vmatpush1.bf16.msra.mxu0 %v22423_v33  ;;  %11578 = vmatprep.mubr.f32.mxu0 %v28865_v51  ;;  %v24429_v26 = vunpack.i.h.bf16 %v24427_v0  ;;  %v24428_v17 = vunpack.i.l.bf16 %v24427_v0 }
 0x905   : > { %22426 = vmatprep.subr.bf16.mxu0 %v22425_v40 }
 0x906   : > { %v12175_v56 = vsel %vm8620_vm0, %v24428_v17, %v24418_v14  ;;  %v12182_v47 = vsel %vm8620_vm0, %v24429_v26, %v24423_v50 }
 0x907   : > { %21072 = vmatmul.mubr.msk.f32.gmra.mrb[20].mxu0 %vm1825_vm9, %v21068_v22  ;;  %v22447_v48 = vpack.c.bf16 %v12182_v47, %v12175_v56 }
 0x908   : > { %11649 = vmatprep.mubr.f32.mxu0 %v28865_v51 }
 0x90b   : > { %21073 = vmatmul.mubr.msk.f32.vlgmr.msra.gmra.mrb[22].mxu0 %vm1825_vm9, %v21067_v9 }
 0x90c   : > { %22428 = vmatpush3.bf16.msra.mxu0 %v22425_v40  ;;  %11655 = vmatprep.mubr.f32.mxu0 %v28865_v51 }
 0x90d   : > { %22430 = vmatprep.subr.bf16.mxu0 %v22429_v20  ;;  %v24443_v20 = vunpack.i.l.bf16 %v24442_v24 }
 0x90f   : > { %21074 = vmatmul.mubr.msk.f32.gmra.mrb[24].mxu0 %vm1825_vm9, %v21068_v22  ;;  %v12180_v63 = vsel %vm8620_vm0, %v24443_v20, %v24444_v54  ;;  %v12179_v32 = vsel %vm8620_vm0, %v24434_v44, %v24443_v20 }
 0x910   : > { %21800 = vmatprep.mubr.msk.f32.mxu0 %vm1825_vm9, %v21067_v9  ;;  %v11799_v9 = vsel %vm1825_vm9, %v24409_v36, %v24414_v57  ;;  %v24464_v57 = vunpack.i.h.bf16 %v24462_v34 }
 0x911   : > { %v22441_v1 = vpack.c.bf16 %v11799_v9, %v11792_v12  ;;  %v24472_v9 = vpop.permute.xlu1 %24471 }
 0x912   : > { %v12572_v12 = vsel %vm9017_vm1, %v24463_v37, %v24464_v57  ;;  %v24474_v14 = vunpack.i.h.bf16 %v24472_v9 }
 0x913   : > { %21801 = vmatmul.mubr.msk.f32.vlgmr.msra.gmra.mrb[26].mxu0 %vm1825_vm9, %v21068_v22  ;;  %v24437_v22 = vpop.permute.xlu0 %24436 }
 0x914   : > { %22432 = vmatpush1.bf16.msra.mxu0 %v22431_v62  ;;  %11884 = vmatprep.mubr.f32.mxu0 %v28865_v51  ;;  %v24439_v33 = vunpack.i.h.bf16 %v24437_v22  ;;  %v24438_v40 = vunpack.i.l.bf16 %v24437_v22  ;;  %v24453_v62 = vunpack.i.l.bf16 %v24452_v2 }
 0x915   : > { %22434 = vmatprep.subr.bf16.mxu0 %v22433_v29  ;;  %v24482_v4 = vpop.permute.xlu1 %24481 }
 0x916   : > { %v12185_v52 = vsel %vm8620_vm0, %v24438_v40, %v24439_v33  ;;  %v12184_v27 = vsel %vm8620_vm0, %v24424_v18, %v24438_v40  ;;  %v12181_v29 = vsel %vm8620_vm0, %v24444_v54, %v24453_v62  ;;  %v24473_v18 = vunpack.i.l.bf16 %v24472_v9 }
 0x917   : > { %21079 = vmatmul.mubr.msk.f32.vlgmr.msra.gmra.mrb[14].mxu0 %vm1825_vm9, %v21077_v19  ;;  %v24447_v28 = vpop.permute.xlu0 %24446  ;;  %v22449_v53 = vpack.c.bf16 %v12185_v52, %v12178_v43  ;;  %v22451_v36 = vpack.c.bf16 %v12184_v27, %v12177_v8  ;;  %v24484_v17 = vunpack.i.h.bf16 %v24482_v4 }
 0x918   : > { %22436 = vmatpush1.bf16.msra.mxu0 %v22435_v16  ;;  %11890 = vmatprep.mubr.f32.mxu0 %v28865_v51  ;;  %v24449_v11 = vunpack.i.h.bf16 %v24447_v28  ;;  %v24448_v25 = vunpack.i.l.bf16 %v24447_v28  ;;  %v12567_v40 = vsel %vm9017_vm1, %v24473_v18, %v24474_v14 }
 0x919   : > { %22438 = vmatprep.subr.bf16.mxu0 %v22437_v30  ;;  %v24492_v24 = vpop.permute.xlu1 %24491 }
 0x91a   : > { %v12187_v60 = vsel %vm8620_vm0, %v24448_v25, %v24449_v11  ;;  %v12186_v10 = vsel %vm8620_vm0, %v24439_v33, %v24448_v25  ;;  %v24494_v54 = vunpack.i.h.bf16 %v24492_v24  ;;  %v24493_v20 = vunpack.i.l.bf16 %v24492_v24 }
 0x91b   : > { %21080 = vmatmul.mubr.msk.f32.gmra.mrb[16].mxu0 %vm1825_vm9, %v21078_v49  ;;  %v28965_v45 = vpop.permute.xlu0 %24456  ;;  %v22453_v46 = vpack.c.bf16 %v12187_v60, %v12180_v63  ;;  %v22455_v16 = vpack.c.bf16 %v12186_v10, %v12179_v32 }
 0x91c   : > { %11961 = vmatprep.mubr.f32.mxu0 %v28865_v51  ;;  %v24459_v41 = vunpack.i.h.bf16 %v28965_v45  ;;  %v24458_v30 = vunpack.i.l.bf16 %v28965_v45  ;;  %v12570_v27 = vsel %vm9017_vm1, %v24484_v17, %v24493_v20 }
 0x91e   : > { %v12565_v35 = vsel %vm9017_vm1, %v24458_v30, %v24459_v41  ;;  %v12566_v47 = vsel %vm9017_vm1, %v24459_v41, %v24473_v18 }
 0x91f   : > { %21081 = vmatmul.mubr.msk.f32.vlgmr.msra.gmra.mrb[18].mxu0 %vm1825_vm9, %v21077_v19  ;;  %v24467_v39 = vpop.permute.xlu0 %24466  ;;  %v22461_v0 = vpack.c.bf16 %v12572_v12, %v12565_v35 }
 0x920   : > { %22440 = vmatpush1.bf16.msra.mxu0 %v22439_v31  ;;  %11967 = vmatprep.mubr.f32.mxu0 %v28865_v51  ;;  %v24469_v13 = vunpack.i.h.bf16 %v24467_v39  ;;  %v24468_v59 = vunpack.i.l.bf16 %v24467_v39 }
 0x921   : > { %22442 = vmatprep.subr.bf16.mxu0 %v22441_v1 }
 0x922   : > { %v12564_v50 = vsel %vm9017_vm1, %v24468_v59, %v24458_v30  ;;  %v12571_v22 = vsel %vm9017_vm1, %v24469_v13, %v24463_v37 }
 0x923   : > { %21082 = vmatmul.mubr.msk.f32.gmra.mrb[20].mxu0 %vm1825_vm9, %v21078_v49  ;;  %v22463_v33 = vpack.c.bf16 %v12571_v22, %v12564_v50 }
 0x924   : > { %12038 = vmatprep.mubr.f32.mxu0 %v28865_v51 }
 0x927   : > { %21083 = vmatmul.mubr.msk.f32.vlgmr.msra.gmra.mrb[22].mxu0 %vm1825_vm9, %v21077_v19 }
 0x928   : > { %22444 = vmatpush3.bf16.msra.mxu0 %v22441_v1  ;;  %12044 = vmatprep.mubr.f32.mxu0 %v28865_v51 }
 0x929   : > { %22446 = vmatprep.subr.bf16.mxu0 %v22445_v61  ;;  %v24483_v61 = vunpack.i.l.bf16 %v24482_v4 }
 0x92b   : > { %21084 = vmatmul.mubr.msk.f32.gmra.mrb[24].mxu0 %vm1825_vm9, %v21078_v49  ;;  %v12569_v25 = vsel %vm9017_vm1, %v24483_v61, %v24484_v17 }
 0x92c   : > { %21807 = vmatprep.mubr.msk.f32.mxu0 %vm1825_vm9, %v21077_v19  ;;  %v12188_v19 = vsel %vm8620_vm0, %v24449_v11, %v24454_v21 }
 0x92d   : > { %v22457_v42 = vpack.c.bf16 %v12188_v19, %v12181_v29 }
 0x92f   : > { %21808 = vmatmul.mubr.msk.f32.vlgmr.msra.gmra.mrb[26].mxu0 %vm1825_vm9, %v21078_v49  ;;  %v24477_v49 = vpop.permute.xlu0 %24476 }
 0x930   : > { %22448 = vmatpush1.bf16.msra.mxu0 %v22447_v48  ;;  %12273 = vmatprep.mubr.f32.mxu0 %v28865_v51  ;;  %v24479_v31 = vunpack.i.h.bf16 %v24477_v49  ;;  %v24478_v1 = vunpack.i.l.bf16 %v24477_v49  ;;  %v21098_v48 = vld [vmem:[%s30556_s6 + $0x88] sm:$0x3] }
 0x931   : > { %22450 = vmatprep.subr.bf16.mxu0 %v22449_v53 }
 0x932   : > { %v12574_v26 = vsel %vm9017_vm1, %v24478_v1, %v24479_v31  ;;  %v12573_v28 = vsel %vm9017_vm1, %v24464_v57, %v24478_v1 }
 0x933   : > { %21089 = vmatmul.mubr.msk.f32.vlgmr.msra.gmra.mrb[14].mxu0 %vm1825_vm9, %v21087_v5  ;;  %v24487_v15 = vpop.permute.xlu0 %24486  ;;  %v22465_v44 = vpack.c.bf16 %v12574_v26, %v12567_v40  ;;  %v22467_v11 = vpack.c.bf16 %v12573_v28, %v12566_v47 }
 0x934   : > { %22452 = vmatpush1.bf16.msra.mxu0 %v22451_v36  ;;  %12279 = vmatprep.mubr.f32.mxu0 %v28865_v51  ;;  %v24489_v6 = vunpack.i.h.bf16 %v24487_v15  ;;  %v24488_v23 = vunpack.i.l.bf16 %v24487_v15 }
 0x935   : > { %22454 = vmatprep.subr.bf16.mxu0 %v22453_v46  ;;  %v29026_v46 = vpop.permute.xlu1 %12941 }
 0x936   : > { %v12576_v56 = vsel %vm9017_vm1, %v24488_v23, %v24489_v6  ;;  %v12575_v43 = vsel %vm9017_vm1, %v24479_v31, %v24488_v23  ;;  %v12577_v53 = vsel %vm9017_vm1, %v24489_v6, %v24494_v54 }
 0x937   : > { %21090 = vmatmul.mubr.msk.f32.gmra.mrb[16].mxu0 %vm1825_vm9, %v21088_v38  ;;  %v22469_v52 = vpack.c.bf16 %v12576_v56, %v12569_v25  ;;  %v22473_v8 = vpack.c.bf16 %v12577_v53, %v12570_v27  ;;  %v29024_v2 = vpop.permute.xlu0 %12936 }
 0x938   : > { %12350 = vmatprep.mubr.f32.mxu0 %v28865_v51 }
 0x939   : > { %v12969_v41 = vpop.permute.xlu1 %12968 }
 0x93b   : > { %21091 = vmatmul.mubr.msk.f32.vlgmr.msra.gmra.mrb[18].mxu0 %vm1825_vm9, %v21087_v5 }
 0x93c   : > { %22456 = vmatpush1.bf16.msra.mxu0 %v22455_v16  ;;  %12356 = vmatprep.mubr.f32.mxu0 %v28865_v51 }
 0x93d   : > { %22458 = vmatprep.subr.bf16.mxu0 %v22457_v42 }
 0x93f   : > { %21092 = vmatmul.mubr.msk.f32.gmra.mrb[20].mxu0 %vm1825_vm9, %v21088_v38 }
 0x940   : > { %12427 = vmatprep.mubr.f32.mxu0 %v28865_v51 }
 0x943   : > { %21093 = vmatmul.mubr.msk.f32.vlgmr.msra.gmra.mrb[22].mxu0 %vm1825_vm9, %v21087_v5 }
 0x944   : > { %22460 = vmatpush3.bf16.msra.mxu0 %v22457_v42  ;;  %12433 = vmatprep.mubr.f32.mxu0 %v28865_v51 }
 0x945   : > { %22462 = vmatprep.subr.bf16.mxu0 %v22461_v0 }
 0x947   : > { %21094 = vmatmul.mubr.msk.f32.gmra.mrb[24].mxu0 %vm1825_vm9, %v21088_v38 }
 0x948   : > { %21814 = vmatprep.mubr.msk.f32.mxu0 %vm1825_vm9, %v21087_v5  ;;  %v12568_v5 = vsel %vm9017_vm1, %v24474_v14, %v24483_v61 }
 0x949   : > { %v22471_v60 = vpack.c.bf16 %v12575_v43, %v12568_v5 }
 0x94b   : > { %21815 = vmatmul.mubr.msk.f32.vlgmr.msra.gmra.mrb[26].mxu0 %vm1825_vm9, %v21088_v38  ;;  %v29029_v38 = vpop.permute.xlu0 %12963 }
 0x94c   : > { %22464 = vmatpush1.bf16.msra.mxu0 %v22463_v33  ;;  %12662 = vmatprep.mubr.f32.mxu0 %v28865_v51 }
 0x94d   : > { %22466 = vmatprep.subr.bf16.mxu0 %v22465_v44 }
 0x94f   : > { %21099 = vmatmul.mubr.msk.f32.vlgmr.msra.gmra.mrb[14].mxu0 %vm1825_vm9, %v21097_v7 }
 0x950   : > { %22468 = vmatpush1.bf16.msra.mxu0 %v22467_v11  ;;  %12668 = vmatprep.mubr.f32.mxu0 %v28865_v51 }
 0x951   : > { %22470 = vmatprep.subr.bf16.mxu0 %v22469_v52 }
 0x953   : > { %21100 = vmatmul.mubr.msk.f32.gmra.mrb[16].mxu0 %vm1825_vm9, %v21098_v48 }
 0x954   : > { %12739 = vmatprep.mubr.f32.mxu0 %v28865_v51 }
 0x957   : > { %21101 = vmatmul.mubr.msk.f32.vlgmr.msra.gmra.mrb[18].mxu0 %vm1825_vm9, %v21097_v7 }
 0x958   : > { %22472 = vmatpush1.bf16.msra.mxu0 %v22471_v60  ;;  %12745 = vmatprep.mubr.f32.mxu0 %v28865_v51 }
 0x959   : > { %22474 = vmatprep.subr.bf16.mxu0 %v22473_v8 }
 0x95b   : > { %21102 = vmatmul.mubr.msk.f32.gmra.mrb[20].mxu0 %vm1825_vm9, %v21098_v48 }
 0x95c   : > { %12816 = vmatprep.mubr.f32.mxu0 %v28865_v51 }
 0x95f   : > { %21103 = vmatmul.mubr.msk.f32.vlgmr.msra.gmra.mrb[22].mxu0 %vm1825_vm9, %v21097_v7 }
 0x960   : > { %22476 = vmatpush3.bf16.msra.mxu0 %v22473_v8  ;;  %12822 = vmatprep.mubr.f32.mxu0 %v28865_v51 }
 0x963   : > { %21104 = vmatmul.mubr.msk.f32.gmra.mrb[24].mxu0 %vm1825_vm9, %v21098_v48 }
 0x964   : > { %21821 = vmatprep.mubr.msk.f32.mxu0 %vm1825_vm9, %v21097_v7 }
 0x967   : > { %21822 = vmatmul.mubr.msk.f32.vlgmr.msra.gmra.mrb[26].mxu0 %vm1825_vm9, %v21098_v48 }
 0x968   : > { %16841 = vmatprep.mubr.f32.mxu0 %v28865_v51 }
 0xa22   : > { %v12664_v36 = vpop.f32.mrb[14].mxu0 }
 0xa23   : > { %v12918_v63 = vmax.f32 %v12664_v36, 0.0  ;;  %v12666_v45 = vpop.f32.mrb[15].mxu0 }
 0xa24   : > { %v12919_v21 = vmax.f32 %v12666_v45, 0.0 }
 0xa25   : > { %v12944_v62 = vmul.f32 %v29024_v2, %v12918_v63 }
 0xa26   : > { %v12945_v10 = vmul.f32 %v29024_v2, %v12919_v21  ;;  %v12670_v29 = vpop.f32.mrb[16].mxu0 }
 0xa27   : > { %v29033_v19 = vadd.f32 %v29029_v38, %v12944_v62  ;;  %v12925_v32 = vmax.f32 %v12670_v29, 0.0  ;;  %v12672_v34 = vpop.f32.mrb[17].mxu0 }
 0xa28   : > { %v29036_v39 = vadd.f32 %v29029_v38, %v12945_v10  ;;  %v12926_v16 = vmax.f32 %v12672_v34, 0.0 }
 0xa29   : > { %12985 = vst [vmem:[#allocation2 + $0x8] sm:$0xff] %v29033_v19  ;;  %v12951_v42 = vmul.f32 %v29026_v46, %v12925_v32 }
 0xa2a   : > { %12986 = vst [vmem:[#allocation2 + $0x10] sm:$0xff] %v29036_v39  ;;  %v12952_v30 = vmul.f32 %v29026_v46, %v12926_v16  ;;  %v12741_v57 = vpop.f32.mrb[18].mxu0 }
 0xa2b   : > { %v12978_v37 = vadd.f32 %v12969_v41, %v12951_v42  ;;  %v12920_v49 = vmax.f32 %v12741_v57, 0.0  ;;  %v12743_v35 = vpop.f32.mrb[19].mxu0 }
 0xa2c   : > { %v12979_v12 = vadd.f32 %v12969_v41, %v12952_v30  ;;  %v12921_v9 = vmax.f32 %v12743_v35, 0.0 }
 0xa2d   : > { %12992 = vst [vmem:[#allocation2 + $0x50] sm:$0x3] %v12978_v37  ;;  %v12946_v13 = vmul.f32 %v29024_v2, %v12920_v49 }
 0xa2e   : > { %12993 = vst [vmem:[#allocation2 + $0x58] sm:$0x3] %v12979_v12  ;;  %v12947_v59 = vmul.f32 %v29024_v2, %v12921_v9  ;;  %v12747_v0 = vpop.f32.mrb[20].mxu0 }
 0xa2f   : > { %v29045_v31 = vadd.f32 %v29029_v38, %v12946_v13  ;;  %v12927_v1 = vmax.f32 %v12747_v0, 0.0  ;;  %v12749_v15 = vpop.f32.mrb[21].mxu0 }
 0xa30   : > { %v29048_v14 = vadd.f32 %v29029_v38, %v12947_v59  ;;  %v12928_v18 = vmax.f32 %v12749_v15, 0.0 }
 0xa31   : > { %12987 = vst [vmem:[#allocation2 + $0x18] sm:$0xff] %v29045_v31  ;;  %v12953_v50 = vmul.f32 %v29026_v46, %v12927_v1  ;;  %v29054_v22 = vpack.i.bf16 %v29045_v31, %v29036_v39 }
 0xa32   : > { %12988 = vst [vmem:[#allocation2 + $0x20] sm:$0xff] %v29048_v14  ;;  %v12954_v4 = vmul.f32 %v29026_v46, %v12928_v18  ;;  %v12818_v6 = vpop.f32.mrb[22].mxu0 }
 0xa33   : > { %v12980_v23 = vadd.f32 %v12969_v41, %v12953_v50  ;;  %v12922_v26 = vmax.f32 %v12818_v6, 0.0  ;;  %v12820_v17 = vpop.f32.mrb[23].mxu0  ;;  %24496 = vrot.lane.b32.xlu0 %v29054_v22, %s25160_s27 }
 0xa34   : > { %v12981_v61 = vadd.f32 %v12969_v41, %v12954_v4  ;;  %v12923_v33 = vmax.f32 %v12820_v17, 0.0  ;;  %v13023_v40 = vld [vmem:[#allocation2 + $0x50] sm:$0x3] }
 0xa35   : > { %12994 = vst [vmem:[#allocation2 + $0x60] sm:$0x3] %v12980_v23  ;;  %v12948_v28 = vmul.f32 %v29024_v2, %v12922_v26  ;;  %v29062_v44 = vpack.i.bf16 %v13023_v40, %v29033_v19  ;;  %v13024_v36 = vld [vmem:[#allocation2 + $0x58] sm:$0x3]  ;;  %v21109_v17 = vld [vmem:[%s30557_s7 + $0x10] sm:$0xff] }
 0xa36   : > { %12995 = vst [vmem:[#allocation2 + $0x68] sm:$0x3] %v12981_v61  ;;  %v12949_v7 = vmul.f32 %v29024_v2, %v12923_v33  ;;  %v12824_v56 = vpop.f32.mrb[24].mxu0 }
 0xa37   : > { %v29066_v47 = vadd.f32 %v29029_v38, %v12948_v28  ;;  %v12929_v24 = vmax.f32 %v12824_v56, 0.0  ;;  %v12826_v11 = vpop.f32.mrb[25].mxu0  ;;  %24506 = vrot.lane.b32.xlu0 %v29062_v44, %s25160_s27 }
 0xa38   : > { %v29071_v25 = vadd.f32 %v29029_v38, %v12949_v7  ;;  %v12930_v52 = vmax.f32 %v12826_v11, 0.0 }
 0xa39   : > { %12989 = vst [vmem:[#allocation2 + $0x28] sm:$0xff] %v29066_v47  ;;  %v12955_v54 = vmul.f32 %v29026_v46, %v12929_v24  ;;  %v29077_v20 = vpack.i.bf16 %v29066_v47, %v29048_v14 }
 0xa3a   : > { %12990 = vst [vmem:[#allocation2 + $0x30] sm:$0xff] %v29071_v25  ;;  %v12956_v48 = vmul.f32 %v29026_v46, %v12930_v52  ;;  %v21823_v43 = vpop.f32.mrb[26].mxu0 }
 0xa3b   : > { %v12982_v27 = vadd.f32 %v12969_v41, %v12955_v54  ;;  %v12931_v53 = vmax.f32 %v21823_v43, 0.0  ;;  %v12895_v5 = vpop.f32.mrb[27].mxu0  ;;  %v21110_v54 = vld [vmem:[%s30557_s7 + $0x18] sm:$0x3] }
 0xa3c   : > { %v12983_v60 = vadd.f32 %v12969_v41, %v12956_v48  ;;  %v12924_v8 = vmax.f32 %v12895_v5, 0.0  ;;  %v13025_v63 = vld [vmem:[#allocation2 + $0x60] sm:$0x3] }
 0xa3d   : > { %12996 = vst [vmem:[#allocation2 + $0x70] sm:$0x3] %v12982_v27  ;;  %v12957_v45 = vmul.f32 %v29026_v46, %v12931_v53  ;;  %v29082_v21 = vpack.i.bf16 %v13025_v63, %v13024_v36  ;;  %v13026_v46 = vld [vmem:[#allocation2 + $0x68] sm:$0x3]  ;;  %v16548_v27 = vld [vmem:[%s30564_s14] sm:$0xff] }
 0xa3e   : > { %12997 = vst [vmem:[#allocation2 + $0x78] sm:$0x3] %v12983_v60  ;;  %v12950_v62 = vmul.f32 %v29024_v2, %v12924_v8  ;;  %v13030_v2 = vld [vmem:[#allocation2 + $0x88] sm:$0x3] }
 0xa3f   : > { %v12984_v10 = vadd.f32 %v12969_v41, %v12957_v45  ;;  %24501 = vrot.lane.b32.xlu1 %v29082_v21, %s25160_s27  ;;  %v16549_v63 = vld [vmem:[%s30564_s14 + $0x8] sm:$0x3] }
 0xa40   : > { %v29088_v29 = vadd.f32 %v29029_v38, %v12950_v62  ;;  %v29104_v38 = vpack.i.bf16 %v13030_v2, %v28865_v51  ;;  %v21260_v2 = vld [vmem:[%s30564_s14 + $0x10] sm:$0xff] }
 0xa41   : > { %12998 = vst [vmem:[#allocation2 + $0x80] sm:$0x3] %v12984_v10 }
 0xa42   : > { %12991 = vst [vmem:[#allocation2 + $0x38] sm:$0xff] %v29088_v29  ;;  %v29093_v32 = vpack.i.bf16 %v29088_v29, %v29071_v25 }
 0xa43   : > { %24511 = vrot.lane.b32.xlu1 %v29077_v20, %s25160_s27 }
 0xa44   : > { %v13027_v34 = vld [vmem:[#allocation2 + $0x70] sm:$0x3] }
 0xa45   : > { %v29097_v16 = vpack.i.bf16 %v13027_v34, %v13026_v46  ;;  %v13028_v42 = vld [vmem:[#allocation2 + $0x78] sm:$0x3] }
 0xa47   : > { %24516 = vrot.lane.b32.xlu0 %v29097_v16, %s25160_s27  ;;  %24521 = vrot.lane.b32.xlu1 %v29093_v32, %s25160_s27 }
 0xa48   : > { %v13029_v41 = vld [vmem:[#allocation2 + $0x80] sm:$0x3] }
 0xa49   : > { %v29106_v30 = vpack.i.bf16 %v13029_v41, %v13028_v42  ;;  %v29273_v42 = vld [vmem:[#allocation2 + $0x40] sm:$0xff]  ;;  %v13007_v41 = vld [vmem:[#allocation2 + $0x58] sm:$0x3] }
 0xa4b   : > { %24526 = vrot.lane.b32.xlu0 %v29106_v30, %s25160_s27  ;;  %24531 = vrot.lane.b32.xlu1 %v29104_v38, %s25160_s27 }
 0xa4f   : > { %24536 = vrot.lane.b32.xlu0 %v29054_v22, %s25167_s26  ;;  %24541 = vrot.lane.b32.xlu1 %v29082_v21, %s25167_s26 }
 0xa53   : > { %24546 = vrot.lane.b32.xlu0 %v29062_v44, %s25167_s26  ;;  %24551 = vrot.lane.b32.xlu1 %v29077_v20, %s25167_s26 }
 0xa57   : > { %24556 = vrot.lane.b32.xlu0 %v29097_v16, %s25167_s26  ;;  %24561 = vrot.lane.b32.xlu1 %v29093_v32, %s25167_s26 }
 0xa5b   : > { %24566 = vrot.lane.b32.xlu0 %v29106_v30, %s25167_s26  ;;  %24571 = vrot.lane.b32.xlu1 %v29104_v38, %s25167_s26  ;;  %s30728_s26 = smov 14  }
 0xa5f   : > { %24576 = vrot.lane.b32.xlu0 %v29054_v22, %s25164_s0  ;;  %24581 = vrot.lane.b32.xlu1 %v29082_v21, %s25164_s0 }
 0xa63   : > { %24586 = vrot.lane.b32.xlu0 %v29062_v44, %s25164_s0  ;;  %24591 = vrot.lane.b32.xlu1 %v29077_v20, %s25164_s0 }
 0xa67   : > { %24596 = vrot.lane.b32.xlu0 %v29097_v16, %s25164_s0  ;;  %24601 = vrot.lane.b32.xlu1 %v29093_v32, %s25164_s0 }
 0xa6b   : > { %24606 = vrot.lane.b32.xlu0 %v29106_v30, %s25164_s0  ;;  %24611 = vrot.lane.b32.xlu1 %v29104_v38, %s25164_s0 }
 0xa6f   : > { %24616 = vrot.lane.b32.xlu0 %v29054_v22, %s25166_s24  ;;  %24621 = vrot.lane.b32.xlu1 %v29082_v21, %s25166_s24 }
 0xa73   : > { %24626 = vrot.lane.b32.xlu0 %v29062_v44, %s25166_s24  ;;  %24631 = vrot.lane.b32.xlu1 %v29077_v20, %s25166_s24 }
 0xa77   : > { %24636 = vrot.lane.b32.xlu0 %v29097_v16, %s25166_s24  ;;  %24641 = vrot.lane.b32.xlu1 %v29093_v32, %s25166_s24 }
 0xa7b   : > { %24646 = vrot.lane.b32.xlu0 %v29106_v30, %s25166_s24  ;;  %24651 = vrot.lane.b32.xlu1 %v29104_v38, %s25166_s24 }
 0xa7f   : > { %24656 = vrot.lane.b32.xlu0 %v29054_v22, %s25168_s28  ;;  %24661 = vrot.lane.b32.xlu1 %v29082_v21, %s25168_s28 }
 0xa83   : > { %24666 = vrot.lane.b32.xlu0 %v29062_v44, %s25168_s28  ;;  %24671 = vrot.lane.b32.xlu1 %v29077_v20, %s25168_s28 }
 0xa87   : > { %24676 = vrot.lane.b32.xlu0 %v29097_v16, %s25168_s28  ;;  %24681 = vrot.lane.b32.xlu1 %v29093_v32, %s25168_s28 }
 0xa8b   : > { %24686 = vrot.lane.b32.xlu0 %v29106_v30, %s25168_s28  ;;  %24691 = vrot.lane.b32.xlu1 %v29104_v38, %s25168_s28  ;;  %s25177_s28 = smov 74  }
 0xa8f   : > { %24696 = vrot.lane.b32.xlu0 %v29054_v22, %s25169_s23  ;;  %24701 = vrot.lane.b32.xlu1 %v29082_v21, %s25169_s23 }
 0xa93   : > { %24706 = vrot.lane.b32.xlu0 %v29062_v44, %s25169_s23  ;;  %24711 = vrot.lane.b32.xlu1 %v29077_v20, %s25169_s23 }
 0xa97   : > { %24716 = vrot.lane.b32.xlu0 %v29097_v16, %s25169_s23  ;;  %24721 = vrot.lane.b32.xlu1 %v29093_v32, %s25169_s23 }
 0xa9b   : > { %24726 = vrot.lane.b32.xlu0 %v29106_v30, %s25169_s23  ;;  %24731 = vrot.lane.b32.xlu1 %v29104_v38, %s25169_s23 }
 0xa9f   : > { %24736 = vrot.lane.b32.xlu0 %v29054_v22, %s30728_s26  ;;  %24741 = vrot.lane.b32.xlu1 %v29082_v21, %s30728_s26 }
 0xaa3   : > { %24746 = vrot.lane.b32.xlu0 %v29062_v44, %s30728_s26  ;;  %24751 = vrot.lane.b32.xlu1 %v29077_v20, %s30728_s26 }
 0xaa5   : > { %v24497_v57 = vpop.permute.xlu0 %24496 }
 0xaa6   : > { %v24499_v49 = vunpack.i.h.bf16 %v24497_v57  ;;  %v24498_v35 = vunpack.i.l.bf16 %v24497_v57  ;;  %v13006_v57 = vld [vmem:[#allocation2 + $0x50] sm:$0x3] }
 0xaa7   : > { %24756 = vrot.lane.b32.xlu0 %v29097_v16, %s30728_s26  ;;  %24761 = vrot.lane.b32.xlu1 %v29093_v32, %s30728_s26 }
 0xaa8   : > { %v13083_v1 = vsel %vm870_vm2, %v24498_v35, %v24499_v49 }
 0xaa9   : > { %v24507_v37 = vpop.permute.xlu0 %24506 }
 0xaaa   : > { %v24508_v12 = vunpack.i.l.bf16 %v24507_v37  ;;  %v24509_v13 = vunpack.i.h.bf16 %v24507_v37  ;;  %v13009_v37 = vld [vmem:[#allocation2 + $0x68] sm:$0x3] }
 0xaab   : > { %24766 = vrot.lane.b32.xlu0 %v29106_v30, %s30728_s26  ;;  %24771 = vrot.lane.b32.xlu1 %v29104_v38, %s30728_s26  ;;  %s25176_s26 = smov 2  }
 0xaac   : > { %v13082_v15 = vsel %vm870_vm2, %v24508_v12, %v24498_v35  ;;  %v13008_v35 = vld [vmem:[#allocation2 + $0x60] sm:$0x3] }
 0xaad   : > { %v13013_v12 = vld [vmem:[%s30557_s7] sm:$0xff] }
 0xaaf   : > { %24776 = vrot.lane.b32.xlu0 %v29054_v22, %s25171_s18  ;;  %24781 = vrot.lane.b32.xlu1 %v29082_v21, %s25171_s18 }
 0xab1   : > { %v24502_v9 = vpop.permute.xlu1 %24501 }
 0xab2   : > { %v24504_v59 = vunpack.i.h.bf16 %v24502_v9  ;;  %v24503_v0 = vunpack.i.l.bf16 %v24502_v9  ;;  %v13011_v9 = vld [vmem:[#allocation2 + $0x78] sm:$0x3] }
 0xab3   : > { %24786 = vrot.lane.b32.xlu0 %v29062_v44, %s25171_s18  ;;  %24791 = vrot.lane.b32.xlu1 %v29077_v20, %s25171_s18 }
 0xab4   : > { %v13089_v18 = vsel %vm870_vm2, %v24509_v13, %v24503_v0  ;;  %v13090_v50 = vsel %vm870_vm2, %v24503_v0, %v24504_v59  ;;  %v13012_v0 = vld [vmem:[#allocation2 + $0x80] sm:$0x3] }
 0xab5   : > { %v22480_v22 = vpack.c.bf16 %v13089_v18, %v13082_v15  ;;  %v24512_v4 = vpop.permute.xlu1 %24511  ;;  %v22477_v6 = vpack.c.bf16 %v13090_v50, %v13083_v1  ;;  %v22519_v18 = vpack.c.bf16 %v13012_v0, %v29088_v29 }
 0xab6   : > { %v24514_v23 = vunpack.i.h.bf16 %v24512_v4  ;;  %v24513_v26 = vunpack.i.l.bf16 %v24512_v4 }
 0xab7   : > { %22479 = vmatprep.subr.msk.bf16.mxu1 %vm27729_vm12, %v22477_v6  ;;  %24796 = vrot.lane.b32.xlu0 %v29097_v16, %s25171_s18 }
 0xab8   : > { %22482 = vmatpush1.bf16.msk.msra.mxu1 %vm27729_vm12, %v22480_v22  ;;  %24801 = vrot.lane.b32.xlu1 %v29093_v32, %s25171_s18  ;;  %v13084_v56 = vsel %vm870_vm2, %v24499_v49, %v24513_v26  ;;  %v13085_v24 = vsel %vm870_vm2, %v24513_v26, %v24514_v23  ;;  %v22504_v49 = vpack.c.bf16 %v13006_v57, %v29033_v19 }
 0xab9   : > { %v24517_v61 = vpop.permute.xlu0 %24516  ;;  %v24522_v33 = vpop.permute.xlu1 %24521  ;;  %v22510_v19 = vpack.c.bf16 %v13008_v35, %v29045_v31  ;;  %v13010_v31 = vld [vmem:[#allocation2 + $0x70] sm:$0x3] }
 0xaba   : > { %v24519_v40 = vunpack.i.h.bf16 %v24517_v61  ;;  %v24518_v28 = vunpack.i.l.bf16 %v24517_v61  ;;  %v24524_v44 = vunpack.i.h.bf16 %v24522_v33  ;;  %v24523_v7 = vunpack.i.l.bf16 %v24522_v33 }
 0xabb   : > { %21113 = vmatmul.mubr.msk.f32.vlgmr.msra.gmra.mrb[36].mxu1 %vm5942_vm13, %v21109_v17  ;;  %24806 = vrot.lane.b32.xlu0 %v29106_v30, %s25171_s18  ;;  %v22501_v30 = vpack.c.bf16 %v13007_v41, %v29036_v39  ;;  %v22507_v39 = vpack.c.bf16 %v13009_v37, %v29048_v14  ;;  %v22513_v14 = vpack.c.bf16 %v13011_v9, %v29071_v25 }
 0xabc   : > { %v13091_v11 = vsel %vm870_vm2, %v24504_v59, %v24518_v28  ;;  %v13092_v52 = vsel %vm870_vm2, %v24518_v28, %v24519_v40  ;;  %13193 = vmatprep.mubr.f32.mxu1 %v28865_v51  ;;  %24811 = vrot.lane.b32.xlu1 %v29104_v38, %s25171_s18  ;;  %v13086_v45 = vsel %vm870_vm2, %v24514_v23, %v24523_v7  ;;  %v21261_v38 = vld [vmem:[%s30564_s14 + $0x18] sm:$0x3]  ;;  %v13014_v59 = vld [vmem:[%s30557_s7 + $0x8] sm:$0x3]  ;;  %s25175_s18 = smov 54  }
 0xabd   : > { %v22486_v20 = vpack.c.bf16 %v13091_v11, %v13084_v56  ;;  %v24527_v48 = vpop.permute.xlu0 %24526  ;;  %v22483_v43 = vpack.c.bf16 %v13092_v52, %v13085_v24  ;;  %v24532_v53 = vpop.permute.xlu1 %24531  ;;  %v13087_v21 = vsel %vm870_vm2, %v24523_v7, %v24524_v44  ;;  %v22516_v15 = vpack.c.bf16 %v13010_v31, %v29066_v47 }
 0xabe   : > { %v24529_v5 = vunpack.i.h.bf16 %v24527_v48  ;;  %v24528_v60 = vunpack.i.l.bf16 %v24527_v48  ;;  %v24534_v8 = vunpack.i.h.bf16 %v24532_v53  ;;  %v24533_v36 = vunpack.i.l.bf16 %v24532_v53 }
 0xabf   : > { %21114 = vmatmul.mubr.msk.f32.gmra.mrb[38].mxu1 %vm5942_vm13, %v21110_v54  ;;  %22485 = vmatprep.subr.msk.bf16.mxu1 %vm27729_vm12, %v22483_v43 }
 0xac0   : > { %v13093_v62 = vsel %vm870_vm2, %v24519_v40, %v24528_v60  ;;  %v13094_v10 = vsel %vm870_vm2, %v24528_v60, %v24529_v5  ;;  %16552 = vperm.xlu0 %23523, %v16548_v27   ;;  %22488 = vmatpush1.bf16.msk.msra.mxu1 %vm27729_vm12, %v22486_v20  ;;  %v13095_v32 = vsel %vm870_vm2, %v24529_v5, %v24534_v8 }
 0xac1   : > { %v22492_v46 = vpack.c.bf16 %v13093_v62, %v13086_v45  ;;  %13264 = vmatprep.mubr.f32.mxu1 %v28865_v51  ;;  %v13088_v34 = vsel %vm870_vm2, %v24524_v44, %v24533_v36  ;;  %16557 = vperm.xlu1 %23524, %v16549_v63   ;;  %v22489_v16 = vpack.c.bf16 %v13094_v10, %v13087_v21  ;;  %v24537_v13 = vpop.permute.xlu0 %24536  ;;  %v24542_v25 = vpop.permute.xlu1 %24541  ;;  %v21141_v63 = vld [vmem:[%s30557_s7 + $0x20] sm:$0xff] }
 0xac2   : > { %v22495_v51 = vpack.c.bf16 %v13095_v32, %v13088_v34  ;;  %v24539_v50 = vunpack.i.h.bf16 %v24537_v13  ;;  %v24538_v22 = vunpack.i.l.bf16 %v24537_v13  ;;  %v24544_v4 = vunpack.i.h.bf16 %v24542_v25 }
 0xac3   : > { %21117 = vmatmul.mubr.msk.f32.vlgmr.msra.gmra.mrb[40].mxu1 %vm5942_vm13, %v21109_v17  ;;  %22491 = vmatprep.subr.msk.bf16.mxu1 %vm27729_vm12, %v22489_v16  ;;  %v24543_v6 = vunpack.i.l.bf16 %v24542_v25  ;;  %v21142_v16 = vld [vmem:[%s30557_s7 + $0x28] sm:$0x3] }
 0xac4   : > { %16579 = vperm.xlu0 %23523, %v21260_v2   ;;  %22494 = vmatpush1.bf16.msk.msra.mxu1 %vm27729_vm12, %v22492_v46  ;;  %v13798_v47 = vsel %vm6638_vm14, %v24538_v22, %v24539_v50 }
 0xac5   : > { %13270 = vmatprep.mubr.f32.mxu1 %v29273_v42  ;;  %16584 = vperm.xlu1 %23524, %v21261_v38   ;;  %v24547_v1 = vpop.permute.xlu0 %24546  ;;  %v13805_v26 = vsel %vm6638_vm14, %v24543_v6, %v24544_v4  ;;  %v24552_v29 = vpop.permute.xlu1 %24551 }
 0xac6   : > { %22497 = vmatprep.subr.msk.bf16.mxu1 %vm27729_vm12, %v22495_v51  ;;  %v24548_v61 = vunpack.i.l.bf16 %v24547_v1  ;;  %v22525_v33 = vpack.c.bf16 %v13805_v26, %v13798_v47  ;;  %v24554_v7 = vunpack.i.h.bf16 %v24552_v29  ;;  %v24553_v56 = vunpack.i.l.bf16 %v24552_v29 }
 0xac7   : > { %21118 = vmatmul.mubr.msk.f32.gmra.mrb[42].mxu1 %vm5942_vm13, %v21110_v54 }
 0xac8   : > { %13341 = vmatprep.mubr.f32.mxu1 %v29273_v42  ;;  %v13797_v24 = vsel %vm6638_vm14, %v24548_v61, %v24538_v22  ;;  %v13800_v27 = vsel %vm6638_vm14, %v24553_v56, %v24554_v7  ;;  %v13799_v45 = vsel %vm6638_vm14, %v24539_v50, %v24553_v56 }
 0xac9   : > { %v24557_v23 = vpop.permute.xlu0 %24556  ;;  %v24562_v52 = vpop.permute.xlu1 %24561 }
 0xaca   : > { %v24559_v40 = vunpack.i.h.bf16 %v24557_v23  ;;  %v24558_v28 = vunpack.i.l.bf16 %v24557_v23  ;;  %v24564_v53 = vunpack.i.h.bf16 %v24562_v52  ;;  %v24563_v5 = vunpack.i.l.bf16 %v24562_v52 }
 0xacb   : > { %21121 = vmatmul.mubr.msk.f32.vlgmr.msra.gmra.mrb[44].mxu1 %vm5942_vm13, %v21109_v17 }
 0xacc   : > { %22500 = vmatpush3.bf16.msk.msra.mxu1 %vm27729_vm12, %v22495_v51  ;;  %13347 = vmatprep.mubr.f32.mxu1 %v29273_v42  ;;  %v13806_v60 = vsel %vm6638_vm14, %v24544_v4, %v24558_v28  ;;  %v13802_v10 = vsel %vm6638_vm14, %v24563_v5, %v24564_v53 }
 0xacd   : > { %22503 = vmatprep.subr.msk.bf16.mxu1 %vm27729_vm12, %v22501_v30  ;;  %v24567_v44 = vpop.permute.xlu0 %24566  ;;  %v24572_v21 = vpop.permute.xlu1 %24571  ;;  %v22534_v62 = vpack.c.bf16 %v13806_v60, %v13799_v45  ;;  %v13801_v30 = vsel %vm6638_vm14, %v24554_v7, %v24563_v5  ;;  %v21159_v5 = vld [vmem:[%s30557_s7 + $0x38] sm:$0x3] }
 0xace   : > { %v24569_v20 = vunpack.i.h.bf16 %v24567_v44  ;;  %v24568_v48 = vunpack.i.l.bf16 %v24567_v44  ;;  %v24574_v34 = vunpack.i.h.bf16 %v24572_v21  ;;  %v24573_v2 = vunpack.i.l.bf16 %v24572_v21 }
 0xacf   : > { %21122 = vmatmul.mubr.msk.f32.gmra.mrb[46].mxu1 %vm5942_vm13, %v21110_v54 }
 0xad0   : > { %21828 = vmatprep.mubr.msk.f32.mxu1 %vm5942_vm13, %v21109_v17  ;;  %v24549_v17 = vunpack.i.h.bf16 %v24547_v1  ;;  %v13809_v36 = vsel %vm6638_vm14, %v24568_v48, %v24569_v20  ;;  %v13808_v38 = vsel %vm6638_vm14, %v24559_v40, %v24568_v48  ;;  %v13810_v51 = vsel %vm6638_vm14, %v24569_v20, %v24574_v34 }
 0xad1   : > { %v29350_v32 = vpop.permute.xlu0 %24576  ;;  %v22537_v46 = vpack.c.bf16 %v13809_v36, %v13802_v10  ;;  %v13803_v41 = vsel %vm6638_vm14, %v24564_v53, %v24573_v2  ;;  %v24582_v37 = vpop.permute.xlu1 %24581 }
 0xad2   : > { %v13804_v11 = vsel %vm6638_vm14, %v24549_v17, %v24543_v6  ;;  %v24579_v35 = vunpack.i.h.bf16 %v29350_v32  ;;  %v24584_v9 = vunpack.i.h.bf16 %v24582_v37 }
 0xad3   : > { %21829 = vmatmul.mubr.msk.f32.vlgmr.msra.gmra.mrb[48].mxu1 %vm5942_vm13, %v21110_v54  ;;  %v13807_v54 = vsel %vm6638_vm14, %v24558_v28, %v24559_v40  ;;  %v22528_v43 = vpack.c.bf16 %v13804_v11, %v13797_v24  ;;  %v21158_v24 = vld [vmem:[%s30557_s7 + $0x30] sm:$0xff] }
 0xad4   : > { %22506 = vmatpush1.bf16.msk.msra.mxu1 %vm27729_vm12, %v22504_v49  ;;  %13520 = vmatprep.mubr.f32.mxu1 %v29273_v42  ;;  %v22531_v8 = vpack.c.bf16 %v13807_v54, %v13800_v27  ;;  %v22540_v49 = vpack.c.bf16 %v13808_v38, %v13801_v30 }
 0xad5   : > { %22509 = vmatprep.subr.msk.bf16.mxu1 %vm27729_vm12, %v22507_v39  ;;  %v24587_v57 = vpop.permute.xlu0 %24586  ;;  %v22543_v39 = vpack.c.bf16 %v13810_v51, %v13803_v41  ;;  %v24592_v31 = vpop.permute.xlu1 %24591 }
 0xad6   : > { %v24589_v0 = vunpack.i.h.bf16 %v24587_v57  ;;  %v24588_v1 = vunpack.i.l.bf16 %v24587_v57  ;;  %v24594_v22 = vunpack.i.h.bf16 %v24592_v31  ;;  %v24593_v4 = vunpack.i.l.bf16 %v24592_v31 }
 0xad7   : > { %21128 = vmatmul.mubr.msk.f32.vlgmr.msra.gmra.mrb[36].mxu1 %vm5942_vm13, %v13013_v12 }
 0xad8   : > { %22512 = vmatpush1.bf16.msk.msra.mxu1 %vm27729_vm12, %v22510_v19  ;;  %13526 = vmatprep.mubr.f32.mxu1 %v29273_v42  ;;  %v24583_v19 = vunpack.i.l.bf16 %v24582_v37  ;;  %v14195_v11 = vsel %vm1350_vm6, %v24579_v35, %v24593_v4 }
 0xad9   : > { %22515 = vmatprep.subr.msk.bf16.mxu1 %vm27729_vm12, %v22513_v14  ;;  %v24597_v13 = vpop.permute.xlu0 %24596  ;;  %v24602_v47 = vpop.permute.xlu1 %24601 }
 0xada   : > { %v14200_v23 = vsel %vm1350_vm6, %v24589_v0, %v24583_v19  ;;  %v24604_v40 = vunpack.i.h.bf16 %v24602_v47  ;;  %v24603_v28 = vunpack.i.l.bf16 %v24602_v47 }
 0xadb   : > { %21129 = vmatmul.mubr.msk.f32.gmra.mrb[38].mxu1 %vm5942_vm13, %v13014_v59 }
 0xadc   : > { %13597 = vmatprep.mubr.f32.mxu1 %v29273_v42  ;;  %v14198_v20 = vsel %vm1350_vm6, %v24603_v28, %v24604_v40 }
 0xadd   : > { %v24607_v50 = vpop.permute.xlu0 %24606  ;;  %v24612_v52 = vpop.permute.xlu1 %24611 }
 0xade   : > { %v24609_v29 = vunpack.i.h.bf16 %v24607_v50  ;;  %v24608_v17 = vunpack.i.l.bf16 %v24607_v50  ;;  %v24614_v27 = vunpack.i.h.bf16 %v24612_v52  ;;  %v24613_v53 = vunpack.i.l.bf16 %v24612_v52 }
 0xadf   : > { %21132 = vmatmul.mubr.msk.f32.vlgmr.msra.gmra.mrb[40].mxu1 %vm5942_vm13, %v13013_v12 }
 0xae0   : > { %22518 = vmatpush1.bf16.msk.msra.mxu1 %vm27729_vm12, %v22516_v15  ;;  %13603 = vmatprep.mubr.f32.mxu1 %v29273_v42  ;;  %v24599_v15 = vunpack.i.h.bf16 %v24597_v13  ;;  %v14205_v56 = vsel %vm1350_vm6, %v24608_v17, %v24609_v29  ;;  %v14199_v36 = vsel %vm1350_vm6, %v24604_v40, %v24613_v53 }
 0xae1   : > { %22521 = vmatprep.subr.msk.bf16.mxu1 %vm27729_vm12, %v22519_v18  ;;  %v29404_v48 = vpop.permute.xlu0 %24616  ;;  %v24622_v21 = vpop.permute.xlu1 %24621 }
 0xae2   : > { %v14204_v60 = vsel %vm1350_vm6, %v24599_v15, %v24608_v17  ;;  %v24624_v34 = vunpack.i.h.bf16 %v24622_v21  ;;  %v24623_v2 = vunpack.i.l.bf16 %v24622_v21 }
 0xae3   : > { %21133 = vmatmul.mubr.msk.f32.gmra.mrb[42].mxu1 %vm5942_vm13, %v13014_v59 }
 0xae4   : > { %13674 = vmatprep.mubr.f32.mxu1 %v29273_v42  ;;  %v14597_v51 = vsel %vm1590_vm8, %v24623_v2, %v24624_v34 }
 0xae5   : > { %v24627_v45 = vpop.permute.xlu0 %24626  ;;  %v24632_v41 = vpop.permute.xlu1 %24631 }
 0xae6   : > { %v24629_v30 = vunpack.i.h.bf16 %v24627_v45  ;;  %v24628_v57 = vunpack.i.l.bf16 %v24627_v45 }
 0xae7   : > { %21136 = vmatmul.mubr.msk.f32.vlgmr.msra.gmra.mrb[44].mxu1 %vm5942_vm13, %v13013_v12 }
 0xae8   : > { %22524 = vmatpush3.bf16.msk.msra.mxu1 %vm27729_vm12, %v22519_v18  ;;  %13680 = vmatprep.mubr.f32.mxu1 %v29273_v42  ;;  %v24598_v18 = vunpack.i.l.bf16 %v24597_v13  ;;  %v14596_v13 = vsel %vm1590_vm8, %v24629_v30, %v24623_v2 }
 0xae9   : > { %22527 = vmatprep.subr.msk.bf16.mxu1 %vm27729_vm12, %v22525_v33  ;;  %v14196_v33 = vsel %vm1350_vm6, %v24593_v4, %v24594_v22 }
 0xaea   : > { %v14203_v26 = vsel %vm1350_vm6, %v24598_v18, %v24599_v15  ;;  %v14202_v44 = vsel %vm1350_vm6, %v24584_v9, %v24598_v18 }
 0xaeb   : > { %21137 = vmatmul.mubr.msk.f32.gmra.mrb[46].mxu1 %vm5942_vm13, %v13014_v59  ;;  %v22555_v7 = vpack.c.bf16 %v14203_v26, %v14196_v33  ;;  %v22558_v54 = vpack.c.bf16 %v14202_v44, %v14195_v11 }
 0xaec   : > { %21835 = vmatprep.mubr.msk.f32.mxu1 %vm5942_vm13, %v13013_v12  ;;  %v24578_v12 = vunpack.i.l.bf16 %v29350_v32  ;;  %v24619_v32 = vunpack.i.h.bf16 %v29404_v48 }
 0xaee   : > { %v14194_v14 = vsel %vm1350_vm6, %v24578_v12, %v24579_v35  ;;  %v14193_v6 = vsel %vm1350_vm6, %v24588_v1, %v24578_v12  ;;  %v24634_v12 = vunpack.i.h.bf16 %v24632_v41 }
 0xaef   : > { %21836 = vmatmul.mubr.msk.f32.vlgmr.msra.gmra.mrb[48].mxu1 %vm5942_vm13, %v13014_v59  ;;  %v14201_v59 = vsel %vm1350_vm6, %v24583_v19, %v24584_v9  ;;  %v22552_v61 = vpack.c.bf16 %v14200_v23, %v14193_v6  ;;  %v24633_v9 = vunpack.i.l.bf16 %v24632_v41  ;;  %v21175_v6 = vld [vmem:[%s30557_s7 + $0x40] sm:$0xff] }
 0xaf0   : > { %22530 = vmatpush1.bf16.msk.msra.mxu1 %vm27729_vm12, %v22528_v43  ;;  %13902 = vmatprep.mubr.f32.mxu1 %v29273_v42  ;;  %v22549_v25 = vpack.c.bf16 %v14201_v59, %v14194_v14  ;;  %v22561_v43 = vpack.c.bf16 %v14205_v56, %v14198_v20  ;;  %v24642_v14 = vpop.permute.xlu1 %24641 }
 0xaf1   : > { %22533 = vmatprep.subr.msk.bf16.mxu1 %vm27729_vm12, %v22531_v8  ;;  %v14206_v8 = vsel %vm1350_vm6, %v24609_v29, %v24614_v27  ;;  %v24644_v15 = vunpack.i.h.bf16 %v24642_v14  ;;  %v24643_v18 = vunpack.i.l.bf16 %v24642_v14  ;;  %v14591_v23 = vsel %vm1590_vm8, %v24619_v32, %v24633_v9 }
 0xaf2   : > { %v22567_v10 = vpack.c.bf16 %v14206_v8, %v14199_v36 }
 0xaf3   : > { %21145 = vmatmul.mubr.msk.f32.vlgmr.msra.gmra.mrb[36].mxu1 %vm5942_vm13, %v21141_v63  ;;  %v14594_v29 = vsel %vm1590_vm8, %v24643_v18, %v24644_v15 }
 0xaf4   : > { %22536 = vmatpush1.bf16.msk.msra.mxu1 %vm27729_vm12, %v22534_v62  ;;  %13908 = vmatprep.mubr.f32.mxu1 %v29273_v42  ;;  %v24652_v47 = vpop.permute.xlu1 %24651 }
 0xaf5   : > { %22539 = vmatprep.subr.msk.bf16.mxu1 %vm27729_vm12, %v22537_v46  ;;  %v24618_v46 = vunpack.i.l.bf16 %v29404_v48  ;;  %v24654_v33 = vunpack.i.h.bf16 %v24652_v47  ;;  %v24653_v40 = vunpack.i.l.bf16 %v24652_v47 }
 0xaf7   : > { %21146 = vmatmul.mubr.msk.f32.gmra.mrb[38].mxu1 %vm5942_vm13, %v21142_v16  ;;  %v14590_v38 = vsel %vm1590_vm8, %v24618_v46, %v24619_v32  ;;  %v14589_v19 = vsel %vm1590_vm8, %v24628_v57, %v24618_v46  ;;  %v14595_v56 = vsel %vm1590_vm8, %v24644_v15, %v24653_v40 }
 0xaf8   : > { %13979 = vmatprep.mubr.f32.mxu1 %v29273_v42  ;;  %v22573_v37 = vpack.c.bf16 %v14597_v51, %v14590_v38  ;;  %v22576_v1 = vpack.c.bf16 %v14596_v13, %v14589_v19  ;;  %v24662_v52 = vpop.permute.xlu1 %24661  ;;  %v21192_v19 = vld [vmem:[%s30557_s7 + $0x50] sm:$0xff] }
 0xaf9   : > { %v24664_v27 = vunpack.i.h.bf16 %v24662_v52  ;;  %v24663_v53 = vunpack.i.l.bf16 %v24662_v52 }
 0xafb   : > { %21149 = vmatmul.mubr.msk.f32.vlgmr.msra.gmra.mrb[40].mxu1 %vm5942_vm13, %v21141_v63  ;;  %v14993_v8 = vsel %vm7827_vm15, %v24663_v53, %v24664_v27 }
 0xafc   : > { %22542 = vmatpush1.bf16.msk.msra.mxu1 %vm27729_vm12, %v22540_v49  ;;  %13985 = vmatprep.mubr.f32.mxu1 %v29273_v42  ;;  %v24672_v36 = vpop.permute.xlu1 %24671 }
 0xafd   : > { %22545 = vmatprep.subr.msk.bf16.mxu1 %vm27729_vm12, %v22543_v39  ;;  %v24674_v46 = vunpack.i.h.bf16 %v24672_v36 }
 0xaff   : > { %21150 = vmatmul.mubr.msk.f32.gmra.mrb[42].mxu1 %vm5942_vm13, %v21142_v16 }
 0xb00   : > { %14056 = vmatprep.mubr.f32.mxu1 %v29273_v42  ;;  %v24682_v38 = vpop.permute.xlu1 %24681 }
 0xb03   : > { %21153 = vmatmul.mubr.msk.f32.vlgmr.msra.gmra.mrb[44].mxu1 %vm5942_vm13, %v21141_v63 }
 0xb04   : > { %22548 = vmatpush3.bf16.msk.msra.mxu1 %vm27729_vm12, %v22543_v39  ;;  %14062 = vmatprep.mubr.f32.mxu1 %v29273_v42  ;;  %v24692_v14 = vpop.permute.xlu1 %24691 }
 0xb05   : > { %22551 = vmatprep.subr.msk.bf16.mxu1 %vm27729_vm12, %v22549_v25  ;;  %v14592_v25 = vsel %vm1590_vm8, %v24633_v9, %v24634_v12  ;;  %v24693_v15 = vunpack.i.l.bf16 %v24692_v14 }
 0xb07   : > { %21154 = vmatmul.mubr.msk.f32.gmra.mrb[46].mxu1 %vm5942_vm13, %v21142_v16 }
 0xb08   : > { %21842 = vmatprep.mubr.msk.f32.mxu1 %vm5942_vm13, %v21141_v63  ;;  %v14197_v63 = vsel %vm1350_vm6, %v24594_v22, %v24603_v28  ;;  %v21176_v28 = vld [vmem:[%s30557_s7 + $0x48] sm:$0x3]  ;;  %v24702_v47 = vpop.permute.xlu1 %24701 }
 0xb09   : > { %v22564_v62 = vpack.c.bf16 %v14204_v60, %v14197_v63  ;;  %v24703_v40 = vunpack.i.l.bf16 %v24702_v47 }
 0xb0b   : > { %21843 = vmatmul.mubr.msk.f32.vlgmr.msra.gmra.mrb[48].mxu1 %vm5942_vm13, %v21142_v16  ;;  %v24637_v16 = vpop.permute.xlu0 %24636 }
 0xb0c   : > { %22554 = vmatpush1.bf16.msk.msra.mxu1 %vm27729_vm12, %v22552_v61  ;;  %14298 = vmatprep.mubr.f32.mxu1 %v29273_v42  ;;  %v24639_v49 = vunpack.i.h.bf16 %v24637_v16  ;;  %v24638_v39 = vunpack.i.l.bf16 %v24637_v16 }
 0xb0d   : > { %22557 = vmatprep.subr.msk.bf16.mxu1 %vm27729_vm12, %v22555_v7 }
 0xb0e   : > { %v14599_v59 = vsel %vm1590_vm8, %v24638_v39, %v24639_v49  ;;  %v14598_v50 = vsel %vm1590_vm8, %v24624_v34, %v24638_v39  ;;  %v24673_v34 = vunpack.i.l.bf16 %v24672_v36  ;;  %v24683_v39 = vunpack.i.l.bf16 %v24682_v38 }
 0xb0f   : > { %21162 = vmatmul.mubr.msk.f32.vlgmr.msra.gmra.mrb[36].mxu1 %vm5942_vm13, %v21158_v24  ;;  %v24647_v35 = vpop.permute.xlu0 %24646  ;;  %v22579_v22 = vpack.c.bf16 %v14599_v59, %v14592_v25  ;;  %v22582_v26 = vpack.c.bf16 %v14598_v50, %v14591_v23  ;;  %v24694_v25 = vunpack.i.h.bf16 %v24692_v14 }
 0xb10   : > { %22560 = vmatpush1.bf16.msk.msra.mxu1 %vm27729_vm12, %v22558_v54  ;;  %14304 = vmatprep.mubr.f32.mxu1 %v29273_v42  ;;  %v24649_v31 = vunpack.i.h.bf16 %v24647_v35  ;;  %v24648_v0 = vunpack.i.l.bf16 %v24647_v35 }
 0xb11   : > { %22563 = vmatprep.subr.msk.bf16.mxu1 %vm27729_vm12, %v22561_v43 }
 0xb12   : > { %v14601_v4 = vsel %vm1590_vm8, %v24648_v0, %v24649_v31  ;;  %v14600_v44 = vsel %vm1590_vm8, %v24639_v49, %v24648_v0  ;;  %v14602_v7 = vsel %vm1590_vm8, %v24649_v31, %v24654_v33  ;;  %v24684_v49 = vunpack.i.h.bf16 %v24682_v38 }
 0xb13   : > { %21163 = vmatmul.mubr.msk.f32.gmra.mrb[38].mxu1 %vm5942_vm13, %v21159_v5  ;;  %v29458_v17 = vpop.permute.xlu0 %24656  ;;  %v22585_v61 = vpack.c.bf16 %v14601_v4, %v14594_v29  ;;  %v22591_v20 = vpack.c.bf16 %v14602_v7, %v14595_v56  ;;  %v24704_v33 = vunpack.i.h.bf16 %v24702_v47  ;;  %v24712_v56 = vpop.permute.xlu1 %24711 }
 0xb14   : > { %14375 = vmatprep.mubr.f32.mxu1 %v29273_v42  ;;  %v24659_v48 = vunpack.i.h.bf16 %v29458_v17  ;;  %v24658_v43 = vunpack.i.l.bf16 %v29458_v17  ;;  %v14990_v31 = vsel %vm7827_vm15, %v24683_v39, %v24684_v49  ;;  %v14991_v4 = vsel %vm7827_vm15, %v24684_v49, %v24693_v15 }
 0xb15   : > { %v15389_v7 = vsel %vm1825_vm9, %v24703_v40, %v24704_v33 }
 0xb16   : > { %v14986_v60 = vsel %vm7827_vm15, %v24658_v43, %v24659_v48  ;;  %v14987_v13 = vsel %vm7827_vm15, %v24659_v48, %v24673_v34 }
 0xb17   : > { %21166 = vmatmul.mubr.msk.f32.vlgmr.msra.gmra.mrb[40].mxu1 %vm5942_vm13, %v21158_v24  ;;  %v24667_v11 = vpop.permute.xlu0 %24666  ;;  %v22597_v21 = vpack.c.bf16 %v14993_v8, %v14986_v60  ;;  %v24722_v60 = vpop.permute.xlu1 %24721 }
 0xb18   : > { %22566 = vmatpush1.bf16.msk.msra.mxu1 %vm27729_vm12, %v22564_v62  ;;  %14381 = vmatprep.mubr.f32.mxu1 %v29273_v42  ;;  %v24669_v63 = vunpack.i.h.bf16 %v24667_v11  ;;  %v24668_v45 = vunpack.i.l.bf16 %v24667_v11 }
 0xb19   : > { %22569 = vmatprep.subr.msk.bf16.mxu1 %vm27729_vm12, %v22567_v10 }
 0xb1a   : > { %v14985_v2 = vsel %vm7827_vm15, %v24668_v45, %v24658_v43  ;;  %v14992_v16 = vsel %vm7827_vm15, %v24669_v63, %v24663_v53  ;;  %v24714_v43 = vunpack.i.h.bf16 %v24712_v56 }
 0xb1b   : > { %21167 = vmatmul.mubr.msk.f32.gmra.mrb[42].mxu1 %vm5942_vm13, %v21159_v5  ;;  %v22600_v57 = vpack.c.bf16 %v14992_v16, %v14985_v2  ;;  %v21209_v2 = vld [vmem:[%s30557_s7 + $0x60] sm:$0xff]  ;;  %v24732_v38 = vpop.permute.xlu1 %24731 }
 0xb1c   : > { %14452 = vmatprep.mubr.f32.mxu1 %v29273_v42  ;;  %v24733_v49 = vunpack.i.l.bf16 %v24732_v38 }
 0xb1f   : > { %21170 = vmatmul.mubr.msk.f32.vlgmr.msra.gmra.mrb[44].mxu1 %vm5942_vm13, %v21158_v24  ;;  %v24742_v14 = vpop.permute.xlu1 %24741 }
 0xb20   : > { %22572 = vmatpush3.bf16.msk.msra.mxu1 %vm27729_vm12, %v22567_v10  ;;  %14458 = vmatprep.mubr.f32.mxu1 %v29273_v42  ;;  %v24743_v15 = vunpack.i.l.bf16 %v24742_v14 }
 0xb21   : > { %22575 = vmatprep.subr.msk.bf16.mxu1 %vm27729_vm12, %v22573_v37  ;;  %v14988_v37 = vsel %vm7827_vm15, %v24673_v34, %v24674_v46 }
 0xb23   : > { %21171 = vmatmul.mubr.msk.f32.gmra.mrb[46].mxu1 %vm5942_vm13, %v21159_v5 }
 0xb24   : > { %21849 = vmatprep.mubr.msk.f32.mxu1 %vm5942_vm13, %v21158_v24  ;;  %v14593_v24 = vsel %vm1590_vm8, %v24634_v12, %v24643_v18  ;;  %v21193_v18 = vld [vmem:[%s30557_s7 + $0x58] sm:$0x3] }
 0xb25   : > { %v22588_v54 = vpack.c.bf16 %v14600_v44, %v14593_v24 }
 0xb27   : > { %21850 = vmatmul.mubr.msk.f32.vlgmr.msra.gmra.mrb[48].mxu1 %vm5942_vm13, %v21159_v5  ;;  %v24677_v5 = vpop.permute.xlu0 %24676 }
 0xb28   : > { %22578 = vmatpush1.bf16.msk.msra.mxu1 %vm27729_vm12, %v22576_v1  ;;  %14694 = vmatprep.mubr.f32.mxu1 %v29273_v42  ;;  %v24679_v62 = vunpack.i.h.bf16 %v24677_v5  ;;  %v24678_v10 = vunpack.i.l.bf16 %v24677_v5 }
 0xb29   : > { %22581 = vmatprep.subr.msk.bf16.mxu1 %vm27729_vm12, %v22579_v22 }
 0xb2a   : > { %v14995_v51 = vsel %vm7827_vm15, %v24678_v10, %v24679_v62  ;;  %v14994_v35 = vsel %vm7827_vm15, %v24664_v27, %v24678_v10  ;;  %v24713_v27 = vunpack.i.l.bf16 %v24712_v56  ;;  %v24723_v10 = vunpack.i.l.bf16 %v24722_v60 }
 0xb2b   : > { %21179 = vmatmul.mubr.msk.f32.vlgmr.msra.gmra.mrb[36].mxu1 %vm5942_vm13, %v21175_v6  ;;  %v24687_v32 = vpop.permute.xlu0 %24686  ;;  %v22603_v12 = vpack.c.bf16 %v14995_v51, %v14988_v37  ;;  %v22606_v59 = vpack.c.bf16 %v14994_v35, %v14987_v13  ;;  %v24734_v37 = vunpack.i.h.bf16 %v24732_v38 }
 0xb2c   : > { %22584 = vmatpush1.bf16.msk.msra.mxu1 %vm27729_vm12, %v22582_v26  ;;  %14700 = vmatprep.mubr.f32.mxu1 %v29273_v42  ;;  %v24689_v41 = vunpack.i.h.bf16 %v24687_v32  ;;  %v24688_v30 = vunpack.i.l.bf16 %v24687_v32 }
 0xb2d   : > { %22587 = vmatprep.subr.msk.bf16.mxu1 %vm27729_vm12, %v22585_v61 }
 0xb2e   : > { %v14997_v9 = vsel %vm7827_vm15, %v24688_v30, %v24689_v41  ;;  %v14996_v50 = vsel %vm7827_vm15, %v24679_v62, %v24688_v30  ;;  %v14998_v22 = vsel %vm7827_vm15, %v24689_v41, %v24694_v25  ;;  %v24724_v62 = vunpack.i.h.bf16 %v24722_v60 }
 0xb2f   : > { %21180 = vmatmul.mubr.msk.f32.gmra.mrb[38].mxu1 %vm5942_vm13, %v21176_v28  ;;  %v29512_v0 = vpop.permute.xlu0 %24696  ;;  %v22609_v1 = vpack.c.bf16 %v14997_v9, %v14990_v31  ;;  %v22615_v29 = vpack.c.bf16 %v14998_v22, %v14991_v4  ;;  %v24744_v25 = vunpack.i.h.bf16 %v24742_v14  ;;  %v24752_v4 = vpop.permute.xlu1 %24751 }
 0xb30   : > { %14771 = vmatprep.mubr.f32.mxu1 %v29273_v42  ;;  %v24699_v17 = vunpack.i.h.bf16 %v29512_v0  ;;  %v24698_v61 = vunpack.i.l.bf16 %v29512_v0  ;;  %v15386_v41 = vsel %vm1825_vm9, %v24723_v10, %v24724_v62  ;;  %v15387_v9 = vsel %vm1825_vm9, %v24724_v62, %v24733_v49 }
 0xb31   : > { %v15785_v22 = vsel %vm8620_vm0, %v24743_v15, %v24744_v25 }
 0xb32   : > { %v15382_v44 = vsel %vm1825_vm9, %v24698_v61, %v24699_v17  ;;  %v15383_v16 = vsel %vm1825_vm9, %v24699_v17, %v24713_v27 }
 0xb33   : > { %21183 = vmatmul.mubr.msk.f32.vlgmr.msra.gmra.mrb[40].mxu1 %vm5942_vm13, %v21175_v6  ;;  %v24707_v23 = vpop.permute.xlu0 %24706  ;;  %v22621_v52 = vpack.c.bf16 %v15389_v7, %v15382_v44  ;;  %v24762_v44 = vpop.permute.xlu1 %24761 }
 0xb34   : > { %22590 = vmatpush1.bf16.msk.msra.mxu1 %vm27729_vm12, %v22588_v54  ;;  %14777 = vmatprep.mubr.f32.mxu1 %v29273_v42  ;;  %v24709_v24 = vunpack.i.h.bf16 %v24707_v23  ;;  %v24708_v11 = vunpack.i.l.bf16 %v24707_v23 }
 0xb35   : > { %22593 = vmatprep.subr.msk.bf16.mxu1 %vm27729_vm12, %v22591_v20 }
 0xb36   : > { %v15381_v53 = vsel %vm1825_vm9, %v24708_v11, %v24698_v61  ;;  %v15388_v5 = vsel %vm1825_vm9, %v24709_v24, %v24703_v40  ;;  %v24754_v61 = vunpack.i.h.bf16 %v24752_v4 }
 0xb37   : > { %21184 = vmatmul.mubr.msk.f32.gmra.mrb[42].mxu1 %vm5942_vm13, %v21176_v28  ;;  %v22624_v45 = vpack.c.bf16 %v15388_v5, %v15381_v53  ;;  %v21226_v53 = vld [vmem:[%s30557_s7 + $0x70] sm:$0xff]  ;;  %v24772_v60 = vpop.permute.xlu1 %24771 }
 0xb38   : > { %14848 = vmatprep.mubr.f32.mxu1 %v29273_v42  ;;  %v24773_v62 = vunpack.i.l.bf16 %v24772_v60 }
 0xb3b   : > { %21187 = vmatmul.mubr.msk.f32.vlgmr.msra.gmra.mrb[44].mxu1 %vm5942_vm13, %v21175_v6  ;;  %v24782_v38 = vpop.permute.xlu1 %24781 }
 0xb3c   : > { %22596 = vmatpush3.bf16.msk.msra.mxu1 %vm27729_vm12, %v22591_v20  ;;  %14854 = vmatprep.mubr.f32.mxu1 %v29273_v42  ;;  %v24783_v49 = vunpack.i.l.bf16 %v24782_v38 }
 0xb3d   : > { %22599 = vmatprep.subr.msk.bf16.mxu1 %vm27729_vm12, %v22597_v21  ;;  %v15384_v21 = vsel %vm1825_vm9, %v24713_v27, %v24714_v43 }
 0xb3f   : > { %21188 = vmatmul.mubr.msk.f32.gmra.mrb[46].mxu1 %vm5942_vm13, %v21176_v28 }
 0xb40   : > { %21856 = vmatprep.mubr.msk.f32.mxu1 %vm5942_vm13, %v21175_v6  ;;  %v14989_v6 = vsel %vm7827_vm15, %v24674_v46, %v24683_v39  ;;  %v21210_v39 = vld [vmem:[%s30557_s7 + $0x68] sm:$0x3] }
 0xb41   : > { %v22612_v26 = vpack.c.bf16 %v14996_v50, %v14989_v6 }
 0xb43   : > { %21857 = vmatmul.mubr.msk.f32.vlgmr.msra.gmra.mrb[48].mxu1 %vm5942_vm13, %v21176_v28  ;;  %v24717_v28 = vpop.permute.xlu0 %24716 }
 0xb44   : > { %22602 = vmatpush1.bf16.msk.msra.mxu1 %vm27729_vm12, %v22600_v57  ;;  %15090 = vmatprep.mubr.f32.mxu1 %v29273_v42  ;;  %v24719_v54 = vunpack.i.h.bf16 %v24717_v28  ;;  %v24718_v20 = vunpack.i.l.bf16 %v24717_v28 }
 0xb45   : > { %22605 = vmatprep.subr.msk.bf16.mxu1 %vm27729_vm12, %v22603_v12 }
 0xb46   : > { %v15391_v8 = vsel %vm1825_vm9, %v24718_v20, %v24719_v54  ;;  %v15390_v32 = vsel %vm1825_vm9, %v24704_v33, %v24718_v20  ;;  %v24753_v33 = vunpack.i.l.bf16 %v24752_v4  ;;  %v24763_v20 = vunpack.i.l.bf16 %v24762_v44 }
 0xb47   : > { %21196 = vmatmul.mubr.msk.f32.vlgmr.msra.gmra.mrb[36].mxu1 %vm5942_vm13, %v21192_v19  ;;  %v24727_v48 = vpop.permute.xlu0 %24726  ;;  %v22627_v46 = vpack.c.bf16 %v15391_v8, %v15384_v21  ;;  %v22630_v51 = vpack.c.bf16 %v15390_v32, %v15383_v16  ;;  %v24774_v21 = vunpack.i.h.bf16 %v24772_v60  ;;  %v563_v60 = vld [vmem:[%s30551_s1] sm:$0xff] }
 0xb48   : > { %22608 = vmatpush1.bf16.msk.msra.mxu1 %vm27729_vm12, %v22606_v59  ;;  %15096 = vmatprep.mubr.f32.mxu1 %v29273_v42  ;;  %v24729_v36 = vunpack.i.h.bf16 %v24727_v48  ;;  %v24728_v63 = vunpack.i.l.bf16 %v24727_v48  ;;  %vm16601_vm3 = vcmp.gt.f32.partialorder %v563_v60, 0.0 }
 0xb49   : > { %22611 = vmatprep.subr.msk.bf16.mxu1 %vm27729_vm12, %v22609_v1 }
 0xb4a   : > { %v15393_v34 = vsel %vm1825_vm9, %v24728_v63, %v24729_v36  ;;  %v15392_v35 = vsel %vm1825_vm9, %v24719_v54, %v24728_v63  ;;  %v15394_v12 = vsel %vm1825_vm9, %v24729_v36, %v24734_v37  ;;  %v24764_v54 = vunpack.i.h.bf16 %v24762_v44 }
 0xb4b   : > { %21197 = vmatmul.mubr.msk.f32.gmra.mrb[38].mxu1 %vm5942_vm13, %v21193_v18  ;;  %v22633_v30 = vpack.c.bf16 %v15393_v34, %v15386_v41  ;;  %v29566_v57 = vpop.permute.xlu0 %24736  ;;  %v22639_v31 = vpack.c.bf16 %v15394_v12, %v15387_v9  ;;  %v24784_v37 = vunpack.i.h.bf16 %v24782_v38  ;;  %v24792_v9 = vpop.permute.xlu1 %24791 }
 0xb4c   : > { %15167 = vmatprep.mubr.f32.mxu1 %v29273_v42  ;;  %v24739_v0 = vunpack.i.h.bf16 %v29566_v57  ;;  %v24738_v1 = vunpack.i.l.bf16 %v29566_v57  ;;  %v15782_v36 = vsel %vm8620_vm0, %v24763_v20, %v24764_v54  ;;  %v15783_v34 = vsel %vm8620_vm0, %v24764_v54, %v24773_v62  ;;  %v21244_v54 = vld [vmem:[%s30557_s7 + $0x88] sm:$0x3] }
 0xb4d   : > { %v16181_v12 = vsel %vm9017_vm1, %v24783_v49, %v24784_v37 }
 0xb4e   : > { %v15778_v50 = vsel %vm8620_vm0, %v24738_v1, %v24739_v0  ;;  %v15779_v5 = vsel %vm8620_vm0, %v24739_v0, %v24753_v33 }
 0xb4f   : > { %21200 = vmatmul.mubr.msk.f32.vlgmr.msra.gmra.mrb[40].mxu1 %vm5942_vm13, %v21192_v19  ;;  %v24747_v13 = vpop.permute.xlu0 %24746  ;;  %v22645_v47 = vpack.c.bf16 %v15785_v22, %v15778_v50  ;;  %v24802_v50 = vpop.permute.xlu1 %24801 }
 0xb50   : > { %22614 = vmatpush1.bf16.msk.msra.mxu1 %vm27729_vm12, %v22612_v26  ;;  %15173 = vmatprep.mubr.f32.mxu1 %v29273_v42  ;;  %v24749_v6 = vunpack.i.h.bf16 %v24747_v13  ;;  %v24748_v23 = vunpack.i.l.bf16 %v24747_v13 }
 0xb51   : > { %22617 = vmatprep.subr.msk.bf16.mxu1 %vm27729_vm12, %v22615_v29 }
 0xb52   : > { %v15777_v40 = vsel %vm8620_vm0, %v24748_v23, %v24738_v1  ;;  %v15784_v28 = vsel %vm8620_vm0, %v24749_v6, %v24743_v15  ;;  %v24794_v1 = vunpack.i.h.bf16 %v24792_v9 }
 0xb53   : > { %21201 = vmatmul.mubr.msk.f32.gmra.mrb[42].mxu1 %vm5942_vm13, %v21193_v18  ;;  %v22648_v11 = vpack.c.bf16 %v15784_v28, %v15777_v40  ;;  %v21243_v40 = vld [vmem:[%s30557_s7 + $0x80] sm:$0xff]  ;;  %v24812_v44 = vpop.permute.xlu1 %24811 }
 0xb54   : > { %15244 = vmatprep.mubr.f32.mxu1 %v29273_v42 }
 0xb57   : > { %21204 = vmatmul.mubr.msk.f32.vlgmr.msra.gmra.mrb[44].mxu1 %vm5942_vm13, %v21192_v19 }
 0xb58   : > { %22620 = vmatpush3.bf16.msk.msra.mxu1 %vm27729_vm12, %v22615_v29  ;;  %15250 = vmatprep.mubr.f32.mxu1 %v29273_v42 }
 0xb59   : > { %22623 = vmatprep.subr.msk.bf16.mxu1 %vm27729_vm12, %v22621_v52  ;;  %v15780_v52 = vsel %vm8620_vm0, %v24753_v33, %v24754_v61 }
 0xb5b   : > { %21205 = vmatmul.mubr.msk.f32.gmra.mrb[46].mxu1 %vm5942_vm13, %v21193_v18 }
 0xb5c   : > { %21863 = vmatprep.mubr.msk.f32.mxu1 %vm5942_vm13, %v21192_v19  ;;  %v15385_v19 = vsel %vm1825_vm9, %v24714_v43, %v24723_v10  ;;  %v21227_v10 = vld [vmem:[%s30557_s7 + $0x78] sm:$0x3] }
 0xb5d   : > { %v22636_v59 = vpack.c.bf16 %v15392_v35, %v15385_v19 }
 0xb5f   : > { %21864 = vmatmul.mubr.msk.f32.vlgmr.msra.gmra.mrb[48].mxu1 %vm5942_vm13, %v21193_v18  ;;  %v24757_v18 = vpop.permute.xlu0 %24756 }
 0xb60   : > { %22626 = vmatpush1.bf16.msk.msra.mxu1 %vm27729_vm12, %v22624_v45  ;;  %15486 = vmatprep.mubr.f32.mxu1 %v29273_v42  ;;  %v24759_v26 = vunpack.i.h.bf16 %v24757_v18  ;;  %v24758_v29 = vunpack.i.l.bf16 %v24757_v18 }
 0xb61   : > { %22629 = vmatprep.subr.msk.bf16.mxu1 %vm27729_vm12, %v22627_v46 }
 0xb62   : > { %v15787_v7 = vsel %vm8620_vm0, %v24758_v29, %v24759_v26  ;;  %v15786_v48 = vsel %vm8620_vm0, %v24744_v25, %v24758_v29  ;;  %v24793_v25 = vunpack.i.l.bf16 %v24792_v9  ;;  %v24803_v29 = vunpack.i.l.bf16 %v24802_v50 }
 0xb63   : > { %21213 = vmatmul.mubr.msk.f32.vlgmr.msra.gmra.mrb[36].mxu1 %vm5942_vm13, %v21209_v2  ;;  %v24767_v17 = vpop.permute.xlu0 %24766  ;;  %v22651_v43 = vpack.c.bf16 %v15787_v7, %v15780_v52  ;;  %v22654_v8 = vpack.c.bf16 %v15786_v48, %v15779_v5  ;;  %v24813_v52 = vunpack.i.l.bf16 %v24812_v44 }
 0xb64   : > { %22632 = vmatpush1.bf16.msk.msra.mxu1 %vm27729_vm12, %v22630_v51  ;;  %15492 = vmatprep.mubr.f32.mxu1 %v29273_v42  ;;  %v24769_v56 = vunpack.i.h.bf16 %v24767_v17  ;;  %v24768_v24 = vunpack.i.l.bf16 %v24767_v17 }
 0xb65   : > { %22635 = vmatprep.subr.msk.bf16.mxu1 %vm27729_vm12, %v22633_v30 }
 0xb66   : > { %v15789_v27 = vsel %vm8620_vm0, %v24768_v24, %v24769_v56  ;;  %v15788_v32 = vsel %vm8620_vm0, %v24759_v26, %v24768_v24  ;;  %v15790_v46 = vsel %vm8620_vm0, %v24769_v56, %v24774_v21  ;;  %v24804_v26 = vunpack.i.h.bf16 %v24802_v50  ;;  %v30730_v21 = vld [vmem:[#allocation7_spill] sm:$0xff] }
 0xb67   : > { %21214 = vmatmul.mubr.msk.f32.gmra.mrb[38].mxu1 %vm5942_vm13, %v21210_v39  ;;  %v22657_v63 = vpack.c.bf16 %v15789_v27, %v15782_v36  ;;  %v29620_v45 = vpop.permute.xlu0 %24776  ;;  %v22663_v41 = vpack.c.bf16 %v15790_v46, %v15783_v34  ;;  %v29687_v27 = vld [vmem:[#allocation2 + $0x40] sm:$0xff]  ;;  %v30731_v46 = vld [vmem:[#allocation5_spill] sm:$0xff] }
 0xb68   : > { %15563 = vmatprep.mubr.f32.mxu1 %v29273_v42  ;;  %v24779_v30 = vunpack.i.h.bf16 %v29620_v45  ;;  %v24778_v57 = vunpack.i.l.bf16 %v29620_v45  ;;  %v16178_v56 = vsel %vm9017_vm1, %v24803_v29, %v24804_v26 }
 0xb6a   : > { %v16174_v35 = vsel %vm9017_vm1, %v24778_v57, %v24779_v30  ;;  %v16175_v28 = vsel %vm9017_vm1, %v24779_v30, %v24793_v25 }
 0xb6b   : > { %21217 = vmatmul.mubr.msk.f32.vlgmr.msra.gmra.mrb[40].mxu1 %vm5942_vm13, %v21209_v2  ;;  %v24787_v16 = vpop.permute.xlu0 %24786  ;;  %v22669_v14 = vpack.c.bf16 %v16181_v12, %v16174_v35 }
 0xb6c   : > { %22638 = vmatpush1.bf16.msk.msra.mxu1 %vm27729_vm12, %v22636_v59  ;;  %15569 = vmatprep.mubr.f32.mxu1 %v29273_v42  ;;  %v24789_v19 = vunpack.i.h.bf16 %v24787_v16  ;;  %v24788_v13 = vunpack.i.l.bf16 %v24787_v16 }
 0xb6d   : > { %22641 = vmatprep.subr.msk.bf16.mxu1 %vm27729_vm12, %v22639_v31 }
 0xb6e   : > { %v16173_v15 = vsel %vm9017_vm1, %v24788_v13, %v24778_v57  ;;  %v16180_v18 = vsel %vm9017_vm1, %v24789_v19, %v24783_v49 }
 0xb6f   : > { %21218 = vmatmul.mubr.msk.f32.gmra.mrb[42].mxu1 %vm5942_vm13, %v21210_v39  ;;  %v22672_v23 = vpack.c.bf16 %v16180_v18, %v16173_v15  ;;  %v16674_v15 = vld [vmem:[#allocation3 + $0x48] sm:$0x3] }
 0xb70   : > { %15640 = vmatprep.mubr.f32.mxu1 %v29273_v42 }
 0xb73   : > { %21221 = vmatmul.mubr.msk.f32.vlgmr.msra.gmra.mrb[44].mxu1 %vm5942_vm13, %v21209_v2 }
 0xb74   : > { %22644 = vmatpush3.bf16.msk.msra.mxu1 %vm27729_vm12, %v22639_v31  ;;  %15646 = vmatprep.mubr.f32.mxu1 %v29273_v42 }
 0xb75   : > { %22647 = vmatprep.subr.msk.bf16.mxu1 %vm27729_vm12, %v22645_v47  ;;  %v16176_v47 = vsel %vm9017_vm1, %v24793_v25, %v24794_v1 }
 0xb77   : > { %21222 = vmatmul.mubr.msk.f32.gmra.mrb[46].mxu1 %vm5942_vm13, %v21210_v39 }
 0xb78   : > { %21870 = vmatprep.mubr.msk.f32.mxu1 %vm5942_vm13, %v21209_v2  ;;  %v15781_v2 = vsel %vm8620_vm0, %v24754_v61, %v24763_v20  ;;  %vm16735_vm0 = vcmask 457728  }
 0xb79   : > { %v22660_v51 = vpack.c.bf16 %v15788_v32, %v15781_v2  ;;  %v29719_v2 = vpop.permute.xlu1 %16557 }
 0xb7b   : > { %21871 = vmatmul.mubr.msk.f32.vlgmr.msra.gmra.mrb[48].mxu1 %vm5942_vm13, %v21210_v39  ;;  %v24797_v39 = vpop.permute.xlu0 %24796 }
 0xb7c   : > { %22650 = vmatpush1.bf16.msk.msra.mxu1 %vm27729_vm12, %v22648_v11  ;;  %15882 = vmatprep.mubr.f32.mxu1 %v29273_v42  ;;  %v24799_v59 = vunpack.i.h.bf16 %v24797_v39  ;;  %v24798_v31 = vunpack.i.l.bf16 %v24797_v39  ;;  %v24814_v11 = vunpack.i.h.bf16 %v24812_v44 }
 0xb7d   : > { %22653 = vmatprep.subr.msk.bf16.mxu1 %vm27729_vm12, %v22651_v43  ;;  %v16179_v43 = vsel %vm9017_vm1, %v24804_v26, %v24813_v52 }
 0xb7e   : > { %v16183_v22 = vsel %vm9017_vm1, %v24798_v31, %v24799_v59  ;;  %v16182_v17 = vsel %vm9017_vm1, %v24784_v37, %v24798_v31 }
 0xb7f   : > { %21230 = vmatmul.mubr.msk.f32.vlgmr.msra.gmra.mrb[36].mxu1 %vm5942_vm13, %v21226_v53  ;;  %v24807_v0 = vpop.permute.xlu0 %24806  ;;  %v22675_v61 = vpack.c.bf16 %v16183_v22, %v16176_v47  ;;  %v22678_v7 = vpack.c.bf16 %v16182_v17, %v16175_v28 }
 0xb80   : > { %22656 = vmatpush1.bf16.msk.msra.mxu1 %vm27729_vm12, %v22654_v8  ;;  %15888 = vmatprep.mubr.f32.mxu1 %v29273_v42  ;;  %v24809_v4 = vunpack.i.h.bf16 %v24807_v0  ;;  %v24808_v6 = vunpack.i.l.bf16 %v24807_v0  ;;  %v30729_v8 = vmov 0  }
 0xb81   : > { %22659 = vmatprep.subr.msk.bf16.mxu1 %vm27729_vm12, %v22657_v63  ;;  %v29711_v36 = vsel %vm16601_vm3, 1, %v30729_v8  ;;  %vm17498_vm3 = vcmask 441344  }
 0xb82   : > { %v16185_v33 = vsel %vm9017_vm1, %v24808_v6, %v24809_v4  ;;  %v16184_v20 = vsel %vm9017_vm1, %v24799_v59, %v24808_v6  ;;  %v16186_v48 = vsel %vm9017_vm1, %v24809_v4, %v24814_v11  ;;  %v16606_v62 = vrot.slane %v29711_v36, %v30730_v21  ;;  %v30737_v4 = vld [vmem:[#allocation6_spill] sm:$0xff] }
 0xb83   : > { %21231 = vmatmul.mubr.msk.f32.gmra.mrb[38].mxu1 %vm5942_vm13, %v21227_v10  ;;  %v22681_v24 = vpack.c.bf16 %v16185_v33, %v16178_v56  ;;  %v22687_v5 = vpack.c.bf16 %v16186_v48, %v16179_v43  ;;  %v29713_v63 = vpop.permute.xlu0 %16552  ;;  %v16610_v34 = vrot.slane %v29711_v36, %v30731_v46  ;;  %v16618_v6 = vrot.slane %v29711_v36, %v30737_v4 }
 0xb84   : > { %15959 = vmatprep.mubr.f32.mxu1 %v29273_v42  ;;  %vm29724_vm4 = vcmp.eq.s32.totalorder %v16606_v62, 1 }
 0xb85   : > { %vm29730_vm5 = vcmp.eq.s32.totalorder %v16610_v34, 1  ;;  %vm29773_vm9 = vcmp.eq.s32.totalorder %v16618_v6, 1 }
 0xb87   : > { %21234 = vmatmul.mubr.msk.f32.vlgmr.msra.gmra.mrb[40].mxu1 %vm5942_vm13, %v21226_v53 }
 0xb88   : > { %22662 = vmatpush1.bf16.msk.msra.mxu1 %vm27729_vm12, %v22660_v51  ;;  %15965 = vmatprep.mubr.f32.mxu1 %v29273_v42  ;;  %v29722_v51 = vpop.permute.xlu0 %16579 }
 0xb89   : > { %22665 = vmatprep.subr.msk.bf16.mxu1 %vm27729_vm12, %v22663_v41 }
 0xb8b   : > { %21235 = vmatmul.mubr.msk.f32.gmra.mrb[42].mxu1 %vm5942_vm13, %v21227_v10 }
 0xb8c   : > { %16036 = vmatprep.mubr.f32.mxu1 %v29273_v42 }
 0xb8f   : > { %21238 = vmatmul.mubr.msk.f32.vlgmr.msra.gmra.mrb[44].mxu1 %vm5942_vm13, %v21226_v53 }
 0xb90   : > { %22668 = vmatpush3.bf16.msk.msra.mxu1 %vm27729_vm12, %v22663_v41  ;;  %16042 = vmatprep.mubr.f32.mxu1 %v29273_v42 }
 0xb91   : > { %22671 = vmatprep.subr.msk.bf16.mxu1 %vm27729_vm12, %v22669_v14  ;;  %v29740_v14 = vpop.permute.xlu1 %16584 }
 0xb93   : > { %21239 = vmatmul.mubr.msk.f32.gmra.mrb[46].mxu1 %vm5942_vm13, %v21227_v10 }
 0xb94   : > { %21877 = vmatprep.mubr.msk.f32.mxu1 %vm5942_vm13, %v21226_v53 }
 0xb97   : > { %21878 = vmatmul.mubr.msk.f32.vlgmr.msra.gmra.mrb[48].mxu1 %vm5942_vm13, %v21227_v10 }
 0xb98   : > { %22674 = vmatpush1.bf16.msk.msra.mxu1 %vm27729_vm12, %v22672_v23  ;;  %16278 = vmatprep.mubr.f32.mxu1 %v29273_v42 }
 0xb99   : > { %22677 = vmatprep.subr.msk.bf16.mxu1 %vm27729_vm12, %v22675_v61  ;;  %v29763_v61 = vpack.i.bf16 %v16674_v15, %v29687_v27 }
 0xb9b   : > { %21247 = vmatmul.mubr.msk.f32.vlgmr.msra.gmra.mrb[36].mxu1 %vm5942_vm13, %v21243_v40 }
 0xb9c   : > { %22680 = vmatpush1.bf16.msk.msra.mxu1 %vm27729_vm12, %v22678_v7  ;;  %16284 = vmatprep.mubr.f32.mxu1 %v29273_v42  ;;  %v16177_v42 = vsel %vm9017_vm1, %v24794_v1, %v24803_v29  ;;  %v30736_v1 = vld [vmem:[#allocation4_spill] sm:$0xff]  ;;  %vm17115_vm1 = vcmask 474112  }
 0xb9d   : > { %22683 = vmatprep.subr.msk.bf16.mxu1 %vm27729_vm12, %v22681_v24  ;;  %v22684_v53 = vpack.c.bf16 %v16184_v20, %v16177_v42  ;;  %v16614_v25 = vrot.slane %v29711_v36, %v30736_v1 }
 0xb9f   : > { %21248 = vmatmul.mubr.msk.f32.gmra.mrb[38].mxu1 %vm5942_vm13, %v21244_v54  ;;  %vm29767_vm7 = vcmp.eq.s32.totalorder %v16614_v25, 1 }
 0xba0   : > { %16355 = vmatprep.mubr.f32.mxu1 %v29687_v27 }
 0xba3   : > { %21251 = vmatmul.mubr.msk.f32.vlgmr.msra.gmra.mrb[40].mxu1 %vm5942_vm13, %v21243_v40 }
 0xba4   : > { %22686 = vmatpush1.bf16.msk.msra.mxu1 %vm27729_vm12, %v22684_v53  ;;  %16361 = vmatprep.mubr.f32.mxu1 %v29687_v27 }
 0xba5   : > { %22689 = vmatprep.subr.msk.bf16.mxu1 %vm27729_vm12, %v22687_v5 }
 0xba7   : > { %21252 = vmatmul.mubr.msk.f32.gmra.mrb[42].mxu1 %vm5942_vm13, %v21244_v54 }
 0xba8   : > { %16432 = vmatprep.mubr.f32.mxu1 %v29687_v27 }
 0xbab   : > { %21255 = vmatmul.mubr.msk.f32.vlgmr.msra.gmra.mrb[44].mxu1 %vm5942_vm13, %v21243_v40 }
 0xbac   : > { %22692 = vmatpush3.bf16.msk.msra.mxu1 %vm27729_vm12, %v22687_v5  ;;  %16438 = vmatprep.mubr.f32.mxu1 %v29687_v27  ;;  %v30742_v5 = vld [vmem:[#allocation9_spill] sm:$0xff] }
 0xbad   : > { %v16622_v60 = vrot.slane %v29711_v36, %v30742_v5 }
 0xbaf   : > { %21256 = vmatmul.mubr.msk.f32.gmra.mrb[46].mxu1 %vm5942_vm13, %v21244_v54  ;;  %vm29811_vm11 = vcmp.eq.s32.totalorder %v16622_v60, 1 }
 0xbb0   : > { %21884 = vmatprep.mubr.msk.f32.mxu1 %vm5942_vm13, %v21243_v40 }
 0xbb3   : > { %21885 = vmatmul.mubr.msk.f32.vlgmr.msra.gmra.mrb[48].mxu1 %vm5942_vm13, %v21244_v54 }
 0xbb4   : > { %20391 = vmatprep.mubr.f32.mxu1 %v29687_v27 }
 0xc6e   : > { %v16280_v45 = vpop.f32.mrb[36].mxu1 }
 0xc6f   : > { %v16534_v10 = vmax.f32 %v16280_v45, 0.0  ;;  %v16282_v32 = vpop.f32.mrb[37].mxu1 }
 0xc70   : > { %v16535_v16 = vmax.f32 %v16282_v32, 0.0 }
 0xc71   : > { %v16560_v38 = vmul.f32 %v29713_v63, %v16534_v10  ;;  %v16626_v10 = vrot.slane %v29711_v36, %v30700_v58 }
 0xc72   : > { %v16561_v30 = vmul.f32 %v29713_v63, %v16535_v16  ;;  %v16286_v57 = vpop.f32.mrb[38].mxu1 }
 0xc73   : > { %v16587_v37 = vadd.f32 %v29722_v51, %v16560_v38  ;;  %v16541_v39 = vmax.f32 %v16286_v57, 0.0  ;;  %v16288_v35 = vpop.f32.mrb[39].mxu1  ;;  %vm29821_vm14 = vcmp.eq.s32.totalorder %v16626_v10, 1 }
 0xc74   : > { %v16588_v12 = vadd.f32 %v29722_v51, %v16561_v30  ;;  %v16542_v9 = vmax.f32 %v16288_v35, 0.0 }
 0xc75   : > { %v29737_v19 = vsel %vm29724_vm4, %v16587_v37, 0.0  ;;  %v16567_v13 = vmul.f32 %v29719_v2, %v16541_v39 }
 0xc76   : > { %v29744_v59 = vsel %vm29730_vm5, %v16588_v12, 0.0  ;;  %v16568_v31 = vmul.f32 %v29719_v2, %v16542_v9  ;;  %v16357_v0 = vpop.f32.mrb[40].mxu1 }
 0xc77   : > { %v16594_v18 = vadd.f32 %v29740_v14, %v16567_v13  ;;  %v16536_v50 = vmax.f32 %v16357_v0, 0.0  ;;  %v16359_v22 = vpop.f32.mrb[41].mxu1  ;;  %v29754_v23 = vpack.i.bf16 %v29744_v59, %v29737_v19 }
 0xc78   : > { %v16595_v47 = vadd.f32 %v29740_v14, %v16568_v31  ;;  %v16537_v26 = vmax.f32 %v16359_v22, 0.0 }
 0xc79   : > { %v16645_v29 = vsel %vm29724_vm4, %v16594_v18, 0.0  ;;  %v16562_v17 = vmul.f32 %v29713_v63, %v16536_v50  ;;  %24816 = vrot.lane.b32.xlu0 %v29754_v23, %s25173_s20 }
 0xc7a   : > { %16659 = vst [vmem:[#allocation3 + $0x50] sm:$0x3] %v16645_v29  ;;  %v16646_v33 = vsel %vm29730_vm5, %v16595_v47, 0.0  ;;  %v16563_v28 = vmul.f32 %v29713_v63, %v16537_v26  ;;  %v16363_v44 = vpop.f32.mrb[42].mxu1  ;;  %v16630_v26 = vrot.slane %v29711_v36, %v30701_v3 }
 0xc7b   : > { %16660 = vst [vmem:[#allocation3 + $0x58] sm:$0x3] %v16646_v33  ;;  %v16589_v7 = vadd.f32 %v29722_v51, %v16562_v17  ;;  %v16543_v24 = vmax.f32 %v16363_v44, 0.0  ;;  %v16365_v11 = vpop.f32.mrb[43].mxu1 }
 0xc7c   : > { %v16590_v52 = vadd.f32 %v29722_v51, %v16563_v28  ;;  %v16544_v54 = vmax.f32 %v16365_v11, 0.0  ;;  %vm29863_vm15 = vcmp.eq.s32.totalorder %v16630_v26, 1 }
 0xc7d   : > { %v29780_v20 = vsel %vm29767_vm7, %v16589_v7, 0.0  ;;  %v16569_v48 = vmul.f32 %v29719_v2, %v16543_v24  ;;  %24826 = vrot.lane.b32.xlu0 %v29763_v61, %s25173_s20 }
 0xc7e   : > { %v29787_v43 = vsel %vm29773_vm9, %v16590_v52, 0.0  ;;  %v16570_v42 = vmul.f32 %v29719_v2, %v16544_v54  ;;  %v16434_v53 = vpop.f32.mrb[44].mxu1  ;;  %v29794_v8 = vpack.i.bf16 %v29780_v20, %v29744_v59 }
 0xc7f   : > { %v16596_v45 = vadd.f32 %v29740_v14, %v16569_v48  ;;  %v16538_v21 = vmax.f32 %v16434_v53, 0.0  ;;  %v16436_v62 = vpop.f32.mrb[45].mxu1  ;;  %v29801_v32 = vpack.i.bf16 %v29787_v43, %v29780_v20 }
 0xc80   : > { %v16597_v46 = vadd.f32 %v29740_v14, %v16570_v42  ;;  %v16539_v34 = vmax.f32 %v16436_v62, 0.0 }
 0xc81   : > { %v16647_v16 = vsel %vm29767_vm7, %v16596_v45, 0.0  ;;  %v16564_v38 = vmul.f32 %v29713_v63, %v16538_v21  ;;  %v29807_v30 = vld [vmem:[#allocation3 + $0x50] sm:$0x3] }
 0xc82   : > { %16661 = vst [vmem:[#allocation3 + $0x60] sm:$0x3] %v16647_v16  ;;  %v16648_v57 = vsel %vm29773_vm9, %v16597_v46, 0.0  ;;  %v16565_v37 = vmul.f32 %v29713_v63, %v16539_v34  ;;  %v16440_v39 = vpop.f32.mrb[46].mxu1  ;;  %v29816_v35 = vld [vmem:[#allocation3 + $0x58] sm:$0x3]  ;;  %v22792_v12 = vpack.c.bf16 %v29807_v30, %v29737_v19 }
 0xc83   : > { %16662 = vst [vmem:[#allocation3 + $0x68] sm:$0x3] %v16648_v57  ;;  %v16591_v9 = vadd.f32 %v29722_v51, %v16564_v38  ;;  %v16545_v31 = vmax.f32 %v16440_v39, 0.0  ;;  %v16442_v0 = vpop.f32.mrb[47].mxu1  ;;  %v29827_v1 = vpack.i.bf16 %v29816_v35, %v29807_v30  ;;  %v22789_v22 = vpack.c.bf16 %v29816_v35, %v29744_v59  ;;  %v18608_v39 = vld [vmem:[#allocation3 + $0x50] sm:$0x3] }
 0xc84   : > { %v16592_v25 = vadd.f32 %v29722_v51, %v16565_v37  ;;  %v16546_v15 = vmax.f32 %v16442_v0, 0.0  ;;  %v24985_v0 = vpack.i.bf16 %v18608_v39, %v29737_v19  ;;  %v21328_v59 = vld [vmem:[%s30558_s8 + $0x40] sm:$0xff]  ;;  %v21329_v19 = vld [vmem:[%s30558_s8 + $0x48] sm:$0x3] }
 0xc85   : > { %v29832_v18 = vsel %vm29811_vm11, %v16591_v9, 0.0  ;;  %v16571_v50 = vmul.f32 %v29719_v2, %v16545_v31  ;;  %24821 = vrot.lane.b32.xlu1 %v29827_v1, %s25173_s20  ;;  %v18609_v9 = vld [vmem:[#allocation3 + $0x58] sm:$0x3] }
 0xc86   : > { %v29841_v4 = vsel %vm29821_vm14, %v16592_v25, 0.0  ;;  %v16572_v6 = vmul.f32 %v29719_v2, %v16546_v15  ;;  %v21886_v47 = vpop.f32.mrb[48].mxu1  ;;  %v29848_v29 = vpack.i.bf16 %v29832_v18, %v29787_v43  ;;  %v18615_v25 = vld [vmem:[#allocation3 + $0x88] sm:$0x3] }
 0xc87   : > { %v16598_v17 = vadd.f32 %v29740_v14, %v16571_v50  ;;  %v16547_v33 = vmax.f32 %v21886_v47, 0.0  ;;  %v16511_v28 = vpop.f32.mrb[49].mxu1  ;;  %v24840_v44 = vpack.i.bf16 %v29841_v4, %v29832_v18 }
 0xc88   : > { %v16599_v7 = vadd.f32 %v29740_v14, %v16572_v6  ;;  %v16540_v24 = vmax.f32 %v16511_v28, 0.0  ;;  %v29926_v6 = vpack.i.bf16 %v18615_v25, %v29687_v27 }
 0xc89   : > { %v16649_v11 = vsel %vm29811_vm11, %v16598_v17, 0.0  ;;  %v16573_v52 = vmul.f32 %v29719_v2, %v16547_v33  ;;  %24831 = vrot.lane.b32.xlu1 %v29801_v32, %s25173_s20  ;;  %v29859_v3 = vld [vmem:[#allocation3 + $0x60] sm:$0x3] }
 0xc8a   : > { %16663 = vst [vmem:[#allocation3 + $0x70] sm:$0x3] %v16649_v11  ;;  %v16650_v36 = vsel %vm29821_vm14, %v16599_v7, 0.0  ;;  %v16566_v48 = vmul.f32 %v29713_v63, %v16540_v24  ;;  %v29868_v42 = vld [vmem:[#allocation3 + $0x68] sm:$0x3]  ;;  %v22798_v45 = vpack.c.bf16 %v29859_v3, %v29780_v20 }
 0xc8b   : > { %16664 = vst [vmem:[#allocation3 + $0x78] sm:$0x3] %v16650_v36  ;;  %v16600_v2 = vadd.f32 %v29740_v14, %v16573_v52  ;;  %v24835_v53 = vpack.i.bf16 %v29868_v42, %v29859_v3  ;;  %v22795_v63 = vpack.c.bf16 %v29868_v42, %v29787_v43  ;;  %v18610_v37 = vld [vmem:[#allocation3 + $0x60] sm:$0x3] }
 0xc8c   : > { %v16593_v5 = vadd.f32 %v29722_v51, %v16566_v48  ;;  %v24980_v31 = vpack.i.bf16 %v18610_v37, %v18609_v9 }
 0xc8d   : > { %v16651_v60 = vsel %vm29863_vm15, %v16600_v2, 0.0  ;;  %24836 = vrot.lane.b32.xlu0 %v24835_v53, %s25173_s20  ;;  %24841 = vrot.lane.b32.xlu1 %v24840_v44, %s25173_s20 }
 0xc8e   : > { %16665 = vst [vmem:[#allocation3 + $0x80] sm:$0x3] %v16651_v60  ;;  %v16644_v14 = vsel %vm29863_vm15, %v16593_v5, 0.0 }
 0xc8f   : > { %v29885_v21 = vpack.i.bf16 %v16644_v14, %v29841_v4 }
 0xc91   : > { %v29887_v51 = vld [vmem:[#allocation3 + $0x70] sm:$0x3] }
 0xc92   : > { %v29889_v62 = vld [vmem:[#allocation3 + $0x78] sm:$0x3]  ;;  %v22804_v34 = vpack.c.bf16 %v29887_v51, %v29832_v18 }
 0xc93   : > { %v24845_v10 = vpack.i.bf16 %v29889_v62, %v29887_v51  ;;  %v22801_v46 = vpack.c.bf16 %v29889_v62, %v29841_v4  ;;  %v18613_v15 = vld [vmem:[#allocation3 + $0x78] sm:$0x3] }
 0xc95   : > { %24846 = vrot.lane.b32.xlu0 %v24845_v10, %s25173_s20  ;;  %v16681_v16 = vld [vmem:[#allocation3 + $0x80] sm:$0x3] }
 0xc96   : > { %v24855_v38 = vpack.i.bf16 %v16681_v16, %v16644_v14  ;;  %v29898_v57 = vpack.c.bf16 %v16681_v16, %v16644_v14 }
 0xc98   : > { %24856 = vrot.lane.b32.xlu1 %v24855_v38, %s25173_s20 }
 0xc99   : > { %24851 = vrot.lane.b32.xlu0 %v29754_v23, %s25174_s19 }
 0xc9c   : > { %24861 = vrot.lane.b32.xlu1 %v29827_v1, %s25174_s19 }
 0xc9d   : > { %24866 = vrot.lane.b32.xlu0 %v29763_v61, %s25174_s19 }
 0xca0   : > { %24871 = vrot.lane.b32.xlu1 %v29801_v32, %s25174_s19 }
 0xca1   : > { %24876 = vrot.lane.b32.xlu0 %v24835_v53, %s25174_s19 }
 0xca4   : > { %24881 = vrot.lane.b32.xlu1 %v24840_v44, %s25174_s19 }
 0xca5   : > { %24886 = vrot.lane.b32.xlu0 %v24845_v10, %s25174_s19 }
 0xca8   : > { %24896 = vrot.lane.b32.xlu1 %v24855_v38, %s25174_s19  ;;  %s21439_s19 = sshll.u32 %s30750_s22, 4 }
 0xca9   : > { %24891 = vrot.lane.b32.xlu0 %v29754_v23, %s25175_s18 }
 0xcac   : > { %24901 = vrot.lane.b32.xlu1 %v29827_v1, %s25175_s18 }
 0xcad   : > { %24906 = vrot.lane.b32.xlu0 %v29763_v61, %s25175_s18 }
 0xcb0   : > { %24911 = vrot.lane.b32.xlu1 %v29801_v32, %s25175_s18 }
 0xcb1   : > { %24916 = vrot.lane.b32.xlu0 %v24835_v53, %s25175_s18 }
 0xcb4   : > { %24921 = vrot.lane.b32.xlu1 %v24840_v44, %s25175_s18 }
 0xcb5   : > { %24926 = vrot.lane.b32.xlu0 %v24845_v10, %s25175_s18 }
 0xcb8   : > { %24936 = vrot.lane.b32.xlu1 %v24855_v38, %s25175_s18 }
 0xcb9   : > { %24931 = vrot.lane.b32.xlu0 %v29754_v23, %s25176_s26  ;;  %v18612_v23 = vld [vmem:[#allocation3 + $0x70] sm:$0x3] }
 0xcbc   : > { %24941 = vrot.lane.b32.xlu1 %v29827_v1, %s25176_s26  ;;  %v18614_v1 = vld [vmem:[#allocation3 + $0x80] sm:$0x3] }
 0xcbd   : > { %24946 = vrot.lane.b32.xlu0 %v29763_v61, %s25176_s26  ;;  %v18611_v61 = vld [vmem:[#allocation3 + $0x68] sm:$0x3]  ;;  %v29921_v50 = vpack.i.bf16 %v18614_v1, %v18613_v15 }
 0xcc0   : > { %24951 = vrot.lane.b32.xlu1 %v29801_v32, %s25176_s26  ;;  %v24995_v32 = vpack.i.bf16 %v18612_v23, %v18611_v61 }
 0xcc1   : > { %24956 = vrot.lane.b32.xlu0 %v24835_v53, %s25176_s26 }
 0xcc4   : > { %24961 = vrot.lane.b32.xlu1 %v24840_v44, %s25176_s26 }
 0xcc5   : > { %24966 = vrot.lane.b32.xlu0 %v24845_v10, %s25176_s26  ;;  %v29965_v10 = vld [vmem:[%s30558_s8 + $0x10] sm:$0xff] }
 0xcc8   : > { %24971 = vrot.lane.b32.xlu1 %v24855_v38, %s25176_s26 }
 0xcc9   : > { %24976 = vrot.lane.b32.xlu0 %v29794_v8, %s25160_s27 }
 0xccc   : > { %24981 = vrot.lane.b32.xlu1 %v24980_v31, %s25160_s27 }
 0xccd   : > { %24986 = vrot.lane.b32.xlu0 %v24985_v0, %s25160_s27 }
 0xcd0   : > { %24991 = vrot.lane.b32.xlu1 %v29848_v29, %s25160_s27 }
 0xcd1   : > { %24996 = vrot.lane.b32.xlu0 %v24995_v32, %s25160_s27 }
 0xcd4   : > { %25001 = vrot.lane.b32.xlu1 %v29885_v21, %s25160_s27 }
 0xcd5   : > { %25006 = vrot.lane.b32.xlu0 %v29921_v50, %s25160_s27 }
 0xcd8   : > { %25011 = vrot.lane.b32.xlu1 %v29926_v6, %s25160_s27 }
 0xcd9   : > { %25016 = vrot.lane.b32.xlu0 %v29794_v8, %s25177_s28 }
 0xcdc   : > { %25021 = vrot.lane.b32.xlu1 %v24980_v31, %s25177_s28 }
 0xcdd   : > { %25026 = vrot.lane.b32.xlu0 %v24985_v0, %s25177_s28 }
 0xce0   : > { %25031 = vrot.lane.b32.xlu1 %v29848_v29, %s25177_s28 }
 0xce1   : > { %25036 = vrot.lane.b32.xlu0 %v24995_v32, %s25177_s28 }
 0xce4   : > { %25041 = vrot.lane.b32.xlu1 %v29885_v21, %s25177_s28 }
 0xce5   : > { %25046 = vrot.lane.b32.xlu0 %v29921_v50, %s25177_s28 }
 0xce8   : > { %25051 = vrot.lane.b32.xlu1 %v29926_v6, %s25177_s28  ;;  %s518_s28 = scalar_lea.vmem %s30566_s16, %s21439_s19 }
 0xce9   : > { %25056 = vrot.lane.b32.xlu0 %v29794_v8, %s25164_s0 }
 0xceb   : > { %v24817_v47 = vpop.permute.xlu0 %24816 }
 0xcec   : > { %25061 = vrot.lane.b32.xlu1 %v24980_v31, %s25164_s0  ;;  %v24819_v17 = vunpack.i.h.bf16 %v24817_v47  ;;  %v24818_v33 = vunpack.i.l.bf16 %v24817_v47 }
 0xced   : > { %25066 = vrot.lane.b32.xlu0 %v24985_v0, %s25164_s0 }
 0xcee   : > { %v16737_v52 = vsel %vm16735_vm0, %v24818_v33, %v24819_v17 }
 0xcef   : > { %v24827_v26 = vpop.permute.xlu0 %24826 }
 0xcf0   : > { %25071 = vrot.lane.b32.xlu1 %v29848_v29, %s25164_s0  ;;  %v24829_v28 = vunpack.i.h.bf16 %v24827_v26  ;;  %v24828_v44 = vunpack.i.l.bf16 %v24827_v26 }
 0xcf1   : > { %25076 = vrot.lane.b32.xlu0 %v24995_v32, %s25164_s0 }
 0xcf2   : > { %v16736_v36 = vsel %vm16735_vm0, %v24828_v44, %v24818_v33 }
 0xcf4   : > { %25081 = vrot.lane.b32.xlu1 %v29885_v21, %s25164_s0 }
 0xcf5   : > { %25086 = vrot.lane.b32.xlu0 %v29921_v50, %s25164_s0 }
 0xcf7   : > { %v24822_v7 = vpop.permute.xlu1 %24821 }
 0xcf8   : > { %v24824_v24 = vunpack.i.h.bf16 %v24822_v7  ;;  %v24823_v11 = vunpack.i.l.bf16 %v24822_v7  ;;  %25091 = vrot.lane.b32.xlu1 %v29926_v6, %s25164_s0 }
 0xcf9   : > { %25096 = vrot.lane.b32.xlu0 %v29794_v8, %s25166_s24 }
 0xcfa   : > { %v16743_v48 = vsel %vm16735_vm0, %v24829_v28, %v24823_v11  ;;  %v16744_v2 = vsel %vm16735_vm0, %v24823_v11, %v24824_v24 }
 0xcfb   : > { %v22693_v53 = vpack.c.bf16 %v16744_v2, %v16737_v52  ;;  %v22696_v5 = vpack.c.bf16 %v16743_v48, %v16736_v36  ;;  %v24832_v60 = vpop.permute.xlu1 %24831  ;;  %v21414_v48 = vld [vmem:[%s30565_s15 + $0x18] sm:$0x3] }
 0xcfc   : > { %25101 = vrot.lane.b32.xlu1 %v24980_v31, %s25166_s24  ;;  %v24834_v14 = vunpack.i.h.bf16 %v24832_v60  ;;  %v24833_v8 = vunpack.i.l.bf16 %v24832_v60 }
 0xcfd   : > { %22695 = vmatprep.subr.msk.bf16.mxu0 %vm27729_vm12, %v22693_v53  ;;  %25106 = vrot.lane.b32.xlu0 %v24985_v0, %s25166_s24 }
 0xcfe   : > { %22698 = vmatpush1.bf16.msk.msra.mxu0 %vm27729_vm12, %v22696_v5  ;;  %v16738_v39 = vsel %vm16735_vm0, %v24819_v17, %v24833_v8  ;;  %v16739_v9 = vsel %vm16735_vm0, %v24833_v8, %v24834_v14 }
 0xcff   : > { %v24837_v16 = vpop.permute.xlu0 %24836  ;;  %v24842_v23 = vpop.permute.xlu1 %24841 }
 0xd00   : > { %v24839_v38 = vunpack.i.h.bf16 %v24837_v16  ;;  %v24838_v37 = vunpack.i.l.bf16 %v24837_v16  ;;  %25111 = vrot.lane.b32.xlu1 %v29848_v29, %s25166_s24  ;;  %v29980_v29 = vld [vmem:[%s30558_s8 + $0x18] sm:$0x3]  ;;  %v24844_v25 = vunpack.i.h.bf16 %v24842_v23 }
 0xd01   : > { %21266 = vmatmul.mubr.msk.f32.vlgmr.msra.gmra.mrb[28].mxu0 %vm5942_vm13, %v29965_v10  ;;  %25116 = vrot.lane.b32.xlu0 %v24995_v32, %s25166_s24  ;;  %v24843_v32 = vunpack.i.l.bf16 %v24842_v23 }
 0xd02   : > { %v16745_v31 = vsel %vm16735_vm0, %v24824_v24, %v24838_v37  ;;  %v16746_v0 = vsel %vm16735_vm0, %v24838_v37, %v24839_v38  ;;  %16847 = vmatprep.mubr.f32.mxu0 %v29687_v27 }
 0xd03   : > { %v22699_v61 = vpack.c.bf16 %v16746_v0, %v16739_v9  ;;  %v22702_v1 = vpack.c.bf16 %v16745_v31, %v16738_v39  ;;  %v16740_v17 = vsel %vm16735_vm0, %v24834_v14, %v24843_v32  ;;  %v16741_v33 = vsel %vm16735_vm0, %v24843_v32, %v24844_v25  ;;  %v21413_v14 = vld [vmem:[%s30565_s15 + $0x10] sm:$0xff] }
 0xd04   : > { %25121 = vrot.lane.b32.xlu1 %v29885_v21, %s25166_s24  ;;  %v20232_v21 = vld [vmem:[%s30565_s15 + $0x8] sm:$0x3] }
 0xd05   : > { %21267 = vmatmul.mubr.msk.f32.gmra.mrb[30].mxu0 %vm5942_vm13, %v29980_v29  ;;  %22701 = vmatprep.subr.msk.bf16.mxu0 %vm27729_vm12, %v22699_v61 }
 0xd06   : > { %25126 = vrot.lane.b32.xlu0 %v29921_v50, %s25166_s24  ;;  %22704 = vmatpush1.bf16.msk.msra.mxu0 %vm27729_vm12, %v22702_v1  ;;  %v20231_v50 = vld [vmem:[%s30565_s15] sm:$0xff] }
 0xd07   : > { %v24847_v15 = vpop.permute.xlu0 %24846  ;;  %16918 = vmatprep.mubr.f32.mxu0 %v29687_v27 }
 0xd08   : > { %v24849_v47 = vunpack.i.h.bf16 %v24847_v15  ;;  %v24848_v26 = vunpack.i.l.bf16 %v24847_v15  ;;  %25131 = vrot.lane.b32.xlu1 %v29926_v6, %s25166_s24 }
 0xd09   : > { %21270 = vmatmul.mubr.msk.f32.vlgmr.msra.gmra.mrb[32].mxu0 %vm5942_vm13, %v29965_v10 }
 0xd0a   : > { %v16747_v28 = vsel %vm16735_vm0, %v24839_v38, %v24848_v26  ;;  %v16748_v44 = vsel %vm16735_vm0, %v24848_v26, %v24849_v47  ;;  %20240 = vperm.xlu0 %23523, %v20232_v21   ;;  %v24857_v7 = vpop.permute.xlu1 %24856  ;;  %16924 = vmatprep.mubr.f32.mxu0 %v29687_v27 }
 0xd0b   : > { %v22705_v6 = vpack.c.bf16 %v16748_v44, %v16741_v33  ;;  %v22708_v24 = vpack.c.bf16 %v16747_v28, %v16740_v17  ;;  %v24852_v11 = vpop.permute.xlu0 %24851  ;;  %v24859_v52 = vunpack.i.h.bf16 %v24857_v7  ;;  %v24858_v36 = vunpack.i.l.bf16 %v24857_v7 }
 0xd0c   : > { %20235 = vperm.xlu1 %23524, %v20231_v50   ;;  %v24854_v2 = vunpack.i.h.bf16 %v24852_v11  ;;  %v24853_v53 = vunpack.i.l.bf16 %v24852_v11 }
 0xd0d   : > { %v16749_v5 = vsel %vm16735_vm0, %v24849_v47, %v24859_v52  ;;  %v16742_v60 = vsel %vm16735_vm0, %v24844_v25, %v24858_v36  ;;  %21271 = vmatmul.mubr.msk.f32.gmra.mrb[34].mxu0 %vm5942_vm13, %v29980_v29  ;;  %22707 = vmatprep.subr.msk.bf16.mxu0 %vm27729_vm12, %v22705_v6  ;;  %vm17895_vm0 = vcmask 15360  }
 0xd0e   : > { %v22711_v8 = vpack.c.bf16 %v16749_v5, %v16742_v60  ;;  %20267 = vperm.xlu0 %23523, %v21414_v48   ;;  %22710 = vmatpush1.bf16.msk.msra.mxu0 %vm27729_vm12, %v22708_v24  ;;  %v24862_v16 = vpop.permute.xlu1 %24861  ;;  %v17117_v9 = vsel %vm17115_vm1, %v24853_v53, %v24854_v2 }
 0xd0f   : > { %v24867_v38 = vpop.permute.xlu0 %24866  ;;  %v24864_v37 = vunpack.i.h.bf16 %v24862_v16  ;;  %v24863_v39 = vunpack.i.l.bf16 %v24862_v16  ;;  %16995 = vmatprep.mubr.f32.mxu0 %v29687_v27 }
 0xd10   : > { %20262 = vperm.xlu1 %23524, %v21413_v14   ;;  %22713 = vmatprep.subr.msk.bf16.mxu0 %vm27729_vm12, %v22711_v8  ;;  %v24869_v31 = vunpack.i.h.bf16 %v24867_v38  ;;  %v24868_v0 = vunpack.i.l.bf16 %v24867_v38 }
 0xd11   : > { %v17124_v23 = vsel %vm17115_vm1, %v24863_v39, %v24864_v37  ;;  %21274 = vmatmul.mubr.msk.f32.vlgmr.msra.gmra.mrb[36].mxu0 %vm5942_vm13, %v29965_v10 }
 0xd12   : > { %v22717_v61 = vpack.c.bf16 %v17124_v23, %v17117_v9  ;;  %22716 = vmatpush3.bf16.msk.msra.mxu0 %vm27729_vm12, %v22711_v8  ;;  %v24872_v1 = vpop.permute.xlu1 %24871  ;;  %17001 = vmatprep.mubr.f32.mxu0 %v29687_v27  ;;  %v17116_v26 = vsel %vm17115_vm1, %v24868_v0, %v24853_v53  ;;  %v17123_v17 = vsel %vm17115_vm1, %v24869_v31, %v24863_v39 }
 0xd13   : > { %v24877_v32 = vpop.permute.xlu0 %24876  ;;  %v24874_v25 = vunpack.i.h.bf16 %v24872_v1  ;;  %v24873_v15 = vunpack.i.l.bf16 %v24872_v1  ;;  %v22720_v11 = vpack.c.bf16 %v17123_v17, %v17116_v26 }
 0xd14   : > { %v24879_v21 = vunpack.i.h.bf16 %v24877_v32  ;;  %v24878_v47 = vunpack.i.l.bf16 %v24877_v32  ;;  %22719 = vmatprep.subr.msk.bf16.mxu0 %vm27729_vm12, %v22717_v61 }
 0xd15   : > { %v17119_v50 = vsel %vm17115_vm1, %v24873_v15, %v24874_v25  ;;  %21275 = vmatmul.mubr.msk.f32.gmra.mrb[38].mxu0 %vm5942_vm13, %v29980_v29  ;;  %v17118_v53 = vsel %vm17115_vm1, %v24854_v2, %v24873_v15 }
 0xd16   : > { %v17126_v33 = vsel %vm17115_vm1, %v24878_v47, %v24879_v21  ;;  %v24882_v28 = vpop.permute.xlu1 %24881  ;;  %21891 = vmatprep.mubr.msk.f32.mxu0 %vm5942_vm13, %v29965_v10  ;;  %v17125_v48 = vsel %vm17115_vm1, %v24864_v37, %v24878_v47  ;;  %v16682_v10 = vld [vmem:[%s30558_s8] sm:$0xff]  ;;  %v16683_v37 = vld [vmem:[%s30558_s8 + $0x8] sm:$0x3] }
 0xd17   : > { %v22723_v44 = vpack.c.bf16 %v17126_v33, %v17119_v50  ;;  %v24887_v7 = vpop.permute.xlu0 %24886  ;;  %v24884_v6 = vunpack.i.h.bf16 %v24882_v28  ;;  %v24883_v24 = vunpack.i.l.bf16 %v24882_v28  ;;  %v22726_v8 = vpack.c.bf16 %v17125_v48, %v17118_v53 }
 0xd18   : > { %v24889_v52 = vunpack.i.h.bf16 %v24887_v7  ;;  %v24888_v36 = vunpack.i.l.bf16 %v24887_v7 }
 0xd19   : > { %v17121_v5 = vsel %vm17115_vm1, %v24883_v24, %v24884_v6  ;;  %21892 = vmatmul.mubr.msk.f32.vlgmr.msra.gmra.mrb[40].mxu0 %vm5942_vm13, %v29980_v29  ;;  %v17120_v9 = vsel %vm17115_vm1, %v24874_v25, %v24883_v24 }
 0xd1a   : > { %v17128_v60 = vsel %vm17115_vm1, %v24888_v36, %v24889_v52  ;;  %22722 = vmatpush1.bf16.msk.msra.mxu0 %vm27729_vm12, %v22720_v11  ;;  %17221 = vmatprep.mubr.f32.mxu0 %v29687_v27  ;;  %v24897_v2 = vpop.permute.xlu1 %24896  ;;  %v17127_v39 = vsel %vm17115_vm1, %v24879_v21, %v24888_v36 }
 0xd1b   : > { %v22729_v14 = vpack.c.bf16 %v17128_v60, %v17121_v5  ;;  %22725 = vmatprep.subr.msk.bf16.mxu0 %vm27729_vm12, %v22723_v44  ;;  %v24892_v16 = vpop.permute.xlu0 %24891  ;;  %v24899_v29 = vunpack.i.h.bf16 %v24897_v2  ;;  %v24898_v38 = vunpack.i.l.bf16 %v24897_v2  ;;  %v22732_v1 = vpack.c.bf16 %v17127_v39, %v17120_v9 }
 0xd1c   : > { %v24894_v25 = vunpack.i.h.bf16 %v24892_v16  ;;  %v24893_v21 = vunpack.i.l.bf16 %v24892_v16 }
 0xd1d   : > { %21281 = vmatmul.mubr.msk.f32.vlgmr.msra.gmra.mrb[28].mxu0 %vm5942_vm13, %v16682_v10  ;;  %v17129_v31 = vsel %vm17115_vm1, %v24889_v52, %v24899_v29  ;;  %v17122_v0 = vsel %vm17115_vm1, %v24884_v6, %v24898_v38 }
 0xd1e   : > { %22728 = vmatpush1.bf16.msk.msra.mxu0 %vm27729_vm12, %v22726_v8  ;;  %17227 = vmatprep.mubr.f32.mxu0 %v29687_v27  ;;  %v24902_v23 = vpop.permute.xlu1 %24901  ;;  %v22735_v32 = vpack.c.bf16 %v17129_v31, %v17122_v0  ;;  %v17500_v33 = vsel %vm17498_vm3, %v24893_v21, %v24894_v25 }
 0xd1f   : > { %22731 = vmatprep.subr.msk.bf16.mxu0 %vm27729_vm12, %v22729_v14  ;;  %v24907_v61 = vpop.permute.xlu0 %24906  ;;  %v24904_v15 = vunpack.i.h.bf16 %v24902_v23  ;;  %v24903_v47 = vunpack.i.l.bf16 %v24902_v23 }
 0xd20   : > { %v24909_v28 = vunpack.i.h.bf16 %v24907_v61  ;;  %v24908_v44 = vunpack.i.l.bf16 %v24907_v61 }
 0xd21   : > { %21282 = vmatmul.mubr.msk.f32.gmra.mrb[30].mxu0 %vm5942_vm13, %v16683_v37  ;;  %v17507_v26 = vsel %vm17498_vm3, %v24903_v47, %v24904_v15 }
 0xd22   : > { %17298 = vmatprep.mubr.f32.mxu0 %v29687_v27  ;;  %v24912_v50 = vpop.permute.xlu1 %24911  ;;  %v22741_v7 = vpack.c.bf16 %v17507_v26, %v17500_v33  ;;  %v17499_v53 = vsel %vm17498_vm3, %v24908_v44, %v24893_v21  ;;  %v17506_v5 = vsel %vm17498_vm3, %v24909_v28, %v24903_v47 }
 0xd23   : > { %v24917_v17 = vpop.permute.xlu0 %24916  ;;  %v24914_v11 = vunpack.i.h.bf16 %v24912_v50  ;;  %v24913_v52 = vunpack.i.l.bf16 %v24912_v50  ;;  %v22744_v38 = vpack.c.bf16 %v17506_v5, %v17499_v53 }
 0xd24   : > { %v24919_v6 = vunpack.i.h.bf16 %v24917_v17  ;;  %v24918_v24 = vunpack.i.l.bf16 %v24917_v17 }
 0xd25   : > { %21285 = vmatmul.mubr.msk.f32.vlgmr.msra.gmra.mrb[32].mxu0 %vm5942_vm13, %v16682_v10  ;;  %v17502_v14 = vsel %vm17498_vm3, %v24913_v52, %v24914_v11  ;;  %v17501_v9 = vsel %vm17498_vm3, %v24894_v25, %v24913_v52  ;;  %v21295_v25 = vld [vmem:[%s30558_s8 + $0x28] sm:$0x3] }
 0xd26   : > { %22734 = vmatpush1.bf16.msk.msra.mxu0 %vm27729_vm12, %v22732_v1  ;;  %17304 = vmatprep.mubr.f32.mxu0 %v29687_v27  ;;  %v24922_v48 = vpop.permute.xlu1 %24921  ;;  %v17509_v60 = vsel %vm17498_vm3, %v24918_v24, %v24919_v6  ;;  %v17508_v39 = vsel %vm17498_vm3, %v24904_v15, %v24918_v24 }
 0xd27   : > { %22737 = vmatprep.subr.msk.bf16.mxu0 %vm27729_vm12, %v22735_v32  ;;  %v24927_v36 = vpop.permute.xlu0 %24926  ;;  %v24924_v16 = vunpack.i.h.bf16 %v24922_v48  ;;  %v24923_v29 = vunpack.i.l.bf16 %v24922_v48  ;;  %v22747_v31 = vpack.c.bf16 %v17509_v60, %v17502_v14  ;;  %v22750_v1 = vpack.c.bf16 %v17508_v39, %v17501_v9 }
 0xd28   : > { %v24929_v2 = vunpack.i.h.bf16 %v24927_v36  ;;  %v24928_v8 = vunpack.i.l.bf16 %v24927_v36 }
 0xd29   : > { %21286 = vmatmul.mubr.msk.f32.gmra.mrb[34].mxu0 %vm5942_vm13, %v16683_v37  ;;  %v17504_v23 = vsel %vm17498_vm3, %v24923_v29, %v24924_v16  ;;  %v17503_v26 = vsel %vm17498_vm3, %v24914_v11, %v24923_v29 }
 0xd2a   : > { %17375 = vmatprep.mubr.f32.mxu0 %v29687_v27  ;;  %v17511_v0 = vsel %vm17498_vm3, %v24928_v8, %v24929_v2  ;;  %v24937_v61 = vpop.permute.xlu1 %24936  ;;  %v17510_v21 = vsel %vm17498_vm3, %v24919_v6, %v24928_v8 }
 0xd2b   : > { %v24939_v15 = vunpack.i.h.bf16 %v24937_v61  ;;  %v24938_v47 = vunpack.i.l.bf16 %v24937_v61  ;;  %v22756_v44 = vpack.c.bf16 %v17510_v21, %v17503_v26 }
 0xd2d   : > { %21289 = vmatmul.mubr.msk.f32.vlgmr.msra.gmra.mrb[36].mxu0 %vm5942_vm13, %v16682_v10  ;;  %v17512_v17 = vsel %vm17498_vm3, %v24929_v2, %v24939_v15  ;;  %v17505_v50 = vsel %vm17498_vm3, %v24924_v16, %v24938_v47 }
 0xd2e   : > { %22740 = vmatpush3.bf16.msk.msra.mxu0 %vm27729_vm12, %v22735_v32  ;;  %17381 = vmatprep.mubr.f32.mxu0 %v29687_v27  ;;  %v22753_v32 = vpack.c.bf16 %v17511_v0, %v17504_v23  ;;  %v24942_v33 = vpop.permute.xlu1 %24941 }
 0xd2f   : > { %22743 = vmatprep.subr.msk.bf16.mxu0 %vm27729_vm12, %v22741_v7  ;;  %v22759_v7 = vpack.c.bf16 %v17512_v17, %v17505_v50  ;;  %v24944_v24 = vunpack.i.h.bf16 %v24942_v33  ;;  %v24943_v52 = vunpack.i.l.bf16 %v24942_v33 }
 0xd31   : > { %21290 = vmatmul.mubr.msk.f32.gmra.mrb[38].mxu0 %vm5942_vm13, %v16683_v37  ;;  %v17904_v36 = vsel %vm17895_vm0, %v24943_v52, %v24944_v24 }
 0xd32   : > { %21898 = vmatprep.mubr.msk.f32.mxu0 %vm5942_vm13, %v16682_v10  ;;  %v21294_v10 = vld [vmem:[%s30558_s8 + $0x20] sm:$0xff]  ;;  %v24952_v53 = vpop.permute.xlu1 %24951 }
 0xd33   : > { %v24954_v29 = vunpack.i.h.bf16 %v24952_v53 }
 0xd35   : > { %21899 = vmatmul.mubr.msk.f32.vlgmr.msra.gmra.mrb[40].mxu0 %vm5942_vm13, %v16683_v37  ;;  %v24932_v37 = vpop.permute.xlu0 %24931 }
 0xd36   : > { %22746 = vmatpush1.bf16.msk.msra.mxu0 %vm27729_vm12, %v22744_v38  ;;  %17604 = vmatprep.mubr.f32.mxu0 %v29687_v27  ;;  %v24934_v6 = vunpack.i.h.bf16 %v24932_v37  ;;  %v24933_v11 = vunpack.i.l.bf16 %v24932_v37  ;;  %v24953_v38 = vunpack.i.l.bf16 %v24952_v53  ;;  %v24962_v9 = vpop.permute.xlu1 %24961 }
 0xd37   : > { %22749 = vmatprep.subr.msk.bf16.mxu0 %vm27729_vm12, %v22747_v31  ;;  %v24964_v37 = vunpack.i.h.bf16 %v24962_v9  ;;  %v24963_v15 = vunpack.i.l.bf16 %v24962_v9 }
 0xd38   : > { %v17897_v5 = vsel %vm17895_vm0, %v24933_v11, %v24934_v6  ;;  %v17899_v61 = vsel %vm17895_vm0, %v24953_v38, %v24954_v29  ;;  %v17898_v26 = vsel %vm17895_vm0, %v24934_v6, %v24953_v38 }
 0xd39   : > { %21298 = vmatmul.mubr.msk.f32.vlgmr.msra.gmra.mrb[28].mxu0 %vm5942_vm13, %v21294_v10  ;;  %v24947_v28 = vpop.permute.xlu0 %24946  ;;  %v22765_v2 = vpack.c.bf16 %v17904_v36, %v17897_v5  ;;  %v17901_v33 = vsel %vm17895_vm0, %v24963_v15, %v24964_v37 }
 0xd3a   : > { %22752 = vmatpush1.bf16.msk.msra.mxu0 %vm27729_vm12, %v22750_v1  ;;  %17610 = vmatprep.mubr.f32.mxu0 %v29687_v27  ;;  %v24949_v60 = vunpack.i.h.bf16 %v24947_v28  ;;  %v24948_v14 = vunpack.i.l.bf16 %v24947_v28  ;;  %v24972_v28 = vpop.permute.xlu1 %24971 }
 0xd3b   : > { %22755 = vmatprep.subr.msk.bf16.mxu0 %vm27729_vm12, %v22753_v32 }
 0xd3c   : > { %v17896_v31 = vsel %vm17895_vm0, %v24948_v14, %v24933_v11  ;;  %v17903_v0 = vsel %vm17895_vm0, %v24949_v60, %v24943_v52  ;;  %v30159_v52 = vld [vmem:[#allocation2 + $0x40] sm:$0xff]  ;;  %v17900_v11 = vsel %vm17895_vm0, %v24954_v29, %v24963_v15 }
 0xd3d   : > { %21299 = vmatmul.mubr.msk.f32.gmra.mrb[30].mxu0 %vm5942_vm13, %v21295_v25  ;;  %v24957_v48 = vpop.permute.xlu0 %24956  ;;  %v22768_v47 = vpack.c.bf16 %v17903_v0, %v17896_v31 }
 0xd3e   : > { %17681 = vmatprep.mubr.f32.mxu0 %v29687_v27  ;;  %v24959_v8 = vunpack.i.h.bf16 %v24957_v48  ;;  %v24958_v16 = vunpack.i.l.bf16 %v24957_v48  ;;  %v24982_v43 = vpop.permute.xlu1 %24981 }
 0xd3f   : > { %v24984_v30 = vunpack.i.h.bf16 %v24982_v43 }
 0xd40   : > { %v17906_v23 = vsel %vm17895_vm0, %v24958_v16, %v24959_v8  ;;  %v17905_v21 = vsel %vm17895_vm0, %v24944_v24, %v24958_v16  ;;  %v24973_v24 = vunpack.i.l.bf16 %v24972_v28 }
 0xd41   : > { %21302 = vmatmul.mubr.msk.f32.vlgmr.msra.gmra.mrb[32].mxu0 %vm5942_vm13, %v21294_v10  ;;  %v24967_v39 = vpop.permute.xlu0 %24966  ;;  %v22771_v17 = vpack.c.bf16 %v17906_v23, %v17899_v61 }
 0xd42   : > { %22758 = vmatpush1.bf16.msk.msra.mxu0 %vm27729_vm12, %v22756_v44  ;;  %17687 = vmatprep.mubr.f32.mxu0 %v29687_v27  ;;  %v24969_v1 = vunpack.i.h.bf16 %v24967_v39  ;;  %v24968_v32 = vunpack.i.l.bf16 %v24967_v39  ;;  %v22774_v44 = vpack.c.bf16 %v17905_v21, %v17898_v26  ;;  %v17902_v48 = vsel %vm17895_vm0, %v24964_v37, %v24973_v24 }
 0xd43   : > { %22761 = vmatprep.subr.msk.bf16.mxu0 %vm27729_vm12, %v22759_v7 }
 0xd44   : > { %v17908_v50 = vsel %vm17895_vm0, %v24968_v32, %v24969_v1  ;;  %v17907_v6 = vsel %vm17895_vm0, %v24959_v8, %v24968_v32 }
 0xd45   : > { %21303 = vmatmul.mubr.msk.f32.gmra.mrb[34].mxu0 %vm5942_vm13, %v21295_v25  ;;  %v22780_v53 = vpack.c.bf16 %v17907_v6, %v17900_v11  ;;  %v24977_v35 = vpop.permute.xlu0 %24976 }
 0xd46   : > { %17758 = vmatprep.mubr.f32.mxu0 %v29687_v27  ;;  %v24978_v4 = vunpack.i.l.bf16 %v24977_v35 }
 0xd49   : > { %21306 = vmatmul.mubr.msk.f32.vlgmr.msra.gmra.mrb[36].mxu0 %vm5942_vm13, %v21294_v10  ;;  %v24987_v20 = vpop.permute.xlu0 %24986 }
 0xd4a   : > { %22764 = vmatpush3.bf16.msk.msra.mxu0 %vm27729_vm12, %v22759_v7  ;;  %17764 = vmatprep.mubr.f32.mxu0 %v29687_v27  ;;  %v22777_v7 = vpack.c.bf16 %v17908_v50, %v17901_v33  ;;  %v24988_v51 = vunpack.i.l.bf16 %v24987_v20 }
 0xd4b   : > { %22767 = vmatprep.subr.msk.bf16.mxu0 %vm27729_vm12, %v22765_v2 }
 0xd4c   : > { %v18667_v16 = vsel %vm870_vm2, %v24988_v51, %v24978_v4 }
 0xd4d   : > { %21307 = vmatmul.mubr.msk.f32.gmra.mrb[38].mxu0 %vm5942_vm13, %v21295_v25  ;;  %v24997_v42 = vpop.permute.xlu0 %24996 }
 0xd4e   : > { %21905 = vmatprep.mubr.msk.f32.mxu0 %vm5942_vm13, %v21294_v10  ;;  %v21311_v10 = vld [vmem:[%s30558_s8 + $0x30] sm:$0xff] }
 0xd51   : > { %21906 = vmatmul.mubr.msk.f32.vlgmr.msra.gmra.mrb[40].mxu0 %vm5942_vm13, %v21295_v25  ;;  %v24974_v25 = vunpack.i.h.bf16 %v24972_v28  ;;  %v25007_v2 = vpop.permute.xlu0 %25006  ;;  %v21346_v28 = vld [vmem:[%s30558_s8 + $0x58] sm:$0x3] }
 0xd52   : > { %22770 = vmatpush1.bf16.msk.msra.mxu0 %vm27729_vm12, %v22768_v47  ;;  %18001 = vmatprep.mubr.f32.mxu0 %v29687_v27  ;;  %v21312_v27 = vld [vmem:[%s30558_s8 + $0x38] sm:$0x3]  ;;  %v25009_v9 = vunpack.i.h.bf16 %v25007_v2  ;;  %v25008_v31 = vunpack.i.l.bf16 %v25007_v2  ;;  %v21345_v47 = vld [vmem:[%s30558_s8 + $0x50] sm:$0xff] }
 0xd53   : > { %22773 = vmatprep.subr.msk.bf16.mxu0 %vm27729_vm12, %v22771_v17  ;;  %v17909_v36 = vsel %vm17895_vm0, %v24969_v1, %v24974_v25 }
 0xd54   : > { %v22783_v5 = vpack.c.bf16 %v17909_v36, %v17902_v48  ;;  %v18679_v37 = vsel %vm870_vm2, %v25008_v31, %v25009_v9 }
 0xd55   : > { %21315 = vmatmul.mubr.msk.f32.vlgmr.msra.gmra.mrb[28].mxu0 %vm5942_vm13, %v21311_v10  ;;  %v25017_v50 = vpop.permute.xlu0 %25016 }
 0xd56   : > { %22776 = vmatpush1.bf16.msk.msra.mxu0 %vm27729_vm12, %v22774_v44  ;;  %18007 = vmatprep.mubr.f32.mxu0 %v30159_v52 }
 0xd57   : > { %22779 = vmatprep.subr.msk.bf16.mxu0 %vm27729_vm12, %v22777_v7 }
 0xd59   : > { %21316 = vmatmul.mubr.msk.f32.gmra.mrb[30].mxu0 %vm5942_vm13, %v21312_v27  ;;  %v25027_v6 = vpop.permute.xlu0 %25026 }
 0xd5a   : > { %18078 = vmatprep.mubr.f32.mxu0 %v30159_v52 }
 0xd5d   : > { %21319 = vmatmul.mubr.msk.f32.vlgmr.msra.gmra.mrb[32].mxu0 %vm5942_vm13, %v21311_v10 }
 0xd5e   : > { %22782 = vmatpush1.bf16.msk.msra.mxu0 %vm27729_vm12, %v22780_v53  ;;  %18084 = vmatprep.mubr.f32.mxu0 %v30159_v52 }
 0xd5f   : > { %22785 = vmatprep.subr.msk.bf16.mxu0 %vm27729_vm12, %v22783_v5 }
 0xd61   : > { %21320 = vmatmul.mubr.msk.f32.gmra.mrb[34].mxu0 %vm5942_vm13, %v21312_v27 }
 0xd62   : > { %18155 = vmatprep.mubr.f32.mxu0 %v30159_v52 }
 0xd65   : > { %21323 = vmatmul.mubr.msk.f32.vlgmr.msra.gmra.mrb[36].mxu0 %vm5942_vm13, %v21311_v10 }
 0xd66   : > { %22788 = vmatpush3.bf16.msk.msra.mxu0 %vm27729_vm12, %v22783_v5  ;;  %18161 = vmatprep.mubr.f32.mxu0 %v30159_v52  ;;  %v25019_v5 = vunpack.i.h.bf16 %v25017_v50 }
 0xd67   : > { %22791 = vmatprep.subr.msk.bf16.mxu0 %vm27729_vm12, %v22789_v22  ;;  %v24979_v22 = vunpack.i.h.bf16 %v24977_v35 }
 0xd69   : > { %21324 = vmatmul.mubr.msk.f32.gmra.mrb[38].mxu0 %vm5942_vm13, %v21312_v27  ;;  %v18668_v18 = vsel %vm870_vm2, %v24978_v4, %v24979_v22 }
 0xd6a   : > { %21912 = vmatprep.mubr.msk.f32.mxu0 %vm5942_vm13, %v21311_v10 }
 0xd6d   : > { %21913 = vmatmul.mubr.msk.f32.vlgmr.msra.gmra.mrb[40].mxu0 %vm5942_vm13, %v21312_v27 }
 0xd6e   : > { %22794 = vmatpush1.bf16.msk.msra.mxu0 %vm27729_vm12, %v22792_v12  ;;  %18344 = vmatprep.mubr.f32.mxu0 %v30159_v52  ;;  %v24983_v12 = vunpack.i.l.bf16 %v24982_v43 }
 0xd6f   : > { %22797 = vmatprep.subr.msk.bf16.mxu0 %vm27729_vm12, %v22795_v63  ;;  %v24992_v63 = vpop.permute.xlu1 %24991 }
 0xd70   : > { %v18675_v3 = vsel %vm870_vm2, %v24983_v12, %v24984_v30  ;;  %v24994_v60 = vunpack.i.h.bf16 %v24992_v63  ;;  %v24993_v14 = vunpack.i.l.bf16 %v24992_v63 }
 0xd71   : > { %21332 = vmatmul.mubr.msk.f32.vlgmr.msra.gmra.mrb[28].mxu0 %vm5942_vm13, %v21328_v59  ;;  %v22813_v62 = vpack.c.bf16 %v18675_v3, %v18668_v18 }
 0xd72   : > { %22800 = vmatpush1.bf16.msk.msra.mxu0 %vm27729_vm12, %v22798_v45  ;;  %18350 = vmatprep.mubr.f32.mxu0 %v30159_v52  ;;  %v24989_v45 = vunpack.i.h.bf16 %v24987_v20  ;;  %v18670_v39 = vsel %vm870_vm2, %v24993_v14, %v24994_v60  ;;  %v18669_v1 = vsel %vm870_vm2, %v24979_v22, %v24993_v14 }
 0xd73   : > { %22803 = vmatprep.subr.msk.bf16.mxu0 %vm27729_vm12, %v22801_v46  ;;  %v24999_v46 = vunpack.i.h.bf16 %v24997_v42  ;;  %v25002_v8 = vpop.permute.xlu1 %25001 }
 0xd74   : > { %v18674_v29 = vsel %vm870_vm2, %v24989_v45, %v24983_v12  ;;  %v25003_v0 = vunpack.i.l.bf16 %v25002_v8  ;;  %v25028_v12 = vunpack.i.l.bf16 %v25027_v6 }
 0xd75   : > { %21333 = vmatmul.mubr.msk.f32.gmra.mrb[30].mxu0 %vm5942_vm13, %v21329_v19  ;;  %v22816_v23 = vpack.c.bf16 %v18674_v29, %v18667_v16  ;;  %v18678_v44 = vsel %vm870_vm2, %v24999_v46, %v25008_v31 }
 0xd76   : > { %18421 = vmatprep.mubr.f32.mxu0 %v30159_v52  ;;  %v18671_v7 = vsel %vm870_vm2, %v24994_v60, %v25003_v0 }
 0xd77   : > { %v25012_v21 = vpop.permute.xlu1 %25011  ;;  %v22828_v11 = vpack.c.bf16 %v18678_v44, %v18671_v7 }
 0xd78   : > { %v25014_v33 = vunpack.i.h.bf16 %v25012_v21  ;;  %v25013_v10 = vunpack.i.l.bf16 %v25012_v21 }
 0xd79   : > { %21336 = vmatmul.mubr.msk.f32.vlgmr.msra.gmra.mrb[32].mxu0 %vm5942_vm13, %v21328_v59 }
 0xd7a   : > { %22806 = vmatpush1.bf16.msk.msra.mxu0 %vm27729_vm12, %v22804_v34  ;;  %18427 = vmatprep.mubr.f32.mxu0 %v30159_v52  ;;  %v24998_v34 = vunpack.i.l.bf16 %v24997_v42  ;;  %v18680_v25 = vsel %vm870_vm2, %v25009_v9, %v25014_v33 }
 0xd7b   : > { %22809 = vmatprep.subr.msk.bf16.mxu0 %vm27729_vm12, %v29898_v57  ;;  %v25022_v27 = vpop.permute.xlu1 %25021 }
 0xd7c   : > { %v18677_v38 = vsel %vm870_vm2, %v24998_v34, %v24999_v46  ;;  %v18676_v61 = vsel %vm870_vm2, %v24984_v30, %v24998_v34  ;;  %v25024_v48 = vunpack.i.h.bf16 %v25022_v27  ;;  %v25023_v53 = vunpack.i.l.bf16 %v25022_v27 }
 0xd7d   : > { %21337 = vmatmul.mubr.msk.f32.gmra.mrb[34].mxu0 %vm5942_vm13, %v21329_v19  ;;  %v22819_v32 = vpack.c.bf16 %v18677_v38, %v18670_v39  ;;  %v22822_v26 = vpack.c.bf16 %v18676_v61, %v18669_v1  ;;  %v25029_v30 = vunpack.i.h.bf16 %v25027_v6 }
 0xd7e   : > { %18498 = vmatprep.mubr.f32.mxu0 %v30159_v52 }
 0xd7f   : > { %v25032_v43 = vpop.permute.xlu1 %25031 }
 0xd80   : > { %v25034_v42 = vunpack.i.h.bf16 %v25032_v43  ;;  %v25033_v63 = vunpack.i.l.bf16 %v25032_v43 }
 0xd81   : > { %21340 = vmatmul.mubr.msk.f32.vlgmr.msra.gmra.mrb[36].mxu0 %vm5942_vm13, %v21328_v59 }
 0xd82   : > { %22812 = vmatpush3.bf16.msk.msra.mxu0 %vm27729_vm12, %v29898_v57  ;;  %18504 = vmatprep.mubr.f32.mxu0 %v30159_v52  ;;  %v25004_v57 = vunpack.i.h.bf16 %v25002_v8 }
 0xd83   : > { %22815 = vmatprep.subr.msk.bf16.mxu0 %vm27729_vm12, %v22813_v62  ;;  %v25042_v45 = vpop.permute.xlu1 %25041 }
 0xd84   : > { %v18672_v15 = vsel %vm870_vm2, %v25003_v0, %v25004_v57  ;;  %v18673_v24 = vsel %vm870_vm2, %v25004_v57, %v25013_v10  ;;  %vm19063_vm2 = vcmask 605184   ;;  %v25044_v2 = vunpack.i.h.bf16 %v25042_v45  ;;  %v21362_v57 = vld [vmem:[%s30558_s8 + $0x60] sm:$0xff] }
 0xd85   : > { %21341 = vmatmul.mubr.msk.f32.gmra.mrb[38].mxu0 %vm5942_vm13, %v21329_v19  ;;  %v22825_v17 = vpack.c.bf16 %v18679_v37, %v18672_v15  ;;  %v22831_v36 = vpack.c.bf16 %v18680_v25, %v18673_v24  ;;  %v19072_v35 = vsel %vm19063_vm2, %v25023_v53, %v25024_v48  ;;  %v19071_v62 = vsel %vm19063_vm2, %v25029_v30, %v25023_v53  ;;  %v21363_v15 = vld [vmem:[%s30558_s8 + $0x68] sm:$0x3] }
 0xd86   : > { %21919 = vmatprep.mubr.msk.f32.mxu0 %vm5942_vm13, %v21328_v59  ;;  %v25018_v59 = vunpack.i.l.bf16 %v25017_v50  ;;  %v19067_v34 = vsel %vm19063_vm2, %v25033_v63, %v25034_v42  ;;  %v25043_v8 = vunpack.i.l.bf16 %v25042_v45  ;;  %v19066_v38 = vsel %vm19063_vm2, %v25019_v5, %v25033_v63 }
 0xd87   : > { %v25052_v0 = vpop.permute.xlu1 %25051 }
 0xd88   : > { %v19065_v20 = vsel %vm19063_vm2, %v25018_v59, %v25019_v5  ;;  %v19064_v51 = vsel %vm19063_vm2, %v25028_v12, %v25018_v59  ;;  %v19069_v31 = vsel %vm19063_vm2, %v25043_v8, %v25044_v2  ;;  %v25053_v37 = vunpack.i.l.bf16 %v25052_v0 }
 0xd89   : > { %21920 = vmatmul.mubr.msk.f32.vlgmr.msra.gmra.mrb[40].mxu0 %vm5942_vm13, %v21329_v19  ;;  %v25037_v19 = vpop.permute.xlu0 %25036  ;;  %v22837_v22 = vpack.c.bf16 %v19072_v35, %v19065_v20  ;;  %v22840_v16 = vpack.c.bf16 %v19071_v62, %v19064_v51  ;;  %v19068_v21 = vsel %vm19063_vm2, %v25034_v42, %v25043_v8 }
 0xd8a   : > { %22818 = vmatpush1.bf16.msk.msra.mxu0 %vm27729_vm12, %v22816_v23  ;;  %18772 = vmatprep.mubr.f32.mxu0 %v30159_v52  ;;  %v25039_v4 = vunpack.i.h.bf16 %v25037_v19  ;;  %v25038_v3 = vunpack.i.l.bf16 %v25037_v19 }
 0xd8b   : > { %22821 = vmatprep.subr.msk.bf16.mxu0 %vm27729_vm12, %v22819_v32  ;;  %v25054_v32 = vunpack.i.h.bf16 %v25052_v0  ;;  %v25062_v50 = vpop.permute.xlu1 %25061 }
 0xd8c   : > { %v19074_v46 = vsel %vm19063_vm2, %v25038_v3, %v25039_v4  ;;  %v19073_v29 = vsel %vm19063_vm2, %v25024_v48, %v25038_v3  ;;  %v25064_v44 = vunpack.i.h.bf16 %v25062_v50  ;;  %v25063_v7 = vunpack.i.l.bf16 %v25062_v50 }
 0xd8d   : > { %21349 = vmatmul.mubr.msk.f32.vlgmr.msra.gmra.mrb[28].mxu0 %vm5942_vm13, %v21345_v47  ;;  %v25047_v18 = vpop.permute.xlu0 %25046  ;;  %v22843_v39 = vpack.c.bf16 %v19074_v46, %v19067_v34  ;;  %v22846_v23 = vpack.c.bf16 %v19073_v29, %v19066_v38 }
 0xd8e   : > { %22824 = vmatpush1.bf16.msk.msra.mxu0 %vm27729_vm12, %v22822_v26  ;;  %18778 = vmatprep.mubr.f32.mxu0 %v30159_v52  ;;  %v25049_v60 = vunpack.i.h.bf16 %v25047_v18  ;;  %v25048_v14 = vunpack.i.l.bf16 %v25047_v18  ;;  %v19468_v27 = vsel %vm1350_vm6, %v25063_v7, %v25064_v44 }
 0xd8f   : > { %22827 = vmatprep.subr.msk.bf16.mxu0 %vm27729_vm12, %v22825_v17  ;;  %v19070_v17 = vsel %vm19063_vm2, %v25044_v2, %v25053_v37  ;;  %v21379_v2 = vld [vmem:[%s30558_s8 + $0x70] sm:$0xff] }
 0xd90   : > { %v19076_v9 = vsel %vm19063_vm2, %v25048_v14, %v25049_v60  ;;  %v19077_v26 = vsel %vm19063_vm2, %v25049_v60, %v25054_v32 }
 0xd91   : > { %21350 = vmatmul.mubr.msk.f32.gmra.mrb[30].mxu0 %vm5942_vm13, %v21346_v28  ;;  %v22849_v61 = vpack.c.bf16 %v19076_v9, %v19069_v31  ;;  %v25057_v1 = vpop.permute.xlu0 %25056  ;;  %v21380_v31 = vld [vmem:[%s30558_s8 + $0x78] sm:$0x3] }
 0xd92   : > { %18849 = vmatprep.mubr.f32.mxu0 %v30159_v52  ;;  %v25059_v25 = vunpack.i.h.bf16 %v25057_v1  ;;  %v25058_v24 = vunpack.i.l.bf16 %v25057_v1 }
 0xd95   : > { %21353 = vmatmul.mubr.msk.f32.vlgmr.msra.gmra.mrb[32].mxu0 %vm5942_vm13, %v21345_v47  ;;  %v25067_v33 = vpop.permute.xlu0 %25066 }
 0xd96   : > { %22830 = vmatpush1.bf16.msk.msra.mxu0 %vm27729_vm12, %v22828_v11  ;;  %18855 = vmatprep.mubr.f32.mxu0 %v30159_v52  ;;  %v25072_v11 = vpop.permute.xlu1 %25071  ;;  %v25069_v48 = vunpack.i.h.bf16 %v25067_v33  ;;  %v25068_v53 = vunpack.i.l.bf16 %v25067_v33 }
 0xd97   : > { %22833 = vmatprep.subr.msk.bf16.mxu0 %vm27729_vm12, %v22831_v36  ;;  %v25074_v19 = vunpack.i.h.bf16 %v25072_v11  ;;  %v25073_v43 = vunpack.i.l.bf16 %v25072_v11 }
 0xd98   : > { %v19460_v12 = vsel %vm1350_vm6, %v25068_v53, %v25058_v24 }
 0xd99   : > { %21354 = vmatmul.mubr.msk.f32.gmra.mrb[34].mxu0 %vm5942_vm13, %v21346_v28  ;;  %v25077_v6 = vpop.permute.xlu0 %25076  ;;  %v19463_v3 = vsel %vm1350_vm6, %v25073_v43, %v25074_v19  ;;  %v19462_v46 = vsel %vm1350_vm6, %v25059_v25, %v25073_v43 }
 0xd9a   : > { %18926 = vmatprep.mubr.f32.mxu0 %v30159_v52  ;;  %v25079_v59 = vunpack.i.h.bf16 %v25077_v6  ;;  %v25078_v35 = vunpack.i.l.bf16 %v25077_v6  ;;  %v25082_v30 = vpop.permute.xlu1 %25081 }
 0xd9b   : > { %v25084_v18 = vunpack.i.h.bf16 %v25082_v30  ;;  %v25083_v45 = vunpack.i.l.bf16 %v25082_v30 }
 0xd9c   : > { %v19469_v62 = vsel %vm1350_vm6, %v25064_v44, %v25078_v35 }
 0xd9d   : > { %21357 = vmatmul.mubr.msk.f32.vlgmr.msra.gmra.mrb[36].mxu0 %vm5942_vm13, %v21345_v47  ;;  %v25087_v20 = vpop.permute.xlu0 %25086  ;;  %v19464_v0 = vsel %vm1350_vm6, %v25074_v19, %v25083_v45 }
 0xd9e   : > { %22836 = vmatpush3.bf16.msk.msra.mxu0 %vm27729_vm12, %v22831_v36  ;;  %18932 = vmatprep.mubr.f32.mxu0 %v30159_v52  ;;  %v19461_v36 = vsel %vm1350_vm6, %v25058_v24, %v25059_v25  ;;  %v25089_v42 = vunpack.i.h.bf16 %v25087_v20  ;;  %v25088_v63 = vunpack.i.l.bf16 %v25087_v20  ;;  %v25092_v8 = vpop.permute.xlu1 %25091 }
 0xd9f   : > { %22839 = vmatprep.subr.msk.bf16.mxu0 %vm27729_vm12, %v22837_v22  ;;  %v22861_v5 = vpack.c.bf16 %v19468_v27, %v19461_v36  ;;  %v19467_v22 = vsel %vm1350_vm6, %v25069_v48, %v25063_v7  ;;  %v25093_v9 = vunpack.i.l.bf16 %v25092_v8 }
 0xda0   : > { %v22864_v51 = vpack.c.bf16 %v19467_v22, %v19460_v12  ;;  %v19472_v60 = vsel %vm1350_vm6, %v25088_v63, %v25089_v42 }
 0xda1   : > { %21358 = vmatmul.mubr.msk.f32.gmra.mrb[38].mxu0 %vm5942_vm13, %v21346_v28  ;;  %v25097_v38 = vpop.permute.xlu0 %25096 }
 0xda2   : > { %21926 = vmatprep.mubr.msk.f32.mxu0 %vm5942_vm13, %v21345_v47  ;;  %v19075_v47 = vsel %vm19063_vm2, %v25039_v4, %v25048_v14  ;;  %v19470_v4 = vsel %vm1350_vm6, %v25078_v35, %v25079_v59  ;;  %v19465_v14 = vsel %vm1350_vm6, %v25083_v45, %v25084_v18  ;;  %v25102_v1 = vpop.permute.xlu1 %25101 }
 0xda3   : > { %v22852_v10 = vpack.c.bf16 %v19075_v47, %v19068_v21  ;;  %v22867_v34 = vpack.c.bf16 %v19470_v4, %v19463_v3  ;;  %v22873_v29 = vpack.c.bf16 %v19472_v60, %v19465_v14  ;;  %v25104_v47 = vunpack.i.h.bf16 %v25102_v1  ;;  %v21397_v60 = vld [vmem:[%s30558_s8 + $0x88] sm:$0x3] }
 0xda4   : > { %v25103_v21 = vunpack.i.l.bf16 %v25102_v1 }
 0xda5   : > { %21927 = vmatmul.mubr.msk.f32.vlgmr.msra.gmra.mrb[40].mxu0 %vm5942_vm13, %v21346_v28  ;;  %v22855_v28 = vpack.c.bf16 %v19077_v26, %v19070_v17  ;;  %v25107_v32 = vpop.permute.xlu0 %25106  ;;  %v25099_v26 = vunpack.i.h.bf16 %v25097_v38  ;;  %v25098_v17 = vunpack.i.l.bf16 %v25097_v38 }
 0xda6   : > { %22842 = vmatpush1.bf16.msk.msra.mxu0 %vm27729_vm12, %v22840_v16  ;;  %19169 = vmatprep.mubr.f32.mxu0 %v30159_v52  ;;  %v22870_v16 = vpack.c.bf16 %v19469_v62, %v19462_v46  ;;  %v19864_v50 = vsel %vm1590_vm8, %v25103_v21, %v25104_v47  ;;  %v25109_v44 = vunpack.i.h.bf16 %v25107_v32  ;;  %v25108_v7 = vunpack.i.l.bf16 %v25107_v32 }
 0xda7   : > { %22845 = vmatprep.subr.msk.bf16.mxu0 %vm27729_vm12, %v22843_v39  ;;  %v25094_v39 = vunpack.i.h.bf16 %v25092_v8 }
 0xda8   : > { %v19856_v53 = vsel %vm1590_vm8, %v25108_v7, %v25098_v17 }
 0xda9   : > { %21366 = vmatmul.mubr.msk.f32.vlgmr.msra.gmra.mrb[28].mxu0 %vm5942_vm13, %v21362_v57  ;;  %v25117_v33 = vpop.permute.xlu0 %25116 }
 0xdaa   : > { %22848 = vmatpush1.bf16.msk.msra.mxu0 %vm27729_vm12, %v22846_v23  ;;  %19175 = vmatprep.mubr.f32.mxu0 %v30159_v52  ;;  %v19473_v23 = vsel %vm1350_vm6, %v25089_v42, %v25094_v39  ;;  %v25119_v24 = vunpack.i.h.bf16 %v25117_v33  ;;  %v25118_v27 = vunpack.i.l.bf16 %v25117_v33 }
 0xdab   : > { %22851 = vmatprep.subr.msk.bf16.mxu0 %vm27729_vm12, %v22849_v61  ;;  %v19466_v61 = vsel %vm1350_vm6, %v25084_v18, %v25093_v9  ;;  %v21396_v18 = vld [vmem:[%s30558_s8 + $0x80] sm:$0xff] }
 0xdac   : > { %v19865_v22 = vsel %vm1590_vm8, %v25104_v47, %v25118_v27 }
 0xdad   : > { %21367 = vmatmul.mubr.msk.f32.gmra.mrb[30].mxu0 %vm5942_vm13, %v21363_v15  ;;  %v25127_v36 = vpop.permute.xlu0 %25126 }
 0xdae   : > { %19246 = vmatprep.mubr.f32.mxu0 %v30159_v52  ;;  %v25129_v19 = vunpack.i.h.bf16 %v25127_v36  ;;  %v25128_v43 = vunpack.i.l.bf16 %v25127_v36 }
 0xdb0   : > { %v19868_v42 = vsel %vm1590_vm8, %v25128_v43, %v25129_v19  ;;  %v19867_v14 = vsel %vm1590_vm8, %v25119_v24, %v25128_v43 }
 0xdb1   : > { %21370 = vmatmul.mubr.msk.f32.vlgmr.msra.gmra.mrb[32].mxu0 %vm5942_vm13, %v21362_v57 }
 0xdb2   : > { %22854 = vmatpush1.bf16.msk.msra.mxu0 %vm27729_vm12, %v22852_v10  ;;  %19252 = vmatprep.mubr.f32.mxu0 %v30159_v52  ;;  %v25112_v10 = vpop.permute.xlu1 %25111 }
 0xdb3   : > { %22857 = vmatprep.subr.msk.bf16.mxu0 %vm27729_vm12, %v22855_v28  ;;  %v25114_v6 = vunpack.i.h.bf16 %v25112_v10  ;;  %v25113_v11 = vunpack.i.l.bf16 %v25112_v10 }
 0xdb5   : > { %21371 = vmatmul.mubr.msk.f32.gmra.mrb[34].mxu0 %vm5942_vm13, %v21363_v15  ;;  %v19859_v35 = vsel %vm1590_vm8, %v25113_v11, %v25114_v6  ;;  %v19858_v4 = vsel %vm1590_vm8, %v25099_v26, %v25113_v11 }
 0xdb6   : > { %19323 = vmatprep.mubr.f32.mxu0 %v30159_v52  ;;  %v25122_v48 = vpop.permute.xlu1 %25121 }
 0xdb7   : > { %v25124_v20 = vunpack.i.h.bf16 %v25122_v48  ;;  %v25123_v30 = vunpack.i.l.bf16 %v25122_v48 }
 0xdb9   : > { %21374 = vmatmul.mubr.msk.f32.vlgmr.msra.gmra.mrb[36].mxu0 %vm5942_vm13, %v21362_v57 }
 0xdba   : > { %22860 = vmatpush3.bf16.msk.msra.mxu0 %vm27729_vm12, %v22855_v28  ;;  %19329 = vmatprep.mubr.f32.mxu0 %v30159_v52  ;;  %v19857_v28 = vsel %vm1590_vm8, %v25098_v17, %v25099_v26  ;;  %v25132_v45 = vpop.permute.xlu1 %25131 }
 0xdbb   : > { %22863 = vmatprep.subr.msk.bf16.mxu0 %vm27729_vm12, %v22861_v5  ;;  %v22885_v25 = vpack.c.bf16 %v19864_v50, %v19857_v28  ;;  %v19863_v5 = vsel %vm1590_vm8, %v25109_v44, %v25103_v21  ;;  %v25134_v46 = vunpack.i.h.bf16 %v25132_v45 }
 0xdbc   : > { %v22888_v12 = vpack.c.bf16 %v19863_v5, %v19856_v53 }
 0xdbd   : > { %21375 = vmatmul.mubr.msk.f32.gmra.mrb[38].mxu0 %vm5942_vm13, %v21363_v15  ;;  %v19869_v8 = vsel %vm1590_vm8, %v25129_v19, %v25134_v46  ;;  %v20299_v46 = vld [vmem:[%s30559_s9 + $0x8] sm:$0x3] }
 0xdbe   : > { %21933 = vmatprep.mubr.msk.f32.mxu0 %vm5942_vm13, %v21362_v57  ;;  %v19471_v57 = vsel %vm1350_vm6, %v25079_v59, %v25088_v63  ;;  %v19866_v59 = vsel %vm1590_vm8, %v25118_v27, %v25119_v24  ;;  %v19861_v63 = vsel %vm1590_vm8, %v25123_v30, %v25124_v20  ;;  %vm22910_vm6 = vmpackc.low %vm5949_vm10, %vm29730_vm5 }
 0xdbf   : > { %v22876_v37 = vpack.c.bf16 %v19471_v57, %v19464_v0  ;;  %v22891_v3 = vpack.c.bf16 %v19866_v59, %v19859_v35  ;;  %v22897_v62 = vpack.c.bf16 %v19868_v42, %v19861_v63  ;;  %v30446_v0 = vpop.permute.xlu1 %20235 }
 0xdc1   : > { %21934 = vmatmul.mubr.msk.f32.vlgmr.msra.gmra.mrb[40].mxu0 %vm5942_vm13, %v21363_v15  ;;  %v22879_v15 = vpack.c.bf16 %v19473_v23, %v19466_v61 }
 0xdc2   : > { %22866 = vmatpush1.bf16.msk.msra.mxu0 %vm27729_vm12, %v22864_v51  ;;  %19565 = vmatprep.mubr.f32.mxu0 %v30159_v52  ;;  %v22894_v51 = vpack.c.bf16 %v19865_v22, %v19858_v4 }
 0xdc3   : > { %22869 = vmatprep.subr.msk.bf16.mxu0 %vm27729_vm12, %v22867_v34  ;;  %v25133_v34 = vunpack.i.l.bf16 %v25132_v45  ;;  %v30454_v50 = vpop.permute.xlu1 %20262 }
 0xdc5   : > { %21383 = vmatmul.mubr.msk.f32.vlgmr.msra.gmra.mrb[28].mxu0 %vm5942_vm13, %v21379_v2 }
 0xdc6   : > { %22872 = vmatpush1.bf16.msk.msra.mxu0 %vm27729_vm12, %v22870_v16  ;;  %19571 = vmatprep.mubr.f32.mxu0 %v30159_v52  ;;  %v19862_v16 = vsel %vm1590_vm8, %v25124_v20, %v25133_v34 }
 0xdc7   : > { %22875 = vmatprep.subr.msk.bf16.mxu0 %vm27729_vm12, %v22873_v29  ;;  %v22903_v38 = vpack.c.bf16 %v19869_v8, %v19862_v16 }
 0xdc9   : > { %21384 = vmatmul.mubr.msk.f32.gmra.mrb[30].mxu0 %vm5942_vm13, %v21380_v31 }
 0xdca   : > { %19642 = vmatprep.mubr.f32.mxu0 %v30159_v52 }
 0xdcd   : > { %21387 = vmatmul.mubr.msk.f32.vlgmr.msra.gmra.mrb[32].mxu0 %vm5942_vm13, %v21379_v2 }
 0xdce   : > { %22878 = vmatpush1.bf16.msk.msra.mxu0 %vm27729_vm12, %v22876_v37  ;;  %19648 = vmatprep.mubr.f32.mxu0 %v30159_v52 }
 0xdcf   : > { %22881 = vmatprep.subr.msk.bf16.mxu0 %vm27729_vm12, %v22879_v15 }
 0xdd1   : > { %21388 = vmatmul.mubr.msk.f32.gmra.mrb[34].mxu0 %vm5942_vm13, %v21380_v31 }
 0xdd2   : > { %19719 = vmatprep.mubr.f32.mxu0 %v30159_v52 }
 0xdd5   : > { %21391 = vmatmul.mubr.msk.f32.vlgmr.msra.gmra.mrb[36].mxu0 %vm5942_vm13, %v21379_v2 }
 0xdd6   : > { %22884 = vmatpush3.bf16.msk.msra.mxu0 %vm27729_vm12, %v22879_v15  ;;  %19725 = vmatprep.mubr.f32.mxu0 %v30159_v52 }
 0xdd7   : > { %22887 = vmatprep.subr.msk.bf16.mxu0 %vm27729_vm12, %v22885_v25 }
 0xdd9   : > { %21392 = vmatmul.mubr.msk.f32.gmra.mrb[38].mxu0 %vm5942_vm13, %v21380_v31 }
 0xdda   : > { %21940 = vmatprep.mubr.msk.f32.mxu0 %vm5942_vm13, %v21379_v2  ;;  %v19860_v2 = vsel %vm1590_vm8, %v25114_v6, %v25123_v30  ;;  %vm22913_vm8 = vmpackc.low %vm5949_vm10, %vm29724_vm4  ;;  %v20298_v30 = vld [vmem:[%s30559_s9] sm:$0xff] }
 0xddb   : > { %v22900_v29 = vpack.c.bf16 %v19867_v14, %v19860_v2 }
 0xddd   : > { %21941 = vmatmul.mubr.msk.f32.vlgmr.msra.gmra.mrb[40].mxu0 %vm5942_vm13, %v21380_v31  ;;  %v30444_v31 = vpop.permute.xlu0 %20240 }
 0xdde   : > { %22890 = vmatpush1.bf16.msk.msra.mxu0 %vm27729_vm12, %v22888_v12  ;;  %19961 = vmatprep.mubr.f32.mxu0 %v30159_v52 }
 0xddf   : > { %22893 = vmatprep.subr.msk.bf16.mxu0 %vm27729_vm12, %v22891_v3 }
 0xde1   : > { %21400 = vmatmul.mubr.msk.f32.vlgmr.msra.gmra.mrb[28].mxu0 %vm5942_vm13, %v21396_v18  ;;  %v30451_v21 = vpop.permute.xlu0 %20267 }
 0xde2   : > { %22896 = vmatpush1.bf16.msk.msra.mxu0 %vm27729_vm12, %v22894_v51  ;;  %19967 = vmatprep.mubr.f32.mxu0 %v30159_v52 }
 0xde3   : > { %22899 = vmatprep.subr.msk.bf16.mxu0 %vm27729_vm12, %v22897_v62 }
 0xde5   : > { %21401 = vmatmul.mubr.msk.f32.gmra.mrb[30].mxu0 %vm5942_vm13, %v21397_v60 }
 0xde6   : > { %20038 = vmatprep.mubr.f32.mxu0 %v30159_v52 }
 0xde9   : > { %21404 = vmatmul.mubr.msk.f32.vlgmr.msra.gmra.mrb[32].mxu0 %vm5942_vm13, %v21396_v18 }
 0xdea   : > { %22902 = vmatpush1.bf16.msk.msra.mxu0 %vm27729_vm12, %v22900_v29  ;;  %20044 = vmatprep.mubr.f32.mxu0 %v30159_v52 }
 0xdeb   : > { %22905 = vmatprep.subr.msk.bf16.mxu0 %vm27729_vm12, %v22903_v38 }
 0xded   : > { %21405 = vmatmul.mubr.msk.f32.gmra.mrb[34].mxu0 %vm5942_vm13, %v21397_v60 }
 0xdee   : > { %20115 = vmatprep.mubr.f32.mxu0 %v30159_v52 }
 0xdf1   : > { %21408 = vmatmul.mubr.msk.f32.vlgmr.msra.gmra.mrb[36].mxu0 %vm5942_vm13, %v21396_v18 }
 0xdf2   : > { %22908 = vmatpush3.bf16.msk.msra.mxu0 %vm27729_vm12, %v22903_v38  ;;  %20121 = vmatprep.mubr.f32.mxu0 %v30159_v52  ;;  %vm22916_vm12 = vmpackc.low %vm5949_vm10, %vm29773_vm9 }
 0xdf5   : > { %21409 = vmatmul.mubr.msk.f32.gmra.mrb[38].mxu0 %vm5942_vm13, %v21397_v60 }
 0xdf6   : > { %21947 = vmatprep.mubr.msk.f32.mxu0 %vm5942_vm13, %v21396_v18 }
 0xdf9   : > { %21948 = vmatmul.mubr.msk.f32.vlgmr.msra.gmra.mrb[40].mxu0 %vm5942_vm13, %v21397_v60 }
 0xeb4   : > { %v19963_v39 = vpop.f32.mrb[28].mxu0 }
 0xeb5   : > { %v19965_v9 = vpop.f32.mrb[29].mxu0  ;;  %v20217_v57 = vmax.f32 %v19963_v39, 0.0 }
 0xeb6   : > { %v20218_v23 = vmax.f32 %v19965_v9, 0.0 }
 0xeb7   : > { %v20243_v32 = vmul.f32 %v30446_v0, %v20217_v57 }
 0xeb8   : > { %v19969_v61 = vpop.f32.mrb[30].mxu0  ;;  %v20244_v15 = vmul.f32 %v30446_v0, %v20218_v23 }
 0xeb9   : > { %v20224_v1 = vmax.f32 %v19969_v61, 0.0  ;;  %v19971_v55 = vpop.f32.mrb[31].mxu0  ;;  %v20270_v28 = vadd.f32 %v30454_v50, %v20243_v32 }
 0xeba   : > { %v20225_v37 = vmax.f32 %v19971_v55, 0.0  ;;  %v20271_v25 = vadd.f32 %v30454_v50, %v20244_v15 }
 0xebb   : > { %v20250_v47 = vmul.f32 %v30444_v31, %v20224_v1 }
 0xebc   : > { %v20251_v26 = vmul.f32 %v30444_v31, %v20225_v37  ;;  %v20040_v17 = vpop.f32.mrb[32].mxu0 }
 0xebd   : > { %v20277_v33 = vadd.f32 %v30451_v21, %v20250_v47  ;;  %v20042_v10 = vpop.f32.mrb[33].mxu0  ;;  %v20219_v7 = vmax.f32 %v20040_v17, 0.0 }
 0xebe   : > { %v20278_v44 = vadd.f32 %v30451_v21, %v20251_v26  ;;  %v20220_v27 = vmax.f32 %v20042_v10, 0.0 }
 0xebf   : > { %v20291_v24 = vsel %vm29724_vm4, %v20277_v33, 0.0  ;;  %v20245_v59 = vmul.f32 %v30446_v0, %v20219_v7  ;;  %vm22919_vm4 = vmpackc.low %vm5949_vm10, %vm29767_vm7 }
 0xec0   : > { %v22912_v6 = vpack.c.bf16 %v20291_v24, %v20270_v28  ;;  %v20292_v11 = vsel %vm29730_vm5, %v20278_v44, 0.0  ;;  %v20046_v36 = vpop.f32.mrb[34].mxu0  ;;  %v20246_v19 = vmul.f32 %v30446_v0, %v20220_v27  ;;  %vm22922_vm5 = vmpackc.low %vm5949_vm10, %vm29821_vm14 }
 0xec1   : > { %v20226_v48 = vmax.f32 %v20046_v36, 0.0  ;;  %v20048_v53 = vpop.f32.mrb[35].mxu0  ;;  %v22909_v5 = vpack.c.bf16 %v20292_v11, %v20271_v25  ;;  %v20272_v22 = vadd.f32 %v30454_v50, %v20245_v59 }
 0xec2   : > { %v20227_v35 = vmax.f32 %v20048_v53, 0.0  ;;  %v20273_v42 = vadd.f32 %v30454_v50, %v20246_v19 }
 0xec3   : > { %v20252_v43 = vmul.f32 %v30444_v31, %v20226_v48  ;;  %22911 = vmatprep.subr.msk.bf16.mxu1 %vm22910_vm6, %v22909_v5 }
 0xec4   : > { %v20253_v20 = vmul.f32 %v30444_v31, %v20227_v35  ;;  %v20117_v49 = vpop.f32.mrb[36].mxu0  ;;  %22914 = vmatpush1.bf16.msk.msra.mxu1 %vm22913_vm8, %v22912_v6 }
 0xec5   : > { %v20279_v41 = vadd.f32 %v30451_v21, %v20252_v43  ;;  %v20119_v12 = vpop.f32.mrb[37].mxu0  ;;  %v20221_v3 = vmax.f32 %v20117_v49, 0.0 }
 0xec6   : > { %v20280_v4 = vadd.f32 %v30451_v21, %v20253_v20  ;;  %v20222_v18 = vmax.f32 %v20119_v12, 0.0 }
 0xec7   : > { %v20293_v63 = vsel %vm29767_vm7, %v20279_v41, 0.0  ;;  %21419 = vmatmul.mubr.msk.f32.vlgmr.msra.gmra.mrb[50].mxu1 %vm5942_vm13, %v20298_v30  ;;  %v20247_v2 = vmul.f32 %v30446_v0, %v20221_v3  ;;  %vm22925_vm7 = vmpackc.low %vm5949_vm10, %vm29811_vm11 }
 0xec8   : > { %v22918_v45 = vpack.c.bf16 %v20293_v63, %v20272_v22  ;;  %v20294_v51 = vsel %vm29773_vm9, %v20280_v4, 0.0  ;;  %v20123_v62 = vpop.f32.mrb[38].mxu0  ;;  %20397 = vmatprep.mubr.f32.mxu1 %v30159_v52  ;;  %v20248_v16 = vmul.f32 %v30446_v0, %v20222_v18  ;;  %vm22928_vm9 = vmpackc.low %vm5949_vm10, %vm29863_vm15 }
 0xec9   : > { %v20228_v34 = vmax.f32 %v20123_v62, 0.0  ;;  %v20125_v60 = vpop.f32.mrb[39].mxu0  ;;  %v22915_v14 = vpack.c.bf16 %v20294_v51, %v20273_v42  ;;  %v20274_v57 = vadd.f32 %v30454_v50, %v20247_v2 }
 0xeca   : > { %v20229_v8 = vmax.f32 %v20125_v60, 0.0  ;;  %v20275_v1 = vadd.f32 %v30454_v50, %v20248_v16 }
 0xecb   : > { %v20254_v29 = vmul.f32 %v30444_v31, %v20228_v34  ;;  %21420 = vmatmul.mubr.msk.f32.gmra.mrb[52].mxu1 %vm5942_vm13, %v20299_v46  ;;  %22917 = vmatprep.subr.msk.bf16.mxu1 %vm22916_vm12, %v22915_v14 }
 0xecc   : > { %v20255_v56 = vmul.f32 %v30444_v31, %v20229_v8  ;;  %v21949_v38 = vpop.f32.mrb[40].mxu0  ;;  %22920 = vmatpush1.bf16.msk.msra.mxu1 %vm22919_vm4, %v22918_v45  ;;  %20468 = vmatprep.mubr.f32.mxu1 %v30159_v52 }
 0xecd   : > { %v20281_v40 = vadd.f32 %v30451_v21, %v20254_v29  ;;  %v20230_v39 = vmax.f32 %v21949_v38, 0.0  ;;  %v20194_v9 = vpop.f32.mrb[41].mxu0 }
 0xece   : > { %v20282_v23 = vadd.f32 %v30451_v21, %v20255_v56  ;;  %v20223_v61 = vmax.f32 %v20194_v9, 0.0 }
 0xecf   : > { %v20295_v55 = vsel %vm29811_vm11, %v20281_v40, 0.0  ;;  %v20256_v32 = vmul.f32 %v30444_v31, %v20230_v39  ;;  %21425 = vmatmul.mubr.msk.f32.vlgmr.msra.gmra.mrb[54].mxu1 %vm5942_vm13, %v20298_v30  ;;  %vm20686_vm11 = vcmask 1024  }
 0xed0   : > { %v22924_v37 = vpack.c.bf16 %v20295_v55, %v20274_v57  ;;  %v20296_v15 = vsel %vm29821_vm14, %v20282_v23, 0.0  ;;  %v20249_v47 = vmul.f32 %v30446_v0, %v20223_v61  ;;  %20474 = vmatprep.mubr.f32.mxu1 %v30159_v52 }
 0xed1   : > { %v20283_v26 = vadd.f32 %v30451_v21, %v20256_v32  ;;  %v22921_v17 = vpack.c.bf16 %v20296_v15, %v20275_v1 }
 0xed2   : > { %v20276_v31 = vadd.f32 %v30454_v50, %v20249_v47 }
 0xed3   : > { %v20297_v33 = vsel %vm29863_vm15, %v20283_v26, 0.0  ;;  %21426 = vmatmul.mubr.msk.f32.gmra.mrb[56].mxu1 %vm5942_vm13, %v20299_v46  ;;  %22923 = vmatprep.subr.msk.bf16.mxu1 %vm22922_vm5, %v22921_v17 }
 0xed4   : > { %v22927_v13 = vpack.c.bf16 %v20297_v33, %v20276_v31  ;;  %22926 = vmatpush1.bf16.msk.msra.mxu1 %vm22925_vm7, %v22924_v37  ;;  %20545 = vmatprep.mubr.f32.mxu1 %v30159_v52 }
 0xed6   : > { %22929 = vmatprep.subr.msk.bf16.mxu1 %vm22928_vm9, %v22927_v13 }
 0xed7   : > { %21431 = vmatmul.mubr.msk.f32.vlgmr.msra.gmra.mrb[58].mxu1 %vm5942_vm13, %v20298_v30 }
 0xed8   : > { %22932 = vmatpush3.bf16.msk.msra.mxu1 %vm22928_vm9, %v22927_v13  ;;  %20551 = vmatprep.mubr.f32.mxu1 %v30159_v52 }
 0xedb   : > { %21432 = vmatmul.mubr.msk.f32.gmra.mrb[60].mxu1 %vm5942_vm13, %v20299_v46 }
 0xedc   : > { %21954 = vmatprep.mubr.msk.f32.mxu1 %vm5942_vm13, %v20298_v30 }
 0xedf   : > { %21955 = vmatmul.mubr.msk.f32.vlgmr.msra.gmra.mrb[62].mxu1 %vm5942_vm13, %v20299_v46  ;;  %vm20684_vm13 = vcmask 7168  }
 0xf9a   : > { %v20393_v58 = vpop.f32.mrb[50].mxu1 }
 0xf9b   : > { %v20395_v54 = vpop.f32.mrb[51].mxu1 }
 0xf9c   : > { %v20633_v0 = vadd.f32 %v20395_v54, %v20393_v58 }
 0xf9e   : > { %v20399_v21 = vpop.f32.mrb[52].mxu1 }
 0xf9f   : > { %v20641_v50 = vsel %vm5949_vm10, %v20399_v21, 0.0  ;;  %v20401_v10 = vpop.f32.mrb[53].mxu1 }
 0xfa0   : > { %v20642_v28 = vsel %vm5949_vm10, %v20401_v10, 0.0 }
 0xfa1   : > { %v20643_v44 = vadd.f32 %v20642_v28, %v20641_v50 }
 0xfa2   : > { %v20470_v7 = vpop.f32.mrb[54].mxu1 }
 0xfa3   : > { %v20634_v25 = vadd.f32 %v20633_v0, %v20470_v7  ;;  %v20472_v24 = vpop.f32.mrb[55].mxu1 }
 0xfa5   : > { %v20635_v52 = vadd.f32 %v20634_v25, %v20472_v24 }
 0xfa6   : > { %v20476_v27 = vpop.f32.mrb[56].mxu1 }
 0xfa7   : > { %v20644_v6 = vsel %vm5949_vm10, %v20476_v27, 0.0  ;;  %v20478_v11 = vpop.f32.mrb[57].mxu1 }
 0xfa8   : > { %v20645_v36 = vadd.f32 %v20644_v6, %v20643_v44  ;;  %v20646_v48 = vsel %vm5949_vm10, %v20478_v11, 0.0 }
 0xfaa   : > { %v20647_v53 = vadd.f32 %v20646_v48, %v20645_v36  ;;  %v20547_v5 = vpop.f32.mrb[58].mxu1 }
 0xfab   : > { %v20636_v59 = vadd.f32 %v20635_v52, %v20547_v5  ;;  %v20549_v35 = vpop.f32.mrb[59].mxu1 }
 0xfad   : > { %v20637_v19 = vadd.f32 %v20636_v59, %v20549_v35 }
 0xfae   : > { %v20553_v43 = vpop.f32.mrb[60].mxu1 }
 0xfaf   : > { %v20648_v20 = vsel %vm5949_vm10, %v20553_v43, 0.0  ;;  %v20555_v49 = vpop.f32.mrb[61].mxu1 }
 0xfb0   : > { %v20649_v30 = vadd.f32 %v20648_v20, %v20647_v53  ;;  %v20650_v41 = vsel %vm5949_vm10, %v20555_v49, 0.0 }
 0xfb2   : > { %v20651_v12 = vadd.f32 %v20650_v41, %v20649_v30  ;;  %v21956_v22 = vpop.f32.mrb[62].mxu1 }
 0xfb3   : > { %v20652_v4 = vsel %vm5949_vm10, %v21956_v22, 0.0  ;;  %v20624_v3 = vpop.f32.mrb[63].mxu1 }
 0xfb4   : > { %v20653_v42 = vadd.f32 %v20652_v4, %v20651_v12  ;;  %v20638_v63 = vadd.f32 %v20637_v19, %v20624_v3 }
 0xfb6   : > { %20654 = vadd.xlane.f32.xlu0 %v20653_v42  ;;  %20639 = vadd.xlane.f32.xlu1 %v20638_v63 }
0x1043   : > { %v20655_v18 = vpop.xlane.xlu0 %20654  ;;  %v20640_v45 = vpop.xlane.xlu1 %20639 }
0x1044   : > { %v20657_v51 = vmul.f32 0.027777778, %v20655_v18  ;;  %v20656_v62 = vmul.f32 0.027777778, %v20640_v45 }
0x1046   : > { %v20658_v46 = vsel %vm5949_vm10, %v20657_v51, -inf }
0x1047   : > { %v20659_v34 = vmax.f32 %v20656_v62, %v20658_v46 }
0x1049   : > { %v20660_v60 = vrot.slane %v20659_v34, 4 }
0x104b   : > { %v20661_v14 = vmax.f32 %v20659_v34, %v20660_v60 }
0x104d   : > { %v20662_v2 = vrot.slane %v20661_v14, 2 }
0x104f   : > { %v20663_v8 = vmax.f32 %v20661_v14, %v20662_v2 }
0x1051   : > { %v20664_v16 = vrot.slane %v20663_v8, 1 }
0x1053   : > { %v20665_v29 = vmax.f32 %v20663_v8, %v20664_v16 }
0x1055   : > { %v20666_v56 = vsub.f32 %v20656_v62, %v20665_v29  ;;  %v20667_v38 = vsub.f32 %v20657_v51, %v20665_v29 }
0x1057   : > { %v20668_v40 = vmul.f32 1.442695, %v20666_v56  ;;  %v20670_v39 = vmul.f32 1.442695, %v20667_v38 }
0x1059   : > { %25135 = vpow2.f32 %v20668_v40 }
0x105a   : > { %25137 = vpow2.f32 %v20670_v39 }
0x1063   : > { %v25136_v9 = vpop.eup %25135 }
0x1064   : > { %v25138_v57 = vpop.eup %25137 }
0x1065   : > { %v20672_v23 = vsel %vm5949_vm10, %v25138_v57, 0.0 }
0x1066   : > { %v20673_v61 = vadd.f32 %v25136_v9, %v20672_v23 }
0x1068   : > { %v20674_v1 = vrot.slane %v20673_v61, 4 }
0x106a   : > { %v20675_v55 = vadd.f32 %v20674_v1, %v20673_v61 }
0x106c   : > { %v20676_v32 = vrot.slane %v20675_v55, 2 }
0x106e   : > { %v20677_v37 = vadd.f32 %v20676_v32, %v20675_v55 }
0x1070   : > { %v20678_v15 = vrot.slane %v20677_v37, 1 }
0x1072   : > { %v20679_v47 = vadd.f32 %v20678_v15, %v20677_v37 }
0x1074   : > { %25139 = vlog2.f32 %v20679_v47 }
0x107e   : > { %v25140_v26 = vpop.eup %25139 }
0x107f   : > { %v20681_v17 = vmul.f32 0.6931472, %v25140_v26 }
0x1081   : > { %v20682_v31 = vsub.f32 %v20666_v56, %v20681_v17  ;;  %v20683_v33 = vsub.f32 %v20667_v38, %v20681_v17 }
0x1083   : > { %20685 = vst.msk [vmem:[%s518_s28] sm:$0xff] %vm20684_vm13, %v20682_v31 }
0x1084   : > { %20687 = vst.msk [vmem:[%s518_s28 + $0x8] sm:$0x3] %vm20686_vm11, %v20683_v33 }
0x1085 PF: > { %s26_s21 = sadd.s32 1, %s25155_s21  }
0x1086   : > { %p23_p4 = scmp.ge.s32.totalorder %s26_s21, 4  }
0x1088   :  { %25 = sbr.rel (!%p23_p4) target bundleno = 2 (0x2), region = 169 }

</bundles_post_ra>
